<compile_context>
chip_gen: v7x
topology: tpu7x:2x2x1
jax: 0.10.0
libtpu: 0.0.40
codegen_flags: <defaults>
</compile_context>

<pallas_src>
import functools

import jax
import jax.numpy as jnp
import numpy as np
from jax.experimental import pallas as pl
from jax.experimental.pallas import tpu as pltpu

NC_PAD = 128  # lane-dense padded class dim; real classes live in [:num_classes]


# ---------------------------------------------------------------------------
# Kernels
# ---------------------------------------------------------------------------
def ensemble_fused_kernel(x_ref, wb_ref, bb_ref, w1_ref, b1_ref,
                          w2_ref, b2_ref, w3_ref, b3_ref, out_ref):
    """Single fused pass: all weights resident in VMEM, grid = (batch blocks,)."""
    # TODO(synk): real backbones are arbitrary conv models (classifier=Identity);
    # stubbed as one fused linear feature extractor (columns = origin|canny|sobel).
    h0 = jnp.maximum(
        jnp.dot(x_ref[...], wb_ref[...], preferred_element_type=jnp.float32)
        + bb_ref[...], 0.0)                                   # F.relu(torch.cat(...))
    h1 = jnp.maximum(
        jnp.dot(h0.astype(jnp.bfloat16), w1_ref[...],
                preferred_element_type=jnp.float32) + b1_ref[...], 0.0)
    h2 = jnp.maximum(
        jnp.dot(h1.astype(jnp.bfloat16), w2_ref[...],
                preferred_element_type=jnp.float32) + b2_ref[...], 0.0)
    logits = jnp.dot(h2.astype(jnp.bfloat16), w3_ref[...],
                     preferred_element_type=jnp.float32) + b3_ref[...]
    m = jnp.max(logits, axis=1, keepdims=True)
    e = jnp.exp(logits - m)                                   # padded cols -> exp(-1e30)=0
    out_ref[...] = e * pl.reciprocal(jnp.sum(e, axis=1, keepdims=True), approx=True)


def ensemble_ktiled_kernel(x_ref, wb_ref, bb_ref, w1_ref, b1_ref,
                           w2_ref, b2_ref, w3_ref, b3_ref, out_ref, acc_ref):
    """Fallback for large feature dims: grid = (batch blocks [parallel],
    fused-feature K blocks [reduction]) with an f32 VMEM accumulator."""
    k = pl.program_id(1)
    nk = pl.num_programs(1)

    @pl.when(k == 0)
    def _():
        acc_ref[...] = jnp.zeros_like(acc_ref)

    feat = jnp.dot(x_ref[...], wb_ref[...],
                   preferred_element_type=jnp.float32) + bb_ref[...]
    h0 = jnp.maximum(feat, 0.0)
    acc_ref[...] += jnp.dot(h0.astype(jnp.bfloat16), w1_ref[...],
                            preferred_element_type=jnp.float32)

    @pl.when(k == nk - 1)
    def _():
        h1 = jnp.maximum(acc_ref[...] + b1_ref[...], 0.0)
        h2 = jnp.maximum(
            jnp.dot(h1.astype(jnp.bfloat16), w2_ref[...],
                    preferred_element_type=jnp.float32) + b2_ref[...], 0.0)
        logits = jnp.dot(h2.astype(jnp.bfloat16), w3_ref[...],
                         preferred_element_type=jnp.float32) + b3_ref[...]
        m = jnp.max(logits, axis=1, keepdims=True)
        e = jnp.exp(logits - m)
        out_ref[...] = e * pl.reciprocal(jnp.sum(e, axis=1, keepdims=True),
                                         approx=True)


# ---------------------------------------------------------------------------
# Parameter fusion
# ---------------------------------------------------------------------------
def fuse_and_cast_params(params, num_classes):
    """Fuse the 3 backbone projections, pad the class head to 128 lanes, cast
    MXU weights to bf16 (biases stay f32)."""
    (wo, bo, wc, bc, ws, bs, w1, b1, w2, b2, w3, b3) = params
    wb = jnp.concatenate([wo, wc, ws], axis=1).astype(jnp.bfloat16)
    bb = jnp.concatenate([bo, bc, bs], axis=1).astype(jnp.float32)
    n2 = w3.shape[0]
    w3p = jnp.zeros((n2, NC_PAD), jnp.float32).at[:, :num_classes].set(w3)
    # NOTE: b3p must STAY f32 — casting -1e30 to bf16 would saturate to -inf.
    b3p = jnp.full((1, NC_PAD), -1e30, jnp.float32).at[:, :num_classes].set(b3)
    return (wb, bb,
            w1.astype(jnp.bfloat16), b1.astype(jnp.float32),
            w2.astype(jnp.bfloat16), b2.astype(jnp.float32),
            w3p.astype(jnp.bfloat16), b3p)


# ---------------------------------------------------------------------------
# Tiling heuristics
# ---------------------------------------------------------------------------
def _num_tensorcores_per_chip():
    try:
        kind = jax.devices()[0].device_kind.lower()
        if "v7" in kind:
            return 2
    except Exception:
        pass
    return 1


def _choose_tb(B):
    """Whole batch in one block on single-TC chips; two bf16-sublane-aligned
    'parallel' blocks on 2-TC chips (v7x) so both TensorCores get work."""
    if _num_tensorcores_per_chip() >= 2 and B % 2 == 0 and (B // 2) % 16 == 0:
        return B // 2
    return B


def _choose_tk(in_dim, f_total, n1, budget_bytes=24 << 20):
    """Cap tk so the double-buffered per-step weight blocks
    2 * tk * (in_dim + n1) * 2B stay under ~24 MiB (v7x has only 64 MiB VMEM)."""
    tk = f_total
    while tk > 128 and (f_total % tk != 0 or 4 * tk * (in_dim + n1) > budget_bytes):
        tk //= 2
    return max(tk, 128)


# ---------------------------------------------------------------------------
# Forward wrappers
# ---------------------------------------------------------------------------
@functools.partial(jax.jit, static_argnames=("num_classes", "tb"))
def ensemble_forward_fused(x, fused_params, num_classes, tb):
    wb, bb, w1, b1, w2, b2, w3p, b3p = fused_params
    B = x.shape[0]
    x_flat = x.reshape(B, -1).astype(jnp.bfloat16)     # torch .view(B,-1), bf16 for MXU
    in_dim = x_flat.shape[1]
    f_total = wb.shape[1]
    n1 = w1.shape[1]
    n2 = w2.shape[1]
    assert B % tb == 0

    grid = (B // tb,)
    in_specs = [
        pl.BlockSpec((tb, in_dim),      lambda b: (b, 0)),   # x (bf16)
        pl.BlockSpec((in_dim, f_total), lambda b: (0, 0)),   # fused backbone W
        pl.BlockSpec((1, f_total),      lambda b: (0, 0)),   # fused backbone bias
        pl.BlockSpec((f_total, n1),     lambda b: (0, 0)),   # W1
        pl.BlockSpec((1, n1),           lambda b: (0, 0)),   # b1
        pl.BlockSpec((n1, n2),          lambda b: (0, 0)),   # W2
        pl.BlockSpec((1, n2),           lambda b: (0, 0)),   # b2
        pl.BlockSpec((n2, NC_PAD),      lambda b: (0, 0)),   # W3 (padded)
        pl.BlockSpec((1, NC_PAD),       lambda b: (0, 0)),   # b3 (padded, f32)
    ]
    out_spec = pl.BlockSpec((tb, NC_PAD), lambda b: (b, 0))

    block_bytes = (
        tb * in_dim * 2 + in_dim * f_total * 2 + f_total * 4 +
        f_total * n1 * 2 + n1 * 4 + n1 * n2 * 2 + n2 * 4 +
        n2 * NC_PAD * 2 + NC_PAD * 4 + tb * NC_PAD * 4)
    vmem_limit = int(2 * block_bytes * 1.25) + (2 << 20)

    out_padded = pl.pallas_call(
        ensemble_fused_kernel,
        out_shape=jax.ShapeDtypeStruct((B, NC_PAD), jnp.float32),
        grid_spec=pltpu.PrefetchScalarGridSpec(
            num_scalar_prefetch=0,
            grid=grid,
            in_specs=in_specs,
            out_specs=out_spec,
        ),
        compiler_params=pltpu.CompilerParams(
            dimension_semantics=("parallel",),
            vmem_limit_bytes=vmem_limit,
        ),
    )(x_flat, wb, bb, w1, b1, w2, b2, w3p, b3p)
    return out_padded[:, :num_classes]


@functools.partial(jax.jit, static_argnames=("num_classes", "tb", "tk"))
def ensemble_forward_ktiled(x, fused_params, num_classes, tb, tk):
    wb, bb, w1, b1, w2, b2, w3p, b3p = fused_params
    B = x.shape[0]
    x_flat = x.reshape(B, -1).astype(jnp.bfloat16)
    in_dim = x_flat.shape[1]
    f_total = wb.shape[1]
    n1 = w1.shape[1]
    n2 = w2.shape[1]
    assert B % tb == 0 and f_total % tk == 0

    # TODO(synk): for large production B, reorder the grid so the batch axis is
    # innermost (k outer) with a resident weight tile, so wb/W1 stream from HBM
    # exactly once instead of B/tb times.
    grid = (B // tb, f_total // tk)

    # TODO(synk): the constant-index epilogue blocks (b1, W2, b2, W3, b3) waste
    # a double buffer each; pipeline_mode=pl.Buffered(1) (or a one-shot scratch
    # load) would reclaim that VMEM for a larger tk.
    in_specs = [
        pl.BlockSpec((tb, in_dim), lambda b, k: (b, 0)),     # x (reused across k)
        pl.BlockSpec((in_dim, tk), lambda b, k: (0, k)),     # fused backbone W (col-tiled)
        pl.BlockSpec((1, tk),      lambda b, k: (0, k)),     # fused backbone bias
        pl.BlockSpec((tk, n1),     lambda b, k: (k, 0)),     # W1 (contraction-tiled)
        pl.BlockSpec((1, n1),      lambda b, k: (0, 0)),     # b1
        pl.BlockSpec((n1, n2),     lambda b, k: (0, 0)),     # W2
        pl.BlockSpec((1, n2),      lambda b, k: (0, 0)),     # b2
        pl.BlockSpec((n2, NC_PAD), lambda b, k: (0, 0)),     # W3 (padded)
        pl.BlockSpec((1, NC_PAD),  lambda b, k: (0, 0)),     # b3 (padded, f32)
    ]
    out_spec = pl.BlockSpec((tb, NC_PAD), lambda b, k: (b, 0))

    block_bytes = (
        tb * in_dim * 2 + in_dim * tk * 2 + tk * 4 + tk * n1 * 2 + n1 * 4 +
        n1 * n2 * 2 + n2 * 4 + n2 * NC_PAD * 2 + NC_PAD * 4 + tb * NC_PAD * 4)
    vmem_limit = int(2 * block_bytes * 1.25) + tb * n1 * 4 + (2 << 20)

    out_padded = pl.pallas_call(
        ensemble_ktiled_kernel,
        out_shape=jax.ShapeDtypeStruct((B, NC_PAD), jnp.float32),
        grid_spec=pltpu.PrefetchScalarGridSpec(
            num_scalar_prefetch=0,
            grid=grid,
            in_specs=in_specs,
            out_specs=out_spec,
            scratch_shapes=[pltpu.VMEM((tb, n1), jnp.float32)],
        ),
        compiler_params=pltpu.CompilerParams(
            # NOTE: the k axis must stay "arbitrary" — the output is written
            # only at k == nk-1 and stays resident across the reduction.
            dimension_semantics=("parallel", "arbitrary"),
            vmem_limit_bytes=vmem_limit,
        ),
    )(x_flat, wb, bb, w1, b1, w2, b2, w3p, b3p)
    return out_padded[:, :num_classes]


def ensemble_forward(x, fused_params, num_classes=3, force_tk=None):
    """Dispatch: fully-fused single pass when all weights fit in VMEM on every
    TPU generation (v7x's 64 MiB is the tightest), otherwise K-tiled reduction."""
    wb, _, w1, _, w2, _, w3p, _ = fused_params
    in_dim, f_total = wb.shape
    n1 = w1.shape[1]
    n2 = w2.shape[1]
    B = x.shape[0]
    tb = _choose_tb(B)

    weight_bytes = (2 * (in_dim * f_total + f_total * n1 + n1 * n2 + n2 * NC_PAD)
                    + 4 * (f_total + n1 + n2 + NC_PAD))
    resident = 2 * (weight_bytes + 2 * tb * in_dim + 4 * tb * NC_PAD)
    if force_tk is None and resident < (40 << 20):
        return ensemble_forward_fused(x, fused_params, num_classes=num_classes, tb=tb)

    tk = force_tk if force_tk is not None else _choose_tk(in_dim, f_total, n1)
    return ensemble_forward_ktiled(x, fused_params, num_classes=num_classes,
                                   tb=tb, tk=tk)


# ---------------------------------------------------------------------------
# Pure-JAX reference and parameter construction
# ---------------------------------------------------------------------------
def reference_forward(x, fused_params, num_classes=3):
    wb, bb, w1, b1, w2, b2, w3p, b3p = fused_params
    B = x.shape[0]
    xf = x.reshape(B, -1).astype(jnp.bfloat16)
    h0 = jnp.maximum(jnp.dot(xf, wb, preferred_element_type=jnp.float32) + bb, 0.0)
    h1 = jnp.maximum(jnp.dot(h0.astype(jnp.bfloat16), w1,
                             preferred_element_type=jnp.float32) + b1, 0.0)
    h2 = jnp.maximum(jnp.dot(h1.astype(jnp.bfloat16), w2,
                             preferred_element_type=jnp.float32) + b2, 0.0)
    logits = jnp.dot(h2.astype(jnp.bfloat16), w3p,
                     preferred_element_type=jnp.float32) + b3p
    return jax.nn.softmax(logits, axis=1)[:, :num_classes]


def make_params(key, in_dim, f_origin, f_canny, f_sobel, h1, h2, num_classes):
    f_total = f_origin + f_canny + f_sobel
    del f_total
    ks = jax.random.split(key, 12)

    def lin(kw, kb, fan_in, fan_out):
        scale = 1.0 / np.sqrt(fan_in)
        w = jax.random.uniform(kw, (fan_in, fan_out), jnp.float32, -scale, scale)
        b = jax.random.uniform(kb, (1, fan_out), jnp.float32, -scale, scale)
        return w, b

    wo, bo = lin(ks[0], ks[1], in_dim, f_origin)
    wc, bc = lin(ks[2], ks[3], in_dim, f_canny)
    ws, bs = lin(ks[4], ks[5], in_dim, f_sobel)
    f_total = f_origin + f_canny + f_sobel
    w1, b1 = lin(ks[6], ks[7], f_total, h1)
    w2, b2 = lin(ks[8], ks[9], h1, h2)
    w3, b3 = lin(ks[10], ks[11], h2, num_classes)
    return (wo, bo, wc, bc, ws, bs, w1, b1, w2, b2, w3, b3)


if __name__ == "__main__":
    key = jax.random.PRNGKey(0)
    k_x, k_p = jax.random.split(key)

    # Small NCHW input.  B=32: one batch block on v5e/v6e (whole batch, weights
    # streamed once), two 16-row bf16-aligned 'parallel' blocks on v7x.
    B, C, H, W = 32, 4, 16, 16
    x = jax.random.normal(k_x, (B, C, H, W), jnp.float32)

    num_classes = 3
    params = make_params(
        k_p,
        in_dim=C * H * W,
        f_origin=256, f_canny=256, f_sobel=512,   # small analog of the real dims
        h1=1024, h2=512, num_classes=num_classes,
    )
    fused = fuse_and_cast_params(params, num_classes)

    ref = reference_forward(x, fused, num_classes=num_classes)

    # Primary path: fully fused single pass (weights resident in VMEM).
    out = jax.block_until_ready(ensemble_forward(x, fused, num_classes=num_classes))
    assert out.shape == (B, num_classes)
    np.testing.assert_allclose(np.asarray(out), np.asarray(ref), rtol=2e-3, atol=2e-3)
    np.testing.assert_allclose(np.asarray(out).sum(axis=1), np.ones(B),
                               rtol=2e-3, atol=2e-3)

    # Fallback path (K-tiled reduction for the real large-feature model).
    out_kt = jax.block_until_ready(
        ensemble_forward(x, fused, num_classes=num_classes, force_tk=256))
    np.testing.assert_allclose(np.asarray(out_kt), np.asarray(ref),
                               rtol=2e-3, atol=2e-3)

    print("KERNEL_OK")
</pallas_src>

<mosaic_0001>
module attributes {stable_mosaic.version = 11 : i64} {
  func.func @ensemble_fused_kernel(%arg0: i32, %arg1: memref<32x1024xbf16, #tpu.memory_space<vmem>>, %arg2: memref<1024x1024xbf16, #tpu.memory_space<vmem>>, %arg3: memref<1x1024xf32, #tpu.memory_space<vmem>>, %arg4: memref<1024x1024xbf16, #tpu.memory_space<vmem>>, %arg5: memref<1x1024xf32, #tpu.memory_space<vmem>>, %arg6: memref<1024x512xbf16, #tpu.memory_space<vmem>>, %arg7: memref<1x512xf32, #tpu.memory_space<vmem>>, %arg8: memref<512x128xbf16, #tpu.memory_space<vmem>>, %arg9: memref<1x128xf32, #tpu.memory_space<vmem>>, %arg10: memref<32x128xf32, #tpu.memory_space<vmem>>) attributes {dimension_semantics = [#tpu.dimension_semantics<parallel>], iteration_bounds = array<i64: 1>, scalar_prefetch = 0 : i64, scratch_operands = 0 : i64, tpu.core_type = #tpu.core_type<tc>, window_params = [{transform_indices = @transform_0, window_bounds = array<i64: 32, 1024>}, {pipeline_mode = #tpu.pipeline_mode<synchronous>, transform_indices = @transform_1, window_bounds = array<i64: 1024, 1024>}, {pipeline_mode = #tpu.pipeline_mode<synchronous>, transform_indices = @transform_2, window_bounds = array<i64: 1, 1024>}, {pipeline_mode = #tpu.pipeline_mode<synchronous>, transform_indices = @transform_3, window_bounds = array<i64: 1024, 1024>}, {pipeline_mode = #tpu.pipeline_mode<synchronous>, transform_indices = @transform_4, window_bounds = array<i64: 1, 1024>}, {pipeline_mode = #tpu.pipeline_mode<synchronous>, transform_indices = @transform_5, window_bounds = array<i64: 1024, 512>}, {pipeline_mode = #tpu.pipeline_mode<synchronous>, transform_indices = @transform_6, window_bounds = array<i64: 1, 512>}, {pipeline_mode = #tpu.pipeline_mode<synchronous>, transform_indices = @transform_7, window_bounds = array<i64: 512, 128>}, {pipeline_mode = #tpu.pipeline_mode<synchronous>, transform_indices = @transform_8, window_bounds = array<i64: 1, 128>}, {transform_indices = @transform_9, window_bounds = array<i64: 32, 128>}]} {
    %c0 = arith.constant 0 : index
    %c0_0 = arith.constant 0 : index
    %0 = vector.load %arg1[%c0, %c0_0] : memref<32x1024xbf16, #tpu.memory_space<vmem>>, vector<32x1024xbf16>
    %c0_1 = arith.constant 0 : index
    %c0_2 = arith.constant 0 : index
    %1 = vector.load %arg2[%c0_1, %c0_2] : memref<1024x1024xbf16, #tpu.memory_space<vmem>>, vector<1024x1024xbf16>
    %cst = arith.constant dense<0.000000e+00> : vector<32x1024xf32>
    %2 = tpu.matmul %0, %1, %cst {dimension_numbers = #tpu.dot_dimension_numbers<[1], [0], [0], [1], [0, 0, 1, 1], [], []>} : vector<32x1024xbf16>, vector<1024x1024xbf16>, vector<32x1024xf32> -> vector<32x1024xf32>
    %c0_3 = arith.constant 0 : index
    %c0_4 = arith.constant 0 : index
    %3 = vector.load %arg3[%c0_3, %c0_4] : memref<1x1024xf32, #tpu.memory_space<vmem>>, vector<1x1024xf32>
    %4 = vector.broadcast %3 : vector<1x1024xf32> to vector<32x1024xf32>
    %5 = arith.addf %2, %4 : vector<32x1024xf32>
    %cst_5 = arith.constant 0.000000e+00 : f32
    %6 = vector.broadcast %cst_5 : f32 to vector<32x1024xf32>
    %7 = arith.maximumf %5, %6 : vector<32x1024xf32>
    %8 = arith.truncf %7 : vector<32x1024xf32> to vector<32x1024xbf16>
    %c0_6 = arith.constant 0 : index
    %c0_7 = arith.constant 0 : index
    %9 = vector.load %arg4[%c0_6, %c0_7] : memref<1024x1024xbf16, #tpu.memory_space<vmem>>, vector<1024x1024xbf16>
    %cst_8 = arith.constant dense<0.000000e+00> : vector<32x1024xf32>
    %10 = tpu.matmul %8, %9, %cst_8 {dimension_numbers = #tpu.dot_dimension_numbers<[1], [0], [0], [1], [0, 0, 1, 1], [], []>} : vector<32x1024xbf16>, vector<1024x1024xbf16>, vector<32x1024xf32> -> vector<32x1024xf32>
    %c0_9 = arith.constant 0 : index
    %c0_10 = arith.constant 0 : index
    %11 = vector.load %arg5[%c0_9, %c0_10] : memref<1x1024xf32, #tpu.memory_space<vmem>>, vector<1x1024xf32>
    %12 = vector.broadcast %11 : vector<1x1024xf32> to vector<32x1024xf32>
    %13 = arith.addf %10, %12 : vector<32x1024xf32>
    %cst_11 = arith.constant 0.000000e+00 : f32
    %14 = vector.broadcast %cst_11 : f32 to vector<32x1024xf32>
    %15 = arith.maximumf %13, %14 : vector<32x1024xf32>
    %16 = arith.truncf %15 : vector<32x1024xf32> to vector<32x1024xbf16>
    %c0_12 = arith.constant 0 : index
    %c0_13 = arith.constant 0 : index
    %17 = vector.load %arg6[%c0_12, %c0_13] : memref<1024x512xbf16, #tpu.memory_space<vmem>>, vector<1024x512xbf16>
    %cst_14 = arith.constant dense<0.000000e+00> : vector<32x512xf32>
    %18 = tpu.matmul %16, %17, %cst_14 {dimension_numbers = #tpu.dot_dimension_numbers<[1], [0], [0], [1], [0, 0, 1, 1], [], []>} : vector<32x1024xbf16>, vector<1024x512xbf16>, vector<32x512xf32> -> vector<32x512xf32>
    %c0_15 = arith.constant 0 : index
    %c0_16 = arith.constant 0 : index
    %19 = vector.load %arg7[%c0_15, %c0_16] : memref<1x512xf32, #tpu.memory_space<vmem>>, vector<1x512xf32>
    %20 = vector.broadcast %19 : vector<1x512xf32> to vector<32x512xf32>
    %21 = arith.addf %18, %20 : vector<32x512xf32>
    %cst_17 = arith.constant 0.000000e+00 : f32
    %22 = vector.broadcast %cst_17 : f32 to vector<32x512xf32>
    %23 = arith.maximumf %21, %22 : vector<32x512xf32>
    %24 = arith.truncf %23 : vector<32x512xf32> to vector<32x512xbf16>
    %c0_18 = arith.constant 0 : index
    %c0_19 = arith.constant 0 : index
    %25 = vector.load %arg8[%c0_18, %c0_19] : memref<512x128xbf16, #tpu.memory_space<vmem>>, vector<512x128xbf16>
    %cst_20 = arith.constant dense<0.000000e+00> : vector<32x128xf32>
    %26 = tpu.matmul %24, %25, %cst_20 {dimension_numbers = #tpu.dot_dimension_numbers<[1], [0], [0], [1], [0, 0, 1, 1], [], []>} : vector<32x512xbf16>, vector<512x128xbf16>, vector<32x128xf32> -> vector<32x128xf32>
    %c0_21 = arith.constant 0 : index
    %c0_22 = arith.constant 0 : index
    %27 = vector.load %arg9[%c0_21, %c0_22] : memref<1x128xf32, #tpu.memory_space<vmem>>, vector<1x128xf32>
    %28 = vector.broadcast %27 : vector<1x128xf32> to vector<32x128xf32>
    %29 = arith.addf %26, %28 : vector<32x128xf32>
    %cst_23 = arith.constant dense<0xFF800000> : vector<32xf32>
    %30 = vector.multi_reduction <maximumf>, %29, %cst_23 [1] : vector<32x128xf32> to vector<32xf32>
    %31 = vector.shape_cast %30 : vector<32xf32> to vector<32x1xf32>
    %32 = vector.broadcast %31 : vector<32x1xf32> to vector<32x128xf32>
    %33 = arith.subf %29, %32 : vector<32x128xf32>
    %34 = math.exp %33 : vector<32x128xf32>
    %cst_24 = arith.constant dense<0.000000e+00> : vector<32xf32>
    %35 = vector.multi_reduction <add>, %34, %cst_24 [1] : vector<32x128xf32> to vector<32xf32>
    %36 = vector.shape_cast %35 : vector<32xf32> to vector<32x1xf32>
    %37 = tpu.reciprocal %36 {approx = true} : vector<32x1xf32> -> vector<32x1xf32>
    %38 = vector.broadcast %37 : vector<32x1xf32> to vector<32x128xf32>
    %39 = arith.mulf %34, %38 : vector<32x128xf32>
    %c0_25 = arith.constant 0 : index
    %c0_26 = arith.constant 0 : index
    %40 = vector.load %arg10[%c0_25, %c0_26] : memref<32x128xf32, #tpu.memory_space<vmem>>, vector<32x128xf32>
    tpu.vector_store %arg10[%c0_25, %c0_26], %39 {strides = array<i32>} : memref<32x128xf32, #tpu.memory_space<vmem>>, vector<32x128xf32>,
    return
  }
  func.func @transform_0(%arg0: i32) -> (i32, i32) {
    %c0_i32 = arith.constant 0 : i32
    %c0_i32_0 = arith.constant 0 : i32
    return %arg0, %c0_i32 : i32, i32
  }
  func.func @transform_1(%arg0: i32) -> (i32, i32) {
    %c0_i32 = arith.constant 0 : i32
    %c0_i32_0 = arith.constant 0 : i32
    %c0_i32_1 = arith.constant 0 : i32
    return %c0_i32, %c0_i32_0 : i32, i32
  }
  func.func @transform_2(%arg0: i32) -> (i32, i32) {
    %c0_i32 = arith.constant 0 : i32
    %c0_i32_0 = arith.constant 0 : i32
    %c0_i32_1 = arith.constant 0 : i32
    return %c0_i32, %c0_i32_0 : i32, i32
  }
  func.func @transform_3(%arg0: i32) -> (i32, i32) {
    %c0_i32 = arith.constant 0 : i32
    %c0_i32_0 = arith.constant 0 : i32
    %c0_i32_1 = arith.constant 0 : i32
    return %c0_i32, %c0_i32_0 : i32, i32
  }
  func.func @transform_4(%arg0: i32) -> (i32, i32) {
    %c0_i32 = arith.constant 0 : i32
    %c0_i32_0 = arith.constant 0 : i32
    %c0_i32_1 = arith.constant 0 : i32
    return %c0_i32, %c0_i32_0 : i32, i32
  }
  func.func @transform_5(%arg0: i32) -> (i32, i32) {
    %c0_i32 = arith.constant 0 : i32
    %c0_i32_0 = arith.constant 0 : i32
    %c0_i32_1 = arith.constant 0 : i32
    return %c0_i32, %c0_i32_0 : i32, i32
  }
  func.func @transform_6(%arg0: i32) -> (i32, i32) {
    %c0_i32 = arith.constant 0 : i32
    %c0_i32_0 = arith.constant 0 : i32
    %c0_i32_1 = arith.constant 0 : i32
    return %c0_i32, %c0_i32_0 : i32, i32
  }
  func.func @transform_7(%arg0: i32) -> (i32, i32) {
    %c0_i32 = arith.constant 0 : i32
    %c0_i32_0 = arith.constant 0 : i32
    %c0_i32_1 = arith.constant 0 : i32
    return %c0_i32, %c0_i32_0 : i32, i32
  }
  func.func @transform_8(%arg0: i32) -> (i32, i32) {
    %c0_i32 = arith.constant 0 : i32
    %c0_i32_0 = arith.constant 0 : i32
    %c0_i32_1 = arith.constant 0 : i32
    return %c0_i32, %c0_i32_0 : i32, i32
  }
  func.func @transform_9(%arg0: i32) -> (i32, i32) {
    %c0_i32 = arith.constant 0 : i32
    %c0_i32_0 = arith.constant 0 : i32
    return %arg0, %c0_i32 : i32, i32
  }
}

</mosaic_0001>

<bundles_post_ra>
// kernel: ensemble_forward_fused.1
= control target key start
LH: loop header
LB: loop body
LE: loop exit
PB: predicated region body
PF: predicated region fallthrough
CT: control target
= control target key end

     0   :  { %14 = vsyncpa [#allocation3], 0  ;;  %s13663_s0 = inlined_call_operand.vmem [shape: bf16[32,1024], index: 0, kind: input, shape index: {}]   ;;  %s13664_s1 = inlined_call_operand.hbm [shape: bf16[1024,1024], index: 1, kind: input, shape index: {}]   ;;  %s13665_s2 = inlined_call_operand.hbm [shape: f32[1,1024], index: 2, kind: input, shape index: {}]   ;;  %s13666_s3 = inlined_call_operand.hbm [shape: bf16[1024,1024], index: 3, kind: input, shape index: {}]   ;;  %s13667_s4 = inlined_call_operand.hbm [shape: f32[1,1024], index: 4, kind: input, shape index: {}]   ;;  %s13668_s5 = inlined_call_operand.hbm [shape: bf16[1024,512], index: 5, kind: input, shape index: {}]   ;;  %s13669_s6 = inlined_call_operand.hbm [shape: f32[1,512], index: 6, kind: input, shape index: {}]   ;;  %s13670_s7 = inlined_call_operand.hbm [shape: bf16[512,128], index: 7, kind: input, shape index: {}]   ;;  %s13671_s8 = inlined_call_operand.hbm [shape: f32[1,128], index: 8, kind: input, shape index: {}]   ;;  %s13672_s9 = inlined_call_operand.vmem [shape: f32[32,128], index: 9, kind: output, shape index: {}]  }
   0x1   :  { %15 = vsyncpa [#allocation5], 0 }
   0x2   :  { %16 = vsyncpa [#allocation8], 0 }
   0x3   :  { %17 = vsyncpa [#allocation11], 0 }
   0x4   :  { %18 = vsyncpa [#allocation14], 0  ;;  %s13005_s30 = smov [#allocation4]   ;;  %s13006_s11 = smov [#allocation7]  }
   0x5   :  { %s39_s10 = sshll.u32 %s13005_s30, 4  ;;  %s61_s12 = sshll.u32 %s13006_s11, 4  ;;  %s40_s10 = int_to_ptr.vmem [resolvable:$true] %s39_s10  ;;  %s62_s12 = int_to_ptr.vmem [resolvable:$true] %s61_s12 }
   0x6   :  { %s12819_s15 = scalar_lea.hbm %s13665_s2, 128 }
   0x7   :  { %p12820_p0 = scmp.ne.s32.totalorder %s13665_s2, %s12819_s15  ;;  %p12823_p1 = scmp.lt.u32.totalorder %s12819_s15, %s13665_s2 }
   0x9   :  { %p12825_p2 = pnand %p12823_p1, %p12820_p0 }
   0xb   :  { %12828 = shalt.err (!%p12825_p2)
}
   0xc   :  { %s12829_s20 = scalar_lea.vmem %s40_s10, 128  ;;  %p12834_p4 = scmp.lt.s32.totalorder %s40_s10, %s40_s10 }
   0xd   :  { %p12830_p3 = scmp.ne.s32.totalorder %s40_s10, %s12829_s20  ;;  %p12835_p5 = scmp.lt.s32.totalorder %s12829_s20, %s12829_s20 }
   0xf   :  { %p12836_p6 = por %p12835_p5, %p12834_p4 }
  0x11   :  { %p12837_p7 = pnand %p12836_p6, %p12830_p3 }
  0x13   :  { %12840 = shalt.err (!%p12837_p7)
}
  0x14   :  { %42 = dma.hbm_to_vmem [thread:$0]  %s13665_s2, 128, %s40_s10, [#allocation5]  }
  0x15   :  { %s12841_s25 = scalar_lea.hbm %s13667_s4, 128 }
  0x16   :  { %p12842_p8 = scmp.ne.s32.totalorder %s13667_s4, %s12841_s25  ;;  %p12845_p9 = scmp.lt.u32.totalorder %s12841_s25, %s13667_s4 }
  0x18   :  { %p12847_p10 = pnand %p12845_p9, %p12842_p8 }
  0x1a   :  { %12850 = shalt.err (!%p12847_p10)
}
  0x1b   :  { %s12851_s30 = scalar_lea.vmem %s62_s12, 128  ;;  %p12856_p12 = scmp.lt.s32.totalorder %s62_s12, %s62_s12 }
  0x1c   :  { %p12852_p11 = scmp.ne.s32.totalorder %s62_s12, %s12851_s30  ;;  %p12857_p13 = scmp.lt.s32.totalorder %s12851_s30, %s12851_s30 }
  0x1e   :  { %p12858_p0 = por %p12857_p13, %p12856_p12 }
  0x20   :  { %p12859_p1 = pnand %p12858_p0, %p12852_p11 }
  0x22   :  { %12862 = shalt.err (!%p12859_p1)
}
  0x23   :  { %64 = dma.hbm_to_vmem [thread:$0]  %s13667_s4, 128, %s62_s12, [#allocation8]  }
  0x24   :  { %s13007_s11 = smov [#allocation10]   ;;  %s13008_s14 = smov [#allocation2]  }
  0x25   :  { %s83_s13 = sshll.u32 %s13007_s11, 4  ;;  %s26_s15 = sshll.u32 %s13008_s14, 4  ;;  %s84_s13 = int_to_ptr.vmem [resolvable:$true] %s83_s13  ;;  %s13093_s15 = int_to_ptr.vmem [resolvable:$true] %s26_s15 }
  0x26   :  { %s12863_s18 = scalar_lea.hbm %s13669_s6, 64 }
  0x27   :  { %p12864_p2 = scmp.ne.s32.totalorder %s13669_s6, %s12863_s18  ;;  %p12867_p3 = scmp.lt.u32.totalorder %s12863_s18, %s13669_s6 }
  0x29   :  { %p12869_p4 = pnand %p12867_p3, %p12864_p2 }
  0x2b   :  { %12872 = shalt.err (!%p12869_p4)
}
  0x2c   :  { %s12873_s4 = scalar_lea.vmem %s84_s13, 64  ;;  %p12878_p6 = scmp.lt.s32.totalorder %s84_s13, %s84_s13 }
  0x2d   :  { %p12874_p5 = scmp.ne.s32.totalorder %s84_s13, %s12873_s4  ;;  %p12879_p7 = scmp.lt.s32.totalorder %s12873_s4, %s12873_s4 }
  0x2f   :  { %p12880_p8 = por %p12879_p7, %p12878_p6 }
  0x31   :  { %p12881_p9 = pnand %p12880_p8, %p12874_p5 }
  0x33   :  { %12884 = shalt.err (!%p12881_p9)
}
  0x34   :  { %86 = dma.hbm_to_vmem [thread:$0]  %s13669_s6, 64, %s84_s13, [#allocation11]  }
  0x35   :  { %s12885_s26 = scalar_lea.hbm %s13664_s1, 65536 }
  0x36   :  { %p12886_p10 = scmp.ne.s32.totalorder %s13664_s1, %s12885_s26  ;;  %p12889_p11 = scmp.lt.u32.totalorder %s12885_s26, %s13664_s1 }
  0x38   :  { %p12891_p12 = pnand %p12889_p11, %p12886_p10 }
  0x3a   :  { %12894 = shalt.err (!%p12891_p12)
}
  0x3b   :  { %s12895_s2 = scalar_lea.vmem %s13093_s15, 65536  ;;  %p12900_p0 = scmp.lt.s32.totalorder %s13093_s15, %s13093_s15 }
  0x3c   :  { %p12896_p13 = scmp.ne.s32.totalorder %s13093_s15, %s12895_s2  ;;  %p12901_p1 = scmp.lt.s32.totalorder %s12895_s2, %s12895_s2 }
  0x3e   :  { %p12902_p2 = por %p12901_p1, %p12900_p0 }
  0x40   :  { %p12903_p3 = pnand %p12902_p2, %p12896_p13 }
  0x42   :  { %12906 = shalt.err (!%p12903_p3)
}
  0x43   :  { %s13009_s6 = smov 512   ;;  %s13010_s10 = smov 32  }
  0x44   :  { %32 = dma.hbm_to_vmem [thread:$0]  %s13664_s1, 65536, %s13093_s15, [#allocation3], %s13009_s6, %s13009_s6, %s13010_s10  }
  0x45   :  { %s13011_s14 = smov [#allocation6]   ;;  %s13012_s17 = smov [#allocation9]  }
  0x46   :  { %s48_s16 = sshll.u32 %s13011_s14, 4  ;;  %s70_s18 = sshll.u32 %s13012_s17, 4  ;;  %s49_s16 = int_to_ptr.vmem [resolvable:$true] %s48_s16  ;;  %s13124_s18 = int_to_ptr.vmem [resolvable:$true] %s70_s18 }
  0x47   :  { %s12907_s21 = scalar_lea.hbm %s13666_s3, 65536 }
  0x48   :  { %p12908_p4 = scmp.ne.s32.totalorder %s13666_s3, %s12907_s21  ;;  %p12911_p5 = scmp.lt.u32.totalorder %s12907_s21, %s13666_s3 }
  0x4a   :  { %p12913_p6 = pnand %p12911_p5, %p12908_p4 }
  0x4c   :  { %12916 = shalt.err (!%p12913_p6)
}
  0x4d   :  { %s12917_s1 = scalar_lea.vmem %s49_s16, 65536  ;;  %p12922_p8 = scmp.lt.s32.totalorder %s49_s16, %s49_s16 }
  0x4e   :  { %p12918_p7 = scmp.ne.s32.totalorder %s49_s16, %s12917_s1  ;;  %p12923_p9 = scmp.lt.s32.totalorder %s12917_s1, %s12917_s1 }
  0x50   :  { %p12924_p10 = por %p12923_p9, %p12922_p8 }
  0x52   :  { %p12925_p11 = pnand %p12924_p10, %p12918_p7 }
  0x54   :  { %12928 = shalt.err (!%p12925_p11)
}
  0x55   :  { %54 = dma.hbm_to_vmem [thread:$0]  %s13666_s3, 65536, %s49_s16, [#allocation5], %s13009_s6, %s13009_s6, %s13010_s10  }
  0x56   :  { %s12929_s27 = scalar_lea.hbm %s13668_s5, 32768 }
  0x57   :  { %p12930_p12 = scmp.ne.s32.totalorder %s13668_s5, %s12929_s27  ;;  %p12933_p13 = scmp.lt.u32.totalorder %s12929_s27, %s13668_s5 }
  0x59   :  { %p12935_p0 = pnand %p12933_p13, %p12930_p12 }
  0x5b   :  { %12938 = shalt.err (!%p12935_p0)
}
  0x5c   :  { %s12939_s11 = scalar_lea.vmem %s13124_s18, 32768  ;;  %p12944_p2 = scmp.lt.s32.totalorder %s13124_s18, %s13124_s18 }
  0x5d   :  { %p12940_p1 = scmp.ne.s32.totalorder %s13124_s18, %s12939_s11  ;;  %p12945_p3 = scmp.lt.s32.totalorder %s12939_s11, %s12939_s11 }
  0x5f   :  { %p12946_p4 = por %p12945_p3, %p12944_p2 }
  0x61   :  { %p12947_p5 = pnand %p12946_p4, %p12940_p1 }
  0x63   :  { %12950 = shalt.err (!%p12947_p5)
}
  0x64   :  { %s13013_s3 = smov 256   ;;  %s13014_s6 = smov 16  }
  0x65   :  { %76 = dma.hbm_to_vmem [thread:$0]  %s13668_s5, 32768, %s13124_s18, [#allocation8], %s13013_s3, %s13013_s3, %s13014_s6  }
  0x66   :  { %s13015_s14 = smov [#allocation12]   ;;  %s12951_s20 = scalar_lea.hbm %s13670_s7, 4096 }
  0x67   :  { %s92_s16 = sshll.u32 %s13015_s14, 4  ;;  %p12952_p6 = scmp.ne.s32.totalorder %s13670_s7, %s12951_s20  ;;  %s93_s16 = int_to_ptr.vmem [resolvable:$true] %s92_s16 }
  0x68   :  { %p12955_p7 = scmp.lt.u32.totalorder %s12951_s20, %s13670_s7 }
  0x6a   :  { %p12957_p8 = pnand %p12955_p7, %p12952_p6 }
  0x6c   :  { %12960 = shalt.err (!%p12957_p8)
}
  0x6d   :  { %s12961_s23 = scalar_lea.vmem %s93_s16, 4096  ;;  %p12966_p10 = scmp.lt.s32.totalorder %s93_s16, %s93_s16 }
  0x6e   :  { %p12962_p9 = scmp.ne.s32.totalorder %s93_s16, %s12961_s23  ;;  %p12967_p11 = scmp.lt.s32.totalorder %s12961_s23, %s12961_s23 }
  0x70   :  { %p12968_p12 = por %p12967_p11, %p12966_p10 }
  0x72   :  { %p12969_p13 = pnand %p12968_p12, %p12962_p9 }
  0x74   :  { %12972 = shalt.err (!%p12969_p13)
}
  0x75   :  { %s13016_s5 = smov 64   ;;  %s13017_s18 = smov 4  }
  0x76   :  { %98 = dma.hbm_to_vmem [thread:$0]  %s13670_s7, 4096, %s93_s16, [#allocation11], %s13016_s5, %s13016_s5, %s13017_s18  }
  0x77   :  { %s13018_s24 = smov [#allocation13]   ;;  %s12973_s28 = scalar_lea.hbm %s13671_s8, 16 }
  0x78   :  { %s105_s25 = sshll.u32 %s13018_s24, 4  ;;  %p12974_p0 = scmp.ne.s32.totalorder %s13671_s8, %s12973_s28  ;;  %s106_s25 = int_to_ptr.vmem [resolvable:$true] %s105_s25 }
  0x79   :  { %p12977_p1 = scmp.lt.u32.totalorder %s12973_s28, %s13671_s8 }
  0x7b   :  { %p12979_p2 = pnand %p12977_p1, %p12974_p0 }
  0x7d   :  { %12982 = shalt.err (!%p12979_p2)
}
  0x7e   :  { %s12983_s3 = scalar_lea.vmem %s106_s25, 16  ;;  %s12987_s7 = scalar_lea.vmem %s106_s25, 32 }
  0x7f   :  { %p12984_p3 = scmp.ne.s32.totalorder %s106_s25, %s12983_s3  ;;  %p12988_p4 = scmp.lt.s32.totalorder %s106_s25, %s106_s25 }
  0x80   :  { %p12989_p5 = scmp.lt.s32.totalorder %s12987_s7, %s12983_s3 }
  0x82   :  { %p12990_p6 = por %p12989_p5, %p12988_p4 }
  0x84   :  { %p12991_p7 = pnand %p12990_p6, %p12984_p3 }
  0x86   :  { %12994 = shalt.err (!%p12991_p7)
}
  0x87   :  { %108 = dma.hbm_to_vmem [thread:$0]  %s13671_s8, 16, %s106_s25, [#allocation14]  }
  0x88   :  { %12995 = dma.done.wait [#allocation3], 65536  }
  0x89   :  { %12996 = vsyncadd [#allocation3], 4294901760 }
  0x8a   :  { %12997 = dma.done.wait [#allocation5], 65664  }
  0x8b   :  { %12998 = vsyncadd [#allocation5], 4294901632 }
  0x8c   :  { %12999 = dma.done.wait [#allocation8], 32896  }
  0x8d   :  { %13000 = vsyncadd [#allocation8], 4294934400 }
  0x8e   :  { %13001 = dma.done.wait [#allocation11], 4160  }
  0x8f   :  { %13002 = vsyncadd [#allocation11], 4294963136 }
  0x90   :  { %13003 = dma.done.wait [#allocation14], 16  }
  0x91   :  { %13004 = vsyncadd [#allocation14], 4294967280  ;;  %v150_v0 = vld [vmem:[#allocation2] sm:$0xff]  ;;  %v151_v2 = vld [vmem:[#allocation2 + $0x8] sm:$0xff] }
  0x92   :  { %v154_v1 = vld [vmem:[#allocation2 + $0x20] sm:$0xff]  ;;  %v155_v4 = vld [vmem:[#allocation2 + $0x28] sm:$0xff] }
  0x93   :  { %v10683_v3 = vcombine.high %v150_v0, %v154_v1  ;;  %v10682_v5 = vcombine.low %v150_v0, %v154_v1  ;;  %v158_v6 = vld [vmem:[#allocation2 + $0x40] sm:$0xff]  ;;  %v10685_v8 = vcombine.high %v151_v2, %v155_v4  ;;  %v10684_v9 = vcombine.low %v151_v2, %v155_v4  ;;  %v159_v11 = vld [vmem:[#allocation2 + $0x48] sm:$0xff] }
  0x94   :  { %v162_v7 = vld [vmem:[#allocation2 + $0x60] sm:$0xff]  ;;  %v163_v12 = vld [vmem:[#allocation2 + $0x68] sm:$0xff] }
  0x95   :  { %v10691_v10 = vcombine.high %v158_v6, %v162_v7  ;;  %v166_v13 = vld [vmem:[#allocation2 + $0x80] sm:$0xff]  ;;  %3344 = vmatprep.subr.bf16.mxu0 %v10683_v3  ;;  %v10693_v14 = vcombine.high %v159_v11, %v163_v12  ;;  %v167_v16 = vld [vmem:[#allocation2 + $0x88] sm:$0xff]  ;;  %3556 = vmatprep.subr.bf16.mxu1 %v10685_v8  ;;  %v10690_v18 = vcombine.low %v158_v6, %v162_v7 }
  0x96   :  { %v170_v15 = vld [vmem:[#allocation2 + $0xa0] sm:$0xff]  ;;  %v171_v17 = vld [vmem:[#allocation2 + $0xa8] sm:$0xff]  ;;  %3345 = vmatpush1.bf16.msra.mxu0 %v10682_v5  ;;  %3557 = vmatpush1.bf16.msra.mxu1 %v10684_v9  ;;  %v10692_v19 = vcombine.low %v159_v11, %v163_v12 }
  0x97   :  { %3346 = vmatprep.subr.bf16.mxu0 %v10691_v10  ;;  %v10699_v20 = vcombine.high %v166_v13, %v170_v15  ;;  %3558 = vmatprep.subr.bf16.mxu1 %v10693_v14  ;;  %v10701_v21 = vcombine.high %v167_v16, %v171_v17  ;;  %v174_v22 = vld [vmem:[#allocation2 + $0xc0] sm:$0xff]  ;;  %v175_v24 = vld [vmem:[#allocation2 + $0xc8] sm:$0xff]  ;;  %v10698_v26 = vcombine.low %v166_v13, %v170_v15 }
  0x98   :  { %v178_v23 = vld [vmem:[#allocation2 + $0xe0] sm:$0xff]  ;;  %v179_v25 = vld [vmem:[#allocation2 + $0xe8] sm:$0xff]  ;;  %v10700_v27 = vcombine.low %v167_v16, %v171_v17 }
  0x99   :  { %v10707_v28 = vcombine.high %v174_v22, %v178_v23  ;;  %v10709_v29 = vcombine.high %v175_v24, %v179_v25  ;;  %v182_v30 = vld [vmem:[#allocation2 + $0x100] sm:$0xff]  ;;  %v183_v32 = vld [vmem:[#allocation2 + $0x108] sm:$0xff]  ;;  %v10706_v34 = vcombine.low %v174_v22, %v178_v23  ;;  %v10708_v35 = vcombine.low %v175_v24, %v179_v25 }
  0x9a   :  { %3347 = vmatpush1.bf16.msra.mxu0 %v10690_v18  ;;  %3559 = vmatpush1.bf16.msra.mxu1 %v10692_v19  ;;  %v186_v31 = vld [vmem:[#allocation2 + $0x120] sm:$0xff]  ;;  %v187_v33 = vld [vmem:[#allocation2 + $0x128] sm:$0xff] }
  0x9b   :  { %3348 = vmatprep.subr.bf16.mxu0 %v10699_v20  ;;  %3560 = vmatprep.subr.bf16.mxu1 %v10701_v21  ;;  %v10715_v36 = vcombine.high %v182_v30, %v186_v31  ;;  %v10717_v37 = vcombine.high %v183_v32, %v187_v33  ;;  %v190_v38 = vld [vmem:[#allocation2 + $0x140] sm:$0xff]  ;;  %v191_v40 = vld [vmem:[#allocation2 + $0x148] sm:$0xff]  ;;  %v10714_v42 = vcombine.low %v182_v30, %v186_v31 }
  0x9c   :  { %v194_v39 = vld [vmem:[#allocation2 + $0x160] sm:$0xff]  ;;  %v195_v41 = vld [vmem:[#allocation2 + $0x168] sm:$0xff]  ;;  %v10716_v43 = vcombine.low %v183_v32, %v187_v33 }
  0x9d   :  { %v10723_v44 = vcombine.high %v190_v38, %v194_v39  ;;  %v10725_v45 = vcombine.high %v191_v40, %v195_v41  ;;  %v198_v46 = vld [vmem:[#allocation2 + $0x180] sm:$0xff]  ;;  %v199_v48 = vld [vmem:[#allocation2 + $0x188] sm:$0xff]  ;;  %v10722_v50 = vcombine.low %v190_v38, %v194_v39  ;;  %v10724_v51 = vcombine.low %v191_v40, %v195_v41 }
  0x9e   :  { %3349 = vmatpush1.bf16.msra.mxu0 %v10698_v26  ;;  %3561 = vmatpush1.bf16.msra.mxu1 %v10700_v27  ;;  %v202_v47 = vld [vmem:[#allocation2 + $0x1a0] sm:$0xff]  ;;  %v203_v49 = vld [vmem:[#allocation2 + $0x1a8] sm:$0xff] }
  0x9f   :  { %3350 = vmatprep.subr.bf16.mxu0 %v10707_v28  ;;  %3562 = vmatprep.subr.bf16.mxu1 %v10709_v29  ;;  %v10731_v52 = vcombine.high %v198_v46, %v202_v47  ;;  %v13182_v53 = vld [vmem:[%s13663_s0] sm:$0xff]  ;;  %v10733_v55 = vcombine.high %v199_v48, %v203_v49  ;;  %v207_v59 = vld [vmem:[#allocation2 + $0x1c8] sm:$0xff]  ;;  %v10730_v61 = vcombine.low %v198_v46, %v202_v47 }
  0xa0   :  { %v13187_v54 = vld [vmem:[%s13663_s0 + $0x20] sm:$0xff]  ;;  %v211_v60 = vld [vmem:[#allocation2 + $0x1e8] sm:$0xff]  ;;  %v10732_v62 = vcombine.low %v199_v48, %v203_v49 }
  0xa1   :  { %v206_v56 = vld [vmem:[#allocation2 + $0x1c0] sm:$0xff]  ;;  %v13191_v58 = vcombine.high %v13182_v53, %v13187_v54  ;;  %v10741_v0 = vcombine.high %v207_v59, %v211_v60  ;;  %v215_v3 = vld [vmem:[#allocation2 + $0x208] sm:$0xff]  ;;  %v10740_v6 = vcombine.low %v207_v59, %v211_v60 }
  0xa2   :  { %3351 = vmatpush1.bf16.msra.mxu0 %v10706_v34  ;;  %3563 = vmatpush1.bf16.msra.mxu1 %v10708_v35  ;;  %v210_v57 = vld [vmem:[#allocation2 + $0x1e0] sm:$0xff]  ;;  %v219_v4 = vld [vmem:[#allocation2 + $0x228] sm:$0xff] }
  0xa3   :  { %3352 = vmatprep.subr.bf16.mxu0 %v10715_v36  ;;  %3564 = vmatprep.subr.bf16.mxu1 %v10717_v37  ;;  %v10739_v63 = vcombine.high %v206_v56, %v210_v57  ;;  %v214_v1 = vld [vmem:[#allocation2 + $0x200] sm:$0xff]  ;;  %v10738_v5 = vcombine.low %v206_v56, %v210_v57  ;;  %v10749_v8 = vcombine.high %v215_v3, %v219_v4  ;;  %v223_v11 = vld [vmem:[#allocation2 + $0x248] sm:$0xff] }
  0xa4   :  { %3376 = vmatprep.mubr.bf16.mxu0 %v13191_v58  ;;  %v218_v2 = vld [vmem:[#allocation2 + $0x220] sm:$0xff]  ;;  %3588 = vmatprep.mubr.bf16.mxu1 %v13191_v58  ;;  %v227_v12 = vld [vmem:[#allocation2 + $0x268] sm:$0xff]  ;;  %v10748_v14 = vcombine.low %v215_v3, %v219_v4 }
  0xa5   :  { %v10747_v7 = vcombine.high %v214_v1, %v218_v2  ;;  %v222_v9 = vld [vmem:[#allocation2 + $0x240] sm:$0xff]  ;;  %v10746_v13 = vcombine.low %v214_v1, %v218_v2  ;;  %v10757_v16 = vcombine.high %v223_v11, %v227_v12  ;;  %v231_v19 = vld [vmem:[#allocation2 + $0x288] sm:$0xff]  ;;  %v10756_v22 = vcombine.low %v223_v11, %v227_v12 }
  0xa6   :  { %3353 = vmatpush1.bf16.msra.mxu0 %v10714_v42  ;;  %3565 = vmatpush1.bf16.msra.mxu1 %v10716_v43  ;;  %v226_v10 = vld [vmem:[#allocation2 + $0x260] sm:$0xff]  ;;  %v235_v20 = vld [vmem:[#allocation2 + $0x2a8] sm:$0xff] }
  0xa7   :  { %3354 = vmatprep.subr.bf16.mxu0 %v10723_v44  ;;  %3566 = vmatprep.subr.bf16.mxu1 %v10725_v45  ;;  %v10755_v15 = vcombine.high %v222_v9, %v226_v10  ;;  %v230_v17 = vld [vmem:[#allocation2 + $0x280] sm:$0xff]  ;;  %v10754_v21 = vcombine.low %v222_v9, %v226_v10  ;;  %v10765_v24 = vcombine.high %v231_v19, %v235_v20  ;;  %v239_v27 = vld [vmem:[#allocation2 + $0x2c8] sm:$0xff] }
  0xa8   :  { %v234_v18 = vld [vmem:[#allocation2 + $0x2a0] sm:$0xff]  ;;  %v243_v28 = vld [vmem:[#allocation2 + $0x2e8] sm:$0xff]  ;;  %v10764_v30 = vcombine.low %v231_v19, %v235_v20 }
  0xa9   :  { %v10763_v23 = vcombine.high %v230_v17, %v234_v18  ;;  %v238_v25 = vld [vmem:[#allocation2 + $0x2c0] sm:$0xff]  ;;  %v10762_v29 = vcombine.low %v230_v17, %v234_v18  ;;  %v10773_v32 = vcombine.high %v239_v27, %v243_v28  ;;  %v247_v35 = vld [vmem:[#allocation2 + $0x308] sm:$0xff]  ;;  %v10772_v38 = vcombine.low %v239_v27, %v243_v28 }
  0xaa   :  { %3355 = vmatpush1.bf16.msra.mxu0 %v10722_v50  ;;  %3567 = vmatpush1.bf16.msra.mxu1 %v10724_v51  ;;  %v242_v26 = vld [vmem:[#allocation2 + $0x2e0] sm:$0xff]  ;;  %v251_v36 = vld [vmem:[#allocation2 + $0x328] sm:$0xff] }
  0xab   :  { %3356 = vmatprep.subr.bf16.mxu0 %v10731_v52  ;;  %3568 = vmatprep.subr.bf16.mxu1 %v10733_v55  ;;  %v10771_v31 = vcombine.high %v238_v25, %v242_v26  ;;  %v246_v33 = vld [vmem:[#allocation2 + $0x300] sm:$0xff]  ;;  %v10770_v37 = vcombine.low %v238_v25, %v242_v26  ;;  %v10781_v40 = vcombine.high %v247_v35, %v251_v36  ;;  %v255_v43 = vld [vmem:[#allocation2 + $0x348] sm:$0xff] }
  0xac   :  { %v250_v34 = vld [vmem:[#allocation2 + $0x320] sm:$0xff]  ;;  %v259_v44 = vld [vmem:[#allocation2 + $0x368] sm:$0xff]  ;;  %v10780_v46 = vcombine.low %v247_v35, %v251_v36 }
  0xad   :  { %v10779_v39 = vcombine.high %v246_v33, %v250_v34  ;;  %v254_v41 = vld [vmem:[#allocation2 + $0x340] sm:$0xff]  ;;  %v10778_v45 = vcombine.low %v246_v33, %v250_v34  ;;  %v10789_v48 = vcombine.high %v255_v43, %v259_v44  ;;  %v263_v51 = vld [vmem:[#allocation2 + $0x388] sm:$0xff]  ;;  %v10788_v56 = vcombine.low %v255_v43, %v259_v44 }
  0xae   :  { %3357 = vmatpush1.bf16.msra.mxu0 %v10730_v61  ;;  %3569 = vmatpush1.bf16.msra.mxu1 %v10732_v62  ;;  %v258_v42 = vld [vmem:[#allocation2 + $0x360] sm:$0xff]  ;;  %v267_v52 = vld [vmem:[#allocation2 + $0x3a8] sm:$0xff] }
  0xaf   :  { %3358 = vmatprep.subr.bf16.mxu0 %v10739_v63  ;;  %3570 = vmatprep.subr.bf16.mxu1 %v10741_v0  ;;  %v10787_v47 = vcombine.high %v254_v41, %v258_v42  ;;  %v262_v49 = vld [vmem:[#allocation2 + $0x380] sm:$0xff]  ;;  %v10786_v55 = vcombine.low %v254_v41, %v258_v42  ;;  %v10797_v59 = vcombine.high %v263_v51, %v267_v52  ;;  %v271_v62 = vld [vmem:[#allocation2 + $0x3c8] sm:$0xff] }
  0xb0   :  { %v266_v50 = vld [vmem:[#allocation2 + $0x3a0] sm:$0xff]  ;;  %v275_v63 = vld [vmem:[#allocation2 + $0x3e8] sm:$0xff]  ;;  %v10796_v1 = vcombine.low %v263_v51, %v267_v52 }
  0xb1   :  { %v10795_v57 = vcombine.high %v262_v49, %v266_v50  ;;  %v270_v60 = vld [vmem:[#allocation2 + $0x3c0] sm:$0xff]  ;;  %v10794_v0 = vcombine.low %v262_v49, %v266_v50  ;;  %v10805_v3 = vcombine.high %v271_v62, %v275_v63  ;;  %v10804_v9 = vcombine.low %v271_v62, %v275_v63  ;;  %v299_v25 = vld [vmem:[#allocation2 + $0x4a8] sm:$0xff] }
  0xb2   :  { %3359 = vmatpush1.bf16.msra.mxu0 %v10738_v5  ;;  %3571 = vmatpush1.bf16.msra.mxu1 %v10740_v6  ;;  %v274_v61 = vld [vmem:[#allocation2 + $0x3e0] sm:$0xff]  ;;  %v279_v6 = vld [vmem:[#allocation2 + $0x408] sm:$0xff] }
  0xb3   :  { %3360 = vmatprep.subr.bf16.mxu0 %v10747_v7  ;;  %3572 = vmatprep.subr.bf16.mxu1 %v10749_v8  ;;  %v10803_v2 = vcombine.high %v270_v60, %v274_v61  ;;  %v278_v4 = vld [vmem:[#allocation2 + $0x400] sm:$0xff]  ;;  %v283_v7 = vld [vmem:[#allocation2 + $0x428] sm:$0xff]  ;;  %v10802_v8 = vcombine.low %v270_v60, %v274_v61 }
  0xb4   :  { %v282_v5 = vld [vmem:[#allocation2 + $0x420] sm:$0xff]  ;;  %v10813_v11 = vcombine.high %v279_v6, %v283_v7  ;;  %v10812_v20 = vcombine.low %v279_v6, %v283_v7  ;;  %v13212_v33 = vld [vmem:[%s13663_s0 + $0x8] sm:$0xff] }
  0xb5   :  { %v10811_v10 = vcombine.high %v278_v4, %v282_v5  ;;  %v286_v12 = vld [vmem:[#allocation2 + $0x440] sm:$0xff]  ;;  %v10810_v19 = vcombine.low %v278_v4, %v282_v5  ;;  %v13218_v35 = vld [vmem:[%s13663_s0 + $0x28] sm:$0xff] }
  0xb6   :  { %3361 = vmatpush1.bf16.msra.mxu0 %v10746_v13  ;;  %3573 = vmatpush1.bf16.msra.mxu1 %v10748_v14  ;;  %v290_v13 = vld [vmem:[#allocation2 + $0x460] sm:$0xff]  ;;  %v287_v14 = vld [vmem:[#allocation2 + $0x448] sm:$0xff] }
  0xb7   :  { %3362 = vmatprep.subr.bf16.mxu0 %v10755_v15  ;;  %3574 = vmatprep.subr.bf16.mxu1 %v10757_v16  ;;  %v13197_v15 = vcombine.low %v13182_v53, %v13187_v54  ;;  %v291_v16 = vld [vmem:[#allocation2 + $0x468] sm:$0xff]  ;;  %v142_v17 = vld [vmem:[%s13663_s0 + $0x40] sm:$0xff]  ;;  %v10818_v26 = vcombine.low %v286_v12, %v290_v13 }
  0xb8   :  { %v146_v18 = vld [vmem:[%s13663_s0 + $0x60] sm:$0xff]  ;;  %v311_v42 = vld [vmem:[#allocation2 + $0x508] sm:$0xff] }
  0xb9   :  { %v298_v53 = vld [vmem:[#allocation2 + $0x4a0] sm:$0xff]  ;;  %v13205_v54 = vcombine.high %v142_v17, %v146_v18  ;;  %v13221_v36 = vcombine.low %v142_v17, %v146_v18  ;;  %v315_v44 = vld [vmem:[#allocation2 + $0x528] sm:$0xff] }
  0xba   :  { %3363 = vmatpush1.bf16.msra.mxu0 %v10754_v21  ;;  %3575 = vmatpush1.bf16.msra.mxu1 %v10756_v22  ;;  %v10819_v21 = vcombine.high %v286_v12, %v290_v13  ;;  %v10821_v22 = vcombine.high %v287_v14, %v291_v16  ;;  %v302_v27 = vld [vmem:[#allocation2 + $0x4c0] sm:$0xff]  ;;  %v319_v51 = vld [vmem:[#allocation2 + $0x548] sm:$0xff]  ;;  %v10845_v52 = vcombine.high %v311_v42, %v315_v44 }
  0xbb   :  { %3364 = vmatprep.subr.bf16.mxu0 %v10763_v23  ;;  %3576 = vmatprep.subr.bf16.mxu1 %v10765_v24  ;;  %v294_v23 = vld [vmem:[#allocation2 + $0x480] sm:$0xff]  ;;  %v295_v24 = vld [vmem:[#allocation2 + $0x488] sm:$0xff] }
  0xbc   :  { %v306_v28 = vld [vmem:[#allocation2 + $0x4e0] sm:$0xff]  ;;  %v10829_v34 = vcombine.high %v295_v24, %v299_v25  ;;  %v327_v62 = vld [vmem:[#allocation2 + $0x588] sm:$0xff] }
  0xbd   :  { %v314_v41 = vld [vmem:[#allocation2 + $0x520] sm:$0xff]  ;;  %v335_v6 = vld [vmem:[#allocation2 + $0x5c8] sm:$0xff] }
  0xbe   :  { %3365 = vmatpush1.bf16.msra.mxu0 %v10762_v29  ;;  %3577 = vmatpush1.bf16.msra.mxu1 %v10764_v30  ;;  %v10820_v29 = vcombine.low %v287_v14, %v291_v16  ;;  %v10827_v30 = vcombine.high %v294_v23, %v298_v53  ;;  %v318_v49 = vld [vmem:[#allocation2 + $0x540] sm:$0xff]  ;;  %v343_v14 = vld [vmem:[#allocation2 + $0x608] sm:$0xff] }
  0xbf   :  { %3366 = vmatprep.subr.bf16.mxu0 %v10771_v31  ;;  %3578 = vmatprep.subr.bf16.mxu1 %v10773_v32  ;;  %v303_v31 = vld [vmem:[#allocation2 + $0x4c8] sm:$0xff]  ;;  %v322_v50 = vld [vmem:[#allocation2 + $0x560] sm:$0xff] }
  0xc0   :  { %v307_v32 = vld [vmem:[#allocation2 + $0x4e8] sm:$0xff]  ;;  %v326_v60 = vld [vmem:[#allocation2 + $0x580] sm:$0xff] }
  0xc1   :  { %v10837_v43 = vcombine.high %v303_v31, %v307_v32  ;;  %v330_v61 = vld [vmem:[#allocation2 + $0x5a0] sm:$0xff]  ;;  %v347_v17 = vld [vmem:[#allocation2 + $0x628] sm:$0xff] }
  0xc2   :  { %3367 = vmatpush1.bf16.msra.mxu0 %v10770_v37  ;;  %3579 = vmatpush1.bf16.msra.mxu1 %v10772_v38  ;;  %v10826_v37 = vcombine.low %v294_v23, %v298_v53  ;;  %v10828_v38 = vcombine.low %v295_v24, %v299_v25  ;;  %v334_v4 = vld [vmem:[#allocation2 + $0x5c0] sm:$0xff]  ;;  %v351_v23 = vld [vmem:[#allocation2 + $0x648] sm:$0xff]  ;;  %v10877_v53 = vcombine.high %v343_v14, %v347_v17 }
  0xc3   :  { %3368 = vmatprep.subr.bf16.mxu0 %v10779_v39  ;;  %3580 = vmatprep.subr.bf16.mxu1 %v10781_v40  ;;  %v10835_v39 = vcombine.high %v302_v27, %v306_v28  ;;  %v310_v40 = vld [vmem:[#allocation2 + $0x500] sm:$0xff]  ;;  %v355_v24 = vld [vmem:[#allocation2 + $0x668] sm:$0xff] }
  0xc4   :  { %v338_v5 = vld [vmem:[#allocation2 + $0x5e0] sm:$0xff] }
  0xc5   :  { %v342_v12 = vld [vmem:[#allocation2 + $0x600] sm:$0xff]  ;;  %v10866_v18 = vcombine.low %v334_v4, %v338_v5 }
  0xc6   :  { %3369 = vmatpush1.bf16.msra.mxu0 %v10778_v45  ;;  %3581 = vmatpush1.bf16.msra.mxu1 %v10780_v46  ;;  %v13225_v45 = vcombine.high %v13212_v33, %v13218_v35  ;;  %v10834_v46 = vcombine.low %v302_v27, %v306_v28  ;;  %v346_v13 = vld [vmem:[#allocation2 + $0x620] sm:$0xff] }
  0xc7   :  { %3370 = vmatprep.subr.bf16.mxu0 %v10787_v47  ;;  %3582 = vmatprep.subr.bf16.mxu1 %v10789_v48  ;;  %v10836_v47 = vcombine.low %v303_v31, %v307_v32  ;;  %v10843_v48 = vcombine.high %v310_v40, %v314_v41  ;;  %v10874_v25 = vcombine.low %v342_v12, %v346_v13  ;;  %v358_v28 = vld [vmem:[#allocation2 + $0x680] sm:$0xff]  ;;  %v363_v32 = vld [vmem:[#allocation2 + $0x6a8] sm:$0xff] }
  0xc8   :  { %v10885_v31 = vcombine.high %v351_v23, %v355_v24 }
  0xca   :  { %3371 = vmatpush1.bf16.msra.mxu0 %v10786_v55  ;;  %3583 = vmatpush1.bf16.msra.mxu1 %v10788_v56  ;;  %v323_v55 = vld [vmem:[#allocation2 + $0x568] sm:$0xff]  ;;  %v10842_v56 = vcombine.low %v310_v40, %v314_v41  ;;  %v370_v40 = vld [vmem:[#allocation2 + $0x6e0] sm:$0xff] }
  0xcb   :  { %3372 = vmatprep.subr.bf16.mxu0 %v10795_v57  ;;  %3584 = vmatprep.subr.bf16.mxu1 %v10797_v59  ;;  %v10844_v57 = vcombine.low %v311_v42, %v315_v44  ;;  %v10851_v59 = vcombine.high %v318_v49, %v322_v50  ;;  %v10853_v63 = vcombine.high %v319_v51, %v323_v55  ;;  %v367_v41 = vld [vmem:[#allocation2 + $0x6c8] sm:$0xff] }
  0xce   :  { %3373 = vmatpush1.bf16.msra.mxu0 %v10794_v0  ;;  %3585 = vmatpush1.bf16.msra.mxu1 %v10796_v1  ;;  %v331_v0 = vld [vmem:[#allocation2 + $0x5a8] sm:$0xff]  ;;  %v10850_v1 = vcombine.low %v318_v49, %v322_v50  ;;  %v378_v49 = vld [vmem:[#allocation2 + $0x720] sm:$0xff] }
  0xcf   :  { %3374 = vmatprep.subr.bf16.mxu0 %v10803_v2  ;;  %3586 = vmatprep.subr.bf16.mxu1 %v10805_v3  ;;  %v10852_v2 = vcombine.low %v319_v51, %v323_v55  ;;  %v10859_v3 = vcombine.high %v326_v60, %v330_v61  ;;  %v10861_v7 = vcombine.high %v327_v62, %v331_v0  ;;  %v375_v50 = vld [vmem:[#allocation2 + $0x708] sm:$0xff] }
  0xd2   :  { %3375 = vmatpush1.bf16.msra.mxu0 %v10802_v8  ;;  %3587 = vmatpush1.bf16.msra.mxu1 %v10804_v9  ;;  %v339_v8 = vld [vmem:[#allocation2 + $0x5e8] sm:$0xff]  ;;  %v10858_v9 = vcombine.low %v326_v60, %v330_v61  ;;  %v386_v60 = vld [vmem:[#allocation2 + $0x760] sm:$0xff] }
  0xd3   :  { %3397 = vmatprep.subr.bf16.mxu0 %v10811_v10  ;;  %3609 = vmatprep.subr.bf16.mxu1 %v10813_v11  ;;  %v10860_v10 = vcombine.low %v327_v62, %v331_v0  ;;  %v10867_v11 = vcombine.high %v334_v4, %v338_v5  ;;  %v10869_v16 = vcombine.high %v335_v6, %v339_v8  ;;  %v383_v61 = vld [vmem:[#allocation2 + $0x748] sm:$0xff]  ;;  %v394_v4 = vld [vmem:[#allocation2 + $0x7a0] sm:$0xff] }
  0xd4   :  { %v391_v5 = vld [vmem:[#allocation2 + $0x788] sm:$0xff] }
  0xd5   :  { %3377 = vmatmul.mubr.bf16.vlgmr.msra.gmra.mrb[0].mxu0 %v13197_v15  ;;  %3589 = vmatmul.mubr.bf16.vlgmr.msra.gmra.mrb[0].mxu1 %v13197_v15 }
  0xd6   :  { %3398 = vmatpush1.bf16.msra.mxu0 %v10810_v19  ;;  %3610 = vmatpush1.bf16.msra.mxu1 %v10812_v20  ;;  %v10868_v19 = vcombine.low %v335_v6, %v339_v8  ;;  %v10875_v20 = vcombine.high %v342_v12, %v346_v13  ;;  %v402_v12 = vld [vmem:[#allocation2 + $0x7e0] sm:$0xff]  ;;  %v399_v13 = vld [vmem:[#allocation2 + $0x7c8] sm:$0xff] }
  0xd7   :  { %3399 = vmatprep.subr.bf16.mxu0 %v10819_v21  ;;  %3611 = vmatprep.subr.bf16.mxu1 %v10821_v22  ;;  %v350_v21 = vld [vmem:[#allocation2 + $0x640] sm:$0xff] }
  0xd8   :  { %3386 = vmatprep.mubr.bf16.mxu0 %v13205_v54  ;;  %3598 = vmatprep.mubr.bf16.mxu1 %v13205_v54  ;;  %v354_v22 = vld [vmem:[#allocation2 + $0x660] sm:$0xff] }
  0xd9   :  { %v10883_v27 = vcombine.high %v350_v21, %v354_v22 }
  0xda   :  { %3400 = vmatpush1.bf16.msra.mxu0 %v10818_v26  ;;  %3612 = vmatpush1.bf16.msra.mxu1 %v10820_v29  ;;  %v10876_v26 = vcombine.low %v343_v14, %v347_v17  ;;  %v362_v29 = vld [vmem:[#allocation2 + $0x6a0] sm:$0xff] }
  0xdb   :  { %3401 = vmatprep.subr.bf16.mxu0 %v10827_v30  ;;  %3613 = vmatprep.subr.bf16.mxu1 %v10829_v34  ;;  %v359_v30 = vld [vmem:[#allocation2 + $0x688] sm:$0xff]  ;;  %v10882_v34 = vcombine.low %v350_v21, %v354_v22  ;;  %v10890_v44 = vcombine.low %v358_v28, %v362_v29  ;;  %v410_v21 = vld [vmem:[#allocation2 + $0x820] sm:$0xff] }
  0xdc   :  { %v10893_v42 = vcombine.high %v359_v30, %v363_v32  ;;  %v407_v22 = vld [vmem:[#allocation2 + $0x808] sm:$0xff] }
  0xdd   :  { %3387 = vmatmul.mubr.bf16.gmra.mrb[4].mxu0 %v13221_v36  ;;  %3599 = vmatmul.mubr.bf16.gmra.mrb[4].mxu1 %v13221_v36 }
  0xde   :  { %3402 = vmatpush1.bf16.msra.mxu0 %v10826_v37  ;;  %3614 = vmatpush1.bf16.msra.mxu1 %v10828_v38  ;;  %v10884_v37 = vcombine.low %v351_v23, %v355_v24  ;;  %v10891_v38 = vcombine.high %v358_v28, %v362_v29  ;;  %v415_v29 = vld [vmem:[#allocation2 + $0x848] sm:$0xff] }
  0xdf   :  { %3403 = vmatprep.subr.bf16.mxu0 %v10835_v39  ;;  %3615 = vmatprep.subr.bf16.mxu1 %v10837_v43  ;;  %v366_v39 = vld [vmem:[#allocation2 + $0x6c0] sm:$0xff]  ;;  %v371_v43 = vld [vmem:[#allocation2 + $0x6e8] sm:$0xff] }
  0xe0   :  { %3429 = vmatprep.mubr.bf16.mxu0 %v13225_v45  ;;  %3641 = vmatprep.mubr.bf16.mxu1 %v13225_v45  ;;  %v10901_v51 = vcombine.high %v367_v41, %v371_v43  ;;  %v10898_v55 = vcombine.low %v366_v39, %v370_v40 }
  0xe2   :  { %3404 = vmatpush1.bf16.msra.mxu0 %v10834_v46  ;;  %3616 = vmatpush1.bf16.msra.mxu1 %v10836_v47  ;;  %v10892_v46 = vcombine.low %v359_v30, %v363_v32  ;;  %v10899_v47 = vcombine.high %v366_v39, %v370_v40  ;;  %v419_v30 = vld [vmem:[#allocation2 + $0x868] sm:$0xff] }
  0xe3   :  { %3405 = vmatprep.subr.bf16.mxu0 %v10843_v48  ;;  %3617 = vmatprep.subr.bf16.mxu1 %v10845_v52  ;;  %v374_v48 = vld [vmem:[#allocation2 + $0x700] sm:$0xff]  ;;  %v379_v52 = vld [vmem:[#allocation2 + $0x728] sm:$0xff] }
  0xe4   :  { %v10909_v62 = vcombine.high %v375_v50, %v379_v52  ;;  %v10906_v0 = vcombine.low %v374_v48, %v378_v49 }
  0xe6   :  { %3406 = vmatpush1.bf16.msra.mxu0 %v10842_v56  ;;  %3618 = vmatpush1.bf16.msra.mxu1 %v10844_v57  ;;  %v10900_v56 = vcombine.low %v367_v41, %v371_v43  ;;  %v10907_v57 = vcombine.high %v374_v48, %v378_v49  ;;  %v422_v41 = vld [vmem:[#allocation2 + $0x880] sm:$0xff]  ;;  %v423_v43 = vld [vmem:[#allocation2 + $0x888] sm:$0xff]  ;;  %v10948_v49 = vcombine.low %v415_v29, %v419_v30 }
  0xe7   :  { %3407 = vmatprep.subr.bf16.mxu0 %v10851_v59  ;;  %3619 = vmatprep.subr.bf16.mxu1 %v10853_v63  ;;  %v382_v59 = vld [vmem:[#allocation2 + $0x740] sm:$0xff]  ;;  %v387_v63 = vld [vmem:[#allocation2 + $0x768] sm:$0xff] }
  0xe8   :  { %v10917_v6 = vcombine.high %v383_v61, %v387_v63  ;;  %v10914_v8 = vcombine.low %v382_v59, %v386_v60  ;;  %v434_v48 = vld [vmem:[#allocation2 + $0x8e0] sm:$0xff] }
  0xea   :  { %3408 = vmatpush1.bf16.msra.mxu0 %v10850_v1  ;;  %3620 = vmatpush1.bf16.msra.mxu1 %v10852_v2  ;;  %v10908_v1 = vcombine.low %v375_v50, %v379_v52  ;;  %v10915_v2 = vcombine.high %v382_v59, %v386_v60  ;;  %v435_v52 = vld [vmem:[#allocation2 + $0x8e8] sm:$0xff] }
  0xeb   :  { %3409 = vmatprep.subr.bf16.mxu0 %v10859_v3  ;;  %3621 = vmatprep.subr.bf16.mxu1 %v10861_v7  ;;  %v390_v3 = vld [vmem:[#allocation2 + $0x780] sm:$0xff]  ;;  %v395_v7 = vld [vmem:[#allocation2 + $0x7a8] sm:$0xff] }
  0xec   :  { %v10925_v14 = vcombine.high %v391_v5, %v395_v7  ;;  %v10922_v17 = vcombine.low %v390_v3, %v394_v4 }
  0xee   :  { %3410 = vmatpush1.bf16.msra.mxu0 %v10858_v9  ;;  %3622 = vmatpush1.bf16.msra.mxu1 %v10860_v10  ;;  %v10916_v9 = vcombine.low %v383_v61, %v387_v63  ;;  %v10923_v10 = vcombine.high %v390_v3, %v394_v4  ;;  %v438_v63 = vld [vmem:[#allocation2 + $0x900] sm:$0xff]  ;;  %v443_v3 = vld [vmem:[#allocation2 + $0x928] sm:$0xff] }
  0xef   :  { %3411 = vmatprep.subr.bf16.mxu0 %v10867_v11  ;;  %3623 = vmatprep.subr.bf16.mxu1 %v10869_v16  ;;  %v398_v11 = vld [vmem:[#allocation2 + $0x7c0] sm:$0xff]  ;;  %v403_v16 = vld [vmem:[#allocation2 + $0x7e8] sm:$0xff] }
  0xf0   :  { %v10933_v23 = vcombine.high %v399_v13, %v403_v16  ;;  %v10930_v24 = vcombine.low %v398_v11, %v402_v12 }
  0xf2   :  { %3412 = vmatpush1.bf16.msra.mxu0 %v10866_v18  ;;  %3624 = vmatpush1.bf16.msra.mxu1 %v10868_v19  ;;  %v10924_v18 = vcombine.low %v391_v5, %v395_v7  ;;  %v10931_v19 = vcombine.high %v398_v11, %v402_v12  ;;  %v451_v12 = vld [vmem:[#allocation2 + $0x968] sm:$0xff] }
  0xf3   :  { %3413 = vmatprep.subr.bf16.mxu0 %v10875_v20  ;;  %3625 = vmatprep.subr.bf16.mxu1 %v10877_v53  ;;  %v406_v20 = vld [vmem:[#allocation2 + $0x800] sm:$0xff]  ;;  %v411_v53 = vld [vmem:[#allocation2 + $0x828] sm:$0xff] }
  0xf4   :  { %v10939_v28 = vcombine.high %v406_v20, %v410_v21  ;;  %v10941_v32 = vcombine.high %v407_v22, %v411_v53  ;;  %v10940_v39 = vcombine.low %v407_v22, %v411_v53 }
  0xf6   :  { %3414 = vmatpush1.bf16.msra.mxu0 %v10874_v25  ;;  %3626 = vmatpush1.bf16.msra.mxu1 %v10876_v26  ;;  %v414_v25 = vld [vmem:[#allocation2 + $0x840] sm:$0xff] }
  0xf7   :  { %3415 = vmatprep.subr.bf16.mxu0 %v10883_v27  ;;  %3627 = vmatprep.subr.bf16.mxu1 %v10885_v31  ;;  %v418_v26 = vld [vmem:[#allocation2 + $0x860] sm:$0xff]  ;;  %v10932_v27 = vcombine.low %v399_v13, %v403_v16  ;;  %v143_v31 = vld [vmem:[%s13663_s0 + $0x48] sm:$0xff] }
  0xf8   :  { %v10947_v40 = vcombine.high %v414_v25, %v418_v26 }
  0xfa   :  { %3416 = vmatpush1.bf16.msra.mxu0 %v10882_v34  ;;  %3628 = vmatpush1.bf16.msra.mxu1 %v10884_v37  ;;  %v147_v34 = vld [vmem:[%s13663_s0 + $0x68] sm:$0xff]  ;;  %v13239_v37 = vcombine.low %v13212_v33, %v13218_v35  ;;  %v10946_v33 = vcombine.low %v414_v25, %v418_v26  ;;  %v430_v35 = vld [vmem:[#allocation2 + $0x8c0] sm:$0xff] }
  0xfb   :  { %3417 = vmatprep.subr.bf16.mxu0 %v10891_v38  ;;  %3629 = vmatprep.subr.bf16.mxu1 %v10893_v42  ;;  %v10938_v38 = vcombine.low %v406_v20, %v410_v21  ;;  %v426_v42 = vld [vmem:[#allocation2 + $0x8a0] sm:$0xff]  ;;  %v13257_v59 = vcombine.low %v143_v31, %v147_v34  ;;  %v10962_v5 = vcombine.low %v430_v35, %v434_v48  ;;  %v459_v21 = vld [vmem:[#allocation2 + $0x9a8] sm:$0xff] }
  0xfc   :  { %v10955_v50 = vcombine.high %v422_v41, %v426_v42  ;;  %v10954_v60 = vcombine.low %v422_v41, %v426_v42  ;;  %v466_v25 = vld [vmem:[#allocation2 + $0x9e0] sm:$0xff]  ;;  %v463_v26 = vld [vmem:[#allocation2 + $0x9c8] sm:$0xff] }
  0xfe   :  { %3418 = vmatpush1.bf16.msra.mxu0 %v10890_v44  ;;  %3630 = vmatpush1.bf16.msra.mxu1 %v10892_v46  ;;  %v10949_v44 = vcombine.high %v415_v29, %v419_v30  ;;  %v427_v46 = vld [vmem:[#allocation2 + $0x8a8] sm:$0xff] }
  0xff   :  { %3419 = vmatprep.subr.bf16.mxu0 %v10899_v47  ;;  %3631 = vmatprep.subr.bf16.mxu1 %v10901_v51  ;;  %v13241_v47 = vcombine.high %v143_v31, %v147_v34  ;;  %v431_v51 = vld [vmem:[#allocation2 + $0x8c8] sm:$0xff]  ;;  %v10956_v61 = vcombine.low %v423_v43, %v427_v46  ;;  %v474_v34 = vld [vmem:[#allocation2 + $0xa20] sm:$0xff] }
 0x102   :  { %3420 = vmatpush1.bf16.msra.mxu0 %v10898_v55  ;;  %3632 = vmatpush1.bf16.msra.mxu1 %v10900_v56  ;;  %v13248_v55 = vld [vmem:[%s13663_s0 + $0x10] sm:$0xff]  ;;  %v10957_v56 = vcombine.high %v423_v43, %v427_v46  ;;  %v482_v46 = vld [vmem:[#allocation2 + $0xa60] sm:$0xff] }
 0x103   :  { %3421 = vmatprep.subr.bf16.mxu0 %v10907_v57  ;;  %3633 = vmatprep.subr.bf16.mxu1 %v10909_v62  ;;  %v13254_v57 = vld [vmem:[%s13663_s0 + $0x30] sm:$0xff]  ;;  %v10963_v62 = vcombine.high %v430_v35, %v434_v48  ;;  %v483_v48 = vld [vmem:[#allocation2 + $0xa68] sm:$0xff] }
 0x104   :  { %v13261_v4 = vcombine.high %v13248_v55, %v13254_v57 }
 0x106   :  { %3422 = vmatpush1.bf16.msra.mxu0 %v10906_v0  ;;  %3634 = vmatpush1.bf16.msra.mxu1 %v10908_v1  ;;  %v442_v0 = vld [vmem:[#allocation2 + $0x920] sm:$0xff]  ;;  %v439_v1 = vld [vmem:[#allocation2 + $0x908] sm:$0xff] }
 0x107   :  { %3423 = vmatprep.subr.bf16.mxu0 %v10915_v2  ;;  %3635 = vmatprep.subr.bf16.mxu1 %v10917_v6  ;;  %v10965_v2 = vcombine.high %v431_v51, %v435_v52  ;;  %v10964_v6 = vcombine.low %v431_v51, %v435_v52  ;;  %v10971_v7 = vcombine.high %v438_v63, %v442_v0  ;;  %v486_v52 = vld [vmem:[#allocation2 + $0xa80] sm:$0xff] }
 0x108   :  { %v10973_v11 = vcombine.high %v439_v1, %v443_v3  ;;  %v10970_v13 = vcombine.low %v438_v63, %v442_v0 }
 0x10a   :  { %3424 = vmatpush1.bf16.msra.mxu0 %v10914_v8  ;;  %3636 = vmatpush1.bf16.msra.mxu1 %v10916_v9  ;;  %v446_v8 = vld [vmem:[#allocation2 + $0x940] sm:$0xff] }
 0x10b   :  { %3425 = vmatprep.subr.bf16.mxu0 %v10923_v10  ;;  %3637 = vmatprep.subr.bf16.mxu1 %v10925_v14  ;;  %v450_v9 = vld [vmem:[#allocation2 + $0x960] sm:$0xff]  ;;  %v447_v10 = vld [vmem:[#allocation2 + $0x948] sm:$0xff]  ;;  %v10972_v14 = vcombine.low %v439_v1, %v443_v3 }
 0x10c   :  { %v10979_v16 = vcombine.high %v446_v8, %v450_v9  ;;  %v10981_v20 = vcombine.high %v447_v10, %v451_v12  ;;  %v10978_v22 = vcombine.low %v446_v8, %v450_v9  ;;  %v498_v3 = vld [vmem:[#allocation2 + $0xae0] sm:$0xff] }
 0x10e   :  { %3426 = vmatpush1.bf16.msra.mxu0 %v10922_v17  ;;  %3638 = vmatpush1.bf16.msra.mxu1 %v10924_v18  ;;  %v454_v17 = vld [vmem:[#allocation2 + $0x980] sm:$0xff] }
 0x10f   :  { %3427 = vmatprep.subr.bf16.mxu0 %v10931_v19  ;;  %3639 = vmatprep.subr.bf16.mxu1 %v10933_v23  ;;  %v458_v18 = vld [vmem:[#allocation2 + $0x9a0] sm:$0xff]  ;;  %v455_v19 = vld [vmem:[#allocation2 + $0x988] sm:$0xff]  ;;  %v10980_v23 = vcombine.low %v447_v10, %v451_v12 }
 0x110   :  { %v10987_v53 = vcombine.high %v454_v17, %v458_v18  ;;  %v10986_v29 = vcombine.low %v454_v17, %v458_v18  ;;  %v10988_v30 = vcombine.low %v455_v19, %v459_v21  ;;  %v506_v12 = vld [vmem:[#allocation2 + $0xb20] sm:$0xff] }
 0x112   :  { %3428 = vmatpush1.bf16.msra.mxu0 %v10930_v24  ;;  %3640 = vmatpush1.bf16.msra.mxu1 %v10932_v27  ;;  %v462_v24 = vld [vmem:[#allocation2 + $0x9c0] sm:$0xff]  ;;  %v10989_v27 = vcombine.high %v455_v19, %v459_v21 }
 0x113   :  { %3450 = vmatprep.subr.bf16.mxu0 %v10939_v28  ;;  %3662 = vmatprep.subr.bf16.mxu1 %v10941_v32  ;;  %v467_v28 = vld [vmem:[#allocation2 + $0x9e8] sm:$0xff]  ;;  %v10995_v31 = vcombine.high %v462_v24, %v466_v25  ;;  %v470_v32 = vld [vmem:[#allocation2 + $0xa00] sm:$0xff]  ;;  %v10994_v41 = vcombine.low %v462_v24, %v466_v25 }
 0x114   :  { %v10996_v42 = vcombine.low %v463_v26, %v467_v28  ;;  %v11003_v43 = vcombine.high %v470_v32, %v474_v34  ;;  %v514_v21 = vld [vmem:[#allocation2 + $0xb60] sm:$0xff] }
 0x115   :  { %3430 = vmatmul.mubr.bf16.vlgmr.msra.gmra.mrb[0].mxu0 %v13239_v37  ;;  %3642 = vmatmul.mubr.bf16.vlgmr.msra.gmra.mrb[0].mxu1 %v13239_v37 }
 0x116   :  { %3451 = vmatpush1.bf16.msra.mxu0 %v10938_v38  ;;  %3663 = vmatpush1.bf16.msra.mxu1 %v10940_v39  ;;  %v471_v38 = vld [vmem:[#allocation2 + $0xa08] sm:$0xff]  ;;  %v10997_v39 = vcombine.high %v463_v26, %v467_v28  ;;  %v522_v28 = vld [vmem:[#allocation2 + $0xba0] sm:$0xff] }
 0x117   :  { %3452 = vmatprep.subr.bf16.mxu0 %v10947_v40  ;;  %3664 = vmatprep.subr.bf16.mxu1 %v10949_v44  ;;  %v475_v40 = vld [vmem:[#allocation2 + $0xa28] sm:$0xff]  ;;  %v478_v44 = vld [vmem:[#allocation2 + $0xa40] sm:$0xff] }
 0x118   :  { %3439 = vmatprep.mubr.bf16.mxu0 %v13241_v47  ;;  %3651 = vmatprep.mubr.bf16.mxu1 %v13241_v47  ;;  %v11005_v35 = vcombine.high %v471_v38, %v475_v40  ;;  %v11011_v51 = vcombine.high %v478_v44, %v482_v46  ;;  %v11010_v63 = vcombine.low %v478_v44, %v482_v46 }
 0x11a   :  { %3453 = vmatpush1.bf16.msra.mxu0 %v10946_v33  ;;  %3665 = vmatpush1.bf16.msra.mxu1 %v10948_v49  ;;  %v479_v33 = vld [vmem:[#allocation2 + $0xa48] sm:$0xff]  ;;  %v11002_v49 = vcombine.low %v470_v32, %v474_v34 }
 0x11b   :  { %3454 = vmatprep.subr.bf16.mxu0 %v10955_v50  ;;  %3666 = vmatprep.subr.bf16.mxu1 %v10957_v56  ;;  %v11004_v50 = vcombine.low %v471_v38, %v475_v40  ;;  %v490_v56 = vld [vmem:[#allocation2 + $0xaa0] sm:$0xff]  ;;  %v11012_v0 = vcombine.low %v479_v33, %v483_v48 }
 0x11c   :  { %v11019_v1 = vcombine.high %v486_v52, %v490_v56  ;;  %v11018_v8 = vcombine.low %v486_v52, %v490_v56  ;;  %v530_v40 = vld [vmem:[#allocation2 + $0xbe0] sm:$0xff] }
 0x11d   :  { %3440 = vmatmul.mubr.bf16.gmra.mrb[4].mxu0 %v13257_v59  ;;  %3652 = vmatmul.mubr.bf16.gmra.mrb[4].mxu1 %v13257_v59  ;;  %v542_v56 = vld [vmem:[#allocation2 + $0xc40] sm:$0xff] }
 0x11e   :  { %3455 = vmatpush1.bf16.msra.mxu0 %v10954_v60  ;;  %3667 = vmatpush1.bf16.msra.mxu1 %v10956_v61  ;;  %v487_v60 = vld [vmem:[#allocation2 + $0xa88] sm:$0xff]  ;;  %v11013_v61 = vcombine.high %v479_v33, %v483_v48  ;;  %v538_v48 = vld [vmem:[#allocation2 + $0xc20] sm:$0xff] }
 0x11f   :  { %3456 = vmatprep.subr.bf16.mxu0 %v10963_v62  ;;  %3668 = vmatprep.subr.bf16.mxu1 %v10965_v2  ;;  %v491_v62 = vld [vmem:[#allocation2 + $0xaa8] sm:$0xff]  ;;  %v494_v2 = vld [vmem:[#allocation2 + $0xac0] sm:$0xff] }
 0x120   :  { %3482 = vmatprep.mubr.bf16.mxu0 %v13261_v4  ;;  %3694 = vmatprep.mubr.bf16.mxu1 %v13261_v4  ;;  %v11020_v9 = vcombine.low %v487_v60, %v491_v62  ;;  %v11027_v10 = vcombine.high %v494_v2, %v498_v3  ;;  %v11026_v17 = vcombine.low %v494_v2, %v498_v3  ;;  %v148_v3 = vld [vmem:[%s13663_s0 + $0x70] sm:$0xff] }
 0x122   :  { %3457 = vmatpush1.bf16.msra.mxu0 %v10962_v5  ;;  %3669 = vmatpush1.bf16.msra.mxu1 %v10964_v6  ;;  %v495_v5 = vld [vmem:[#allocation2 + $0xac8] sm:$0xff]  ;;  %v11021_v6 = vcombine.high %v487_v60, %v491_v62  ;;  %v546_v60 = vld [vmem:[#allocation2 + $0xc60] sm:$0xff] }
 0x123   :  { %3458 = vmatprep.subr.bf16.mxu0 %v10971_v7  ;;  %3670 = vmatprep.subr.bf16.mxu1 %v10973_v11  ;;  %v499_v7 = vld [vmem:[#allocation2 + $0xae8] sm:$0xff]  ;;  %v502_v11 = vld [vmem:[#allocation2 + $0xb00] sm:$0xff] }
 0x124   :  { %v11028_v18 = vcombine.low %v495_v5, %v499_v7  ;;  %v11035_v19 = vcombine.high %v502_v11, %v506_v12  ;;  %v11034_v24 = vcombine.low %v502_v11, %v506_v12  ;;  %v551_v11 = vld [vmem:[#allocation2 + $0xc88] sm:$0xff] }
 0x126   :  { %3459 = vmatpush1.bf16.msra.mxu0 %v10970_v13  ;;  %3671 = vmatpush1.bf16.msra.mxu1 %v10972_v14  ;;  %v503_v13 = vld [vmem:[#allocation2 + $0xb08] sm:$0xff]  ;;  %v11029_v14 = vcombine.high %v495_v5, %v499_v7  ;;  %v13275_v5 = vcombine.low %v13248_v55, %v13254_v57  ;;  %v11074_v55 = vcombine.low %v542_v56, %v546_v60  ;;  %v558_v57 = vld [vmem:[#allocation2 + $0xcc0] sm:$0xff] }
 0x127   :  { %3460 = vmatprep.subr.bf16.mxu0 %v10979_v16  ;;  %3672 = vmatprep.subr.bf16.mxu1 %v10981_v20  ;;  %v507_v16 = vld [vmem:[#allocation2 + $0xb28] sm:$0xff]  ;;  %v510_v20 = vld [vmem:[#allocation2 + $0xb40] sm:$0xff] }
 0x128   :  { %v11036_v25 = vcombine.low %v503_v13, %v507_v16  ;;  %v11043_v26 = vcombine.high %v510_v20, %v514_v21  ;;  %v11042_v32 = vcombine.low %v510_v20, %v514_v21  ;;  %v563_v20 = vld [vmem:[#allocation2 + $0xce8] sm:$0xff]  ;;  %v13284_v21 = vld [vmem:[%s13663_s0 + $0x18] sm:$0xff] }
 0x12a   :  { %3461 = vmatpush1.bf16.msra.mxu0 %v10978_v22  ;;  %3673 = vmatpush1.bf16.msra.mxu1 %v10980_v23  ;;  %v511_v22 = vld [vmem:[#allocation2 + $0xb48] sm:$0xff]  ;;  %v11037_v23 = vcombine.high %v503_v13, %v507_v16  ;;  %v562_v16 = vld [vmem:[#allocation2 + $0xce0] sm:$0xff] }
 0x12b   :  { %3462 = vmatprep.subr.bf16.mxu0 %v10987_v53  ;;  %3674 = vmatprep.subr.bf16.mxu1 %v10989_v27  ;;  %v515_v53 = vld [vmem:[#allocation2 + $0xb68] sm:$0xff]  ;;  %v518_v27 = vld [vmem:[#allocation2 + $0xb80] sm:$0xff] }
 0x12c   :  { %v11044_v34 = vcombine.low %v511_v22, %v515_v53  ;;  %v11051_v38 = vcombine.high %v518_v27, %v522_v28  ;;  %v11050_v44 = vcombine.low %v518_v27, %v522_v28  ;;  %v555_v13 = vld [vmem:[#allocation2 + $0xca8] sm:$0xff]  ;;  %v566_v27 = vld [vmem:[#allocation2 + $0xd00] sm:$0xff] }
 0x12d   :  { %v570_v28 = vld [vmem:[#allocation2 + $0xd20] sm:$0xff] }
 0x12e   :  { %3463 = vmatpush1.bf16.msra.mxu0 %v10986_v29  ;;  %3675 = vmatpush1.bf16.msra.mxu1 %v10988_v30  ;;  %v519_v29 = vld [vmem:[#allocation2 + $0xb88] sm:$0xff]  ;;  %v11045_v30 = vcombine.high %v511_v22, %v515_v53  ;;  %v11085_v22 = vcombine.high %v551_v11, %v555_v13 }
 0x12f   :  { %3464 = vmatprep.subr.bf16.mxu0 %v10995_v31  ;;  %3676 = vmatprep.subr.bf16.mxu1 %v10997_v39  ;;  %v523_v31 = vld [vmem:[#allocation2 + $0xba8] sm:$0xff]  ;;  %v526_v39 = vld [vmem:[#allocation2 + $0xbc0] sm:$0xff] }
 0x130   :  { %v11052_v46 = vcombine.low %v519_v29, %v523_v31  ;;  %v11059_v33 = vcombine.high %v526_v39, %v530_v40  ;;  %v11058_v52 = vcombine.low %v526_v39, %v530_v40  ;;  %v11099_v39 = vcombine.high %v566_v27, %v570_v28  ;;  %v574_v40 = vld [vmem:[#allocation2 + $0xd40] sm:$0xff] }
 0x132   :  { %3465 = vmatpush1.bf16.msra.mxu0 %v10994_v41  ;;  %3677 = vmatpush1.bf16.msra.mxu1 %v10996_v42  ;;  %v527_v41 = vld [vmem:[#allocation2 + $0xbc8] sm:$0xff]  ;;  %v11053_v42 = vcombine.high %v519_v29, %v523_v31 }
 0x133   :  { %3466 = vmatprep.subr.bf16.mxu0 %v11003_v43  ;;  %3678 = vmatprep.subr.bf16.mxu1 %v11005_v35  ;;  %v531_v43 = vld [vmem:[#allocation2 + $0xbe8] sm:$0xff]  ;;  %v534_v35 = vld [vmem:[#allocation2 + $0xc00] sm:$0xff] }
 0x134   :  { %v11067_v62 = vcombine.high %v534_v35, %v538_v48  ;;  %v567_v29 = vld [vmem:[#allocation2 + $0xd08] sm:$0xff] }
 0x135   :  { %v571_v31 = vld [vmem:[#allocation2 + $0xd28] sm:$0xff] }
 0x136   :  { %3467 = vmatpush1.bf16.msra.mxu0 %v11002_v49  ;;  %3679 = vmatpush1.bf16.msra.mxu1 %v11004_v50  ;;  %v535_v49 = vld [vmem:[#allocation2 + $0xc08] sm:$0xff]  ;;  %v11061_v50 = vcombine.high %v527_v41, %v531_v43 }
 0x137   :  { %3468 = vmatprep.subr.bf16.mxu0 %v11011_v51  ;;  %3680 = vmatprep.subr.bf16.mxu1 %v11013_v61  ;;  %v539_v51 = vld [vmem:[#allocation2 + $0xc28] sm:$0xff]  ;;  %v11060_v61 = vcombine.low %v527_v41, %v531_v43  ;;  %v578_v41 = vld [vmem:[#allocation2 + $0xd60] sm:$0xff]  ;;  %v11101_v43 = vcombine.high %v567_v29, %v571_v31 }
 0x138   :  { %v11069_v2 = vcombine.high %v535_v49, %v539_v51  ;;  %v11068_v7 = vcombine.low %v535_v49, %v539_v51  ;;  %v586_v49 = vld [vmem:[#allocation2 + $0xda0] sm:$0xff] }
 0x13a   :  { %3469 = vmatpush1.bf16.msra.mxu0 %v11010_v63  ;;  %3681 = vmatpush1.bf16.msra.mxu1 %v11012_v0  ;;  %v543_v63 = vld [vmem:[#allocation2 + $0xc48] sm:$0xff] }
 0x13b   :  { %3470 = vmatprep.subr.bf16.mxu0 %v11019_v1  ;;  %3682 = vmatprep.subr.bf16.mxu1 %v11021_v6  ;;  %v547_v0 = vld [vmem:[#allocation2 + $0xc68] sm:$0xff]  ;;  %v144_v1 = vld [vmem:[%s13663_s0 + $0x50] sm:$0xff]  ;;  %v11066_v6 = vcombine.low %v534_v35, %v538_v48  ;;  %v11107_v35 = vcombine.high %v574_v40, %v578_v41  ;;  %v582_v48 = vld [vmem:[#allocation2 + $0xd80] sm:$0xff] }
 0x13c   :  { %v11077_v12 = vcombine.high %v543_v63, %v547_v0  ;;  %v13293_v53 = vcombine.low %v144_v1, %v148_v3 }
 0x13e   :  { %3471 = vmatpush1.bf16.msra.mxu0 %v11018_v8  ;;  %3683 = vmatpush1.bf16.msra.mxu1 %v11020_v9  ;;  %v11075_v8 = vcombine.high %v542_v56, %v546_v60  ;;  %v550_v9 = vld [vmem:[#allocation2 + $0xc80] sm:$0xff]  ;;  %v11106_v56 = vcombine.low %v574_v40, %v578_v41  ;;  %v623_v41 = vld [vmem:[#allocation2 + $0xec8] sm:$0xff] }
 0x13f   :  { %3472 = vmatprep.subr.bf16.mxu0 %v11027_v10  ;;  %3684 = vmatprep.subr.bf16.mxu1 %v11029_v14  ;;  %v554_v10 = vld [vmem:[#allocation2 + $0xca0] sm:$0xff]  ;;  %v13277_v14 = vcombine.high %v144_v1, %v148_v3  ;;  %v11114_v3 = vcombine.low %v582_v48, %v586_v49 }
 0x140   :  { %v626_v40 = vld [vmem:[#allocation2 + $0xee0] sm:$0xff] }
 0x142   :  { %3473 = vmatpush1.bf16.msra.mxu0 %v11026_v17  ;;  %3685 = vmatpush1.bf16.msra.mxu1 %v11028_v18  ;;  %v11076_v17 = vcombine.low %v543_v63, %v547_v0  ;;  %v11083_v18 = vcombine.high %v550_v9, %v554_v10  ;;  %v594_v63 = vld [vmem:[#allocation2 + $0xde0] sm:$0xff]  ;;  %v591_v0 = vld [vmem:[#allocation2 + $0xdc8] sm:$0xff] }
 0x143   :  { %3474 = vmatprep.subr.bf16.mxu0 %v11035_v19  ;;  %3686 = vmatprep.subr.bf16.mxu1 %v11037_v23  ;;  %v559_v19 = vld [vmem:[#allocation2 + $0xcc8] sm:$0xff]  ;;  %v13290_v23 = vld [vmem:[%s13663_s0 + $0x38] sm:$0xff] }
 0x146   :  { %3475 = vmatpush1.bf16.msra.mxu0 %v11034_v24  ;;  %3687 = vmatpush1.bf16.msra.mxu1 %v11036_v25  ;;  %v11082_v24 = vcombine.low %v550_v9, %v554_v10  ;;  %v11084_v25 = vcombine.low %v551_v11, %v555_v13  ;;  %v602_v9 = vld [vmem:[#allocation2 + $0xe20] sm:$0xff]  ;;  %v599_v10 = vld [vmem:[#allocation2 + $0xe08] sm:$0xff] }
 0x147   :  { %3476 = vmatprep.subr.bf16.mxu0 %v11043_v26  ;;  %3688 = vmatprep.subr.bf16.mxu1 %v11045_v30  ;;  %v11091_v26 = vcombine.high %v558_v57, %v562_v16  ;;  %v11093_v30 = vcombine.high %v559_v19, %v563_v20 }
 0x14a   :  { %3477 = vmatpush1.bf16.msra.mxu0 %v11042_v32  ;;  %3689 = vmatpush1.bf16.msra.mxu1 %v11044_v34  ;;  %v13297_v32 = vcombine.high %v13284_v21, %v13290_v23  ;;  %v11090_v34 = vcombine.low %v558_v57, %v562_v16  ;;  %v606_v16 = vld [vmem:[#allocation2 + $0xe40] sm:$0xff] }
 0x14b   :  { %3478 = vmatprep.subr.bf16.mxu0 %v11051_v38  ;;  %3690 = vmatprep.subr.bf16.mxu1 %v11053_v42  ;;  %v11092_v38 = vcombine.low %v559_v19, %v563_v20  ;;  %v575_v42 = vld [vmem:[#allocation2 + $0xd48] sm:$0xff] }
 0x14c   :  { %v611_v20 = vld [vmem:[#allocation2 + $0xe68] sm:$0xff] }
 0x14e   :  { %3479 = vmatpush1.bf16.msra.mxu0 %v11050_v44  ;;  %3691 = vmatpush1.bf16.msra.mxu1 %v11052_v46  ;;  %v579_v44 = vld [vmem:[#allocation2 + $0xd68] sm:$0xff]  ;;  %v11098_v46 = vcombine.low %v566_v27, %v570_v28  ;;  %v618_v27 = vld [vmem:[#allocation2 + $0xea0] sm:$0xff] }
 0x14f   :  { %3480 = vmatprep.subr.bf16.mxu0 %v11059_v33  ;;  %3692 = vmatprep.subr.bf16.mxu1 %v11061_v50  ;;  %v11100_v33 = vcombine.low %v567_v29, %v571_v31  ;;  %v583_v50 = vld [vmem:[#allocation2 + $0xd88] sm:$0xff]  ;;  %v11109_v51 = vcombine.high %v575_v42, %v579_v44  ;;  %v11108_v60 = vcombine.low %v575_v42, %v579_v44 }
 0x150   :  { %v615_v28 = vld [vmem:[#allocation2 + $0xe88] sm:$0xff] }
 0x152   :  { %3481 = vmatpush1.bf16.msra.mxu0 %v11058_v52  ;;  %3693 = vmatpush1.bf16.msra.mxu1 %v11060_v61  ;;  %v587_v52 = vld [vmem:[#allocation2 + $0xda8] sm:$0xff]  ;;  %v11115_v61 = vcombine.high %v582_v48, %v586_v49  ;;  %v630_v48 = vld [vmem:[#allocation2 + $0xf00] sm:$0xff] }
 0x153   :  { %3503 = vmatprep.subr.bf16.mxu0 %v11067_v62  ;;  %3715 = vmatprep.subr.bf16.mxu1 %v11069_v2  ;;  %v590_v62 = vld [vmem:[#allocation2 + $0xdc0] sm:$0xff]  ;;  %v11117_v1 = vcombine.high %v583_v50, %v587_v52  ;;  %v595_v2 = vld [vmem:[#allocation2 + $0xde8] sm:$0xff] }
 0x154   :  { %v11125_v11 = vcombine.high %v591_v0, %v595_v2  ;;  %v11122_v13 = vcombine.low %v590_v62, %v594_v63  ;;  %v634_v49 = vld [vmem:[#allocation2 + $0xf20] sm:$0xff] }
 0x155   :  { %3483 = vmatmul.mubr.bf16.vlgmr.msra.gmra.mrb[0].mxu0 %v13275_v5  ;;  %3695 = vmatmul.mubr.bf16.vlgmr.msra.gmra.mrb[0].mxu1 %v13275_v5 }
 0x156   :  { %3504 = vmatpush1.bf16.msra.mxu0 %v11066_v6  ;;  %3716 = vmatpush1.bf16.msra.mxu1 %v11068_v7  ;;  %v11116_v6 = vcombine.low %v583_v50, %v587_v52  ;;  %v11123_v7 = vcombine.high %v590_v62, %v594_v63  ;;  %v631_v50 = vld [vmem:[#allocation2 + $0xf08] sm:$0xff]  ;;  %v638_v62 = vld [vmem:[#allocation2 + $0xf40] sm:$0xff] }
 0x157   :  { %3505 = vmatprep.subr.bf16.mxu0 %v11075_v8  ;;  %3717 = vmatprep.subr.bf16.mxu1 %v11077_v12  ;;  %v598_v8 = vld [vmem:[#allocation2 + $0xe00] sm:$0xff]  ;;  %v603_v12 = vld [vmem:[#allocation2 + $0xe28] sm:$0xff] }
 0x158   :  { %3492 = vmatprep.mubr.bf16.mxu0 %v13277_v14  ;;  %3704 = vmatprep.mubr.bf16.mxu1 %v13277_v14  ;;  %v11131_v57 = vcombine.high %v598_v8, %v602_v9  ;;  %v11133_v19 = vcombine.high %v599_v10, %v603_v12  ;;  %v642_v63 = vld [vmem:[#allocation2 + $0xf60] sm:$0xff] }
 0x15a   :  { %3506 = vmatpush1.bf16.msra.mxu0 %v11074_v55  ;;  %3718 = vmatpush1.bf16.msra.mxu1 %v11076_v17  ;;  %v11124_v55 = vcombine.low %v591_v0, %v595_v2  ;;  %v610_v17 = vld [vmem:[#allocation2 + $0xe60] sm:$0xff]  ;;  %v639_v0 = vld [vmem:[#allocation2 + $0xf48] sm:$0xff]  ;;  %v11162_v2 = vcombine.low %v630_v48, %v634_v49 }
 0x15b   :  { %3507 = vmatprep.subr.bf16.mxu0 %v11083_v18  ;;  %3719 = vmatprep.subr.bf16.mxu1 %v11085_v22  ;;  %v607_v18 = vld [vmem:[#allocation2 + $0xe48] sm:$0xff]  ;;  %v11130_v22 = vcombine.low %v598_v8, %v602_v9  ;;  %v11138_v31 = vcombine.low %v606_v16, %v610_v17  ;;  %v646_v8 = vld [vmem:[#allocation2 + $0xf80] sm:$0xff] }
 0x15c   :  { %v11141_v29 = vcombine.high %v607_v18, %v611_v20  ;;  %v650_v9 = vld [vmem:[#allocation2 + $0xfa0] sm:$0xff] }
 0x15d   :  { %3493 = vmatmul.mubr.bf16.gmra.mrb[4].mxu0 %v13293_v53  ;;  %3705 = vmatmul.mubr.bf16.gmra.mrb[4].mxu1 %v13293_v53 }
 0x15e   :  { %3508 = vmatpush1.bf16.msra.mxu0 %v11082_v24  ;;  %3720 = vmatpush1.bf16.msra.mxu1 %v11084_v25  ;;  %v11132_v24 = vcombine.low %v599_v10, %v603_v12  ;;  %v11139_v25 = vcombine.high %v606_v16, %v610_v17  ;;  %v647_v10 = vld [vmem:[#allocation2 + $0xf88] sm:$0xff]  ;;  %v11170_v12 = vcombine.low %v638_v62, %v642_v63  ;;  %v654_v16 = vld [vmem:[#allocation2 + $0xfc0] sm:$0xff] }
 0x15f   :  { %3509 = vmatprep.subr.bf16.mxu0 %v11091_v26  ;;  %3721 = vmatprep.subr.bf16.mxu1 %v11093_v30  ;;  %v614_v26 = vld [vmem:[#allocation2 + $0xe80] sm:$0xff]  ;;  %v619_v30 = vld [vmem:[#allocation2 + $0xea8] sm:$0xff] }
 0x160   :  { %3535 = vmatprep.mubr.bf16.mxu0 %v13297_v32  ;;  %3747 = vmatprep.mubr.bf16.mxu1 %v13297_v32  ;;  %v11149_v42 = vcombine.high %v615_v28, %v619_v30  ;;  %v11146_v44 = vcombine.low %v614_v26, %v618_v27  ;;  %v658_v17 = vld [vmem:[#allocation2 + $0xfe0] sm:$0xff] }
 0x162   :  { %3510 = vmatpush1.bf16.msra.mxu0 %v11090_v34  ;;  %3722 = vmatpush1.bf16.msra.mxu1 %v11092_v38  ;;  %v11140_v34 = vcombine.low %v607_v18, %v611_v20  ;;  %v11147_v38 = vcombine.high %v614_v26, %v618_v27  ;;  %v655_v18 = vld [vmem:[#allocation2 + $0xfc8] sm:$0xff]  ;;  %v11178_v20 = vcombine.low %v646_v8, %v650_v9  ;;  %v152_v26 = vld [vmem:[#allocation2 + $0x10] sm:$0xff] }
 0x163   :  { %3511 = vmatprep.subr.bf16.mxu0 %v11099_v39  ;;  %3723 = vmatprep.subr.bf16.mxu1 %v11101_v43  ;;  %v622_v39 = vld [vmem:[#allocation2 + $0xec0] sm:$0xff]  ;;  %v627_v43 = vld [vmem:[#allocation2 + $0xee8] sm:$0xff]  ;;  %v156_v27 = vld [vmem:[#allocation2 + $0x30] sm:$0xff] }
 0x164   :  { %v11154_v52 = vcombine.low %v622_v39, %v626_v40 }
 0x166   :  { %3512 = vmatpush1.bf16.msra.mxu0 %v11098_v46  ;;  %3724 = vmatpush1.bf16.msra.mxu1 %v11100_v33  ;;  %v11148_v46 = vcombine.low %v615_v28, %v619_v30  ;;  %v11155_v33 = vcombine.high %v622_v39, %v626_v40  ;;  %v153_v28 = vld [vmem:[#allocation2 + $0x18] sm:$0xff]  ;;  %v11186_v30 = vcombine.low %v654_v16, %v658_v17  ;;  %v160_v39 = vld [vmem:[#allocation2 + $0x50] sm:$0xff] }
 0x167   :  { %3513 = vmatprep.subr.bf16.mxu0 %v11107_v35  ;;  %3725 = vmatprep.subr.bf16.mxu1 %v11109_v51  ;;  %v11157_v35 = vcombine.high %v623_v41, %v627_v43  ;;  %v635_v51 = vld [vmem:[#allocation2 + $0xf28] sm:$0xff]  ;;  %v164_v40 = vld [vmem:[#allocation2 + $0x70] sm:$0xff] }
 0x16a   :  { %3514 = vmatpush1.bf16.msra.mxu0 %v11106_v56  ;;  %3726 = vmatpush1.bf16.msra.mxu1 %v11108_v60  ;;  %v11156_v56 = vcombine.low %v623_v41, %v627_v43  ;;  %v11163_v60 = vcombine.high %v630_v48, %v634_v49  ;;  %v161_v41 = vld [vmem:[#allocation2 + $0x58] sm:$0xff]  ;;  %v10695_v48 = vcombine.high %v160_v39, %v164_v40 }
 0x16b   :  { %3515 = vmatprep.subr.bf16.mxu0 %v11115_v61  ;;  %3727 = vmatprep.subr.bf16.mxu1 %v11117_v1  ;;  %v11165_v61 = vcombine.high %v631_v50, %v635_v51  ;;  %v643_v1 = vld [vmem:[#allocation2 + $0xf68] sm:$0xff]  ;;  %v165_v43 = vld [vmem:[#allocation2 + $0x78] sm:$0xff] }
 0x16c   :  { %v10697_v49 = vcombine.high %v161_v41, %v165_v43 }
 0x16e   :  { %3516 = vmatpush1.bf16.msra.mxu0 %v11114_v3  ;;  %3728 = vmatpush1.bf16.msra.mxu1 %v11116_v6  ;;  %v11164_v3 = vcombine.low %v631_v50, %v635_v51  ;;  %v11171_v6 = vcombine.high %v638_v62, %v642_v63  ;;  %v169_v51 = vld [vmem:[#allocation2 + $0x98] sm:$0xff]  ;;  %v176_v63 = vld [vmem:[#allocation2 + $0xd0] sm:$0xff] }
 0x16f   :  { %3517 = vmatprep.subr.bf16.mxu0 %v11123_v7  ;;  %3729 = vmatprep.subr.bf16.mxu1 %v11125_v11  ;;  %v11173_v7 = vcombine.high %v639_v0, %v643_v1  ;;  %v651_v11 = vld [vmem:[#allocation2 + $0xfa8] sm:$0xff] }
 0x172   :  { %3518 = vmatpush1.bf16.msra.mxu0 %v11122_v13  ;;  %3730 = vmatpush1.bf16.msra.mxu1 %v11124_v55  ;;  %v11172_v13 = vcombine.low %v639_v0, %v643_v1  ;;  %v11179_v55 = vcombine.high %v646_v8, %v650_v9  ;;  %v180_v0 = vld [vmem:[#allocation2 + $0xf0] sm:$0xff] }
 0x173   :  { %3519 = vmatprep.subr.bf16.mxu0 %v11131_v57  ;;  %3731 = vmatprep.subr.bf16.mxu1 %v11133_v19  ;;  %v11181_v57 = vcombine.high %v647_v10, %v651_v11  ;;  %v659_v19 = vld [vmem:[#allocation2 + $0xfe8] sm:$0xff]  ;;  %v10711_v8 = vcombine.high %v176_v63, %v180_v0 }
 0x176   :  { %3520 = vmatpush1.bf16.msra.mxu0 %v11130_v22  ;;  %3732 = vmatpush1.bf16.msra.mxu1 %v11132_v24  ;;  %v11180_v22 = vcombine.low %v647_v10, %v651_v11  ;;  %v11187_v24 = vcombine.high %v654_v16, %v658_v17  ;;  %v184_v10 = vld [vmem:[#allocation2 + $0x110] sm:$0xff] }
 0x177   :  { %3521 = vmatprep.subr.bf16.mxu0 %v11139_v25  ;;  %3733 = vmatprep.subr.bf16.mxu1 %v11141_v29  ;;  %v11189_v25 = vcombine.high %v655_v18, %v659_v19  ;;  %v157_v29 = vld [vmem:[#allocation2 + $0x38] sm:$0xff]  ;;  %v188_v11 = vld [vmem:[#allocation2 + $0x130] sm:$0xff] }
 0x178   :  { %v10719_v16 = vcombine.high %v184_v10, %v188_v11 }
 0x17a   :  { %3522 = vmatpush1.bf16.msra.mxu0 %v11138_v31  ;;  %3734 = vmatpush1.bf16.msra.mxu1 %v11140_v34  ;;  %v11188_v31 = vcombine.low %v655_v18, %v659_v19  ;;  %v10687_v34 = vcombine.high %v152_v26, %v156_v27  ;;  %v192_v18 = vld [vmem:[#allocation2 + $0x150] sm:$0xff] }
 0x17b   :  { %3523 = vmatprep.subr.bf16.mxu0 %v11147_v38  ;;  %3735 = vmatprep.subr.bf16.mxu1 %v11149_v42  ;;  %v10689_v38 = vcombine.high %v153_v28, %v157_v29  ;;  %v13305_v42 = vcombine.low %v13284_v21, %v13290_v23  ;;  %v168_v21 = vld [vmem:[#allocation2 + $0x90] sm:$0xff] }
 0x17c   :  { %v172_v23 = vld [vmem:[#allocation2 + $0xb0] sm:$0xff] }
 0x17d   :  { %v196_v19 = vld [vmem:[#allocation2 + $0x170] sm:$0xff] }
 0x17e   :  { %3524 = vmatpush1.bf16.msra.mxu0 %v11146_v44  ;;  %3736 = vmatpush1.bf16.msra.mxu1 %v11148_v46  ;;  %v145_v44 = vld [vmem:[%s13663_s0 + $0x58] sm:$0xff] }
 0x17f   :  { %3525 = vmatprep.subr.bf16.mxu0 %v11155_v33  ;;  %3737 = vmatprep.subr.bf16.mxu1 %v11157_v35  ;;  %v149_v46 = vld [vmem:[%s13663_s0 + $0x78] sm:$0xff]  ;;  %v10686_v33 = vcombine.low %v152_v26, %v156_v27  ;;  %v10688_v35 = vcombine.low %v153_v28, %v157_v29  ;;  %v10727_v26 = vcombine.high %v192_v18, %v196_v19  ;;  %v200_v28 = vld [vmem:[#allocation2 + $0x190] sm:$0xff] }
 0x180   :  { %v13313_v50 = vcombine.high %v145_v44, %v149_v46  ;;  %v13319_v1 = vcombine.low %v145_v44, %v149_v46  ;;  %v204_v29 = vld [vmem:[#allocation2 + $0x1b0] sm:$0xff]  ;;  %v213_v44 = vld [vmem:[#allocation2 + $0x1f8] sm:$0xff] }
 0x181   :  { %v10734_v46 = vcombine.low %v200_v28, %v204_v29 }
 0x182   :  { %3526 = vmatpush1.bf16.msra.mxu0 %v11154_v52  ;;  %3738 = vmatpush1.bf16.msra.mxu1 %v11156_v56  ;;  %v173_v52 = vld [vmem:[#allocation2 + $0xb8] sm:$0xff]  ;;  %v10694_v56 = vcombine.low %v160_v39, %v164_v40  ;;  %v10735_v39 = vcombine.high %v200_v28, %v204_v29  ;;  %v208_v40 = vld [vmem:[#allocation2 + $0x1d0] sm:$0xff] }
 0x183   :  { %3527 = vmatprep.subr.bf16.mxu0 %v11163_v60  ;;  %3739 = vmatprep.subr.bf16.mxu1 %v11165_v61  ;;  %v10696_v60 = vcombine.low %v161_v41, %v165_v43  ;;  %v10703_v61 = vcombine.high %v168_v21, %v172_v23  ;;  %v10705_v62 = vcombine.high %v169_v51, %v173_v52  ;;  %v212_v41 = vld [vmem:[#allocation2 + $0x1f0] sm:$0xff]  ;;  %v209_v43 = vld [vmem:[#allocation2 + $0x1d8] sm:$0xff] }
 0x184   :  { %v252_v28 = vld [vmem:[#allocation2 + $0x330] sm:$0xff]  ;;  %v249_v29 = vld [vmem:[#allocation2 + $0x318] sm:$0xff] }
 0x186   :  { %3528 = vmatpush1.bf16.msra.mxu0 %v11162_v2  ;;  %3740 = vmatpush1.bf16.msra.mxu1 %v11164_v3  ;;  %v177_v2 = vld [vmem:[#allocation2 + $0xd8] sm:$0xff] }
 0x187   :  { %3529 = vmatprep.subr.bf16.mxu0 %v11171_v6  ;;  %3741 = vmatprep.subr.bf16.mxu1 %v11173_v7  ;;  %v181_v3 = vld [vmem:[#allocation2 + $0xf8] sm:$0xff]  ;;  %v10702_v6 = vcombine.low %v168_v21, %v172_v23  ;;  %v10704_v7 = vcombine.low %v169_v51, %v173_v52  ;;  %v220_v21 = vld [vmem:[#allocation2 + $0x230] sm:$0xff]  ;;  %v10742_v52 = vcombine.low %v208_v40, %v212_v41 }
 0x188   :  { %v10713_v9 = vcombine.high %v177_v2, %v181_v3  ;;  %v217_v23 = vld [vmem:[#allocation2 + $0x218] sm:$0xff] }
 0x189   :  { %v221_v51 = vld [vmem:[#allocation2 + $0x238] sm:$0xff] }
 0x18a   :  { %3530 = vmatpush1.bf16.msra.mxu0 %v11170_v12  ;;  %3742 = vmatpush1.bf16.msra.mxu1 %v11172_v13  ;;  %v185_v12 = vld [vmem:[#allocation2 + $0x118] sm:$0xff] }
 0x18b   :  { %3531 = vmatprep.subr.bf16.mxu0 %v11179_v55  ;;  %3743 = vmatprep.subr.bf16.mxu1 %v11181_v57  ;;  %v189_v13 = vld [vmem:[#allocation2 + $0x138] sm:$0xff]  ;;  %v10710_v55 = vcombine.low %v176_v63, %v180_v0  ;;  %v10712_v57 = vcombine.low %v177_v2, %v181_v3  ;;  %v228_v63 = vld [vmem:[#allocation2 + $0x270] sm:$0xff] }
 0x18c   :  { %v10721_v17 = vcombine.high %v185_v12, %v189_v13  ;;  %v225_v0 = vld [vmem:[#allocation2 + $0x258] sm:$0xff] }
 0x18d   :  { %v229_v2 = vld [vmem:[#allocation2 + $0x278] sm:$0xff] }
 0x18e   :  { %3532 = vmatpush1.bf16.msra.mxu0 %v11178_v20  ;;  %3744 = vmatpush1.bf16.msra.mxu1 %v11180_v22  ;;  %v193_v20 = vld [vmem:[#allocation2 + $0x158] sm:$0xff] }
 0x18f   :  { %3533 = vmatprep.subr.bf16.mxu0 %v11187_v24  ;;  %3745 = vmatprep.subr.bf16.mxu1 %v11189_v25  ;;  %v197_v22 = vld [vmem:[#allocation2 + $0x178] sm:$0xff]  ;;  %v10718_v24 = vcombine.low %v184_v10, %v188_v11  ;;  %v10720_v25 = vcombine.low %v185_v12, %v189_v13  ;;  %v236_v10 = vld [vmem:[#allocation2 + $0x2b0] sm:$0xff] }
 0x190   :  { %v10729_v27 = vcombine.high %v193_v20, %v197_v22  ;;  %v233_v11 = vld [vmem:[#allocation2 + $0x298] sm:$0xff] }
 0x191   :  { %v237_v12 = vld [vmem:[#allocation2 + $0x2b8] sm:$0xff] }
 0x192   :  { %3534 = vmatpush1.bf16.msra.mxu0 %v11186_v30  ;;  %3746 = vmatpush1.bf16.msra.mxu1 %v11188_v31  ;;  %v201_v30 = vld [vmem:[#allocation2 + $0x198] sm:$0xff] }
 0x193   :  { %3768 = vmatprep.subr.bf16.mxu0 %v10687_v34  ;;  %3980 = vmatprep.subr.bf16.mxu1 %v10689_v38  ;;  %v205_v31 = vld [vmem:[#allocation2 + $0x1b8] sm:$0xff]  ;;  %v10726_v34 = vcombine.low %v192_v18, %v196_v19  ;;  %v10728_v38 = vcombine.low %v193_v20, %v197_v22  ;;  %v244_v18 = vld [vmem:[#allocation2 + $0x2f0] sm:$0xff] }
 0x194   :  { %v241_v19 = vld [vmem:[#allocation2 + $0x2d8] sm:$0xff] }
 0x195   :  { %3536 = vmatmul.mubr.bf16.vlgmr.msra.gmra.mrb[0].mxu0 %v13305_v42  ;;  %3748 = vmatmul.mubr.bf16.vlgmr.msra.gmra.mrb[0].mxu1 %v13305_v42  ;;  %v245_v20 = vld [vmem:[#allocation2 + $0x2f8] sm:$0xff] }
 0x196   :  { %3769 = vmatpush1.bf16.msra.mxu0 %v10686_v33  ;;  %3981 = vmatpush1.bf16.msra.mxu1 %v10688_v35  ;;  %v10736_v33 = vcombine.low %v201_v30, %v205_v31  ;;  %v10743_v35 = vcombine.high %v208_v40, %v212_v41  ;;  %v260_v40 = vld [vmem:[#allocation2 + $0x370] sm:$0xff]  ;;  %v257_v41 = vld [vmem:[#allocation2 + $0x358] sm:$0xff] }
 0x197   :  { %3770 = vmatprep.subr.bf16.mxu0 %v10695_v48  ;;  %3982 = vmatprep.subr.bf16.mxu1 %v10697_v49  ;;  %v10745_v48 = vcombine.high %v209_v43, %v213_v44  ;;  %v216_v49 = vld [vmem:[#allocation2 + $0x210] sm:$0xff] }
 0x198   :  { %3545 = vmatprep.mubr.bf16.mxu0 %v13313_v50  ;;  %3757 = vmatprep.mubr.bf16.mxu1 %v13313_v50  ;;  %v10750_v3 = vcombine.low %v216_v49, %v220_v21 }
 0x19a   :  { %3771 = vmatpush1.bf16.msra.mxu0 %v10694_v56  ;;  %3983 = vmatpush1.bf16.msra.mxu1 %v10696_v60  ;;  %v10744_v56 = vcombine.low %v209_v43, %v213_v44  ;;  %v10751_v60 = vcombine.high %v216_v49, %v220_v21  ;;  %v261_v43 = vld [vmem:[#allocation2 + $0x378] sm:$0xff]  ;;  %v268_v49 = vld [vmem:[#allocation2 + $0x3b0] sm:$0xff] }
 0x19b   :  { %3772 = vmatprep.subr.bf16.mxu0 %v10703_v61  ;;  %3984 = vmatprep.subr.bf16.mxu1 %v10705_v62  ;;  %v10753_v61 = vcombine.high %v217_v23, %v221_v51  ;;  %v224_v62 = vld [vmem:[#allocation2 + $0x250] sm:$0xff]  ;;  %v265_v21 = vld [vmem:[#allocation2 + $0x398] sm:$0xff] }
 0x19c   :  { %v10758_v13 = vcombine.low %v224_v62, %v228_v63 }
 0x19d   :  { %3546 = vmatmul.mubr.bf16.gmra.mrb[4].mxu0 %v13319_v1  ;;  %3758 = vmatmul.mubr.bf16.gmra.mrb[4].mxu1 %v13319_v1 }
 0x19e   :  { %3773 = vmatpush1.bf16.msra.mxu0 %v10702_v6  ;;  %3985 = vmatpush1.bf16.msra.mxu1 %v10704_v7  ;;  %v10752_v6 = vcombine.low %v217_v23, %v221_v51  ;;  %v10759_v7 = vcombine.high %v224_v62, %v228_v63  ;;  %v269_v23 = vld [vmem:[#allocation2 + $0x3b8] sm:$0xff]  ;;  %v276_v62 = vld [vmem:[#allocation2 + $0x3f0] sm:$0xff] }
 0x19f   :  { %3774 = vmatprep.subr.bf16.mxu0 %v10711_v8  ;;  %3986 = vmatprep.subr.bf16.mxu1 %v10713_v9  ;;  %v10761_v8 = vcombine.high %v225_v0, %v229_v2  ;;  %v232_v9 = vld [vmem:[#allocation2 + $0x290] sm:$0xff]  ;;  %v273_v63 = vld [vmem:[#allocation2 + $0x3d8] sm:$0xff] }
 0x1a0   :  { %3800 = vmatprep.mubr.bf16.mxu0 %v13191_v58  ;;  %4012 = vmatprep.mubr.bf16.mxu1 %v13191_v58  ;;  %v10737_v58 = vcombine.high %v201_v30, %v205_v31  ;;  %v10766_v22 = vcombine.low %v232_v9, %v236_v10  ;;  %v253_v30 = vld [vmem:[#allocation2 + $0x338] sm:$0xff] }
 0x1a2   :  { %3775 = vmatpush1.bf16.msra.mxu0 %v10710_v55  ;;  %3987 = vmatpush1.bf16.msra.mxu1 %v10712_v57  ;;  %v10760_v55 = vcombine.low %v225_v0, %v229_v2  ;;  %v10767_v57 = vcombine.high %v232_v9, %v236_v10  ;;  %v277_v0 = vld [vmem:[#allocation2 + $0x3f8] sm:$0xff]  ;;  %v284_v9 = vld [vmem:[#allocation2 + $0x430] sm:$0xff] }
 0x1a3   :  { %3776 = vmatprep.subr.bf16.mxu0 %v10719_v16  ;;  %3988 = vmatprep.subr.bf16.mxu1 %v10721_v17  ;;  %v10769_v16 = vcombine.high %v233_v11, %v237_v12  ;;  %v240_v17 = vld [vmem:[#allocation2 + $0x2d0] sm:$0xff]  ;;  %v281_v10 = vld [vmem:[#allocation2 + $0x418] sm:$0xff] }
 0x1a4   :  { %v10774_v31 = vcombine.low %v240_v17, %v244_v18 }
 0x1a6   :  { %3777 = vmatpush1.bf16.msra.mxu0 %v10718_v24  ;;  %3989 = vmatpush1.bf16.msra.mxu1 %v10720_v25  ;;  %v10768_v24 = vcombine.low %v233_v11, %v237_v12  ;;  %v10775_v25 = vcombine.high %v240_v17, %v244_v18  ;;  %v285_v11 = vld [vmem:[#allocation2 + $0x438] sm:$0xff]  ;;  %v292_v17 = vld [vmem:[#allocation2 + $0x470] sm:$0xff] }
 0x1a7   :  { %3778 = vmatprep.subr.bf16.mxu0 %v10727_v26  ;;  %3990 = vmatprep.subr.bf16.mxu1 %v10729_v27  ;;  %v10777_v26 = vcombine.high %v241_v19, %v245_v20  ;;  %v248_v27 = vld [vmem:[#allocation2 + $0x310] sm:$0xff]  ;;  %v289_v18 = vld [vmem:[#allocation2 + $0x458] sm:$0xff] }
 0x1a8   :  { %v10782_v44 = vcombine.low %v248_v27, %v252_v28 }
 0x1aa   :  { %3779 = vmatpush1.bf16.msra.mxu0 %v10726_v34  ;;  %3991 = vmatpush1.bf16.msra.mxu1 %v10728_v38  ;;  %v10776_v34 = vcombine.low %v241_v19, %v245_v20  ;;  %v10783_v38 = vcombine.high %v248_v27, %v252_v28  ;;  %v293_v19 = vld [vmem:[#allocation2 + $0x478] sm:$0xff]  ;;  %v300_v27 = vld [vmem:[#allocation2 + $0x4b0] sm:$0xff] }
 0x1ab   :  { %3780 = vmatprep.subr.bf16.mxu0 %v10735_v39  ;;  %3992 = vmatprep.subr.bf16.mxu1 %v10737_v58  ;;  %v10785_v39 = vcombine.high %v249_v29, %v253_v30  ;;  %v256_v58 = vld [vmem:[#allocation2 + $0x350] sm:$0xff]  ;;  %v297_v28 = vld [vmem:[#allocation2 + $0x498] sm:$0xff] }
 0x1ac   :  { %v10790_v51 = vcombine.low %v256_v58, %v260_v40 }
 0x1ae   :  { %3781 = vmatpush1.bf16.msra.mxu0 %v10734_v46  ;;  %3993 = vmatpush1.bf16.msra.mxu1 %v10736_v33  ;;  %v10784_v46 = vcombine.low %v249_v29, %v253_v30  ;;  %v10791_v33 = vcombine.high %v256_v58, %v260_v40  ;;  %v301_v29 = vld [vmem:[#allocation2 + $0x4b8] sm:$0xff]  ;;  %v308_v58 = vld [vmem:[#allocation2 + $0x4f0] sm:$0xff] }
 0x1af   :  { %3782 = vmatprep.subr.bf16.mxu0 %v10743_v35  ;;  %3994 = vmatprep.subr.bf16.mxu1 %v10745_v48  ;;  %v10793_v35 = vcombine.high %v257_v41, %v261_v43  ;;  %v264_v48 = vld [vmem:[#allocation2 + $0x390] sm:$0xff]  ;;  %v305_v40 = vld [vmem:[#allocation2 + $0x4d8] sm:$0xff] }
 0x1b0   :  { %v10798_v2 = vcombine.low %v264_v48, %v268_v49 }
 0x1b2   :  { %3783 = vmatpush1.bf16.msra.mxu0 %v10742_v52  ;;  %3995 = vmatpush1.bf16.msra.mxu1 %v10744_v56  ;;  %v10792_v52 = vcombine.low %v257_v41, %v261_v43  ;;  %v10799_v56 = vcombine.high %v264_v48, %v268_v49  ;;  %v309_v41 = vld [vmem:[#allocation2 + $0x4f8] sm:$0xff] }
 0x1b3   :  { %3784 = vmatprep.subr.bf16.mxu0 %v10751_v60  ;;  %3996 = vmatprep.subr.bf16.mxu1 %v10753_v61  ;;  %v10801_v60 = vcombine.high %v265_v21, %v269_v23  ;;  %v272_v61 = vld [vmem:[#allocation2 + $0x3d0] sm:$0xff]  ;;  %v313_v48 = vld [vmem:[#allocation2 + $0x518] sm:$0xff] }
 0x1b4   :  { %v10806_v12 = vcombine.low %v272_v61, %v276_v62  ;;  %v317_v49 = vld [vmem:[#allocation2 + $0x538] sm:$0xff] }
 0x1b6   :  { %3785 = vmatpush1.bf16.msra.mxu0 %v10750_v3  ;;  %3997 = vmatpush1.bf16.msra.mxu1 %v10752_v6  ;;  %v10800_v3 = vcombine.low %v265_v21, %v269_v23  ;;  %v10807_v6 = vcombine.high %v272_v61, %v276_v62  ;;  %v325_v61 = vld [vmem:[#allocation2 + $0x578] sm:$0xff] }
 0x1b7   :  { %3786 = vmatprep.subr.bf16.mxu0 %v10759_v7  ;;  %3998 = vmatprep.subr.bf16.mxu1 %v10761_v8  ;;  %v10809_v7 = vcombine.high %v273_v63, %v277_v0  ;;  %v280_v8 = vld [vmem:[#allocation2 + $0x410] sm:$0xff] }
 0x1b8   :  { %v10814_v20 = vcombine.low %v280_v8, %v284_v9 }
 0x1ba   :  { %3787 = vmatpush1.bf16.msra.mxu0 %v10758_v13  ;;  %3999 = vmatpush1.bf16.msra.mxu1 %v10760_v55  ;;  %v10808_v13 = vcombine.low %v273_v63, %v277_v0  ;;  %v10815_v55 = vcombine.high %v280_v8, %v284_v9  ;;  %v10848_v63 = vcombine.low %v313_v48, %v317_v49 }
 0x1bb   :  { %3788 = vmatprep.subr.bf16.mxu0 %v10767_v57  ;;  %4000 = vmatprep.subr.bf16.mxu1 %v10769_v16  ;;  %v10817_v57 = vcombine.high %v281_v10, %v285_v11  ;;  %v288_v16 = vld [vmem:[#allocation2 + $0x450] sm:$0xff] }
 0x1bc   :  { %v10822_v30 = vcombine.low %v288_v16, %v292_v17 }
 0x1be   :  { %3789 = vmatpush1.bf16.msra.mxu0 %v10766_v22  ;;  %4001 = vmatpush1.bf16.msra.mxu1 %v10768_v24  ;;  %v10816_v22 = vcombine.low %v281_v10, %v285_v11  ;;  %v10823_v24 = vcombine.high %v288_v16, %v292_v17  ;;  %v336_v11 = vld [vmem:[#allocation2 + $0x5d0] sm:$0xff] }
 0x1bf   :  { %3790 = vmatprep.subr.bf16.mxu0 %v10775_v25  ;;  %4002 = vmatprep.subr.bf16.mxu1 %v10777_v26  ;;  %v10825_v25 = vcombine.high %v289_v18, %v293_v19  ;;  %v296_v26 = vld [vmem:[#allocation2 + $0x490] sm:$0xff] }
 0x1c0   :  { %v10830_v43 = vcombine.low %v296_v26, %v300_v27 }
 0x1c2   :  { %3791 = vmatpush1.bf16.msra.mxu0 %v10774_v31  ;;  %4003 = vmatpush1.bf16.msra.mxu1 %v10776_v34  ;;  %v10824_v31 = vcombine.low %v289_v18, %v293_v19  ;;  %v10831_v34 = vcombine.high %v296_v26, %v300_v27  ;;  %v344_v19 = vld [vmem:[#allocation2 + $0x610] sm:$0xff] }
 0x1c3   :  { %3792 = vmatprep.subr.bf16.mxu0 %v10783_v38  ;;  %4004 = vmatprep.subr.bf16.mxu1 %v10785_v39  ;;  %v10833_v38 = vcombine.high %v297_v28, %v301_v29  ;;  %v304_v39 = vld [vmem:[#allocation2 + $0x4d0] sm:$0xff] }
 0x1c4   :  { %v10838_v21 = vcombine.low %v304_v39, %v308_v58 }
 0x1c6   :  { %3793 = vmatpush1.bf16.msra.mxu0 %v10782_v44  ;;  %4005 = vmatpush1.bf16.msra.mxu1 %v10784_v46  ;;  %v10839_v44 = vcombine.high %v304_v39, %v308_v58  ;;  %v10841_v46 = vcombine.high %v305_v40, %v309_v41 }
 0x1c7   :  { %3794 = vmatprep.subr.bf16.mxu0 %v10791_v33  ;;  %4006 = vmatprep.subr.bf16.mxu1 %v10793_v35  ;;  %v312_v33 = vld [vmem:[#allocation2 + $0x510] sm:$0xff] }
 0x1c8   :  { %v316_v35 = vld [vmem:[#allocation2 + $0x530] sm:$0xff] }
 0x1c9   :  { %v10847_v23 = vcombine.high %v312_v33, %v316_v35  ;;  %v10846_v62 = vcombine.low %v312_v33, %v316_v35 }
 0x1ca   :  { %3795 = vmatpush1.bf16.msra.mxu0 %v10790_v51  ;;  %4007 = vmatpush1.bf16.msra.mxu1 %v10792_v52  ;;  %v10849_v51 = vcombine.high %v313_v48, %v317_v49  ;;  %v320_v52 = vld [vmem:[#allocation2 + $0x550] sm:$0xff] }
 0x1cb   :  { %3796 = vmatprep.subr.bf16.mxu0 %v10799_v56  ;;  %4008 = vmatprep.subr.bf16.mxu1 %v10801_v60  ;;  %v324_v56 = vld [vmem:[#allocation2 + $0x570] sm:$0xff]  ;;  %v321_v60 = vld [vmem:[#allocation2 + $0x558] sm:$0xff] }
 0x1cc   :  { %v10857_v0 = vcombine.high %v321_v60, %v325_v61  ;;  %v10854_v8 = vcombine.low %v320_v52, %v324_v56  ;;  %v10856_v9 = vcombine.low %v321_v60, %v325_v61  ;;  %v368_v49 = vld [vmem:[#allocation2 + $0x6d0] sm:$0xff] }
 0x1cd   :  { %v376_v61 = vld [vmem:[#allocation2 + $0x710] sm:$0xff] }
 0x1ce   :  { %3797 = vmatpush1.bf16.msra.mxu0 %v10798_v2  ;;  %4009 = vmatpush1.bf16.msra.mxu1 %v10800_v3  ;;  %v328_v2 = vld [vmem:[#allocation2 + $0x590] sm:$0xff] }
 0x1cf   :  { %3798 = vmatprep.subr.bf16.mxu0 %v10807_v6  ;;  %4010 = vmatprep.subr.bf16.mxu1 %v10809_v7  ;;  %v332_v3 = vld [vmem:[#allocation2 + $0x5b0] sm:$0xff]  ;;  %v329_v6 = vld [vmem:[#allocation2 + $0x598] sm:$0xff] }
 0x1d0   :  { %v333_v7 = vld [vmem:[#allocation2 + $0x5b8] sm:$0xff]  ;;  %v10863_v10 = vcombine.high %v328_v2, %v332_v3 }
 0x1d1   :  { %v10864_v16 = vcombine.low %v329_v6, %v333_v7 }
 0x1d2   :  { %3799 = vmatpush1.bf16.msra.mxu0 %v10806_v12  ;;  %4011 = vmatpush1.bf16.msra.mxu1 %v10808_v13  ;;  %v340_v12 = vld [vmem:[#allocation2 + $0x5f0] sm:$0xff]  ;;  %v337_v13 = vld [vmem:[#allocation2 + $0x5d8] sm:$0xff] }
 0x1d3   :  { %3821 = vmatprep.subr.bf16.mxu0 %v10815_v55  ;;  %4033 = vmatprep.subr.bf16.mxu1 %v10817_v57  ;;  %v341_v55 = vld [vmem:[#allocation2 + $0x5f8] sm:$0xff]  ;;  %v10862_v57 = vcombine.low %v328_v2, %v332_v3  ;;  %v10871_v17 = vcombine.high %v336_v11, %v340_v12 }
 0x1d4   :  { %v10873_v18 = vcombine.high %v337_v13, %v341_v55  ;;  %v10872_v26 = vcombine.low %v337_v13, %v341_v55  ;;  %v392_v55 = vld [vmem:[#allocation2 + $0x790] sm:$0xff] }
 0x1d5   :  { %3801 = vmatmul.mubr.bf16.vlgmr.msra.gmra.mrb[8].mxu0 %v13197_v15  ;;  %4013 = vmatmul.mubr.bf16.vlgmr.msra.gmra.mrb[8].mxu1 %v13197_v15  ;;  %v10832_v15 = vcombine.low %v297_v28, %v301_v29  ;;  %v352_v29 = vld [vmem:[#allocation2 + $0x650] sm:$0xff] }
 0x1d6   :  { %3822 = vmatpush1.bf16.msra.mxu0 %v10814_v20  ;;  %4034 = vmatpush1.bf16.msra.mxu1 %v10816_v22  ;;  %v348_v20 = vld [vmem:[#allocation2 + $0x630] sm:$0xff]  ;;  %v345_v22 = vld [vmem:[#allocation2 + $0x618] sm:$0xff] }
 0x1d7   :  { %3823 = vmatprep.subr.bf16.mxu0 %v10823_v24  ;;  %4035 = vmatprep.subr.bf16.mxu1 %v10825_v25  ;;  %v349_v24 = vld [vmem:[#allocation2 + $0x638] sm:$0xff]  ;;  %v10870_v25 = vcombine.low %v336_v11, %v340_v12  ;;  %v10879_v27 = vcombine.high %v344_v19, %v348_v20 }
 0x1d8   :  { %3810 = vmatprep.mubr.bf16.mxu0 %v13205_v54  ;;  %4022 = vmatprep.mubr.bf16.mxu1 %v13205_v54  ;;  %v10840_v54 = vcombine.low %v305_v40, %v309_v41  ;;  %v10881_v28 = vcombine.high %v345_v22, %v349_v24  ;;  %v10880_v39 = vcombine.low %v345_v22, %v349_v24  ;;  %v360_v41 = vld [vmem:[#allocation2 + $0x690] sm:$0xff] }
 0x1d9   :  { %v400_v24 = vld [vmem:[#allocation2 + $0x7d0] sm:$0xff] }
 0x1da   :  { %3824 = vmatpush1.bf16.msra.mxu0 %v10822_v30  ;;  %4036 = vmatpush1.bf16.msra.mxu1 %v10824_v31  ;;  %v356_v30 = vld [vmem:[#allocation2 + $0x670] sm:$0xff]  ;;  %v353_v31 = vld [vmem:[#allocation2 + $0x658] sm:$0xff] }
 0x1db   :  { %3825 = vmatprep.subr.bf16.mxu0 %v10831_v34  ;;  %4037 = vmatprep.subr.bf16.mxu1 %v10833_v38  ;;  %v357_v34 = vld [vmem:[#allocation2 + $0x678] sm:$0xff]  ;;  %v10878_v38 = vcombine.low %v344_v19, %v348_v20  ;;  %v10887_v58 = vcombine.high %v352_v29, %v356_v30 }
 0x1dc   :  { %v10889_v40 = vcombine.high %v353_v31, %v357_v34  ;;  %v10888_v33 = vcombine.low %v353_v31, %v357_v34  ;;  %v408_v34 = vld [vmem:[#allocation2 + $0x810] sm:$0xff] }
 0x1dd   :  { %3811 = vmatmul.mubr.bf16.gmra.mrb[12].mxu0 %v13221_v36  ;;  %4023 = vmatmul.mubr.bf16.gmra.mrb[12].mxu1 %v13221_v36  ;;  %v10855_v36 = vcombine.high %v320_v52, %v324_v56 }
 0x1de   :  { %3826 = vmatpush1.bf16.msra.mxu0 %v10830_v43  ;;  %4038 = vmatpush1.bf16.msra.mxu1 %v10832_v15  ;;  %v364_v43 = vld [vmem:[#allocation2 + $0x6b0] sm:$0xff]  ;;  %v361_v15 = vld [vmem:[#allocation2 + $0x698] sm:$0xff] }
 0x1df   :  { %3827 = vmatprep.subr.bf16.mxu0 %v10839_v44  ;;  %4039 = vmatprep.subr.bf16.mxu1 %v10841_v46  ;;  %v365_v44 = vld [vmem:[#allocation2 + $0x6b8] sm:$0xff]  ;;  %v10886_v46 = vcombine.low %v352_v29, %v356_v30  ;;  %v10895_v35 = vcombine.high %v360_v41, %v364_v43 }
 0x1e0   :  { %3853 = vmatprep.mubr.bf16.mxu0 %v13225_v45  ;;  %4065 = vmatprep.mubr.bf16.mxu1 %v13225_v45  ;;  %v10865_v45 = vcombine.high %v329_v6, %v333_v7  ;;  %v10897_v48 = vcombine.high %v361_v15, %v365_v44  ;;  %v10896_v52 = vcombine.low %v361_v15, %v365_v44  ;;  %v384_v7 = vld [vmem:[#allocation2 + $0x750] sm:$0xff] }
 0x1e1   :  { %v416_v44 = vld [vmem:[#allocation2 + $0x850] sm:$0xff] }
 0x1e2   :  { %3828 = vmatpush1.bf16.msra.mxu0 %v10838_v21  ;;  %4040 = vmatpush1.bf16.msra.mxu1 %v10840_v54  ;;  %v372_v21 = vld [vmem:[#allocation2 + $0x6f0] sm:$0xff]  ;;  %v369_v54 = vld [vmem:[#allocation2 + $0x6d8] sm:$0xff] }
 0x1e3   :  { %3829 = vmatprep.subr.bf16.mxu0 %v10847_v23  ;;  %4041 = vmatprep.subr.bf16.mxu1 %v10849_v51  ;;  %v373_v23 = vld [vmem:[#allocation2 + $0x6f8] sm:$0xff]  ;;  %v10894_v51 = vcombine.low %v360_v41, %v364_v43  ;;  %v10903_v56 = vcombine.high %v368_v49, %v372_v21 }
 0x1e4   :  { %v10905_v60 = vcombine.high %v369_v54, %v373_v23  ;;  %v10904_v2 = vcombine.low %v369_v54, %v373_v23  ;;  %v424_v23 = vld [vmem:[#allocation2 + $0x890] sm:$0xff] }
 0x1e6   :  { %3830 = vmatpush1.bf16.msra.mxu0 %v10846_v62  ;;  %4042 = vmatpush1.bf16.msra.mxu1 %v10848_v63  ;;  %v380_v62 = vld [vmem:[#allocation2 + $0x730] sm:$0xff]  ;;  %v377_v63 = vld [vmem:[#allocation2 + $0x718] sm:$0xff] }
 0x1e7   :  { %3831 = vmatprep.subr.bf16.mxu0 %v10855_v36  ;;  %4043 = vmatprep.subr.bf16.mxu1 %v10857_v0  ;;  %v381_v36 = vld [vmem:[#allocation2 + $0x738] sm:$0xff]  ;;  %v10902_v0 = vcombine.low %v368_v49, %v372_v21  ;;  %v10911_v3 = vcombine.high %v376_v61, %v380_v62 }
 0x1e8   :  { %v10913_v6 = vcombine.high %v377_v63, %v381_v36  ;;  %v10912_v11 = vcombine.low %v377_v63, %v381_v36  ;;  %v432_v36 = vld [vmem:[#allocation2 + $0x8d0] sm:$0xff] }
 0x1ea   :  { %3832 = vmatpush1.bf16.msra.mxu0 %v10854_v8  ;;  %4044 = vmatpush1.bf16.msra.mxu1 %v10856_v9  ;;  %v388_v8 = vld [vmem:[#allocation2 + $0x770] sm:$0xff]  ;;  %v385_v9 = vld [vmem:[#allocation2 + $0x758] sm:$0xff] }
 0x1eb   :  { %3833 = vmatprep.subr.bf16.mxu0 %v10863_v10  ;;  %4045 = vmatprep.subr.bf16.mxu1 %v10865_v45  ;;  %v389_v10 = vld [vmem:[#allocation2 + $0x778] sm:$0xff]  ;;  %v10910_v45 = vcombine.low %v376_v61, %v380_v62  ;;  %v10919_v12 = vcombine.high %v384_v7, %v388_v8 }
 0x1ec   :  { %v10921_v13 = vcombine.high %v385_v9, %v389_v10  ;;  %v10920_v19 = vcombine.low %v385_v9, %v389_v10  ;;  %v440_v9 = vld [vmem:[#allocation2 + $0x910] sm:$0xff] }
 0x1ed   :  { %v444_v10 = vld [vmem:[#allocation2 + $0x930] sm:$0xff] }
 0x1ee   :  { %3834 = vmatpush1.bf16.msra.mxu0 %v10862_v57  ;;  %4046 = vmatpush1.bf16.msra.mxu1 %v10864_v16  ;;  %v396_v57 = vld [vmem:[#allocation2 + $0x7b0] sm:$0xff]  ;;  %v393_v16 = vld [vmem:[#allocation2 + $0x798] sm:$0xff] }
 0x1ef   :  { %3835 = vmatprep.subr.bf16.mxu0 %v10871_v17  ;;  %4047 = vmatprep.subr.bf16.mxu1 %v10873_v18  ;;  %v397_v17 = vld [vmem:[#allocation2 + $0x7b8] sm:$0xff]  ;;  %v10918_v18 = vcombine.low %v384_v7, %v388_v8  ;;  %v10927_v20 = vcombine.high %v392_v55, %v396_v57 }
 0x1f0   :  { %v10929_v22 = vcombine.high %v393_v16, %v397_v17  ;;  %v10928_v29 = vcombine.low %v393_v16, %v397_v17  ;;  %v452_v16 = vld [vmem:[#allocation2 + $0x970] sm:$0xff]  ;;  %v449_v17 = vld [vmem:[#allocation2 + $0x958] sm:$0xff] }
 0x1f2   :  { %3836 = vmatpush1.bf16.msra.mxu0 %v10870_v25  ;;  %4048 = vmatpush1.bf16.msra.mxu1 %v10872_v26  ;;  %v404_v25 = vld [vmem:[#allocation2 + $0x7f0] sm:$0xff]  ;;  %v401_v26 = vld [vmem:[#allocation2 + $0x7d8] sm:$0xff] }
 0x1f3   :  { %3837 = vmatprep.subr.bf16.mxu0 %v10879_v27  ;;  %4049 = vmatprep.subr.bf16.mxu1 %v10881_v28  ;;  %v405_v27 = vld [vmem:[#allocation2 + $0x7f8] sm:$0xff]  ;;  %v10926_v28 = vcombine.low %v392_v55, %v396_v57  ;;  %v10935_v30 = vcombine.high %v400_v24, %v404_v25  ;;  %v448_v57 = vld [vmem:[#allocation2 + $0x950] sm:$0xff] }
 0x1f4   :  { %v10937_v31 = vcombine.high %v401_v26, %v405_v27  ;;  %v10936_v41 = vcombine.low %v401_v26, %v405_v27  ;;  %v457_v26 = vld [vmem:[#allocation2 + $0x998] sm:$0xff] }
 0x1f5   :  { %v461_v27 = vld [vmem:[#allocation2 + $0x9b8] sm:$0xff] }
 0x1f6   :  { %3838 = vmatpush1.bf16.msra.mxu0 %v10878_v38  ;;  %4050 = vmatpush1.bf16.msra.mxu1 %v10880_v39  ;;  %v412_v38 = vld [vmem:[#allocation2 + $0x830] sm:$0xff]  ;;  %v409_v39 = vld [vmem:[#allocation2 + $0x818] sm:$0xff] }
 0x1f7   :  { %3839 = vmatprep.subr.bf16.mxu0 %v10887_v58  ;;  %4051 = vmatprep.subr.bf16.mxu1 %v10889_v40  ;;  %v413_v58 = vld [vmem:[#allocation2 + $0x838] sm:$0xff]  ;;  %v10934_v40 = vcombine.low %v400_v24, %v404_v25  ;;  %v10943_v43 = vcombine.high %v408_v34, %v412_v38  ;;  %v456_v24 = vld [vmem:[#allocation2 + $0x990] sm:$0xff] }
 0x1f8   :  { %v10945_v15 = vcombine.high %v409_v39, %v413_v58  ;;  %v10944_v49 = vcombine.low %v409_v39, %v413_v58  ;;  %v460_v25 = vld [vmem:[#allocation2 + $0x9b0] sm:$0xff]  ;;  %v469_v39 = vld [vmem:[#allocation2 + $0x9f8] sm:$0xff] }
 0x1f9   :  { %v10990_v58 = vcombine.low %v456_v24, %v460_v25 }
 0x1fa   :  { %3840 = vmatpush1.bf16.msra.mxu0 %v10886_v46  ;;  %4052 = vmatpush1.bf16.msra.mxu1 %v10888_v33  ;;  %v420_v46 = vld [vmem:[#allocation2 + $0x870] sm:$0xff]  ;;  %v417_v33 = vld [vmem:[#allocation2 + $0x858] sm:$0xff] }
 0x1fb   :  { %3841 = vmatprep.subr.bf16.mxu0 %v10895_v35  ;;  %4053 = vmatprep.subr.bf16.mxu1 %v10897_v48  ;;  %v421_v35 = vld [vmem:[#allocation2 + $0x878] sm:$0xff]  ;;  %v10942_v48 = vcombine.low %v408_v34, %v412_v38  ;;  %v10951_v21 = vcombine.high %v416_v44, %v420_v46  ;;  %v468_v34 = vld [vmem:[#allocation2 + $0x9f0] sm:$0xff] }
 0x1fc   :  { %v10953_v54 = vcombine.high %v417_v33, %v421_v35  ;;  %v10952_v61 = vcombine.low %v417_v33, %v421_v35  ;;  %v465_v38 = vld [vmem:[#allocation2 + $0x9d8] sm:$0xff] }
 0x1fd   :  { %v477_v33 = vld [vmem:[#allocation2 + $0xa38] sm:$0xff] }
 0x1fe   :  { %3842 = vmatpush1.bf16.msra.mxu0 %v10894_v51  ;;  %4054 = vmatpush1.bf16.msra.mxu1 %v10896_v52  ;;  %v428_v51 = vld [vmem:[#allocation2 + $0x8b0] sm:$0xff]  ;;  %v425_v52 = vld [vmem:[#allocation2 + $0x898] sm:$0xff] }
 0x1ff   :  { %3843 = vmatprep.subr.bf16.mxu0 %v10903_v56  ;;  %4055 = vmatprep.subr.bf16.mxu1 %v10905_v60  ;;  %v429_v56 = vld [vmem:[#allocation2 + $0x8b8] sm:$0xff]  ;;  %v10950_v60 = vcombine.low %v416_v44, %v420_v46  ;;  %v10959_v62 = vcombine.high %v424_v23, %v428_v51  ;;  %v476_v44 = vld [vmem:[#allocation2 + $0xa30] sm:$0xff] }
 0x200   :  { %v10961_v63 = vcombine.high %v425_v52, %v429_v56  ;;  %v473_v46 = vld [vmem:[#allocation2 + $0xa18] sm:$0xff] }
 0x202   :  { %3844 = vmatpush1.bf16.msra.mxu0 %v10902_v0  ;;  %4056 = vmatpush1.bf16.msra.mxu1 %v10904_v2  ;;  %v436_v0 = vld [vmem:[#allocation2 + $0x8f0] sm:$0xff]  ;;  %v433_v2 = vld [vmem:[#allocation2 + $0x8d8] sm:$0xff] }
 0x203   :  { %3845 = vmatprep.subr.bf16.mxu0 %v10911_v3  ;;  %4057 = vmatprep.subr.bf16.mxu1 %v10913_v6  ;;  %v437_v3 = vld [vmem:[#allocation2 + $0x8f8] sm:$0xff]  ;;  %v10958_v6 = vcombine.low %v424_v23, %v428_v51  ;;  %v10967_v7 = vcombine.high %v432_v36, %v436_v0  ;;  %v484_v23 = vld [vmem:[#allocation2 + $0xa70] sm:$0xff] }
 0x204   :  { %v10969_v8 = vcombine.high %v433_v2, %v437_v3  ;;  %v481_v51 = vld [vmem:[#allocation2 + $0xa58] sm:$0xff] }
 0x206   :  { %3846 = vmatpush1.bf16.msra.mxu0 %v10910_v45  ;;  %4058 = vmatpush1.bf16.msra.mxu1 %v10912_v11  ;;  %v441_v45 = vld [vmem:[#allocation2 + $0x918] sm:$0xff] }
 0x207   :  { %3847 = vmatprep.subr.bf16.mxu0 %v10919_v12  ;;  %4059 = vmatprep.subr.bf16.mxu1 %v10921_v13  ;;  %v445_v11 = vld [vmem:[#allocation2 + $0x938] sm:$0xff]  ;;  %v10966_v12 = vcombine.low %v432_v36, %v436_v0  ;;  %v10975_v13 = vcombine.high %v440_v9, %v444_v10  ;;  %v492_v36 = vld [vmem:[#allocation2 + $0xab0] sm:$0xff] }
 0x208   :  { %v10977_v55 = vcombine.high %v441_v45, %v445_v11  ;;  %v489_v0 = vld [vmem:[#allocation2 + $0xa98] sm:$0xff] }
 0x20a   :  { %3848 = vmatpush1.bf16.msra.mxu0 %v10918_v18  ;;  %4060 = vmatpush1.bf16.msra.mxu1 %v10920_v19  ;;  %v453_v18 = vld [vmem:[#allocation2 + $0x978] sm:$0xff]  ;;  %v10974_v19 = vcombine.low %v440_v9, %v444_v10  ;;  %v500_v9 = vld [vmem:[#allocation2 + $0xaf0] sm:$0xff] }
 0x20b   :  { %3849 = vmatprep.subr.bf16.mxu0 %v10927_v20  ;;  %4061 = vmatprep.subr.bf16.mxu1 %v10929_v22  ;;  %v10976_v20 = vcombine.low %v441_v45, %v445_v11  ;;  %v10985_v22 = vcombine.high %v449_v17, %v453_v18  ;;  %v497_v10 = vld [vmem:[#allocation2 + $0xad8] sm:$0xff] }
 0x20c   :  { %v501_v45 = vld [vmem:[#allocation2 + $0xaf8] sm:$0xff] }
 0x20e   :  { %3850 = vmatpush1.bf16.msra.mxu0 %v10926_v28  ;;  %4062 = vmatpush1.bf16.msra.mxu1 %v10928_v29  ;;  %v10982_v28 = vcombine.low %v448_v57, %v452_v16  ;;  %v10984_v29 = vcombine.low %v449_v17, %v453_v18  ;;  %v509_v17 = vld [vmem:[#allocation2 + $0xb38] sm:$0xff] }
 0x20f   :  { %3851 = vmatprep.subr.bf16.mxu0 %v10935_v30  ;;  %4063 = vmatprep.subr.bf16.mxu1 %v10937_v31  ;;  %v10991_v30 = vcombine.high %v456_v24, %v460_v25  ;;  %v464_v31 = vld [vmem:[#allocation2 + $0x9d0] sm:$0xff]  ;;  %v513_v25 = vld [vmem:[#allocation2 + $0xb58] sm:$0xff] }
 0x210   :  { %v10998_v35 = vcombine.low %v464_v31, %v468_v34  ;;  %v516_v24 = vld [vmem:[#allocation2 + $0xb70] sm:$0xff] }
 0x212   :  { %3852 = vmatpush1.bf16.msra.mxu0 %v10934_v40  ;;  %4064 = vmatpush1.bf16.msra.mxu1 %v10936_v41  ;;  %v10992_v40 = vcombine.low %v457_v26, %v461_v27  ;;  %v10999_v41 = vcombine.high %v464_v31, %v468_v34  ;;  %v524_v31 = vld [vmem:[#allocation2 + $0xbb0] sm:$0xff]  ;;  %v521_v34 = vld [vmem:[#allocation2 + $0xb98] sm:$0xff] }
 0x213   :  { %3874 = vmatprep.subr.bf16.mxu0 %v10943_v43  ;;  %4086 = vmatprep.subr.bf16.mxu1 %v10945_v15  ;;  %v11001_v43 = vcombine.high %v465_v38, %v469_v39  ;;  %v472_v15 = vld [vmem:[#allocation2 + $0xa10] sm:$0xff] }
 0x215   :  { %3854 = vmatmul.mubr.bf16.vlgmr.msra.gmra.mrb[8].mxu0 %v13239_v37  ;;  %4066 = vmatmul.mubr.bf16.vlgmr.msra.gmra.mrb[8].mxu1 %v13239_v37  ;;  %v10960_v37 = vcombine.low %v425_v52, %v429_v56  ;;  %v485_v52 = vld [vmem:[#allocation2 + $0xa78] sm:$0xff]  ;;  %v11006_v56 = vcombine.low %v472_v15, %v476_v44 }
 0x216   :  { %3875 = vmatpush1.bf16.msra.mxu0 %v10942_v48  ;;  %4087 = vmatpush1.bf16.msra.mxu1 %v10944_v49  ;;  %v11000_v48 = vcombine.low %v465_v38, %v469_v39  ;;  %v11007_v49 = vcombine.high %v472_v15, %v476_v44  ;;  %v525_v38 = vld [vmem:[#allocation2 + $0xbb8] sm:$0xff]  ;;  %v532_v15 = vld [vmem:[#allocation2 + $0xbf0] sm:$0xff] }
 0x217   :  { %3876 = vmatprep.subr.bf16.mxu0 %v10951_v21  ;;  %4088 = vmatprep.subr.bf16.mxu1 %v10953_v54  ;;  %v11009_v21 = vcombine.high %v473_v46, %v477_v33  ;;  %v480_v54 = vld [vmem:[#allocation2 + $0xa50] sm:$0xff]  ;;  %v529_v44 = vld [vmem:[#allocation2 + $0xbd8] sm:$0xff] }
 0x218   :  { %3863 = vmatprep.mubr.bf16.mxu0 %v13241_v47  ;;  %4075 = vmatprep.mubr.bf16.mxu1 %v13241_v47  ;;  %v10968_v47 = vcombine.low %v433_v2, %v437_v3  ;;  %v493_v2 = vld [vmem:[#allocation2 + $0xab8] sm:$0xff]  ;;  %v11014_v3 = vcombine.low %v480_v54, %v484_v23 }
 0x21a   :  { %3877 = vmatpush1.bf16.msra.mxu0 %v10950_v60  ;;  %4089 = vmatpush1.bf16.msra.mxu1 %v10952_v61  ;;  %v11008_v60 = vcombine.low %v473_v46, %v477_v33  ;;  %v11015_v61 = vcombine.high %v480_v54, %v484_v23  ;;  %v533_v46 = vld [vmem:[#allocation2 + $0xbf8] sm:$0xff]  ;;  %v540_v54 = vld [vmem:[#allocation2 + $0xc30] sm:$0xff] }
 0x21b   :  { %3878 = vmatprep.subr.bf16.mxu0 %v10959_v62  ;;  %4090 = vmatprep.subr.bf16.mxu1 %v10961_v63  ;;  %v11017_v62 = vcombine.high %v481_v51, %v485_v52  ;;  %v488_v63 = vld [vmem:[#allocation2 + $0xa90] sm:$0xff]  ;;  %v537_v23 = vld [vmem:[#allocation2 + $0xc18] sm:$0xff] }
 0x21c   :  { %v11022_v11 = vcombine.low %v488_v63, %v492_v36 }
 0x21d   :  { %3864 = vmatmul.mubr.bf16.gmra.mrb[12].mxu0 %v13257_v59  ;;  %4076 = vmatmul.mubr.bf16.gmra.mrb[12].mxu1 %v13257_v59  ;;  %v10983_v59 = vcombine.high %v448_v57, %v452_v16  ;;  %v508_v57 = vld [vmem:[#allocation2 + $0xb30] sm:$0xff]  ;;  %v505_v16 = vld [vmem:[#allocation2 + $0xb18] sm:$0xff] }
 0x21e   :  { %3879 = vmatpush1.bf16.msra.mxu0 %v10958_v6  ;;  %4091 = vmatpush1.bf16.msra.mxu1 %v10960_v37  ;;  %v11016_v6 = vcombine.low %v481_v51, %v485_v52  ;;  %v11023_v37 = vcombine.high %v488_v63, %v492_v36  ;;  %v541_v51 = vld [vmem:[#allocation2 + $0xc38] sm:$0xff]  ;;  %v548_v63 = vld [vmem:[#allocation2 + $0xc70] sm:$0xff] }
 0x21f   :  { %3880 = vmatprep.subr.bf16.mxu0 %v10967_v7  ;;  %4092 = vmatprep.subr.bf16.mxu1 %v10969_v8  ;;  %v11025_v7 = vcombine.high %v489_v0, %v493_v2  ;;  %v496_v8 = vld [vmem:[#allocation2 + $0xad0] sm:$0xff]  ;;  %v545_v36 = vld [vmem:[#allocation2 + $0xc58] sm:$0xff] }
 0x220   :  { %3906 = vmatprep.mubr.bf16.mxu0 %v13261_v4  ;;  %4118 = vmatprep.mubr.bf16.mxu1 %v13261_v4  ;;  %v10993_v4 = vcombine.high %v457_v26, %v461_v27  ;;  %v11030_v18 = vcombine.low %v496_v8, %v500_v9  ;;  %v517_v26 = vld [vmem:[#allocation2 + $0xb78] sm:$0xff] }
 0x222   :  { %3881 = vmatpush1.bf16.msra.mxu0 %v10966_v12  ;;  %4093 = vmatpush1.bf16.msra.mxu1 %v10968_v47  ;;  %v11024_v12 = vcombine.low %v489_v0, %v493_v2  ;;  %v11031_v47 = vcombine.high %v496_v8, %v500_v9  ;;  %v549_v0 = vld [vmem:[#allocation2 + $0xc78] sm:$0xff]  ;;  %v556_v8 = vld [vmem:[#allocation2 + $0xcb0] sm:$0xff] }
 0x223   :  { %3882 = vmatprep.subr.bf16.mxu0 %v10975_v13  ;;  %4094 = vmatprep.subr.bf16.mxu1 %v10977_v55  ;;  %v11033_v13 = vcombine.high %v497_v10, %v501_v45  ;;  %v504_v55 = vld [vmem:[#allocation2 + $0xb10] sm:$0xff]  ;;  %v553_v9 = vld [vmem:[#allocation2 + $0xc98] sm:$0xff] }
 0x224   :  { %v11038_v27 = vcombine.low %v504_v55, %v508_v57 }
 0x226   :  { %3883 = vmatpush1.bf16.msra.mxu0 %v10974_v19  ;;  %4095 = vmatpush1.bf16.msra.mxu1 %v10976_v20  ;;  %v11032_v19 = vcombine.low %v497_v10, %v501_v45  ;;  %v11039_v20 = vcombine.high %v504_v55, %v508_v57  ;;  %v557_v10 = vld [vmem:[#allocation2 + $0xcb8] sm:$0xff]  ;;  %v564_v55 = vld [vmem:[#allocation2 + $0xcf0] sm:$0xff] }
 0x227   :  { %3884 = vmatprep.subr.bf16.mxu0 %v10983_v59  ;;  %4096 = vmatprep.subr.bf16.mxu1 %v10985_v22  ;;  %v11041_v59 = vcombine.high %v505_v16, %v509_v17  ;;  %v512_v22 = vld [vmem:[#allocation2 + $0xb50] sm:$0xff]  ;;  %v561_v57 = vld [vmem:[#allocation2 + $0xcd8] sm:$0xff] }
 0x228   :  { %v11046_v39 = vcombine.low %v512_v22, %v516_v24 }
 0x22a   :  { %3885 = vmatpush1.bf16.msra.mxu0 %v10982_v28  ;;  %4097 = vmatpush1.bf16.msra.mxu1 %v10984_v29  ;;  %v11040_v28 = vcombine.low %v505_v16, %v509_v17  ;;  %v11047_v29 = vcombine.high %v512_v22, %v516_v24  ;;  %v565_v16 = vld [vmem:[#allocation2 + $0xcf8] sm:$0xff]  ;;  %v664_v17 = vlaneseq  ;;  %v572_v22 = vld [vmem:[#allocation2 + $0xd30] sm:$0xff] }
 0x22b   :  { %3886 = vmatprep.subr.bf16.mxu0 %v10991_v30  ;;  %4098 = vmatprep.subr.bf16.mxu1 %v10993_v4  ;;  %v11049_v30 = vcombine.high %v513_v25, %v517_v26  ;;  %v520_v4 = vld [vmem:[#allocation2 + $0xb90] sm:$0xff]  ;;  %v569_v24 = vld [vmem:[#allocation2 + $0xd18] sm:$0xff] }
 0x22c   :  { %v11054_v33 = vcombine.low %v520_v4, %v524_v31 }
 0x22e   :  { %3887 = vmatpush1.bf16.msra.mxu0 %v10990_v58  ;;  %4099 = vmatpush1.bf16.msra.mxu1 %v10992_v40  ;;  %v11048_v58 = vcombine.low %v513_v25, %v517_v26  ;;  %v11055_v40 = vcombine.high %v520_v4, %v524_v31  ;;  %v573_v25 = vld [vmem:[#allocation2 + $0xd38] sm:$0xff]  ;;  %v13345_v26 = vshrl.u32 %v664_v17, 7  ;;  %v580_v4 = vld [vmem:[#allocation2 + $0xd70] sm:$0xff] }
 0x22f   :  { %3888 = vmatprep.subr.bf16.mxu0 %v10999_v41  ;;  %4100 = vmatprep.subr.bf16.mxu1 %v11001_v43  ;;  %v11057_v41 = vcombine.high %v521_v34, %v525_v38  ;;  %v528_v43 = vld [vmem:[#allocation2 + $0xbd0] sm:$0xff] }
 0x230   :  { %v11062_v52 = vcombine.low %v528_v43, %v532_v15  ;;  %v13351_v31 = vsub.s32 0, %v13345_v26 }
 0x232   :  { %3889 = vmatpush1.bf16.msra.mxu0 %v10998_v35  ;;  %4101 = vmatpush1.bf16.msra.mxu1 %v11000_v48  ;;  %v11056_v35 = vcombine.low %v521_v34, %v525_v38  ;;  %v11063_v48 = vcombine.high %v528_v43, %v532_v15  ;;  %v577_v34 = vld [vmem:[#allocation2 + $0xd58] sm:$0xff]  ;;  %v13361_v43 = vsub.s32 3, %v13345_v26 }
 0x233   :  { %3890 = vmatprep.subr.bf16.mxu0 %v11007_v49  ;;  %4102 = vmatprep.subr.bf16.mxu1 %v11009_v21  ;;  %v11065_v49 = vcombine.high %v529_v44, %v533_v46  ;;  %v536_v21 = vld [vmem:[#allocation2 + $0xc10] sm:$0xff]  ;;  %v581_v38 = vld [vmem:[#allocation2 + $0xd78] sm:$0xff] }
 0x234   :  { %v11070_v2 = vcombine.low %v536_v21, %v540_v54 }
 0x236   :  { %3891 = vmatpush1.bf16.msra.mxu0 %v11006_v56  ;;  %4103 = vmatpush1.bf16.msra.mxu1 %v11008_v60  ;;  %v11064_v56 = vcombine.low %v529_v44, %v533_v46  ;;  %v11071_v60 = vcombine.high %v536_v21, %v540_v54  ;;  %v11113_v44 = vcombine.high %v577_v34, %v581_v38  ;;  %v584_v46 = vld [vmem:[#allocation2 + $0xd90] sm:$0xff] }
 0x237   :  { %3892 = vmatprep.subr.bf16.mxu0 %v11015_v61  ;;  %4104 = vmatprep.subr.bf16.mxu1 %v11017_v62  ;;  %v11073_v61 = vcombine.high %v537_v23, %v541_v51  ;;  %v544_v62 = vld [vmem:[#allocation2 + $0xc50] sm:$0xff] }
 0x238   :  { %v11078_v45 = vcombine.low %v544_v62, %v548_v63 }
 0x23a   :  { %3893 = vmatpush1.bf16.msra.mxu0 %v11014_v3  ;;  %4105 = vmatpush1.bf16.msra.mxu1 %v11016_v6  ;;  %v11072_v3 = vcombine.low %v537_v23, %v541_v51  ;;  %v11079_v6 = vcombine.high %v544_v62, %v548_v63  ;;  %v11112_v51 = vcombine.low %v577_v34, %v581_v38  ;;  %v596_v62 = vld [vmem:[#allocation2 + $0xdf0] sm:$0xff] }
 0x23b   :  { %3894 = vmatprep.subr.bf16.mxu0 %v11023_v37  ;;  %4106 = vmatprep.subr.bf16.mxu1 %v11025_v7  ;;  %v11081_v37 = vcombine.high %v545_v36, %v549_v0  ;;  %v552_v7 = vld [vmem:[#allocation2 + $0xc90] sm:$0xff] }
 0x23e   :  { %3895 = vmatpush1.bf16.msra.mxu0 %v11022_v11  ;;  %4107 = vmatpush1.bf16.msra.mxu1 %v11024_v12  ;;  %v11080_v11 = vcombine.low %v545_v36, %v549_v0  ;;  %v11087_v12 = vcombine.high %v552_v7, %v556_v8 }
 0x23f   :  { %3896 = vmatprep.subr.bf16.mxu0 %v11031_v47  ;;  %4108 = vmatprep.subr.bf16.mxu1 %v11033_v13  ;;  %v11089_v47 = vcombine.high %v553_v9, %v557_v10  ;;  %v560_v13 = vld [vmem:[#allocation2 + $0xcd0] sm:$0xff] }
 0x242   :  { %3897 = vmatpush1.bf16.msra.mxu0 %v11030_v18  ;;  %4109 = vmatpush1.bf16.msra.mxu1 %v11032_v19  ;;  %v11086_v18 = vcombine.low %v552_v7, %v556_v8  ;;  %v11095_v19 = vcombine.high %v560_v13, %v564_v55 }
 0x243   :  { %3898 = vmatprep.subr.bf16.mxu0 %v11039_v20  ;;  %4110 = vmatprep.subr.bf16.mxu1 %v11041_v59  ;;  %v11097_v20 = vcombine.high %v561_v57, %v565_v16  ;;  %v568_v59 = vld [vmem:[#allocation2 + $0xd10] sm:$0xff] }
 0x246   :  { %3899 = vmatpush1.bf16.msra.mxu0 %v11038_v27  ;;  %4111 = vmatpush1.bf16.msra.mxu1 %v11040_v28  ;;  %v11094_v27 = vcombine.low %v560_v13, %v564_v55  ;;  %v11103_v28 = vcombine.high %v568_v59, %v572_v22 }
 0x247   :  { %3900 = vmatprep.subr.bf16.mxu0 %v11047_v29  ;;  %4112 = vmatprep.subr.bf16.mxu1 %v11049_v30  ;;  %v11105_v29 = vcombine.high %v569_v24, %v573_v25  ;;  %v576_v30 = vld [vmem:[#allocation2 + $0xd50] sm:$0xff] }
 0x248   :  { %v11111_v15 = vcombine.high %v576_v30, %v580_v4  ;;  %v11110_v54 = vcombine.low %v576_v30, %v580_v4 }
 0x24a   :  { %3901 = vmatpush1.bf16.msra.mxu0 %v11046_v39  ;;  %4113 = vmatpush1.bf16.msra.mxu1 %v11048_v58  ;;  %v11102_v39 = vcombine.low %v568_v59, %v572_v22  ;;  %v13355_v58 = vsub.s32 2, %v13345_v26 }
 0x24b   :  { %3902 = vmatprep.subr.bf16.mxu0 %v11055_v40  ;;  %4114 = vmatprep.subr.bf16.mxu1 %v11057_v41  ;;  %v13358_v40 = vsub.s32 1, %v13345_v26  ;;  %v11104_v41 = vcombine.low %v569_v24, %v573_v25  ;;  %v601_v25 = vld [vmem:[#allocation2 + $0xe18] sm:$0xff] }
 0x24e   :  { %3903 = vmatpush1.bf16.msra.mxu0 %v11054_v33  ;;  %4115 = vmatpush1.bf16.msra.mxu1 %v11056_v35  ;;  %v585_v35 = vld [vmem:[#allocation2 + $0xd98] sm:$0xff] }
 0x24f   :  { %3904 = vmatprep.subr.bf16.mxu0 %v11063_v48  ;;  %4116 = vmatprep.subr.bf16.mxu1 %v11065_v49  ;;  %v589_v48 = vld [vmem:[#allocation2 + $0xdb8] sm:$0xff] }
 0x252   :  { %3905 = vmatpush1.bf16.msra.mxu0 %v11062_v52  ;;  %4117 = vmatpush1.bf16.msra.mxu1 %v11064_v56 }
 0x253   :  { %3927 = vmatprep.subr.bf16.mxu0 %v11071_v60  ;;  %4139 = vmatprep.subr.bf16.mxu1 %v11073_v61  ;;  %v11121_v60 = vcombine.high %v585_v35, %v589_v48  ;;  %v13375_v61 = vld [vmem:[#allocation2 + $0xdd0] sm:$0xff] }
 0x254   :  { %v11127_v13 = vcombine.high %v13375_v61, %v596_v62  ;;  %v11126_v17 = vcombine.low %v13375_v61, %v596_v62 }
 0x255   :  { %3907 = vmatmul.mubr.bf16.vlgmr.msra.gmra.mrb[8].mxu0 %v13275_v5  ;;  %4119 = vmatmul.mubr.bf16.vlgmr.msra.gmra.mrb[8].mxu1 %v13275_v5  ;;  %v11088_v5 = vcombine.low %v553_v9, %v557_v10  ;;  %v11120_v10 = vcombine.low %v585_v35, %v589_v48 }
 0x256   :  { %3928 = vmatpush1.bf16.msra.mxu0 %v11070_v2  ;;  %4140 = vmatpush1.bf16.msra.mxu1 %v11072_v3  ;;  %v13378_v2 = vld [vmem:[#allocation2 + $0xdd8] sm:$0xff] }
 0x257   :  { %3929 = vmatprep.subr.bf16.mxu0 %v11079_v6  ;;  %4141 = vmatprep.subr.bf16.mxu1 %v11081_v37  ;;  %v13380_v3 = vld [vmem:[#allocation2 + $0xdf8] sm:$0xff] }
 0x258   :  { %3916 = vmatprep.mubr.bf16.mxu0 %v13277_v14  ;;  %4128 = vmatprep.mubr.bf16.mxu1 %v13277_v14  ;;  %v11096_v14 = vcombine.low %v561_v57, %v565_v16  ;;  %v11128_v24 = vcombine.low %v13378_v2, %v13380_v3 }
 0x25a   :  { %3930 = vmatpush1.bf16.msra.mxu0 %v11078_v45  ;;  %4142 = vmatpush1.bf16.msra.mxu1 %v11080_v11 }
 0x25b   :  { %3931 = vmatprep.subr.bf16.mxu0 %v11087_v12  ;;  %4143 = vmatprep.subr.bf16.mxu1 %v11089_v47 }
 0x25d   :  { %3917 = vmatmul.mubr.bf16.gmra.mrb[12].mxu0 %v13293_v53  ;;  %4129 = vmatmul.mubr.bf16.gmra.mrb[12].mxu1 %v13293_v53  ;;  %v662_v53 = vld [vmem:[#allocation4] sm:$0xff] }
 0x25e   :  { %3932 = vmatpush1.bf16.msra.mxu0 %v11086_v18  ;;  %4144 = vmatpush1.bf16.msra.mxu1 %v11088_v5  ;;  %v13364_v33 = vrot.slane %v662_v53, %v13351_v31  ;;  %v13367_v49 = vrot.slane %v662_v53, %v13355_v58  ;;  %v13370_v21 = vrot.slane %v662_v53, %v13358_v40  ;;  %v13392_v5 = vld [vmem:[#allocation2 + $0xe10] sm:$0xff] }
 0x25f   :  { %3933 = vmatprep.subr.bf16.mxu0 %v11095_v19  ;;  %4145 = vmatprep.subr.bf16.mxu1 %v11097_v20  ;;  %v13373_v23 = vrot.slane %v662_v53, %v13361_v43  ;;  %v11129_v18 = vcombine.high %v13378_v2, %v13380_v3  ;;  %v13394_v19 = vld [vmem:[#allocation2 + $0xe30] sm:$0xff] }
 0x260   :  { %3959 = vmatprep.mubr.bf16.mxu0 %v13297_v32  ;;  %4171 = vmatprep.mubr.bf16.mxu1 %v13297_v32  ;;  %v588_v32 = vld [vmem:[#allocation2 + $0xdb0] sm:$0xff] }
 0x261   :  { %v11119_v52 = vcombine.high %v584_v46, %v588_v32  ;;  %v11118_v9 = vcombine.low %v584_v46, %v588_v32  ;;  %v608_v46 = vld [vmem:[#allocation2 + $0xe50] sm:$0xff] }
 0x262   :  { %3934 = vmatpush1.bf16.msra.mxu0 %v11094_v27  ;;  %4146 = vmatpush1.bf16.msra.mxu1 %v11096_v14  ;;  %v605_v27 = vld [vmem:[#allocation2 + $0xe38] sm:$0xff]  ;;  %v612_v32 = vld [vmem:[#allocation2 + $0xe70] sm:$0xff] }
 0x263   :  { %3935 = vmatprep.subr.bf16.mxu0 %v11103_v28  ;;  %4147 = vmatprep.subr.bf16.mxu1 %v11105_v29 }
 0x266   :  { %3936 = vmatpush1.bf16.msra.mxu0 %v11102_v39  ;;  %4148 = vmatpush1.bf16.msra.mxu1 %v11104_v41  ;;  %v11135_v39 = vcombine.high %v13392_v5, %v13394_v19 }
 0x267   :  { %3937 = vmatprep.subr.bf16.mxu0 %v11111_v15  ;;  %4149 = vmatprep.subr.bf16.mxu1 %v11113_v44  ;;  %v11137_v44 = vcombine.high %v601_v25, %v605_v27 }
 0x268   :  { %v3537_v56 = vpop.f32.mrb[0].mxu0  ;;  %v3749_v36 = vpop.f32.mrb[0].mxu1 }
 0x269   :  { %v12051_v63 = vadd.f32 %v3537_v56, %v13364_v33  ;;  %v3539_v0 = vpop.f32.mrb[1].mxu0  ;;  %v12059_v6 = vadd.f32 %v3749_v36, %v13367_v49  ;;  %v3751_v7 = vpop.f32.mrb[1].mxu1  ;;  %v613_v56 = vld [vmem:[#allocation2 + $0xe78] sm:$0xff]  ;;  %v11134_v36 = vcombine.low %v13392_v5, %v13394_v19 }
 0x26a   :  { %v12052_v37 = vadd.f32 %v3539_v0, %v13370_v21  ;;  %v3541_v8 = vpop.f32.mrb[2].mxu0  ;;  %3938 = vmatpush1.bf16.msra.mxu0 %v11110_v54  ;;  %v12060_v45 = vadd.f32 %v3751_v7, %v13373_v23  ;;  %v3753_v12 = vpop.f32.mrb[2].mxu1  ;;  %4150 = vmatpush1.bf16.msra.mxu1 %v11112_v51  ;;  %v11136_v0 = vcombine.low %v601_v25, %v605_v27  ;;  %v624_v27 = vld [vmem:[#allocation2 + $0xed0] sm:$0xff] }
 0x26b   :  { %v12053_v11 = vadd.f32 %v3541_v8, %v13364_v33  ;;  %v3543_v47 = vpop.f32.mrb[3].mxu0  ;;  %3939 = vmatprep.subr.bf16.mxu0 %v11119_v52  ;;  %v12061_v55 = vadd.f32 %v3753_v12, %v13367_v49  ;;  %v3755_v16 = vpop.f32.mrb[3].mxu1  ;;  %4151 = vmatprep.subr.bf16.mxu1 %v11121_v60  ;;  %v4192_v20 = vmax.f32 %v12051_v63, 0.0  ;;  %v4194_v14 = vmax.f32 %v12059_v6, 0.0  ;;  %v609_v52 = vld [vmem:[#allocation2 + $0xe58] sm:$0xff]  ;;  %v616_v12 = vld [vmem:[#allocation2 + $0xe90] sm:$0xff] }
 0x26c   :  { %v12054_v57 = vadd.f32 %v3543_v47, %v13370_v21  ;;  %v12062_v22 = vadd.f32 %v3755_v16, %v13373_v23  ;;  %v4193_v28 = vmax.f32 %v12052_v37, 0.0  ;;  %v4195_v4 = vmax.f32 %v12060_v45, 0.0  ;;  %v620_v47 = vld [vmem:[#allocation2 + $0xeb0] sm:$0xff]  ;;  %v617_v16 = vld [vmem:[#allocation2 + $0xe98] sm:$0xff] }
 0x26d   :  { %v4200_v59 = vmax.f32 %v12053_v11, 0.0  ;;  %v4202_v29 = vmax.f32 %v12061_v55, 0.0  ;;  %v11143_v7 = vcombine.high %v608_v46, %v612_v32  ;;  %v11142_v45 = vcombine.low %v608_v46, %v612_v32  ;;  %v636_v46 = vld [vmem:[#allocation2 + $0xf30] sm:$0xff]  ;;  %v633_v32 = vld [vmem:[#allocation2 + $0xf18] sm:$0xff] }
 0x26e   :  { %v4201_v30 = vmax.f32 %v12054_v57, 0.0  ;;  %3940 = vmatpush1.bf16.msra.mxu0 %v11118_v9  ;;  %v4203_v38 = vmax.f32 %v12062_v22, 0.0  ;;  %4152 = vmatpush1.bf16.msra.mxu1 %v11120_v10  ;;  %v11145_v11 = vcombine.high %v609_v52, %v613_v56  ;;  %v11151_v22 = vcombine.high %v616_v12, %v620_v47 }
 0x26f   :  { %v13399_v34 = vpack.c.bf16 %v4200_v59, %v4192_v20  ;;  %3941 = vmatprep.subr.bf16.mxu0 %v11127_v13  ;;  %v13403_v53 = vpack.c.bf16 %v4202_v29, %v4194_v14  ;;  %4153 = vmatprep.subr.bf16.mxu1 %v11129_v18  ;;  %v628_v14 = vld [vmem:[#allocation2 + $0xef0] sm:$0xff]  ;;  %v625_v29 = vld [vmem:[#allocation2 + $0xed8] sm:$0xff] }
 0x270   :  { %v13405_v41 = vpack.c.bf16 %v4201_v30, %v4193_v28  ;;  %v3547_v15 = vpop.f32.mrb[4].mxu0  ;;  %v13407_v35 = vpack.c.bf16 %v4203_v38, %v4195_v4  ;;  %v3759_v54 = vpop.f32.mrb[4].mxu1  ;;  %v629_v30 = vld [vmem:[#allocation2 + $0xef8] sm:$0xff]  ;;  %v11150_v4 = vcombine.low %v616_v12, %v620_v47  ;;  %v656_v12 = vld [vmem:[#allocation2 + $0xfd0] sm:$0xff] }
 0x271   :  { %v12055_v48 = vadd.f32 %v3547_v15, %v13364_v33  ;;  %v3549_v51 = vpop.f32.mrb[5].mxu0  ;;  %v12063_v60 = vadd.f32 %v3759_v54, %v13367_v49  ;;  %v3761_v62 = vpop.f32.mrb[5].mxu1  ;;  %v11161_v15 = vcombine.high %v625_v29, %v629_v30  ;;  %v11158_v54 = vcombine.low %v624_v27, %v628_v14  ;;  %v660_v47 = vld [vmem:[#allocation2 + $0xff0] sm:$0xff] }
 0x272   :  { %v12056_v61 = vadd.f32 %v3549_v51, %v13370_v21  ;;  %v3551_v63 = vpop.f32.mrb[6].mxu0  ;;  %3942 = vmatpush1.bf16.msra.mxu0 %v11126_v17  ;;  %v12064_v2 = vadd.f32 %v3761_v62, %v13373_v23  ;;  %v3763_v6 = vpop.f32.mrb[6].mxu1  ;;  %4154 = vmatpush1.bf16.msra.mxu1 %v11128_v24  ;;  %v621_v17 = vld [vmem:[#allocation2 + $0xeb8] sm:$0xff]  ;;  %v11160_v51 = vcombine.low %v625_v29, %v629_v30  ;;  %v4249_v29 = vld [vmem:[#allocation6 + $0x48] sm:$0xff] }
 0x273   :  { %v12057_v3 = vadd.f32 %v3551_v63, %v13364_v33  ;;  %v3553_v37 = vpop.f32.mrb[7].mxu0  ;;  %3943 = vmatprep.subr.bf16.mxu0 %v11135_v39  ;;  %v12065_v8 = vadd.f32 %v3763_v6, %v13367_v49  ;;  %v3765_v10 = vpop.f32.mrb[7].mxu1  ;;  %4155 = vmatprep.subr.bf16.mxu1 %v11137_v44  ;;  %v4208_v13 = vmax.f32 %v12055_v48, 0.0  ;;  %v11144_v33 = vcombine.low %v609_v52, %v613_v56  ;;  %v632_v44 = vld [vmem:[#allocation2 + $0xf10] sm:$0xff]  ;;  %v637_v48 = vld [vmem:[#allocation2 + $0xf38] sm:$0xff] }
 0x274   :  { %v12058_v9 = vadd.f32 %v3553_v37, %v13370_v21  ;;  %v12066_v57 = vadd.f32 %v3765_v10, %v13373_v23  ;;  %v4210_v18 = vmax.f32 %v12063_v60, 0.0  ;;  %v4209_v5 = vmax.f32 %v12056_v61, 0.0  ;;  %v640_v60 = vld [vmem:[#allocation2 + $0xf50] sm:$0xff]  ;;  %v641_v62 = vld [vmem:[#allocation2 + $0xf58] sm:$0xff] }
 0x275   :  { %v4216_v55 = vmax.f32 %v12057_v3, 0.0  ;;  %v4218_v19 = vmax.f32 %v12065_v8, 0.0  ;;  %v4211_v49 = vmax.f32 %v12064_v2, 0.0  ;;  %v11153_v23 = vcombine.high %v617_v16, %v621_v17  ;;  %v644_v61 = vld [vmem:[#allocation2 + $0xf70] sm:$0xff]  ;;  %v645_v63 = vld [vmem:[#allocation2 + $0xf78] sm:$0xff] }
 0x276   :  { %v4217_v20 = vmax.f32 %v12058_v9, 0.0  ;;  %3944 = vmatpush1.bf16.msra.mxu0 %v11134_v36  ;;  %v4219_v59 = vmax.f32 %v12066_v57, 0.0  ;;  %4156 = vmatpush1.bf16.msra.mxu1 %v11136_v0  ;;  %v11152_v38 = vcombine.low %v617_v16, %v621_v17  ;;  %v11159_v39 = vcombine.high %v624_v27, %v628_v14  ;;  %v648_v6 = vld [vmem:[#allocation2 + $0xf90] sm:$0xff]  ;;  %v653_v8 = vld [vmem:[#allocation2 + $0xfb8] sm:$0xff]  ;;  %v4248_v27 = vld [vmem:[#allocation6 + $0x40] sm:$0xff] }
 0x277   :  { %v13419_v21 = vpack.c.bf16 %v4216_v55, %v4208_v13  ;;  %3945 = vmatprep.subr.bf16.mxu0 %v11143_v7  ;;  %v13421_v24 = vpack.c.bf16 %v4218_v19, %v4210_v18  ;;  %4157 = vmatprep.subr.bf16.mxu1 %v11145_v11  ;;  %v11167_v52 = vcombine.high %v632_v44, %v636_v46  ;;  %v652_v37 = vld [vmem:[#allocation2 + $0xfb0] sm:$0xff]  ;;  %v649_v7 = vld [vmem:[#allocation2 + $0xf98] sm:$0xff]  ;;  %v4240_v18 = vld [vmem:[#allocation6] sm:$0xff] }
 0x278   :  { %v13423_v25 = vpack.c.bf16 %v4217_v20, %v4209_v5  ;;  %v13425_v28 = vpack.c.bf16 %v4219_v59, %v4211_v49  ;;  %v11169_v56 = vcombine.high %v633_v32, %v637_v48  ;;  %v11166_v36 = vcombine.low %v632_v44, %v636_v46  ;;  %v657_v13 = vld [vmem:[#allocation2 + $0xfd8] sm:$0xff]  ;;  %v4244_v5 = vld [vmem:[#allocation6 + $0x20] sm:$0xff]  ;;  %v4241_v19 = vld [vmem:[#allocation6 + $0x8] sm:$0xff] }
 0x279   :  { %v11168_v0 = vcombine.low %v633_v32, %v637_v48  ;;  %v11175_v2 = vcombine.high %v640_v60, %v644_v61  ;;  %v11177_v3 = vcombine.high %v641_v62, %v645_v63  ;;  %v11174_v9 = vcombine.low %v640_v60, %v644_v61  ;;  %v661_v55 = vld [vmem:[#allocation2 + $0xff8] sm:$0xff]  ;;  %v4245_v20 = vld [vmem:[#allocation6 + $0x28] sm:$0xff]  ;;  %v4252_v14 = vld [vmem:[#allocation6 + $0x60] sm:$0xff] }
 0x27a   :  { %3946 = vmatpush1.bf16.msra.mxu0 %v11142_v45  ;;  %4158 = vmatpush1.bf16.msra.mxu1 %v11144_v33  ;;  %v11176_v10 = vcombine.low %v641_v62, %v645_v63  ;;  %v11183_v45 = vcombine.high %v648_v6, %v652_v37  ;;  %v11185_v11 = vcombine.high %v649_v7, %v653_v8  ;;  %v4253_v30 = vld [vmem:[#allocation6 + $0x68] sm:$0xff]  ;;  %v4256_v44 = vld [vmem:[#allocation6 + $0x80] sm:$0xff] }
 0x27b   :  { %3947 = vmatprep.subr.bf16.mxu0 %v11151_v22  ;;  %4159 = vmatprep.subr.bf16.mxu1 %v11153_v23  ;;  %v11182_v57 = vcombine.low %v648_v6, %v652_v37  ;;  %v11184_v33 = vcombine.low %v649_v7, %v653_v8  ;;  %v11191_v16 = vcombine.high %v656_v12, %v660_v47  ;;  %v4260_v46 = vld [vmem:[#allocation6 + $0xa0] sm:$0xff]  ;;  %v4257_v32 = vld [vmem:[#allocation6 + $0x88] sm:$0xff] }
 0x27c   :  { %v11193_v17 = vcombine.high %v657_v13, %v661_v55  ;;  %v11190_v49 = vcombine.low %v656_v12, %v660_v47  ;;  %v11192_v59 = vcombine.low %v657_v13, %v661_v55  ;;  %v11195_v22 = vcombine.high %v4240_v18, %v4244_v5  ;;  %v4261_v48 = vld [vmem:[#allocation6 + $0xa8] sm:$0xff]  ;;  %v4264_v60 = vld [vmem:[#allocation6 + $0xc0] sm:$0xff] }
 0x27d   :  { %v11197_v23 = vcombine.high %v4241_v19, %v4245_v20  ;;  %v4268_v61 = vld [vmem:[#allocation6 + $0xe0] sm:$0xff]  ;;  %v11210_v62 = vcombine.low %v4256_v44, %v4260_v46  ;;  %v4265_v63 = vld [vmem:[#allocation6 + $0xc8] sm:$0xff] }
 0x27e   :  { %3948 = vmatpush1.bf16.msra.mxu0 %v11150_v4  ;;  %4160 = vmatpush1.bf16.msra.mxu1 %v11152_v38  ;;  %v11194_v4 = vcombine.low %v4240_v18, %v4244_v5  ;;  %v11196_v38 = vcombine.low %v4241_v19, %v4245_v20  ;;  %v4273_v37 = vld [vmem:[#allocation6 + $0x108] sm:$0xff] }
 0x27f   :  { %3949 = vmatprep.subr.bf16.mxu0 %v11159_v39  ;;  %4161 = vmatprep.subr.bf16.mxu1 %v11161_v15  ;;  %v11203_v39 = vcombine.high %v4248_v27, %v4252_v14  ;;  %v11205_v15 = vcombine.high %v4249_v29, %v4253_v30  ;;  %v4277_v7 = vld [vmem:[#allocation6 + $0x128] sm:$0xff] }
 0x280   :  { %v4281_v12 = vld [vmem:[#allocation6 + $0x148] sm:$0xff] }
 0x281   :  { %v4285_v47 = vld [vmem:[#allocation6 + $0x168] sm:$0xff] }
 0x282   :  { %3950 = vmatpush1.bf16.msra.mxu0 %v11158_v54  ;;  %4162 = vmatpush1.bf16.msra.mxu1 %v11160_v51  ;;  %v11202_v54 = vcombine.low %v4248_v27, %v4252_v14  ;;  %v11204_v51 = vcombine.low %v4249_v29, %v4253_v30  ;;  %v4293_v18 = vld [vmem:[#allocation6 + $0x1a8] sm:$0xff]  ;;  %v11236_v19 = vcombine.low %v4281_v12, %v4285_v47 }
 0x283   :  { %3951 = vmatprep.subr.bf16.mxu0 %v11167_v52  ;;  %4163 = vmatprep.subr.bf16.mxu1 %v11169_v56  ;;  %v11211_v52 = vcombine.high %v4256_v44, %v4260_v46  ;;  %v11213_v56 = vcombine.high %v4257_v32, %v4261_v48  ;;  %v4301_v27 = vld [vmem:[#allocation6 + $0x1e8] sm:$0xff] }
 0x284   :  { %v4309_v44 = vld [vmem:[#allocation6 + $0x228] sm:$0xff] }
 0x286   :  { %3952 = vmatpush1.bf16.msra.mxu0 %v11166_v36  ;;  %4164 = vmatpush1.bf16.msra.mxu1 %v11168_v0  ;;  %v4269_v36 = vld [vmem:[#allocation6 + $0xe8] sm:$0xff]  ;;  %v11219_v0 = vcombine.high %v4264_v60, %v4268_v61 }
 0x287   :  { %3953 = vmatprep.subr.bf16.mxu0 %v11175_v2  ;;  %4165 = vmatprep.subr.bf16.mxu1 %v11177_v3  ;;  %v4272_v2 = vld [vmem:[#allocation6 + $0x100] sm:$0xff]  ;;  %v11221_v6 = vcombine.high %v4265_v63, %v4269_v36  ;;  %v11220_v8 = vcombine.low %v4265_v63, %v4269_v36 }
 0x288   :  { %v4276_v3 = vld [vmem:[#allocation6 + $0x120] sm:$0xff] }
 0x289   :  { %v11226_v13 = vcombine.low %v4272_v2, %v4276_v3 }
 0x28a   :  { %3954 = vmatpush1.bf16.msra.mxu0 %v11174_v9  ;;  %4166 = vmatpush1.bf16.msra.mxu1 %v11176_v10  ;;  %v11227_v9 = vcombine.high %v4272_v2, %v4276_v3  ;;  %v11229_v10 = vcombine.high %v4273_v37, %v4277_v7  ;;  %v4321_v2 = vld [vmem:[#allocation6 + $0x288] sm:$0xff] }
 0x28b   :  { %3955 = vmatprep.subr.bf16.mxu0 %v11183_v45  ;;  %4167 = vmatprep.subr.bf16.mxu1 %v11185_v11  ;;  %v4280_v45 = vld [vmem:[#allocation6 + $0x140] sm:$0xff]  ;;  %v4325_v3 = vld [vmem:[#allocation6 + $0x2a8] sm:$0xff] }
 0x28c   :  { %v4284_v11 = vld [vmem:[#allocation6 + $0x160] sm:$0xff] }
 0x28d   :  { %v11235_v55 = vcombine.high %v4280_v45, %v4284_v11  ;;  %v11234_v5 = vcombine.low %v4280_v45, %v4284_v11  ;;  %v4333_v45 = vld [vmem:[#allocation6 + $0x2e8] sm:$0xff] }
 0x28e   :  { %3956 = vmatpush1.bf16.msra.mxu0 %v11182_v57  ;;  %4168 = vmatpush1.bf16.msra.mxu1 %v11184_v33  ;;  %v11237_v57 = vcombine.high %v4281_v12, %v4285_v47  ;;  %v4288_v33 = vld [vmem:[#allocation6 + $0x180] sm:$0xff]  ;;  %v11276_v12 = vcombine.low %v4321_v2, %v4325_v3 }
 0x28f   :  { %3957 = vmatprep.subr.bf16.mxu0 %v11191_v16  ;;  %4169 = vmatprep.subr.bf16.mxu1 %v11193_v17  ;;  %v4292_v16 = vld [vmem:[#allocation6 + $0x1a0] sm:$0xff]  ;;  %v4289_v17 = vld [vmem:[#allocation6 + $0x188] sm:$0xff] }
 0x290   :  { %v11243_v20 = vcombine.high %v4288_v33, %v4292_v16  ;;  %v11242_v14 = vcombine.low %v4288_v33, %v4292_v16  ;;  %v11244_v29 = vcombine.low %v4289_v17, %v4293_v18  ;;  %v4341_v33 = vld [vmem:[#allocation6 + $0x328] sm:$0xff] }
 0x292   :  { %3958 = vmatpush1.bf16.msra.mxu0 %v11190_v49  ;;  %4170 = vmatpush1.bf16.msra.mxu1 %v11192_v59  ;;  %v11245_v49 = vcombine.high %v4289_v17, %v4293_v18  ;;  %v4296_v59 = vld [vmem:[#allocation6 + $0x1c0] sm:$0xff] }
 0x293   :  { %7354 = vmatprep.subr.bf16.mxu0 %v11195_v22  ;;  %7566 = vmatprep.subr.bf16.mxu1 %v11197_v23  ;;  %v4300_v22 = vld [vmem:[#allocation6 + $0x1e0] sm:$0xff]  ;;  %v4297_v23 = vld [vmem:[#allocation6 + $0x1c8] sm:$0xff] }
 0x294   :  { %v11251_v30 = vcombine.high %v4296_v59, %v4300_v22  ;;  %v11250_v46 = vcombine.low %v4296_v59, %v4300_v22  ;;  %v4349_v59 = vld [vmem:[#allocation6 + $0x368] sm:$0xff] }
 0x295   :  { %3960 = vmatmul.mubr.bf16.vlgmr.msra.gmra.mrb[8].mxu0 %v13305_v42  ;;  %4172 = vmatmul.mubr.bf16.vlgmr.msra.gmra.mrb[8].mxu1 %v13305_v42  ;;  %v11212_v42 = vcombine.low %v4257_v32, %v4261_v48  ;;  %v11252_v32 = vcombine.low %v4297_v23, %v4301_v27 }
 0x296   :  { %7355 = vmatpush1.bf16.msra.mxu0 %v11194_v4  ;;  %7567 = vmatpush1.bf16.msra.mxu1 %v11196_v38  ;;  %v11253_v4 = vcombine.high %v4297_v23, %v4301_v27  ;;  %v4304_v38 = vld [vmem:[#allocation6 + $0x200] sm:$0xff] }
 0x297   :  { %7356 = vmatprep.subr.bf16.mxu0 %v11203_v39  ;;  %7568 = vmatprep.subr.bf16.mxu1 %v11205_v15  ;;  %v4308_v39 = vld [vmem:[#allocation6 + $0x220] sm:$0xff]  ;;  %v4305_v15 = vld [vmem:[#allocation6 + $0x208] sm:$0xff] }
 0x298   :  { %3969 = vmatprep.mubr.bf16.mxu0 %v13313_v50  ;;  %4181 = vmatprep.mubr.bf16.mxu1 %v13313_v50  ;;  %v11218_v50 = vcombine.low %v4264_v60, %v4268_v61  ;;  %v11259_v48 = vcombine.high %v4304_v38, %v4308_v39  ;;  %v4317_v60 = vld [vmem:[#allocation6 + $0x268] sm:$0xff]  ;;  %v11258_v61 = vcombine.low %v4304_v38, %v4308_v39 }
 0x299   :  { %v4357_v38 = vld [vmem:[#allocation6 + $0x3a8] sm:$0xff] }
 0x29a   :  { %7357 = vmatpush1.bf16.msra.mxu0 %v11202_v54  ;;  %7569 = vmatpush1.bf16.msra.mxu1 %v11204_v51  ;;  %v11261_v54 = vcombine.high %v4305_v15, %v4309_v44  ;;  %v4312_v51 = vld [vmem:[#allocation6 + $0x240] sm:$0xff] }
 0x29b   :  { %7358 = vmatprep.subr.bf16.mxu0 %v11211_v52  ;;  %7570 = vmatprep.subr.bf16.mxu1 %v11213_v56  ;;  %v4316_v52 = vld [vmem:[#allocation6 + $0x260] sm:$0xff]  ;;  %v4313_v56 = vld [vmem:[#allocation6 + $0x248] sm:$0xff] }
 0x29c   :  { %v11267_v63 = vcombine.high %v4312_v51, %v4316_v52  ;;  %v11269_v36 = vcombine.high %v4313_v56, %v4317_v60 }
 0x29d   :  { %3970 = vmatmul.mubr.bf16.gmra.mrb[12].mxu0 %v13319_v1  ;;  %4182 = vmatmul.mubr.bf16.gmra.mrb[12].mxu1 %v13319_v1  ;;  %v11228_v1 = vcombine.low %v4273_v37, %v4277_v7  ;;  %v11268_v37 = vcombine.low %v4313_v56, %v4317_v60 }
 0x29e   :  { %7359 = vmatpush1.bf16.msra.mxu0 %v11210_v62  ;;  %7386 = vmatprep.mubr.bf16.mxu0 %v13405_v41  ;;  %v11260_v62 = vcombine.low %v4305_v15, %v4309_v44 }
 0x29f   :  { %7571 = vmatpush1.bf16.msra.mxu1 %v11212_v42  ;;  %7598 = vmatprep.mubr.bf16.mxu1 %v13405_v41  ;;  %v4320_v42 = vld [vmem:[#allocation6 + $0x280] sm:$0xff] }
 0x2a0   :  { %7360 = vmatprep.subr.bf16.mxu0 %v11219_v0  ;;  %7572 = vmatprep.subr.bf16.mxu1 %v11221_v6  ;;  %v4324_v0 = vld [vmem:[#allocation6 + $0x2a0] sm:$0xff]  ;;  %v11266_v6 = vcombine.low %v4312_v51, %v4316_v52  ;;  %v4365_v51 = vld [vmem:[#allocation6 + $0x3e8] sm:$0xff] }
 0x2a1   :  { %v11275_v7 = vcombine.high %v4320_v42, %v4324_v0  ;;  %v11274_v11 = vcombine.low %v4320_v42, %v4324_v0  ;;  %v4373_v42 = vld [vmem:[#allocation6 + $0x428] sm:$0xff] }
 0x2a2   :  { %7361 = vmatpush1.bf16.msra.mxu0 %v11218_v50  ;;  %v11277_v50 = vcombine.high %v4321_v2, %v4325_v3 }
 0x2a3   :  { %7573 = vmatpush1.bf16.msra.mxu1 %v11220_v8  ;;  %7362 = vmatprep.subr.bf16.mxu0 %v11227_v9  ;;  %v4328_v8 = vld [vmem:[#allocation6 + $0x2c0] sm:$0xff] }
 0x2a4   :  { %7574 = vmatprep.subr.bf16.mxu1 %v11229_v10  ;;  %v4332_v9 = vld [vmem:[#allocation6 + $0x2e0] sm:$0xff]  ;;  %v4329_v10 = vld [vmem:[#allocation6 + $0x2c8] sm:$0xff] }
 0x2a5   :  { %v11283_v47 = vcombine.high %v4328_v8, %v4332_v9  ;;  %v11282_v16 = vcombine.low %v4328_v8, %v4332_v9  ;;  %v11284_v17 = vcombine.low %v4329_v10, %v4333_v45  ;;  %v4381_v8 = vld [vmem:[#allocation6 + $0x468] sm:$0xff] }
 0x2a6   :  { %7363 = vmatpush1.bf16.msra.mxu0 %v11226_v13  ;;  %v11285_v13 = vcombine.high %v4329_v10, %v4333_v45 }
 0x2a7   :  { %7575 = vmatpush1.bf16.msra.mxu1 %v11228_v1  ;;  %7364 = vmatprep.subr.bf16.mxu0 %v11235_v55  ;;  %v4336_v1 = vld [vmem:[#allocation6 + $0x300] sm:$0xff] }
 0x2a8   :  { %7576 = vmatprep.subr.bf16.mxu1 %v11237_v57  ;;  %v4340_v55 = vld [vmem:[#allocation6 + $0x320] sm:$0xff]  ;;  %v4337_v57 = vld [vmem:[#allocation6 + $0x308] sm:$0xff] }
 0x2a9   :  { %v11291_v18 = vcombine.high %v4336_v1, %v4340_v55  ;;  %v11290_v22 = vcombine.low %v4336_v1, %v4340_v55  ;;  %v11292_v23 = vcombine.low %v4337_v57, %v4341_v33  ;;  %v4389_v1 = vld [vmem:[#allocation6 + $0x4a8] sm:$0xff] }
 0x2aa   :  { %7365 = vmatpush1.bf16.msra.mxu0 %v11234_v5  ;;  %v11293_v5 = vcombine.high %v4337_v57, %v4341_v33 }
 0x2ab   :  { %7577 = vmatpush1.bf16.msra.mxu1 %v11236_v19  ;;  %7366 = vmatprep.subr.bf16.mxu0 %v11243_v20  ;;  %v4344_v19 = vld [vmem:[#allocation6 + $0x340] sm:$0xff] }
 0x2ac   :  { %7578 = vmatprep.subr.bf16.mxu1 %v11245_v49  ;;  %v4348_v20 = vld [vmem:[#allocation6 + $0x360] sm:$0xff]  ;;  %v4345_v49 = vld [vmem:[#allocation6 + $0x348] sm:$0xff] }
 0x2ad   :  { %v11299_v27 = vcombine.high %v4344_v19, %v4348_v20  ;;  %v11298_v39 = vcombine.low %v4344_v19, %v4348_v20  ;;  %v11300_v15 = vcombine.low %v4345_v49, %v4349_v59  ;;  %v4397_v19 = vld [vmem:[#allocation6 + $0x4e8] sm:$0xff] }
 0x2ae   :  { %7367 = vmatpush1.bf16.msra.mxu0 %v11242_v14  ;;  %v11301_v14 = vcombine.high %v4345_v49, %v4349_v59 }
 0x2af   :  { %7579 = vmatpush1.bf16.msra.mxu1 %v11244_v29  ;;  %7368 = vmatprep.subr.bf16.mxu0 %v11251_v30  ;;  %v4352_v29 = vld [vmem:[#allocation6 + $0x380] sm:$0xff] }
 0x2b0   :  { %7580 = vmatprep.subr.bf16.mxu1 %v11253_v4  ;;  %v4356_v30 = vld [vmem:[#allocation6 + $0x3a0] sm:$0xff]  ;;  %v4353_v4 = vld [vmem:[#allocation6 + $0x388] sm:$0xff] }
 0x2b1   :  { %v11307_v44 = vcombine.high %v4352_v29, %v4356_v30  ;;  %v11306_v52 = vcombine.low %v4352_v29, %v4356_v30  ;;  %v11308_v56 = vcombine.low %v4353_v4, %v4357_v38  ;;  %v4405_v29 = vld [vmem:[#allocation6 + $0x528] sm:$0xff] }
 0x2b2   :  { %7369 = vmatpush1.bf16.msra.mxu0 %v11250_v46  ;;  %v11309_v46 = vcombine.high %v4353_v4, %v4357_v38 }
 0x2b3   :  { %7581 = vmatpush1.bf16.msra.mxu1 %v11252_v32  ;;  %7370 = vmatprep.subr.bf16.mxu0 %v11259_v48  ;;  %v4360_v32 = vld [vmem:[#allocation6 + $0x3c0] sm:$0xff] }
 0x2b4   :  { %7582 = vmatprep.subr.bf16.mxu1 %v11261_v54  ;;  %v4364_v48 = vld [vmem:[#allocation6 + $0x3e0] sm:$0xff]  ;;  %v4361_v54 = vld [vmem:[#allocation6 + $0x3c8] sm:$0xff] }
 0x2b5   :  { %v11315_v60 = vcombine.high %v4360_v32, %v4364_v48  ;;  %v11314_v0 = vcombine.low %v4360_v32, %v4364_v48  ;;  %v11316_v2 = vcombine.low %v4361_v54, %v4365_v51  ;;  %v4413_v32 = vld [vmem:[#allocation6 + $0x568] sm:$0xff] }
 0x2b6   :  { %7371 = vmatpush1.bf16.msra.mxu0 %v11258_v61  ;;  %v11317_v61 = vcombine.high %v4361_v54, %v4365_v51 }
 0x2b7   :  { %7583 = vmatpush1.bf16.msra.mxu1 %v11260_v62  ;;  %7372 = vmatprep.subr.bf16.mxu0 %v11267_v63  ;;  %v4368_v62 = vld [vmem:[#allocation6 + $0x400] sm:$0xff] }
 0x2b8   :  { %7584 = vmatprep.subr.bf16.mxu1 %v11269_v36  ;;  %v4372_v63 = vld [vmem:[#allocation6 + $0x420] sm:$0xff]  ;;  %v4369_v36 = vld [vmem:[#allocation6 + $0x408] sm:$0xff] }
 0x2b9   :  { %v11323_v3 = vcombine.high %v4368_v62, %v4372_v63  ;;  %v11322_v9 = vcombine.low %v4368_v62, %v4372_v63  ;;  %v11324_v10 = vcombine.low %v4369_v36, %v4373_v42  ;;  %v4421_v62 = vld [vmem:[#allocation6 + $0x5a8] sm:$0xff] }
 0x2ba   :  { %7373 = vmatpush1.bf16.msra.mxu0 %v11266_v6  ;;  %v11325_v6 = vcombine.high %v4369_v36, %v4373_v42 }
 0x2bb   :  { %7585 = vmatpush1.bf16.msra.mxu1 %v11268_v37  ;;  %7374 = vmatprep.subr.bf16.mxu0 %v11275_v7  ;;  %v4376_v37 = vld [vmem:[#allocation6 + $0x440] sm:$0xff] }
 0x2bc   :  { %7586 = vmatprep.subr.bf16.mxu1 %v11277_v50  ;;  %v4380_v7 = vld [vmem:[#allocation6 + $0x460] sm:$0xff]  ;;  %v4377_v50 = vld [vmem:[#allocation6 + $0x448] sm:$0xff] }
 0x2bd   :  { %v11331_v45 = vcombine.high %v4376_v37, %v4380_v7  ;;  %v11330_v55 = vcombine.low %v4376_v37, %v4380_v7  ;;  %v11332_v57 = vcombine.low %v4377_v50, %v4381_v8  ;;  %v4429_v37 = vld [vmem:[#allocation6 + $0x5e8] sm:$0xff] }
 0x2be   :  { %7375 = vmatpush1.bf16.msra.mxu0 %v11274_v11  ;;  %v11333_v11 = vcombine.high %v4377_v50, %v4381_v8 }
 0x2bf   :  { %7587 = vmatpush1.bf16.msra.mxu1 %v11276_v12  ;;  %7376 = vmatprep.subr.bf16.mxu0 %v11283_v47  ;;  %v4384_v12 = vld [vmem:[#allocation6 + $0x480] sm:$0xff] }
 0x2c0   :  { %7588 = vmatprep.subr.bf16.mxu1 %v11285_v13  ;;  %v4388_v47 = vld [vmem:[#allocation6 + $0x4a0] sm:$0xff]  ;;  %v4385_v13 = vld [vmem:[#allocation6 + $0x488] sm:$0xff] }
 0x2c1   :  { %v11339_v33 = vcombine.high %v4384_v12, %v4388_v47  ;;  %v11338_v20 = vcombine.low %v4384_v12, %v4388_v47  ;;  %v11340_v49 = vcombine.low %v4385_v13, %v4389_v1  ;;  %v4437_v12 = vld [vmem:[#allocation6 + $0x628] sm:$0xff] }
 0x2c2   :  { %7377 = vmatpush1.bf16.msra.mxu0 %v11282_v16  ;;  %v11341_v16 = vcombine.high %v4385_v13, %v4389_v1 }
 0x2c3   :  { %7589 = vmatpush1.bf16.msra.mxu1 %v11284_v17  ;;  %7378 = vmatprep.subr.bf16.mxu0 %v11291_v18  ;;  %v4392_v17 = vld [vmem:[#allocation6 + $0x4c0] sm:$0xff] }
 0x2c4   :  { %7590 = vmatprep.subr.bf16.mxu1 %v11293_v5  ;;  %v4396_v18 = vld [vmem:[#allocation6 + $0x4e0] sm:$0xff]  ;;  %v4393_v5 = vld [vmem:[#allocation6 + $0x4c8] sm:$0xff] }
 0x2c5   :  { %v11347_v59 = vcombine.high %v4392_v17, %v4396_v18  ;;  %v11346_v30 = vcombine.low %v4392_v17, %v4396_v18  ;;  %v11348_v4 = vcombine.low %v4393_v5, %v4397_v19  ;;  %v4445_v17 = vld [vmem:[#allocation6 + $0x668] sm:$0xff] }
 0x2c6   :  { %7379 = vmatpush1.bf16.msra.mxu0 %v11290_v22  ;;  %v11349_v22 = vcombine.high %v4393_v5, %v4397_v19 }
 0x2c7   :  { %7591 = vmatpush1.bf16.msra.mxu1 %v11292_v23  ;;  %7380 = vmatprep.subr.bf16.mxu0 %v11299_v27  ;;  %v4400_v23 = vld [vmem:[#allocation6 + $0x500] sm:$0xff] }
 0x2c8   :  { %7592 = vmatprep.subr.bf16.mxu1 %v11301_v14  ;;  %v4404_v27 = vld [vmem:[#allocation6 + $0x520] sm:$0xff]  ;;  %v4401_v14 = vld [vmem:[#allocation6 + $0x508] sm:$0xff] }
 0x2c9   :  { %v11355_v38 = vcombine.high %v4400_v23, %v4404_v27  ;;  %v11354_v48 = vcombine.low %v4400_v23, %v4404_v27  ;;  %v11356_v54 = vcombine.low %v4401_v14, %v4405_v29  ;;  %v4453_v23 = vld [vmem:[#allocation6 + $0x6a8] sm:$0xff] }
 0x2ca   :  { %7381 = vmatpush1.bf16.msra.mxu0 %v11298_v39  ;;  %v11357_v39 = vcombine.high %v4401_v14, %v4405_v29 }
 0x2cb   :  { %7593 = vmatpush1.bf16.msra.mxu1 %v11300_v15  ;;  %7382 = vmatprep.subr.bf16.mxu0 %v11307_v44  ;;  %v4408_v15 = vld [vmem:[#allocation6 + $0x540] sm:$0xff] }
 0x2cc   :  { %7594 = vmatprep.subr.bf16.mxu1 %v11309_v46  ;;  %v4412_v44 = vld [vmem:[#allocation6 + $0x560] sm:$0xff]  ;;  %v4409_v46 = vld [vmem:[#allocation6 + $0x548] sm:$0xff] }
 0x2cd   :  { %v11363_v51 = vcombine.high %v4408_v15, %v4412_v44  ;;  %v11362_v63 = vcombine.low %v4408_v15, %v4412_v44  ;;  %v11364_v36 = vcombine.low %v4409_v46, %v4413_v32  ;;  %v4461_v15 = vld [vmem:[#allocation6 + $0x6e8] sm:$0xff] }
 0x2ce   :  { %7383 = vmatpush1.bf16.msra.mxu0 %v11306_v52  ;;  %v11365_v52 = vcombine.high %v4409_v46, %v4413_v32 }
 0x2cf   :  { %7595 = vmatpush1.bf16.msra.mxu1 %v11308_v56  ;;  %7384 = vmatprep.subr.bf16.mxu0 %v11315_v60  ;;  %v4416_v56 = vld [vmem:[#allocation6 + $0x580] sm:$0xff] }
 0x2d0   :  { %7596 = vmatprep.subr.bf16.mxu1 %v11317_v61  ;;  %v4420_v60 = vld [vmem:[#allocation6 + $0x5a0] sm:$0xff]  ;;  %v4417_v61 = vld [vmem:[#allocation6 + $0x588] sm:$0xff] }
 0x2d1   :  { %v11371_v42 = vcombine.high %v4416_v56, %v4420_v60  ;;  %v11370_v7 = vcombine.low %v4416_v56, %v4420_v60  ;;  %v11372_v50 = vcombine.low %v4417_v61, %v4421_v62  ;;  %v4469_v56 = vld [vmem:[#allocation6 + $0x728] sm:$0xff] }
 0x2d2   :  { %7385 = vmatpush1.bf16.msra.mxu0 %v11314_v0  ;;  %v11373_v0 = vcombine.high %v4417_v61, %v4421_v62 }
 0x2d3   :  { %7597 = vmatpush1.bf16.msra.mxu1 %v11316_v2  ;;  %7407 = vmatprep.subr.bf16.mxu0 %v11323_v3  ;;  %v4424_v2 = vld [vmem:[#allocation6 + $0x5c0] sm:$0xff] }
 0x2d4   :  { %7619 = vmatprep.subr.bf16.mxu1 %v11325_v6  ;;  %v4428_v3 = vld [vmem:[#allocation6 + $0x5e0] sm:$0xff]  ;;  %v4425_v6 = vld [vmem:[#allocation6 + $0x5c8] sm:$0xff] }
 0x2d5   :  { %7387 = vmatmul.mubr.bf16.vlgmr.msra.gmra.mrb[16].mxu0 %v13399_v34  ;;  %v11379_v8 = vcombine.high %v4424_v2, %v4428_v3  ;;  %v11378_v47 = vcombine.low %v4424_v2, %v4428_v3  ;;  %v11380_v13 = vcombine.low %v4425_v6, %v4429_v37  ;;  %v4477_v2 = vld [vmem:[#allocation6 + $0x768] sm:$0xff] }
 0x2d6   :  { %7599 = vmatmul.mubr.bf16.vlgmr.msra.gmra.mrb[16].mxu1 %v13399_v34  ;;  %7396 = vmatprep.mubr.bf16.mxu0 %v13423_v25 }
 0x2d7   :  { %7408 = vmatpush1.bf16.msra.mxu0 %v11322_v9  ;;  %7608 = vmatprep.mubr.bf16.mxu1 %v13423_v25  ;;  %v11381_v9 = vcombine.high %v4425_v6, %v4429_v37 }
 0x2d8   :  { %7620 = vmatpush1.bf16.msra.mxu1 %v11324_v10  ;;  %7409 = vmatprep.subr.bf16.mxu0 %v11331_v45  ;;  %v4432_v10 = vld [vmem:[#allocation6 + $0x600] sm:$0xff] }
 0x2d9   :  { %7621 = vmatprep.subr.bf16.mxu1 %v11333_v11  ;;  %v4436_v45 = vld [vmem:[#allocation6 + $0x620] sm:$0xff]  ;;  %v4433_v11 = vld [vmem:[#allocation6 + $0x608] sm:$0xff] }
 0x2da   :  { %v11387_v1 = vcombine.high %v4432_v10, %v4436_v45  ;;  %v11386_v18 = vcombine.low %v4432_v10, %v4436_v45  ;;  %v11388_v5 = vcombine.low %v4433_v11, %v4437_v12  ;;  %v4485_v10 = vld [vmem:[#allocation6 + $0x7a8] sm:$0xff] }
 0x2db   :  { %7410 = vmatpush1.bf16.msra.mxu0 %v11330_v55  ;;  %v11389_v55 = vcombine.high %v4433_v11, %v4437_v12 }
 0x2dc   :  { %7622 = vmatpush1.bf16.msra.mxu1 %v11332_v57  ;;  %7411 = vmatprep.subr.bf16.mxu0 %v11339_v33  ;;  %v4440_v57 = vld [vmem:[#allocation6 + $0x640] sm:$0xff] }
 0x2dd   :  { %7397 = vmatmul.mubr.bf16.gmra.mrb[20].mxu0 %v13419_v21  ;;  %7623 = vmatprep.subr.bf16.mxu1 %v11341_v16  ;;  %v4444_v33 = vld [vmem:[#allocation6 + $0x660] sm:$0xff]  ;;  %v4441_v16 = vld [vmem:[#allocation6 + $0x648] sm:$0xff] }
 0x2de   :  { %7609 = vmatmul.mubr.bf16.gmra.mrb[20].mxu1 %v13419_v21  ;;  %7439 = vmatprep.mubr.bf16.mxu0 %v13407_v35  ;;  %v11395_v19 = vcombine.high %v4440_v57, %v4444_v33  ;;  %v11394_v27 = vcombine.low %v4440_v57, %v4444_v33  ;;  %v11396_v14 = vcombine.low %v4441_v16, %v4445_v17  ;;  %v4493_v57 = vld [vmem:[#allocation6 + $0x7e8] sm:$0xff] }
 0x2df   :  { %7412 = vmatpush1.bf16.msra.mxu0 %v11338_v20  ;;  %7651 = vmatprep.mubr.bf16.mxu1 %v13407_v35  ;;  %v11397_v20 = vcombine.high %v4441_v16, %v4445_v17 }
 0x2e0   :  { %7624 = vmatpush1.bf16.msra.mxu1 %v11340_v49  ;;  %7413 = vmatprep.subr.bf16.mxu0 %v11347_v59  ;;  %v4448_v49 = vld [vmem:[#allocation6 + $0x680] sm:$0xff] }
 0x2e1   :  { %7625 = vmatprep.subr.bf16.mxu1 %v11349_v22  ;;  %v4452_v59 = vld [vmem:[#allocation6 + $0x6a0] sm:$0xff]  ;;  %v4449_v22 = vld [vmem:[#allocation6 + $0x688] sm:$0xff] }
 0x2e2   :  { %v11403_v29 = vcombine.high %v4448_v49, %v4452_v59  ;;  %v11402_v44 = vcombine.low %v4448_v49, %v4452_v59  ;;  %v11404_v46 = vcombine.low %v4449_v22, %v4453_v23  ;;  %v4501_v49 = vld [vmem:[#allocation6 + $0x828] sm:$0xff] }
 0x2e3   :  { %7414 = vmatpush1.bf16.msra.mxu0 %v11346_v30  ;;  %v11405_v30 = vcombine.high %v4449_v22, %v4453_v23 }
 0x2e4   :  { %7626 = vmatpush1.bf16.msra.mxu1 %v11348_v4  ;;  %7415 = vmatprep.subr.bf16.mxu0 %v11355_v38  ;;  %v4456_v4 = vld [vmem:[#allocation6 + $0x6c0] sm:$0xff] }
 0x2e5   :  { %7627 = vmatprep.subr.bf16.mxu1 %v11357_v39  ;;  %v4460_v38 = vld [vmem:[#allocation6 + $0x6e0] sm:$0xff]  ;;  %v4457_v39 = vld [vmem:[#allocation6 + $0x6c8] sm:$0xff] }
 0x2e6   :  { %v11411_v32 = vcombine.high %v4456_v4, %v4460_v38  ;;  %v11410_v60 = vcombine.low %v4456_v4, %v4460_v38  ;;  %v11412_v61 = vcombine.low %v4457_v39, %v4461_v15  ;;  %v4509_v4 = vld [vmem:[#allocation6 + $0x868] sm:$0xff] }
 0x2e7   :  { %7416 = vmatpush1.bf16.msra.mxu0 %v11354_v48  ;;  %v11413_v48 = vcombine.high %v4457_v39, %v4461_v15 }
 0x2e8   :  { %7628 = vmatpush1.bf16.msra.mxu1 %v11356_v54  ;;  %7417 = vmatprep.subr.bf16.mxu0 %v11363_v51  ;;  %v4464_v54 = vld [vmem:[#allocation6 + $0x700] sm:$0xff] }
 0x2e9   :  { %7629 = vmatprep.subr.bf16.mxu1 %v11365_v52  ;;  %v4468_v51 = vld [vmem:[#allocation6 + $0x720] sm:$0xff]  ;;  %v4465_v52 = vld [vmem:[#allocation6 + $0x708] sm:$0xff] }
 0x2ea   :  { %v11419_v62 = vcombine.high %v4464_v54, %v4468_v51  ;;  %v11418_v3 = vcombine.low %v4464_v54, %v4468_v51  ;;  %v11420_v6 = vcombine.low %v4465_v52, %v4469_v56  ;;  %v4517_v54 = vld [vmem:[#allocation6 + $0x8a8] sm:$0xff] }
 0x2eb   :  { %7418 = vmatpush1.bf16.msra.mxu0 %v11362_v63  ;;  %v11421_v63 = vcombine.high %v4465_v52, %v4469_v56 }
 0x2ec   :  { %7630 = vmatpush1.bf16.msra.mxu1 %v11364_v36  ;;  %7419 = vmatprep.subr.bf16.mxu0 %v11371_v42  ;;  %v4472_v36 = vld [vmem:[#allocation6 + $0x740] sm:$0xff] }
 0x2ed   :  { %7631 = vmatprep.subr.bf16.mxu1 %v11373_v0  ;;  %v4476_v42 = vld [vmem:[#allocation6 + $0x760] sm:$0xff]  ;;  %v4473_v0 = vld [vmem:[#allocation6 + $0x748] sm:$0xff] }
 0x2ee   :  { %v11427_v37 = vcombine.high %v4472_v36, %v4476_v42  ;;  %v11426_v45 = vcombine.low %v4472_v36, %v4476_v42  ;;  %v11428_v11 = vcombine.low %v4473_v0, %v4477_v2  ;;  %v4525_v36 = vld [vmem:[#allocation6 + $0x8e8] sm:$0xff] }
 0x2ef   :  { %7420 = vmatpush1.bf16.msra.mxu0 %v11370_v7  ;;  %v11429_v7 = vcombine.high %v4473_v0, %v4477_v2 }
 0x2f0   :  { %7632 = vmatpush1.bf16.msra.mxu1 %v11372_v50  ;;  %7421 = vmatprep.subr.bf16.mxu0 %v11379_v8  ;;  %v4480_v50 = vld [vmem:[#allocation6 + $0x780] sm:$0xff] }
 0x2f1   :  { %7633 = vmatprep.subr.bf16.mxu1 %v11381_v9  ;;  %v4484_v8 = vld [vmem:[#allocation6 + $0x7a0] sm:$0xff]  ;;  %v4481_v9 = vld [vmem:[#allocation6 + $0x788] sm:$0xff] }
 0x2f2   :  { %v11435_v12 = vcombine.high %v4480_v50, %v4484_v8  ;;  %v11434_v33 = vcombine.low %v4480_v50, %v4484_v8  ;;  %v11436_v16 = vcombine.low %v4481_v9, %v4485_v10  ;;  %v4533_v50 = vld [vmem:[#allocation6 + $0x928] sm:$0xff] }
 0x2f3   :  { %7422 = vmatpush1.bf16.msra.mxu0 %v11378_v47  ;;  %v11437_v47 = vcombine.high %v4481_v9, %v4485_v10 }
 0x2f4   :  { %7634 = vmatpush1.bf16.msra.mxu1 %v11380_v13  ;;  %7423 = vmatprep.subr.bf16.mxu0 %v11387_v1  ;;  %v4488_v13 = vld [vmem:[#allocation6 + $0x7c0] sm:$0xff] }
 0x2f5   :  { %7635 = vmatprep.subr.bf16.mxu1 %v11389_v55  ;;  %v4492_v1 = vld [vmem:[#allocation6 + $0x7e0] sm:$0xff]  ;;  %v4489_v55 = vld [vmem:[#allocation6 + $0x7c8] sm:$0xff] }
 0x2f6   :  { %v11443_v17 = vcombine.high %v4488_v13, %v4492_v1  ;;  %v11442_v59 = vcombine.low %v4488_v13, %v4492_v1  ;;  %v11444_v22 = vcombine.low %v4489_v55, %v4493_v57  ;;  %v4541_v13 = vld [vmem:[#allocation6 + $0x968] sm:$0xff] }
 0x2f7   :  { %7424 = vmatpush1.bf16.msra.mxu0 %v11386_v18  ;;  %v11445_v18 = vcombine.high %v4489_v55, %v4493_v57 }
 0x2f8   :  { %7636 = vmatpush1.bf16.msra.mxu1 %v11388_v5  ;;  %7425 = vmatprep.subr.bf16.mxu0 %v11395_v19  ;;  %v4496_v5 = vld [vmem:[#allocation6 + $0x800] sm:$0xff] }
 0x2f9   :  { %7637 = vmatprep.subr.bf16.mxu1 %v11397_v20  ;;  %v4500_v19 = vld [vmem:[#allocation6 + $0x820] sm:$0xff]  ;;  %v4497_v20 = vld [vmem:[#allocation6 + $0x808] sm:$0xff] }
 0x2fa   :  { %v11451_v23 = vcombine.high %v4496_v5, %v4500_v19  ;;  %v11450_v38 = vcombine.low %v4496_v5, %v4500_v19  ;;  %v11452_v39 = vcombine.low %v4497_v20, %v4501_v49  ;;  %v4549_v5 = vld [vmem:[#allocation6 + $0x9a8] sm:$0xff] }
 0x2fb   :  { %7426 = vmatpush1.bf16.msra.mxu0 %v11394_v27  ;;  %v11453_v27 = vcombine.high %v4497_v20, %v4501_v49 }
 0x2fc   :  { %7638 = vmatpush1.bf16.msra.mxu1 %v11396_v14  ;;  %7427 = vmatprep.subr.bf16.mxu0 %v11403_v29  ;;  %v4504_v14 = vld [vmem:[#allocation6 + $0x840] sm:$0xff] }
 0x2fd   :  { %7639 = vmatprep.subr.bf16.mxu1 %v11405_v30  ;;  %v4508_v29 = vld [vmem:[#allocation6 + $0x860] sm:$0xff]  ;;  %v4505_v30 = vld [vmem:[#allocation6 + $0x848] sm:$0xff] }
 0x2fe   :  { %v11459_v15 = vcombine.high %v4504_v14, %v4508_v29  ;;  %v11458_v51 = vcombine.low %v4504_v14, %v4508_v29  ;;  %v11460_v52 = vcombine.low %v4505_v30, %v4509_v4  ;;  %v4557_v14 = vld [vmem:[#allocation6 + $0x9e8] sm:$0xff] }
 0x2ff   :  { %7428 = vmatpush1.bf16.msra.mxu0 %v11402_v44  ;;  %v11461_v44 = vcombine.high %v4505_v30, %v4509_v4 }
 0x300   :  { %7640 = vmatpush1.bf16.msra.mxu1 %v11404_v46  ;;  %7429 = vmatprep.subr.bf16.mxu0 %v11411_v32  ;;  %v4512_v46 = vld [vmem:[#allocation6 + $0x880] sm:$0xff] }
 0x301   :  { %7641 = vmatprep.subr.bf16.mxu1 %v11413_v48  ;;  %v4516_v32 = vld [vmem:[#allocation6 + $0x8a0] sm:$0xff]  ;;  %v4513_v48 = vld [vmem:[#allocation6 + $0x888] sm:$0xff] }
 0x302   :  { %v11467_v56 = vcombine.high %v4512_v46, %v4516_v32  ;;  %v11466_v42 = vcombine.low %v4512_v46, %v4516_v32  ;;  %v11468_v0 = vcombine.low %v4513_v48, %v4517_v54  ;;  %v4565_v46 = vld [vmem:[#allocation6 + $0xa28] sm:$0xff] }
 0x303   :  { %7430 = vmatpush1.bf16.msra.mxu0 %v11410_v60  ;;  %v11469_v60 = vcombine.high %v4513_v48, %v4517_v54 }
 0x304   :  { %7642 = vmatpush1.bf16.msra.mxu1 %v11412_v61  ;;  %7431 = vmatprep.subr.bf16.mxu0 %v11419_v62  ;;  %v4520_v61 = vld [vmem:[#allocation6 + $0x8c0] sm:$0xff] }
 0x305   :  { %7643 = vmatprep.subr.bf16.mxu1 %v11421_v63  ;;  %v4524_v62 = vld [vmem:[#allocation6 + $0x8e0] sm:$0xff]  ;;  %v4521_v63 = vld [vmem:[#allocation6 + $0x8c8] sm:$0xff] }
 0x306   :  { %v11475_v2 = vcombine.high %v4520_v61, %v4524_v62  ;;  %v11474_v8 = vcombine.low %v4520_v61, %v4524_v62  ;;  %v11476_v9 = vcombine.low %v4521_v63, %v4525_v36  ;;  %v4573_v61 = vld [vmem:[#allocation6 + $0xa68] sm:$0xff] }
 0x307   :  { %7432 = vmatpush1.bf16.msra.mxu0 %v11418_v3  ;;  %v11477_v3 = vcombine.high %v4521_v63, %v4525_v36 }
 0x308   :  { %7644 = vmatpush1.bf16.msra.mxu1 %v11420_v6  ;;  %7433 = vmatprep.subr.bf16.mxu0 %v11427_v37  ;;  %v4528_v6 = vld [vmem:[#allocation6 + $0x900] sm:$0xff] }
 0x309   :  { %7645 = vmatprep.subr.bf16.mxu1 %v11429_v7  ;;  %v4532_v37 = vld [vmem:[#allocation6 + $0x920] sm:$0xff]  ;;  %v4529_v7 = vld [vmem:[#allocation6 + $0x908] sm:$0xff] }
 0x30a   :  { %v11483_v10 = vcombine.high %v4528_v6, %v4532_v37  ;;  %v11482_v1 = vcombine.low %v4528_v6, %v4532_v37  ;;  %v11484_v55 = vcombine.low %v4529_v7, %v4533_v50  ;;  %v4581_v6 = vld [vmem:[#allocation6 + $0xaa8] sm:$0xff] }
 0x30b   :  { %7434 = vmatpush1.bf16.msra.mxu0 %v11426_v45  ;;  %v11485_v45 = vcombine.high %v4529_v7, %v4533_v50 }
 0x30c   :  { %7646 = vmatpush1.bf16.msra.mxu1 %v11428_v11  ;;  %7435 = vmatprep.subr.bf16.mxu0 %v11435_v12  ;;  %v4536_v11 = vld [vmem:[#allocation6 + $0x940] sm:$0xff] }
 0x30d   :  { %7647 = vmatprep.subr.bf16.mxu1 %v11437_v47  ;;  %v4540_v12 = vld [vmem:[#allocation6 + $0x960] sm:$0xff]  ;;  %v4537_v47 = vld [vmem:[#allocation6 + $0x948] sm:$0xff] }
 0x30e   :  { %v11491_v57 = vcombine.high %v4536_v11, %v4540_v12  ;;  %v11490_v19 = vcombine.low %v4536_v11, %v4540_v12  ;;  %v11492_v20 = vcombine.low %v4537_v47, %v4541_v13  ;;  %v4589_v11 = vld [vmem:[#allocation6 + $0xae8] sm:$0xff] }
 0x30f   :  { %7436 = vmatpush1.bf16.msra.mxu0 %v11434_v33  ;;  %v11493_v33 = vcombine.high %v4537_v47, %v4541_v13 }
 0x310   :  { %7648 = vmatpush1.bf16.msra.mxu1 %v11436_v16  ;;  %7437 = vmatprep.subr.bf16.mxu0 %v11443_v17  ;;  %v4544_v16 = vld [vmem:[#allocation6 + $0x980] sm:$0xff] }
 0x311   :  { %7649 = vmatprep.subr.bf16.mxu1 %v11445_v18  ;;  %v4548_v17 = vld [vmem:[#allocation6 + $0x9a0] sm:$0xff]  ;;  %v4545_v18 = vld [vmem:[#allocation6 + $0x988] sm:$0xff] }
 0x312   :  { %v11499_v49 = vcombine.high %v4544_v16, %v4548_v17  ;;  %v11498_v29 = vcombine.low %v4544_v16, %v4548_v17  ;;  %v11500_v30 = vcombine.low %v4545_v18, %v4549_v5  ;;  %v4597_v16 = vld [vmem:[#allocation6 + $0xb28] sm:$0xff] }
 0x313   :  { %7438 = vmatpush1.bf16.msra.mxu0 %v11442_v59  ;;  %v11501_v59 = vcombine.high %v4545_v18, %v4549_v5 }
 0x314   :  { %7650 = vmatpush1.bf16.msra.mxu1 %v11444_v22  ;;  %7460 = vmatprep.subr.bf16.mxu0 %v11451_v23  ;;  %v4552_v22 = vld [vmem:[#allocation6 + $0x9c0] sm:$0xff] }
 0x315   :  { %7672 = vmatprep.subr.bf16.mxu1 %v11453_v27  ;;  %v4556_v23 = vld [vmem:[#allocation6 + $0x9e0] sm:$0xff]  ;;  %v4553_v27 = vld [vmem:[#allocation6 + $0x9c8] sm:$0xff] }
 0x316   :  { %7440 = vmatmul.mubr.bf16.vlgmr.msra.gmra.mrb[16].mxu0 %v13403_v53  ;;  %v11507_v4 = vcombine.high %v4552_v22, %v4556_v23  ;;  %v11506_v32 = vcombine.low %v4552_v22, %v4556_v23  ;;  %v11508_v48 = vcombine.low %v4553_v27, %v4557_v14  ;;  %v4605_v22 = vld [vmem:[#allocation6 + $0xb68] sm:$0xff] }
 0x317   :  { %7652 = vmatmul.mubr.bf16.vlgmr.msra.gmra.mrb[16].mxu1 %v13403_v53  ;;  %7449 = vmatprep.mubr.bf16.mxu0 %v13425_v28 }
 0x318   :  { %7661 = vmatprep.mubr.bf16.mxu1 %v13425_v28  ;;  %7461 = vmatpush1.bf16.msra.mxu0 %v11450_v38  ;;  %v11509_v38 = vcombine.high %v4553_v27, %v4557_v14 }
 0x319   :  { %7673 = vmatpush1.bf16.msra.mxu1 %v11452_v39  ;;  %7462 = vmatprep.subr.bf16.mxu0 %v11459_v15  ;;  %v4560_v39 = vld [vmem:[#allocation6 + $0xa00] sm:$0xff] }
 0x31a   :  { %7674 = vmatprep.subr.bf16.mxu1 %v11461_v44  ;;  %v4564_v15 = vld [vmem:[#allocation6 + $0xa20] sm:$0xff]  ;;  %v4561_v44 = vld [vmem:[#allocation6 + $0xa08] sm:$0xff] }
 0x31b   :  { %v11515_v54 = vcombine.high %v4560_v39, %v4564_v15  ;;  %v11514_v62 = vcombine.low %v4560_v39, %v4564_v15  ;;  %v11516_v63 = vcombine.low %v4561_v44, %v4565_v46  ;;  %v4613_v39 = vld [vmem:[#allocation6 + $0xba8] sm:$0xff] }
 0x31c   :  { %7463 = vmatpush1.bf16.msra.mxu0 %v11458_v51  ;;  %v11517_v51 = vcombine.high %v4561_v44, %v4565_v46 }
 0x31d   :  { %7675 = vmatpush1.bf16.msra.mxu1 %v11460_v52  ;;  %7464 = vmatprep.subr.bf16.mxu0 %v11467_v56  ;;  %v4568_v52 = vld [vmem:[#allocation6 + $0xa40] sm:$0xff] }
 0x31e   :  { %7450 = vmatmul.mubr.bf16.gmra.mrb[20].mxu0 %v13421_v24  ;;  %7676 = vmatprep.subr.bf16.mxu1 %v11469_v60  ;;  %v4572_v56 = vld [vmem:[#allocation6 + $0xa60] sm:$0xff]  ;;  %v4569_v60 = vld [vmem:[#allocation6 + $0xa48] sm:$0xff] }
 0x31f   :  { %7662 = vmatmul.mubr.bf16.gmra.mrb[20].mxu1 %v13421_v24  ;;  %v11523_v36 = vcombine.high %v4568_v52, %v4572_v56  ;;  %v11522_v37 = vcombine.low %v4568_v52, %v4572_v56  ;;  %v11524_v7 = vcombine.low %v4569_v60, %v4573_v61  ;;  %v4621_v52 = vld [vmem:[#allocation6 + $0xbe8] sm:$0xff] }
 0x320   :  { %7465 = vmatpush1.bf16.msra.mxu0 %v11466_v42  ;;  %v11525_v42 = vcombine.high %v4569_v60, %v4573_v61 }
 0x321   :  { %7677 = vmatpush1.bf16.msra.mxu1 %v11468_v0  ;;  %7466 = vmatprep.subr.bf16.mxu0 %v11475_v2  ;;  %v4576_v0 = vld [vmem:[#allocation6 + $0xa80] sm:$0xff] }
 0x322   :  { %7678 = vmatprep.subr.bf16.mxu1 %v11477_v3  ;;  %v4580_v2 = vld [vmem:[#allocation6 + $0xaa0] sm:$0xff]  ;;  %v4577_v3 = vld [vmem:[#allocation6 + $0xa88] sm:$0xff] }
 0x323   :  { %v11531_v50 = vcombine.high %v4576_v0, %v4580_v2  ;;  %v11530_v12 = vcombine.low %v4576_v0, %v4580_v2  ;;  %v11532_v47 = vcombine.low %v4577_v3, %v4581_v6  ;;  %v13455_v0 = vld [vmem:[#allocation6 + $0xc28] sm:$0xff] }
 0x324   :  { %7467 = vmatpush1.bf16.msra.mxu0 %v11474_v8  ;;  %v11533_v8 = vcombine.high %v4577_v3, %v4581_v6 }
 0x325   :  { %7679 = vmatpush1.bf16.msra.mxu1 %v11476_v9  ;;  %7468 = vmatprep.subr.bf16.mxu0 %v11483_v10  ;;  %v4584_v9 = vld [vmem:[#allocation6 + $0xac0] sm:$0xff] }
 0x326   :  { %7680 = vmatprep.subr.bf16.mxu1 %v11485_v45  ;;  %v4588_v10 = vld [vmem:[#allocation6 + $0xae0] sm:$0xff]  ;;  %v4585_v45 = vld [vmem:[#allocation6 + $0xac8] sm:$0xff] }
 0x327   :  { %v11539_v13 = vcombine.high %v4584_v9, %v4588_v10  ;;  %v11538_v17 = vcombine.low %v4584_v9, %v4588_v10  ;;  %v11540_v18 = vcombine.low %v4585_v45, %v4589_v11  ;;  %v694_v9 = vsub.s32 7, %v13345_v26  ;;  %v12817_v10 = vld [vmem:[#allocation4] sm:$0xff] }
 0x328   :  { %7469 = vmatpush1.bf16.msra.mxu0 %v11482_v1  ;;  %v11541_v1 = vcombine.high %v4585_v45, %v4589_v11 }
 0x329   :  { %7681 = vmatpush1.bf16.msra.mxu1 %v11484_v55  ;;  %7470 = vmatprep.subr.bf16.mxu0 %v11491_v57  ;;  %v4592_v55 = vld [vmem:[#allocation6 + $0xb00] sm:$0xff] }
 0x32a   :  { %7682 = vmatprep.subr.bf16.mxu1 %v11493_v33  ;;  %v4596_v57 = vld [vmem:[#allocation6 + $0xb20] sm:$0xff]  ;;  %v4593_v33 = vld [vmem:[#allocation6 + $0xb08] sm:$0xff] }
 0x32b   :  { %v11547_v5 = vcombine.high %v4592_v55, %v4596_v57  ;;  %v11546_v23 = vcombine.low %v4592_v55, %v4596_v57  ;;  %v11548_v27 = vcombine.low %v4593_v33, %v4597_v16 }
 0x32c   :  { %7471 = vmatpush1.bf16.msra.mxu0 %v11490_v19  ;;  %v11549_v19 = vcombine.high %v4593_v33, %v4597_v16 }
 0x32d   :  { %7683 = vmatpush1.bf16.msra.mxu1 %v11492_v20  ;;  %7472 = vmatprep.subr.bf16.mxu0 %v11499_v49  ;;  %v4600_v20 = vld [vmem:[#allocation6 + $0xb40] sm:$0xff] }
 0x32e   :  { %7684 = vmatprep.subr.bf16.mxu1 %v11501_v59  ;;  %v4604_v49 = vld [vmem:[#allocation6 + $0xb60] sm:$0xff]  ;;  %v4601_v59 = vld [vmem:[#allocation6 + $0xb48] sm:$0xff] }
 0x32f   :  { %v11555_v14 = vcombine.high %v4600_v20, %v4604_v49  ;;  %v11554_v15 = vcombine.low %v4600_v20, %v4604_v49  ;;  %v11556_v44 = vcombine.low %v4601_v59, %v4605_v22 }
 0x330   :  { %7473 = vmatpush1.bf16.msra.mxu0 %v11498_v29  ;;  %v11557_v29 = vcombine.high %v4601_v59, %v4605_v22 }
 0x331   :  { %7685 = vmatpush1.bf16.msra.mxu1 %v11500_v30  ;;  %7474 = vmatprep.subr.bf16.mxu0 %v11507_v4  ;;  %v4608_v30 = vld [vmem:[#allocation6 + $0xb80] sm:$0xff] }
 0x332   :  { %7686 = vmatprep.subr.bf16.mxu1 %v11509_v38  ;;  %v4612_v4 = vld [vmem:[#allocation6 + $0xba0] sm:$0xff]  ;;  %v4609_v38 = vld [vmem:[#allocation6 + $0xb88] sm:$0xff] }
 0x333   :  { %v11563_v46 = vcombine.high %v4608_v30, %v4612_v4  ;;  %v11562_v56 = vcombine.low %v4608_v30, %v4612_v4  ;;  %v11564_v60 = vcombine.low %v4609_v38, %v4613_v39  ;;  %v13477_v30 = vld [vmem:[#allocation6 + $0xc40] sm:$0xff] }
 0x334   :  { %7475 = vmatpush1.bf16.msra.mxu0 %v11506_v32  ;;  %v11565_v32 = vcombine.high %v4609_v38, %v4613_v39  ;;  %v13479_v4 = vld [vmem:[#allocation6 + $0xc60] sm:$0xff] }
 0x335   :  { %7687 = vmatpush1.bf16.msra.mxu1 %v11508_v48  ;;  %7476 = vmatprep.subr.bf16.mxu0 %v11515_v54  ;;  %v4616_v48 = vld [vmem:[#allocation6 + $0xbc0] sm:$0xff] }
 0x336   :  { %7688 = vmatprep.subr.bf16.mxu1 %v11517_v51  ;;  %v4620_v54 = vld [vmem:[#allocation6 + $0xbe0] sm:$0xff]  ;;  %v4617_v51 = vld [vmem:[#allocation6 + $0xbc8] sm:$0xff] }
 0x337   :  { %v11571_v61 = vcombine.high %v4616_v48, %v4620_v54  ;;  %v11570_v2 = vcombine.low %v4616_v48, %v4620_v54  ;;  %v11572_v3 = vcombine.low %v4617_v51, %v4621_v52 }
 0x338   :  { %7477 = vmatpush1.bf16.msra.mxu0 %v11514_v62  ;;  %v11573_v62 = vcombine.high %v4617_v51, %v4621_v52 }
 0x339   :  { %7689 = vmatpush1.bf16.msra.mxu1 %v11516_v63  ;;  %7478 = vmatprep.subr.bf16.mxu0 %v11523_v36  ;;  %v13449_v63 = vld [vmem:[#allocation6 + $0xc00] sm:$0xff] }
 0x33a   :  { %7690 = vmatprep.subr.bf16.mxu1 %v11525_v42  ;;  %v13451_v36 = vld [vmem:[#allocation6 + $0xc20] sm:$0xff]  ;;  %v13453_v42 = vld [vmem:[#allocation6 + $0xc08] sm:$0xff] }
 0x33b   :  { %v11579_v6 = vcombine.high %v13449_v63, %v13451_v36 }
 0x33c   :  { %7479 = vmatpush1.bf16.msra.mxu0 %v11522_v37  ;;  %v11581_v37 = vcombine.high %v13453_v42, %v13455_v0 }
 0x33d   :  { %7691 = vmatpush1.bf16.msra.mxu1 %v11524_v7  ;;  %7480 = vmatprep.subr.bf16.mxu0 %v11531_v50  ;;  %v682_v7 = vsub.s32 4, %v13345_v26  ;;  %v690_v50 = vsub.s32 6, %v13345_v26 }
 0x33e   :  { %7692 = vmatprep.subr.bf16.mxu1 %v11533_v8  ;;  %v686_v8 = vsub.s32 5, %v13345_v26 }
 0x33f   :  { %v683_v45 = vrot.slane %v12817_v10, %v682_v7  ;;  %v691_v11 = vrot.slane %v12817_v10, %v690_v50 }
 0x340   :  { %7481 = vmatpush1.bf16.msra.mxu0 %v11530_v12  ;;  %v687_v12 = vrot.slane %v12817_v10, %v686_v8 }
 0x341   :  { %7693 = vmatpush1.bf16.msra.mxu1 %v11532_v47  ;;  %7482 = vmatprep.subr.bf16.mxu0 %v11539_v13  ;;  %v13473_v47 = vrot.slane %v12817_v10, %v694_v9  ;;  %v11587_v10 = vcombine.high %v13477_v30, %v13479_v4 }
 0x342   :  { %7694 = vmatprep.subr.bf16.mxu1 %v11541_v1 }
 0x344   :  { %7483 = vmatpush1.bf16.msra.mxu0 %v11538_v17 }
 0x345   :  { %7695 = vmatpush1.bf16.msra.mxu1 %v11540_v18  ;;  %7484 = vmatprep.subr.bf16.mxu0 %v11547_v5 }
 0x346   :  { %7696 = vmatprep.subr.bf16.mxu1 %v11549_v19 }
 0x348   :  { %7485 = vmatpush1.bf16.msra.mxu0 %v11546_v23 }
 0x349   :  { %7697 = vmatpush1.bf16.msra.mxu1 %v11548_v27  ;;  %7486 = vmatprep.subr.bf16.mxu0 %v11555_v14 }
 0x34a   :  { %7698 = vmatprep.subr.bf16.mxu1 %v11557_v29 }
 0x34c   :  { %7487 = vmatpush1.bf16.msra.mxu0 %v11554_v15 }
 0x34d   :  { %7699 = vmatpush1.bf16.msra.mxu1 %v11556_v44  ;;  %7488 = vmatprep.subr.bf16.mxu0 %v11563_v46  ;;  %v4633_v46 = vld [vmem:[#allocation6 + $0xc48] sm:$0xff] }
 0x34e   :  { %7700 = vmatprep.subr.bf16.mxu1 %v11565_v32  ;;  %v4637_v32 = vld [vmem:[#allocation6 + $0xc68] sm:$0xff] }
 0x350   :  { %7489 = vmatpush1.bf16.msra.mxu0 %v11562_v56 }
 0x351   :  { %7701 = vmatpush1.bf16.msra.mxu1 %v11564_v60  ;;  %7490 = vmatprep.subr.bf16.mxu0 %v11571_v61  ;;  %v11578_v61 = vcombine.low %v13449_v63, %v13451_v36  ;;  %v11586_v63 = vcombine.low %v13477_v30, %v13479_v4  ;;  %v4641_v36 = vld [vmem:[#allocation6 + $0xc88] sm:$0xff] }
 0x352   :  { %7702 = vmatprep.subr.bf16.mxu1 %v11573_v62  ;;  %v11580_v62 = vcombine.low %v13453_v42, %v13455_v0  ;;  %v4645_v42 = vld [vmem:[#allocation6 + $0xca8] sm:$0xff] }
 0x354   :  { %7491 = vmatpush1.bf16.msra.mxu0 %v11570_v2 }
 0x355   :  { %7703 = vmatpush1.bf16.msra.mxu1 %v11572_v3  ;;  %7513 = vmatprep.subr.bf16.mxu0 %v11579_v6 }
 0x356   :  { %7725 = vmatprep.subr.bf16.mxu1 %v11581_v37 }
 0x368   :  { %v3961_v13 = vpop.f32.mrb[8].mxu0  ;;  %v4173_v55 = vpop.f32.mrb[8].mxu1 }
 0x369   :  { %v12067_v1 = vadd.f32 %v3961_v13, %v683_v45  ;;  %v3963_v57 = vpop.f32.mrb[9].mxu0  ;;  %v12075_v33 = vadd.f32 %v4173_v55, %v691_v11  ;;  %v4175_v17 = vpop.f32.mrb[9].mxu1  ;;  %v11589_v13 = vcombine.high %v4633_v46, %v4637_v32  ;;  %v4644_v55 = vld [vmem:[#allocation6 + $0xca0] sm:$0xff] }
 0x36a   :  { %v12068_v16 = vadd.f32 %v3963_v57, %v687_v12  ;;  %v3965_v18 = vpop.f32.mrb[10].mxu0  ;;  %v12076_v5 = vadd.f32 %v4175_v17, %v13473_v47  ;;  %v4177_v20 = vpop.f32.mrb[10].mxu1 }
 0x36b   :  { %v12069_v19 = vadd.f32 %v3965_v18, %v683_v45  ;;  %v3967_v49 = vpop.f32.mrb[11].mxu0  ;;  %v12077_v59 = vadd.f32 %v4177_v20, %v691_v11  ;;  %v4179_v23 = vpop.f32.mrb[11].mxu1  ;;  %v4196_v27 = vmax.f32 %v12067_v1, 0.0  ;;  %v4198_v38 = vmax.f32 %v12075_v33, 0.0  ;;  %v4640_v1 = vld [vmem:[#allocation6 + $0xc80] sm:$0xff] }
 0x36c   :  { %v12070_v22 = vadd.f32 %v3967_v49, %v687_v12  ;;  %v12078_v29 = vadd.f32 %v4179_v23, %v13473_v47  ;;  %v4197_v39 = vmax.f32 %v12068_v16, 0.0  ;;  %v4199_v48 = vmax.f32 %v12076_v5, 0.0 }
 0x36d   :  { %v4204_v14 = vmax.f32 %v12069_v19, 0.0  ;;  %v4206_v15 = vmax.f32 %v12077_v59, 0.0  ;;  %v11588_v20 = vcombine.low %v4633_v46, %v4637_v32  ;;  %v11595_v23 = vcombine.high %v4640_v1, %v4644_v55  ;;  %v4652_v32 = vld [vmem:[#allocation6 + $0xce0] sm:$0xff] }
 0x36e   :  { %v4205_v44 = vmax.f32 %v12070_v22, 0.0  ;;  %v4207_v51 = vmax.f32 %v12078_v29, 0.0 }
 0x36f   :  { %v13481_v54 = vpack.c.bf16 %v4204_v14, %v4196_v27  ;;  %v13483_v52 = vpack.c.bf16 %v4206_v15, %v4198_v38  ;;  %v4648_v15 = vld [vmem:[#allocation6 + $0xcc0] sm:$0xff] }
 0x370   :  { %v13485_v56 = vpack.c.bf16 %v4205_v44, %v4197_v39  ;;  %v3971_v60 = vpop.f32.mrb[12].mxu0  ;;  %v13491_v2 = vpack.c.bf16 %v4207_v51, %v4199_v48  ;;  %v4183_v6 = vpop.f32.mrb[12].mxu1  ;;  %v4649_v48 = vld [vmem:[#allocation6 + $0xcc8] sm:$0xff] }
 0x371   :  { %v12071_v3 = vadd.f32 %v3971_v60, %v683_v45  ;;  %v3973_v37 = vpop.f32.mrb[13].mxu0  ;;  %v12079_v57 = vadd.f32 %v4183_v6, %v691_v11  ;;  %v4185_v16 = vpop.f32.mrb[13].mxu1  ;;  %v4653_v51 = vld [vmem:[#allocation6 + $0xce8] sm:$0xff]  ;;  %v11603_v6 = vcombine.high %v4648_v15, %v4652_v32 }
 0x372   :  { %v12072_v33 = vadd.f32 %v3973_v37, %v687_v12  ;;  %v3975_v17 = vpop.f32.mrb[14].mxu0  ;;  %7492 = vmatprep.mubr.bf16.mxu0 %v13485_v56  ;;  %7704 = vmatprep.mubr.bf16.mxu1 %v13485_v56  ;;  %v12080_v0 = vadd.f32 %v4185_v16, %v13473_v47  ;;  %v4187_v5 = vpop.f32.mrb[14].mxu1  ;;  %v11605_v37 = vcombine.high %v4649_v48, %v4653_v51 }
 0x373   :  { %v12073_v18 = vadd.f32 %v3975_v17, %v683_v45  ;;  %v3977_v19 = vpop.f32.mrb[15].mxu0  ;;  %7493 = vmatmul.mubr.bf16.vlgmr.msra.gmra.mrb[16].mxu0 %v13481_v54  ;;  %7705 = vmatmul.mubr.bf16.vlgmr.msra.gmra.mrb[16].mxu1 %v13481_v54  ;;  %v12081_v49 = vadd.f32 %v4187_v5, %v691_v11  ;;  %v4189_v22 = vpop.f32.mrb[15].mxu1  ;;  %v4212_v27 = vmax.f32 %v12071_v3, 0.0  ;;  %v11597_v45 = vcombine.high %v4641_v36, %v4645_v42  ;;  %v4656_v3 = vld [vmem:[#allocation6 + $0xd00] sm:$0xff] }
 0x374   :  { %v12074_v59 = vadd.f32 %v3977_v19, %v687_v12  ;;  %7514 = vmatpush1.bf16.msra.mxu0 %v11578_v61  ;;  %7726 = vmatpush1.bf16.msra.mxu1 %v11580_v62  ;;  %v12082_v29 = vadd.f32 %v4189_v22, %v13473_v47  ;;  %v4214_v30 = vmax.f32 %v12079_v57, 0.0  ;;  %v4213_v4 = vmax.f32 %v12072_v33, 0.0  ;;  %v4664_v17 = vld [vmem:[#allocation6 + $0xd40] sm:$0xff]  ;;  %v4677_v22 = vld [vmem:[#allocation6 + $0xda8] sm:$0xff] }
 0x375   :  { %v4220_v14 = vmax.f32 %v12073_v18, 0.0  ;;  %7515 = vmatprep.subr.bf16.mxu0 %v11587_v10  ;;  %7727 = vmatprep.subr.bf16.mxu1 %v11589_v13  ;;  %v4222_v38 = vmax.f32 %v12081_v49, 0.0  ;;  %v4215_v44 = vmax.f32 %v12080_v0, 0.0  ;;  %v11594_v12 = vcombine.low %v4640_v1, %v4644_v55  ;;  %v4660_v10 = vld [vmem:[#allocation6 + $0xd20] sm:$0xff]  ;;  %v4657_v13 = vld [vmem:[#allocation6 + $0xd08] sm:$0xff] }
 0x376   :  { %v4221_v39 = vmax.f32 %v12074_v59, 0.0  ;;  %v4223_v11 = vmax.f32 %v12082_v29, 0.0  ;;  %v11596_v47 = vcombine.low %v4641_v36, %v4645_v42  ;;  %v4661_v1 = vld [vmem:[#allocation6 + $0xd28] sm:$0xff]  ;;  %v11602_v55 = vcombine.low %v4648_v15, %v4652_v32  ;;  %v4676_v49 = vld [vmem:[#allocation6 + $0xda0] sm:$0xff] }
 0x377   :  { %v13503_v46 = vpack.c.bf16 %v4220_v14, %v4212_v27  ;;  %v13505_v60 = vpack.c.bf16 %v4222_v38, %v4214_v30  ;;  %v11604_v57 = vcombine.low %v4649_v48, %v4653_v51  ;;  %v11611_v33 = vcombine.high %v4656_v3, %v4660_v10  ;;  %v4665_v36 = vld [vmem:[#allocation6 + $0xd48] sm:$0xff]  ;;  %v4684_v30 = vld [vmem:[#allocation6 + $0xde0] sm:$0xff] }
 0x378   :  { %v13507_v61 = vpack.c.bf16 %v4221_v39, %v4213_v4  ;;  %7516 = vmatpush1.bf16.msra.mxu0 %v11586_v63  ;;  %7728 = vmatpush1.bf16.msra.mxu1 %v11588_v20  ;;  %v13509_v62 = vpack.c.bf16 %v4223_v11, %v4215_v44  ;;  %v11613_v16 = vcombine.high %v4657_v13, %v4661_v1  ;;  %v4668_v63 = vld [vmem:[#allocation6 + $0xd60] sm:$0xff]  ;;  %v4669_v42 = vld [vmem:[#allocation6 + $0xd68] sm:$0xff] }
 0x379   :  { %7517 = vmatprep.subr.bf16.mxu0 %v11595_v23  ;;  %7729 = vmatprep.subr.bf16.mxu1 %v11597_v45  ;;  %v11610_v0 = vcombine.low %v4656_v3, %v4660_v10  ;;  %v11612_v18 = vcombine.low %v4657_v13, %v4661_v1  ;;  %v11619_v5 = vcombine.high %v4664_v17, %v4668_v63  ;;  %v4672_v20 = vld [vmem:[#allocation6 + $0xd80] sm:$0xff]  ;;  %v4673_v59 = vld [vmem:[#allocation6 + $0xd88] sm:$0xff] }
 0x37a   :  { %7502 = vmatprep.mubr.bf16.mxu0 %v13507_v61  ;;  %7714 = vmatprep.mubr.bf16.mxu1 %v13507_v61  ;;  %v11621_v19 = vcombine.high %v4665_v36, %v4669_v42  ;;  %v11618_v23 = vcombine.low %v4664_v17, %v4668_v63  ;;  %v11620_v27 = vcombine.low %v4665_v36, %v4669_v42  ;;  %v4680_v45 = vld [vmem:[#allocation6 + $0xdc0] sm:$0xff]  ;;  %v4681_v4 = vld [vmem:[#allocation6 + $0xdc8] sm:$0xff] }
 0x37b   :  { %7503 = vmatmul.mubr.bf16.gmra.mrb[20].mxu0 %v13503_v46  ;;  %7715 = vmatmul.mubr.bf16.gmra.mrb[20].mxu1 %v13503_v46  ;;  %v11627_v14 = vcombine.high %v4672_v20, %v4676_v49  ;;  %v11629_v29 = vcombine.high %v4673_v59, %v4677_v22  ;;  %v4685_v38 = vld [vmem:[#allocation6 + $0xde8] sm:$0xff]  ;;  %v11626_v39 = vcombine.low %v4672_v20, %v4676_v49  ;;  %v4692_v32 = vld [vmem:[#allocation6 + $0xe20] sm:$0xff] }
 0x37c   :  { %7518 = vmatpush1.bf16.msra.mxu0 %v11594_v12  ;;  %7730 = vmatpush1.bf16.msra.mxu1 %v11596_v47  ;;  %v11628_v15 = vcombine.low %v4673_v59, %v4677_v22  ;;  %v11635_v44 = vcombine.high %v4680_v45, %v4684_v30  ;;  %v11637_v11 = vcombine.high %v4681_v4, %v4685_v38  ;;  %v4688_v12 = vld [vmem:[#allocation6 + $0xe00] sm:$0xff]  ;;  %v4689_v48 = vld [vmem:[#allocation6 + $0xe08] sm:$0xff] }
 0x37d   :  { %7545 = vmatprep.mubr.bf16.mxu0 %v13491_v2  ;;  %7757 = vmatprep.mubr.bf16.mxu1 %v13491_v2  ;;  %v4693_v51 = vld [vmem:[#allocation6 + $0xe28] sm:$0xff]  ;;  %v11634_v47 = vcombine.low %v4680_v45, %v4684_v30  ;;  %v11636_v3 = vcombine.low %v4681_v4, %v4685_v38  ;;  %v4696_v10 = vld [vmem:[#allocation6 + $0xe40] sm:$0xff] }
 0x37e   :  { %7519 = vmatprep.subr.bf16.mxu0 %v11603_v6  ;;  %7731 = vmatprep.subr.bf16.mxu1 %v11605_v37  ;;  %v11643_v6 = vcombine.high %v4688_v12, %v4692_v32  ;;  %v11645_v37 = vcombine.high %v4689_v48, %v4693_v51  ;;  %v4700_v13 = vld [vmem:[#allocation6 + $0xe60] sm:$0xff]  ;;  %v4697_v1 = vld [vmem:[#allocation6 + $0xe48] sm:$0xff] }
 0x37f   :  { %v4704_v63 = vld [vmem:[#allocation6 + $0xe80] sm:$0xff]  ;;  %v4705_v42 = vld [vmem:[#allocation6 + $0xe88] sm:$0xff] }
 0x380   :  { %7520 = vmatpush1.bf16.msra.mxu0 %v11602_v55  ;;  %7732 = vmatpush1.bf16.msra.mxu1 %v11604_v57  ;;  %v4701_v55 = vld [vmem:[#allocation6 + $0xe68] sm:$0xff]  ;;  %v11642_v57 = vcombine.low %v4688_v12, %v4692_v32  ;;  %v4708_v36 = vld [vmem:[#allocation6 + $0xea0] sm:$0xff] }
 0x381   :  { %7521 = vmatprep.subr.bf16.mxu0 %v11611_v33  ;;  %7733 = vmatprep.subr.bf16.mxu1 %v11613_v16  ;;  %v11644_v33 = vcombine.low %v4689_v48, %v4693_v51  ;;  %v11651_v16 = vcombine.high %v4696_v10, %v4700_v13  ;;  %v11653_v17 = vcombine.high %v4697_v1, %v4701_v55  ;;  %v4712_v49 = vld [vmem:[#allocation6 + $0xec0] sm:$0xff]  ;;  %v4713_v22 = vld [vmem:[#allocation6 + $0xec8] sm:$0xff] }
 0x382   :  { %v4716_v59 = vld [vmem:[#allocation6 + $0xee0] sm:$0xff]  ;;  %v4721_v38 = vld [vmem:[#allocation6 + $0xf08] sm:$0xff] }
 0x383   :  { %v4720_v30 = vld [vmem:[#allocation6 + $0xf00] sm:$0xff]  ;;  %v4729_v51 = vld [vmem:[#allocation6 + $0xf48] sm:$0xff] }
 0x384   :  { %7522 = vmatpush1.bf16.msra.mxu0 %v11610_v0  ;;  %7734 = vmatpush1.bf16.msra.mxu1 %v11612_v18  ;;  %v4709_v0 = vld [vmem:[#allocation6 + $0xea8] sm:$0xff]  ;;  %v11650_v18 = vcombine.low %v4696_v10, %v4700_v13  ;;  %v4724_v4 = vld [vmem:[#allocation6 + $0xf20] sm:$0xff] }
 0x385   :  { %7523 = vmatprep.subr.bf16.mxu0 %v11619_v5  ;;  %7735 = vmatprep.subr.bf16.mxu1 %v11621_v19  ;;  %v11652_v5 = vcombine.low %v4697_v1, %v4701_v55  ;;  %v11659_v19 = vcombine.high %v4704_v63, %v4708_v36  ;;  %v11661_v20 = vcombine.high %v4705_v42, %v4709_v0  ;;  %v4728_v32 = vld [vmem:[#allocation6 + $0xf40] sm:$0xff]  ;;  %v4737_v55 = vld [vmem:[#allocation6 + $0xf88] sm:$0xff] }
 0x386   :  { %v4732_v48 = vld [vmem:[#allocation6 + $0xf60] sm:$0xff] }
 0x387   :  { %v4736_v13 = vld [vmem:[#allocation6 + $0xf80] sm:$0xff] }
 0x388   :  { %7524 = vmatpush1.bf16.msra.mxu0 %v11618_v23  ;;  %7736 = vmatpush1.bf16.msra.mxu1 %v11620_v27  ;;  %v4717_v23 = vld [vmem:[#allocation6 + $0xee8] sm:$0xff]  ;;  %v11658_v27 = vcombine.low %v4704_v63, %v4708_v36  ;;  %v4740_v1 = vld [vmem:[#allocation6 + $0xfa0] sm:$0xff] }
 0x389   :  { %7525 = vmatprep.subr.bf16.mxu0 %v11627_v14  ;;  %7737 = vmatprep.subr.bf16.mxu1 %v11629_v29  ;;  %v11660_v14 = vcombine.low %v4705_v42, %v4709_v0  ;;  %v11667_v29 = vcombine.high %v4712_v49, %v4716_v59  ;;  %v11669_v45 = vcombine.high %v4713_v22, %v4717_v23  ;;  %v4744_v36 = vld [vmem:[#allocation6 + $0xfc0] sm:$0xff]  ;;  %v4745_v0 = vld [vmem:[#allocation6 + $0xfc8] sm:$0xff] }
 0x38a   :  { %v4748_v42 = vld [vmem:[#allocation6 + $0xfe0] sm:$0xff] }
 0x38c   :  { %7526 = vmatpush1.bf16.msra.mxu0 %v11626_v39  ;;  %7738 = vmatpush1.bf16.msra.mxu1 %v11628_v15  ;;  %v4725_v39 = vld [vmem:[#allocation6 + $0xf28] sm:$0xff]  ;;  %v11666_v15 = vcombine.low %v4712_v49, %v4716_v59  ;;  %v4242_v59 = vld [vmem:[#allocation6 + $0x10] sm:$0xff] }
 0x38d   :  { %7527 = vmatprep.subr.bf16.mxu0 %v11635_v44  ;;  %7739 = vmatprep.subr.bf16.mxu1 %v11637_v11  ;;  %v11668_v44 = vcombine.low %v4713_v22, %v4717_v23  ;;  %v11675_v11 = vcombine.high %v4720_v30, %v4724_v4  ;;  %v11677_v12 = vcombine.high %v4721_v38, %v4725_v39  ;;  %v4246_v22 = vld [vmem:[#allocation6 + $0x30] sm:$0xff]  ;;  %v4243_v23 = vld [vmem:[#allocation6 + $0x18] sm:$0xff] }
 0x390   :  { %7528 = vmatpush1.bf16.msra.mxu0 %v11634_v47  ;;  %7740 = vmatpush1.bf16.msra.mxu1 %v11636_v3  ;;  %v4733_v47 = vld [vmem:[#allocation6 + $0xf68] sm:$0xff]  ;;  %v11674_v3 = vcombine.low %v4720_v30, %v4724_v4  ;;  %v4250_v4 = vld [vmem:[#allocation6 + $0x50] sm:$0xff] }
 0x391   :  { %7529 = vmatprep.subr.bf16.mxu0 %v11643_v6  ;;  %7741 = vmatprep.subr.bf16.mxu1 %v11645_v37  ;;  %v11676_v6 = vcombine.low %v4721_v38, %v4725_v39  ;;  %v11683_v37 = vcombine.high %v4728_v32, %v4732_v48  ;;  %v11685_v10 = vcombine.high %v4729_v51, %v4733_v47  ;;  %v4254_v38 = vld [vmem:[#allocation6 + $0x70] sm:$0xff]  ;;  %v4251_v39 = vld [vmem:[#allocation6 + $0x58] sm:$0xff] }
 0x394   :  { %7530 = vmatpush1.bf16.msra.mxu0 %v11642_v57  ;;  %7742 = vmatpush1.bf16.msra.mxu1 %v11644_v33  ;;  %v4741_v57 = vld [vmem:[#allocation6 + $0xfa8] sm:$0xff]  ;;  %v11682_v33 = vcombine.low %v4728_v32, %v4732_v48  ;;  %v4258_v48 = vld [vmem:[#allocation6 + $0x90] sm:$0xff] }
 0x395   :  { %7531 = vmatprep.subr.bf16.mxu0 %v11651_v16  ;;  %7743 = vmatprep.subr.bf16.mxu1 %v11653_v17  ;;  %v11684_v16 = vcombine.low %v4729_v51, %v4733_v47  ;;  %v11691_v17 = vcombine.high %v4736_v13, %v4740_v1  ;;  %v11693_v63 = vcombine.high %v4737_v55, %v4741_v57  ;;  %v4262_v51 = vld [vmem:[#allocation6 + $0xb0] sm:$0xff]  ;;  %v4259_v47 = vld [vmem:[#allocation6 + $0x98] sm:$0xff] }
 0x398   :  { %7532 = vmatpush1.bf16.msra.mxu0 %v11650_v18  ;;  %7744 = vmatpush1.bf16.msra.mxu1 %v11652_v5  ;;  %v4749_v18 = vld [vmem:[#allocation6 + $0xfe8] sm:$0xff]  ;;  %v11690_v5 = vcombine.low %v4736_v13, %v4740_v1  ;;  %v4266_v1 = vld [vmem:[#allocation6 + $0xd0] sm:$0xff] }
 0x399   :  { %7533 = vmatprep.subr.bf16.mxu0 %v11659_v19  ;;  %7745 = vmatprep.subr.bf16.mxu1 %v11661_v20  ;;  %v11692_v19 = vcombine.low %v4737_v55, %v4741_v57  ;;  %v11699_v20 = vcombine.high %v4744_v36, %v4748_v42  ;;  %v11701_v49 = vcombine.high %v4745_v0, %v4749_v18  ;;  %v4270_v55 = vld [vmem:[#allocation6 + $0xf0] sm:$0xff]  ;;  %v4267_v57 = vld [vmem:[#allocation6 + $0xd8] sm:$0xff] }
 0x39c   :  { %7534 = vmatpush1.bf16.msra.mxu0 %v11658_v27  ;;  %7746 = vmatpush1.bf16.msra.mxu1 %v11660_v14  ;;  %v4247_v27 = vld [vmem:[#allocation6 + $0x38] sm:$0xff]  ;;  %v11698_v14 = vcombine.low %v4744_v36, %v4748_v42  ;;  %v4274_v42 = vld [vmem:[#allocation6 + $0x110] sm:$0xff] }
 0x39d   :  { %7535 = vmatprep.subr.bf16.mxu0 %v11667_v29  ;;  %7747 = vmatprep.subr.bf16.mxu1 %v11669_v45  ;;  %v11700_v29 = vcombine.low %v4745_v0, %v4749_v18  ;;  %v11199_v45 = vcombine.high %v4242_v59, %v4246_v22  ;;  %v11201_v30 = vcombine.high %v4243_v23, %v4247_v27  ;;  %v4278_v0 = vld [vmem:[#allocation6 + $0x130] sm:$0xff]  ;;  %v4275_v18 = vld [vmem:[#allocation6 + $0x118] sm:$0xff] }
 0x3a0   :  { %7536 = vmatpush1.bf16.msra.mxu0 %v11666_v15  ;;  %7748 = vmatpush1.bf16.msra.mxu1 %v11668_v44  ;;  %v4255_v15 = vld [vmem:[#allocation6 + $0x78] sm:$0xff]  ;;  %v11198_v44 = vcombine.low %v4242_v59, %v4246_v22  ;;  %v4282_v22 = vld [vmem:[#allocation6 + $0x150] sm:$0xff] }
 0x3a1   :  { %7537 = vmatprep.subr.bf16.mxu0 %v11675_v11  ;;  %7749 = vmatprep.subr.bf16.mxu1 %v11677_v12  ;;  %v11200_v11 = vcombine.low %v4243_v23, %v4247_v27  ;;  %v11207_v12 = vcombine.high %v4250_v4, %v4254_v38  ;;  %v11209_v32 = vcombine.high %v4251_v39, %v4255_v15  ;;  %v4286_v23 = vld [vmem:[#allocation6 + $0x170] sm:$0xff]  ;;  %v4283_v27 = vld [vmem:[#allocation6 + $0x158] sm:$0xff] }
 0x3a4   :  { %7538 = vmatpush1.bf16.msra.mxu0 %v11674_v3  ;;  %7750 = vmatpush1.bf16.msra.mxu1 %v11676_v6  ;;  %v4263_v3 = vld [vmem:[#allocation6 + $0xb8] sm:$0xff]  ;;  %v11206_v6 = vcombine.low %v4250_v4, %v4254_v38  ;;  %v4290_v4 = vld [vmem:[#allocation6 + $0x190] sm:$0xff] }
 0x3a5   :  { %7539 = vmatprep.subr.bf16.mxu0 %v11683_v37  ;;  %7751 = vmatprep.subr.bf16.mxu1 %v11685_v10  ;;  %v11208_v37 = vcombine.low %v4251_v39, %v4255_v15  ;;  %v11215_v10 = vcombine.high %v4258_v48, %v4262_v51  ;;  %v11217_v13 = vcombine.high %v4259_v47, %v4263_v3  ;;  %v4294_v38 = vld [vmem:[#allocation6 + $0x1b0] sm:$0xff]  ;;  %v4291_v39 = vld [vmem:[#allocation6 + $0x198] sm:$0xff] }
 0x3a6   :  { %v4295_v15 = vld [vmem:[#allocation6 + $0x1b8] sm:$0xff] }
 0x3a8   :  { %7540 = vmatpush1.bf16.msra.mxu0 %v11682_v33  ;;  %7752 = vmatpush1.bf16.msra.mxu1 %v11684_v16  ;;  %v4271_v33 = vld [vmem:[#allocation6 + $0xf8] sm:$0xff]  ;;  %v11214_v16 = vcombine.low %v4258_v48, %v4262_v51  ;;  %v4298_v48 = vld [vmem:[#allocation6 + $0x1d0] sm:$0xff] }
 0x3a9   :  { %7541 = vmatprep.subr.bf16.mxu0 %v11691_v17  ;;  %7753 = vmatprep.subr.bf16.mxu1 %v11693_v63  ;;  %v11216_v17 = vcombine.low %v4259_v47, %v4263_v3  ;;  %v11223_v63 = vcombine.high %v4266_v1, %v4270_v55  ;;  %v11225_v36 = vcombine.high %v4267_v57, %v4271_v33  ;;  %v4302_v51 = vld [vmem:[#allocation6 + $0x1f0] sm:$0xff]  ;;  %v4299_v47 = vld [vmem:[#allocation6 + $0x1d8] sm:$0xff] }
 0x3aa   :  { %v4303_v3 = vld [vmem:[#allocation6 + $0x1f8] sm:$0xff] }
 0x3ac   :  { %7542 = vmatpush1.bf16.msra.mxu0 %v11690_v5  ;;  %7754 = vmatpush1.bf16.msra.mxu1 %v11692_v19  ;;  %v4279_v5 = vld [vmem:[#allocation6 + $0x138] sm:$0xff]  ;;  %v11222_v19 = vcombine.low %v4266_v1, %v4270_v55  ;;  %v4306_v1 = vld [vmem:[#allocation6 + $0x210] sm:$0xff] }
 0x3ad   :  { %7543 = vmatprep.subr.bf16.mxu0 %v11699_v20  ;;  %7755 = vmatprep.subr.bf16.mxu1 %v11701_v49  ;;  %v11224_v20 = vcombine.low %v4267_v57, %v4271_v33  ;;  %v11231_v49 = vcombine.high %v4274_v42, %v4278_v0  ;;  %v11233_v59 = vcombine.high %v4275_v18, %v4279_v5  ;;  %v4310_v55 = vld [vmem:[#allocation6 + $0x230] sm:$0xff]  ;;  %v4307_v57 = vld [vmem:[#allocation6 + $0x218] sm:$0xff] }
 0x3ae   :  { %v4311_v33 = vld [vmem:[#allocation6 + $0x238] sm:$0xff] }
 0x3b0   :  { %7544 = vmatpush1.bf16.msra.mxu0 %v11698_v14  ;;  %7756 = vmatpush1.bf16.msra.mxu1 %v11700_v29  ;;  %v4287_v14 = vld [vmem:[#allocation6 + $0x178] sm:$0xff]  ;;  %v11230_v29 = vcombine.low %v4274_v42, %v4278_v0  ;;  %v4314_v42 = vld [vmem:[#allocation6 + $0x250] sm:$0xff] }
 0x3b1   :  { %7778 = vmatprep.subr.bf16.mxu0 %v11199_v45  ;;  %7990 = vmatprep.subr.bf16.mxu1 %v11201_v30  ;;  %v11232_v45 = vcombine.low %v4275_v18, %v4279_v5  ;;  %v11239_v30 = vcombine.high %v4282_v22, %v4286_v23  ;;  %v4318_v0 = vld [vmem:[#allocation6 + $0x270] sm:$0xff]  ;;  %v4315_v18 = vld [vmem:[#allocation6 + $0x258] sm:$0xff] }
 0x3b2   :  { %v4319_v5 = vld [vmem:[#allocation6 + $0x278] sm:$0xff] }
 0x3b3   :  { %7546 = vmatmul.mubr.bf16.vlgmr.msra.gmra.mrb[16].mxu0 %v13483_v52  ;;  %7758 = vmatmul.mubr.bf16.vlgmr.msra.gmra.mrb[16].mxu1 %v13483_v52 }
 0x3b4   :  { %7555 = vmatprep.mubr.bf16.mxu0 %v13509_v62  ;;  %7767 = vmatprep.mubr.bf16.mxu1 %v13509_v62 }
 0x3b5   :  { %7779 = vmatpush1.bf16.msra.mxu0 %v11198_v44  ;;  %7991 = vmatpush1.bf16.msra.mxu1 %v11200_v11  ;;  %v11238_v44 = vcombine.low %v4282_v22, %v4286_v23  ;;  %v11240_v11 = vcombine.low %v4283_v27, %v4287_v14  ;;  %v4322_v22 = vld [vmem:[#allocation6 + $0x290] sm:$0xff] }
 0x3b6   :  { %7780 = vmatprep.subr.bf16.mxu0 %v11207_v12  ;;  %7992 = vmatprep.subr.bf16.mxu1 %v11209_v32  ;;  %v11247_v12 = vcombine.high %v4290_v4, %v4294_v38  ;;  %v11249_v32 = vcombine.high %v4291_v39, %v4295_v15  ;;  %v4326_v23 = vld [vmem:[#allocation6 + $0x2b0] sm:$0xff] }
 0x3b9   :  { %7781 = vmatpush1.bf16.msra.mxu0 %v11206_v6  ;;  %7993 = vmatpush1.bf16.msra.mxu1 %v11208_v37  ;;  %v11246_v6 = vcombine.low %v4290_v4, %v4294_v38  ;;  %v11248_v37 = vcombine.low %v4291_v39, %v4295_v15  ;;  %v4330_v4 = vld [vmem:[#allocation6 + $0x2d0] sm:$0xff]  ;;  %v4331_v39 = vld [vmem:[#allocation6 + $0x2d8] sm:$0xff] }
 0x3ba   :  { %7782 = vmatprep.subr.bf16.mxu0 %v11215_v10  ;;  %7994 = vmatprep.subr.bf16.mxu1 %v11217_v13  ;;  %v11255_v10 = vcombine.high %v4298_v48, %v4302_v51  ;;  %v11257_v13 = vcombine.high %v4299_v47, %v4303_v3  ;;  %v4334_v38 = vld [vmem:[#allocation6 + $0x2f0] sm:$0xff]  ;;  %v4335_v15 = vld [vmem:[#allocation6 + $0x2f8] sm:$0xff] }
 0x3bb   :  { %7556 = vmatmul.mubr.bf16.gmra.mrb[20].mxu0 %v13505_v60  ;;  %7768 = vmatmul.mubr.bf16.gmra.mrb[20].mxu1 %v13505_v60 }
 0x3bc   :  { %7810 = vmatprep.mubr.bf16.mxu0 %v13405_v41  ;;  %8022 = vmatprep.mubr.bf16.mxu1 %v13405_v41  ;;  %v11241_v41 = vcombine.high %v4283_v27, %v4287_v14  ;;  %v4323_v27 = vld [vmem:[#allocation6 + $0x298] sm:$0xff] }
 0x3bd   :  { %7783 = vmatpush1.bf16.msra.mxu0 %v11214_v16  ;;  %7995 = vmatpush1.bf16.msra.mxu1 %v11216_v17  ;;  %v11254_v16 = vcombine.low %v4298_v48, %v4302_v51  ;;  %v11256_v17 = vcombine.low %v4299_v47, %v4303_v3  ;;  %v4327_v14 = vld [vmem:[#allocation6 + $0x2b8] sm:$0xff]  ;;  %v4338_v48 = vld [vmem:[#allocation6 + $0x310] sm:$0xff] }
 0x3be   :  { %7784 = vmatprep.subr.bf16.mxu0 %v11223_v63  ;;  %7996 = vmatprep.subr.bf16.mxu1 %v11225_v36  ;;  %v11263_v63 = vcombine.high %v4306_v1, %v4310_v55  ;;  %v11265_v36 = vcombine.high %v4307_v57, %v4311_v33  ;;  %v4342_v51 = vld [vmem:[#allocation6 + $0x330] sm:$0xff]  ;;  %v4339_v47 = vld [vmem:[#allocation6 + $0x318] sm:$0xff] }
 0x3bf   :  { %v4343_v3 = vld [vmem:[#allocation6 + $0x338] sm:$0xff] }
 0x3c1   :  { %7785 = vmatpush1.bf16.msra.mxu0 %v11222_v19  ;;  %7997 = vmatpush1.bf16.msra.mxu1 %v11224_v20  ;;  %v11262_v19 = vcombine.low %v4306_v1, %v4310_v55  ;;  %v11264_v20 = vcombine.low %v4307_v57, %v4311_v33  ;;  %v4346_v1 = vld [vmem:[#allocation6 + $0x350] sm:$0xff]  ;;  %v4347_v57 = vld [vmem:[#allocation6 + $0x358] sm:$0xff] }
 0x3c2   :  { %7786 = vmatprep.subr.bf16.mxu0 %v11231_v49  ;;  %7998 = vmatprep.subr.bf16.mxu1 %v11233_v59  ;;  %v11271_v49 = vcombine.high %v4314_v42, %v4318_v0  ;;  %v11273_v59 = vcombine.high %v4315_v18, %v4319_v5  ;;  %v4350_v55 = vld [vmem:[#allocation6 + $0x370] sm:$0xff]  ;;  %v4351_v33 = vld [vmem:[#allocation6 + $0x378] sm:$0xff] }
 0x3c5   :  { %7787 = vmatpush1.bf16.msra.mxu0 %v11230_v29  ;;  %7999 = vmatpush1.bf16.msra.mxu1 %v11232_v45  ;;  %v11270_v29 = vcombine.low %v4314_v42, %v4318_v0  ;;  %v11272_v45 = vcombine.low %v4315_v18, %v4319_v5  ;;  %v4354_v42 = vld [vmem:[#allocation6 + $0x390] sm:$0xff]  ;;  %v4355_v18 = vld [vmem:[#allocation6 + $0x398] sm:$0xff] }
 0x3c6   :  { %7788 = vmatprep.subr.bf16.mxu0 %v11239_v30  ;;  %8000 = vmatprep.subr.bf16.mxu1 %v11241_v41  ;;  %v11279_v30 = vcombine.high %v4322_v22, %v4326_v23  ;;  %v11281_v41 = vcombine.high %v4323_v27, %v4327_v14  ;;  %v4358_v0 = vld [vmem:[#allocation6 + $0x3b0] sm:$0xff]  ;;  %v4359_v5 = vld [vmem:[#allocation6 + $0x3b8] sm:$0xff] }
 0x3c9   :  { %7789 = vmatpush1.bf16.msra.mxu0 %v11238_v44  ;;  %8001 = vmatpush1.bf16.msra.mxu1 %v11240_v11  ;;  %v11278_v44 = vcombine.low %v4322_v22, %v4326_v23  ;;  %v11280_v11 = vcombine.low %v4323_v27, %v4327_v14  ;;  %v4362_v22 = vld [vmem:[#allocation6 + $0x3d0] sm:$0xff]  ;;  %v4363_v27 = vld [vmem:[#allocation6 + $0x3d8] sm:$0xff] }
 0x3ca   :  { %7790 = vmatprep.subr.bf16.mxu0 %v11247_v12  ;;  %8002 = vmatprep.subr.bf16.mxu1 %v11249_v32  ;;  %v11287_v12 = vcombine.high %v4330_v4, %v4334_v38  ;;  %v11289_v32 = vcombine.high %v4331_v39, %v4335_v15  ;;  %v4366_v23 = vld [vmem:[#allocation6 + $0x3f0] sm:$0xff]  ;;  %v4367_v14 = vld [vmem:[#allocation6 + $0x3f8] sm:$0xff] }
 0x3cd   :  { %7791 = vmatpush1.bf16.msra.mxu0 %v11246_v6  ;;  %8003 = vmatpush1.bf16.msra.mxu1 %v11248_v37  ;;  %v11286_v6 = vcombine.low %v4330_v4, %v4334_v38  ;;  %v11288_v37 = vcombine.low %v4331_v39, %v4335_v15  ;;  %v4370_v4 = vld [vmem:[#allocation6 + $0x410] sm:$0xff]  ;;  %v4371_v39 = vld [vmem:[#allocation6 + $0x418] sm:$0xff] }
 0x3ce   :  { %7792 = vmatprep.subr.bf16.mxu0 %v11255_v10  ;;  %8004 = vmatprep.subr.bf16.mxu1 %v11257_v13  ;;  %v11295_v10 = vcombine.high %v4338_v48, %v4342_v51  ;;  %v11297_v13 = vcombine.high %v4339_v47, %v4343_v3  ;;  %v4374_v38 = vld [vmem:[#allocation6 + $0x430] sm:$0xff]  ;;  %v4375_v15 = vld [vmem:[#allocation6 + $0x438] sm:$0xff] }
 0x3d1   :  { %7793 = vmatpush1.bf16.msra.mxu0 %v11254_v16  ;;  %8005 = vmatpush1.bf16.msra.mxu1 %v11256_v17  ;;  %v11294_v16 = vcombine.low %v4338_v48, %v4342_v51  ;;  %v11296_v17 = vcombine.low %v4339_v47, %v4343_v3  ;;  %v4378_v48 = vld [vmem:[#allocation6 + $0x450] sm:$0xff]  ;;  %v4379_v47 = vld [vmem:[#allocation6 + $0x458] sm:$0xff] }
 0x3d2   :  { %7794 = vmatprep.subr.bf16.mxu0 %v11263_v63  ;;  %8006 = vmatprep.subr.bf16.mxu1 %v11265_v36  ;;  %v11303_v63 = vcombine.high %v4346_v1, %v4350_v55  ;;  %v11305_v36 = vcombine.high %v4347_v57, %v4351_v33  ;;  %v4382_v51 = vld [vmem:[#allocation6 + $0x470] sm:$0xff]  ;;  %v4383_v3 = vld [vmem:[#allocation6 + $0x478] sm:$0xff] }
 0x3d5   :  { %7795 = vmatpush1.bf16.msra.mxu0 %v11262_v19  ;;  %8007 = vmatpush1.bf16.msra.mxu1 %v11264_v20  ;;  %v11302_v19 = vcombine.low %v4346_v1, %v4350_v55  ;;  %v11304_v20 = vcombine.low %v4347_v57, %v4351_v33  ;;  %v4386_v1 = vld [vmem:[#allocation6 + $0x490] sm:$0xff]  ;;  %v4387_v57 = vld [vmem:[#allocation6 + $0x498] sm:$0xff] }
 0x3d6   :  { %7796 = vmatprep.subr.bf16.mxu0 %v11271_v49  ;;  %8008 = vmatprep.subr.bf16.mxu1 %v11273_v59  ;;  %v11311_v49 = vcombine.high %v4354_v42, %v4358_v0  ;;  %v11313_v59 = vcombine.high %v4355_v18, %v4359_v5  ;;  %v4390_v55 = vld [vmem:[#allocation6 + $0x4b0] sm:$0xff]  ;;  %v4391_v33 = vld [vmem:[#allocation6 + $0x4b8] sm:$0xff] }
 0x3d9   :  { %7797 = vmatpush1.bf16.msra.mxu0 %v11270_v29  ;;  %8009 = vmatpush1.bf16.msra.mxu1 %v11272_v45  ;;  %v11310_v29 = vcombine.low %v4354_v42, %v4358_v0  ;;  %v11312_v45 = vcombine.low %v4355_v18, %v4359_v5  ;;  %v4394_v42 = vld [vmem:[#allocation6 + $0x4d0] sm:$0xff]  ;;  %v4395_v18 = vld [vmem:[#allocation6 + $0x4d8] sm:$0xff] }
 0x3da   :  { %7798 = vmatprep.subr.bf16.mxu0 %v11279_v30  ;;  %8010 = vmatprep.subr.bf16.mxu1 %v11281_v41  ;;  %v11319_v30 = vcombine.high %v4362_v22, %v4366_v23  ;;  %v11321_v41 = vcombine.high %v4363_v27, %v4367_v14  ;;  %v4398_v0 = vld [vmem:[#allocation6 + $0x4f0] sm:$0xff]  ;;  %v4399_v5 = vld [vmem:[#allocation6 + $0x4f8] sm:$0xff] }
 0x3dd   :  { %7799 = vmatpush1.bf16.msra.mxu0 %v11278_v44  ;;  %8011 = vmatpush1.bf16.msra.mxu1 %v11280_v11  ;;  %v11318_v44 = vcombine.low %v4362_v22, %v4366_v23  ;;  %v11320_v11 = vcombine.low %v4363_v27, %v4367_v14  ;;  %v4403_v22 = vld [vmem:[#allocation6 + $0x518] sm:$0xff]  ;;  %v11350_v27 = vcombine.low %v4394_v42, %v4398_v0 }
 0x3de   :  { %7800 = vmatprep.subr.bf16.mxu0 %v11287_v12  ;;  %8012 = vmatprep.subr.bf16.mxu1 %v11289_v32  ;;  %v11327_v12 = vcombine.high %v4370_v4, %v4374_v38  ;;  %v11329_v32 = vcombine.high %v4371_v39, %v4375_v15  ;;  %v4407_v23 = vld [vmem:[#allocation6 + $0x538] sm:$0xff]  ;;  %v11352_v14 = vcombine.low %v4395_v18, %v4399_v5 }
 0x3e1   :  { %7801 = vmatpush1.bf16.msra.mxu0 %v11286_v6  ;;  %8013 = vmatpush1.bf16.msra.mxu1 %v11288_v37  ;;  %v11326_v6 = vcombine.low %v4370_v4, %v4374_v38  ;;  %v11328_v37 = vcombine.low %v4371_v39, %v4375_v15  ;;  %v4411_v4 = vld [vmem:[#allocation6 + $0x558] sm:$0xff]  ;;  %v11360_v39 = vcombine.low %v4403_v22, %v4407_v23 }
 0x3e2   :  { %7802 = vmatprep.subr.bf16.mxu0 %v11295_v10  ;;  %8014 = vmatprep.subr.bf16.mxu1 %v11297_v13  ;;  %v11335_v10 = vcombine.high %v4378_v48, %v4382_v51  ;;  %v11337_v13 = vcombine.high %v4379_v47, %v4383_v3  ;;  %v4415_v38 = vld [vmem:[#allocation6 + $0x578] sm:$0xff] }
 0x3e5   :  { %7803 = vmatpush1.bf16.msra.mxu0 %v11294_v16  ;;  %8015 = vmatpush1.bf16.msra.mxu1 %v11296_v17  ;;  %v11334_v16 = vcombine.low %v4378_v48, %v4382_v51  ;;  %v11336_v17 = vcombine.low %v4379_v47, %v4383_v3  ;;  %v11368_v51 = vcombine.low %v4411_v4, %v4415_v38 }
 0x3e6   :  { %7804 = vmatprep.subr.bf16.mxu0 %v11303_v63  ;;  %8016 = vmatprep.subr.bf16.mxu1 %v11305_v36  ;;  %v11343_v63 = vcombine.high %v4386_v1, %v4390_v55  ;;  %v11345_v36 = vcombine.high %v4387_v57, %v4391_v33 }
 0x3e9   :  { %7805 = vmatpush1.bf16.msra.mxu0 %v11302_v19  ;;  %8017 = vmatpush1.bf16.msra.mxu1 %v11304_v20  ;;  %v11344_v19 = vcombine.low %v4387_v57, %v4391_v33  ;;  %v11351_v20 = vcombine.high %v4394_v42, %v4398_v0 }
 0x3ea   :  { %7806 = vmatprep.subr.bf16.mxu0 %v11311_v49  ;;  %8018 = vmatprep.subr.bf16.mxu1 %v11313_v59  ;;  %v11353_v49 = vcombine.high %v4395_v18, %v4399_v5  ;;  %v4402_v59 = vld [vmem:[#allocation6 + $0x510] sm:$0xff] }
 0x3ed   :  { %7807 = vmatpush1.bf16.msra.mxu0 %v11310_v29  ;;  %8019 = vmatpush1.bf16.msra.mxu1 %v11312_v45  ;;  %v11361_v45 = vcombine.high %v4403_v22, %v4407_v23 }
 0x3ee   :  { %7808 = vmatprep.subr.bf16.mxu0 %v11319_v30  ;;  %8020 = vmatprep.subr.bf16.mxu1 %v11321_v41  ;;  %v4410_v30 = vld [vmem:[#allocation6 + $0x550] sm:$0xff] }
 0x3ef   :  { %v4414_v41 = vld [vmem:[#allocation6 + $0x570] sm:$0xff] }
 0x3f0   :  { %v11367_v15 = vcombine.high %v4410_v30, %v4414_v41  ;;  %v11366_v48 = vcombine.low %v4410_v30, %v4414_v41 }
 0x3f1   :  { %7809 = vmatpush1.bf16.msra.mxu0 %v11318_v44  ;;  %8021 = vmatpush1.bf16.msra.mxu1 %v11320_v11  ;;  %v11369_v44 = vcombine.high %v4411_v4, %v4415_v38  ;;  %v4418_v11 = vld [vmem:[#allocation6 + $0x590] sm:$0xff] }
 0x3f2   :  { %7831 = vmatprep.subr.bf16.mxu0 %v11327_v12  ;;  %8043 = vmatprep.subr.bf16.mxu1 %v11329_v32  ;;  %v4422_v12 = vld [vmem:[#allocation6 + $0x5b0] sm:$0xff]  ;;  %v4423_v32 = vld [vmem:[#allocation6 + $0x5b8] sm:$0xff] }
 0x3f3   :  { %v11375_v47 = vcombine.high %v4418_v11, %v4422_v12 }
 0x3f4   :  { %7811 = vmatmul.mubr.bf16.vlgmr.msra.gmra.mrb[24].mxu0 %v13399_v34  ;;  %8023 = vmatmul.mubr.bf16.vlgmr.msra.gmra.mrb[24].mxu1 %v13399_v34  ;;  %v11342_v34 = vcombine.low %v4386_v1, %v4390_v55  ;;  %v11374_v1 = vcombine.low %v4418_v11, %v4422_v12 }
 0x3f5   :  { %7820 = vmatprep.mubr.bf16.mxu0 %v13423_v25  ;;  %7832 = vmatpush1.bf16.msra.mxu0 %v11326_v6  ;;  %v4426_v6 = vld [vmem:[#allocation6 + $0x5d0] sm:$0xff] }
 0x3f6   :  { %8032 = vmatprep.mubr.bf16.mxu1 %v13423_v25  ;;  %8044 = vmatpush1.bf16.msra.mxu1 %v11328_v37  ;;  %v4406_v25 = vld [vmem:[#allocation6 + $0x530] sm:$0xff] }
 0x3f7   :  { %7833 = vmatprep.subr.bf16.mxu0 %v11335_v10  ;;  %8045 = vmatprep.subr.bf16.mxu1 %v11337_v13  ;;  %v11359_v29 = vcombine.high %v4402_v59, %v4406_v25  ;;  %v4430_v37 = vld [vmem:[#allocation6 + $0x5f0] sm:$0xff]  ;;  %v4427_v10 = vld [vmem:[#allocation6 + $0x5d8] sm:$0xff] }
 0x3f8   :  { %v4431_v13 = vld [vmem:[#allocation6 + $0x5f8] sm:$0xff]  ;;  %v11383_v57 = vcombine.high %v4426_v6, %v4430_v37  ;;  %v11382_v42 = vcombine.low %v4426_v6, %v4430_v37 }
 0x3f9   :  { %7834 = vmatpush1.bf16.msra.mxu0 %v11334_v16  ;;  %v11385_v33 = vcombine.high %v4427_v10, %v4431_v13  ;;  %v4434_v16 = vld [vmem:[#allocation6 + $0x610] sm:$0xff]  ;;  %v11384_v0 = vcombine.low %v4427_v10, %v4431_v13 }
 0x3fa   :  { %8046 = vmatpush1.bf16.msra.mxu1 %v11336_v17  ;;  %7835 = vmatprep.subr.bf16.mxu0 %v11343_v63  ;;  %v4438_v17 = vld [vmem:[#allocation6 + $0x630] sm:$0xff]  ;;  %v4435_v63 = vld [vmem:[#allocation6 + $0x618] sm:$0xff] }
 0x3fb   :  { %8047 = vmatprep.subr.bf16.mxu1 %v11345_v36  ;;  %v4439_v36 = vld [vmem:[#allocation6 + $0x638] sm:$0xff]  ;;  %v11391_v18 = vcombine.high %v4434_v16, %v4438_v17 }
 0x3fc   :  { %7821 = vmatmul.mubr.bf16.gmra.mrb[28].mxu0 %v13419_v21  ;;  %8033 = vmatmul.mubr.bf16.gmra.mrb[28].mxu1 %v13419_v21  ;;  %v11358_v21 = vcombine.low %v4402_v59, %v4406_v25  ;;  %v11393_v5 = vcombine.high %v4435_v63, %v4439_v36  ;;  %v11390_v59 = vcombine.low %v4434_v16, %v4438_v17 }
 0x3fd   :  { %7836 = vmatpush1.bf16.msra.mxu0 %v11342_v34  ;;  %7863 = vmatprep.mubr.bf16.mxu0 %v13407_v35  ;;  %v4442_v34 = vld [vmem:[#allocation6 + $0x650] sm:$0xff]  ;;  %v11392_v25 = vcombine.low %v4435_v63, %v4439_v36 }
 0x3fe   :  { %8048 = vmatpush1.bf16.msra.mxu1 %v11344_v19  ;;  %8075 = vmatprep.mubr.bf16.mxu1 %v13407_v35  ;;  %v4419_v35 = vld [vmem:[#allocation6 + $0x598] sm:$0xff]  ;;  %v4446_v19 = vld [vmem:[#allocation6 + $0x670] sm:$0xff] }
 0x3ff   :  { %7837 = vmatprep.subr.bf16.mxu0 %v11351_v20  ;;  %8049 = vmatprep.subr.bf16.mxu1 %v11353_v49  ;;  %v11377_v3 = vcombine.high %v4419_v35, %v4423_v32  ;;  %v11376_v55 = vcombine.low %v4419_v35, %v4423_v32  ;;  %v4443_v20 = vld [vmem:[#allocation6 + $0x658] sm:$0xff]  ;;  %v11399_v22 = vcombine.high %v4442_v34, %v4446_v19 }
 0x400   :  { %v4447_v49 = vld [vmem:[#allocation6 + $0x678] sm:$0xff]  ;;  %v11398_v30 = vcombine.low %v4442_v34, %v4446_v19 }
 0x401   :  { %7838 = vmatpush1.bf16.msra.mxu0 %v11350_v27  ;;  %v11401_v23 = vcombine.high %v4443_v20, %v4447_v49  ;;  %v4450_v27 = vld [vmem:[#allocation6 + $0x690] sm:$0xff]  ;;  %v11400_v41 = vcombine.low %v4443_v20, %v4447_v49 }
 0x402   :  { %8050 = vmatpush1.bf16.msra.mxu1 %v11352_v14  ;;  %7839 = vmatprep.subr.bf16.mxu0 %v11359_v29  ;;  %v4454_v14 = vld [vmem:[#allocation6 + $0x6b0] sm:$0xff]  ;;  %v4451_v29 = vld [vmem:[#allocation6 + $0x698] sm:$0xff] }
 0x403   :  { %8051 = vmatprep.subr.bf16.mxu1 %v11361_v45  ;;  %v4455_v45 = vld [vmem:[#allocation6 + $0x6b8] sm:$0xff]  ;;  %v11407_v4 = vcombine.high %v4450_v27, %v4454_v14  ;;  %v11406_v11 = vcombine.low %v4450_v27, %v4454_v14 }
 0x404   :  { %v11409_v38 = vcombine.high %v4451_v29, %v4455_v45  ;;  %v11408_v12 = vcombine.low %v4451_v29, %v4455_v45 }
 0x405   :  { %7840 = vmatpush1.bf16.msra.mxu0 %v11358_v21  ;;  %v4458_v21 = vld [vmem:[#allocation6 + $0x6d0] sm:$0xff] }
 0x406   :  { %8052 = vmatpush1.bf16.msra.mxu1 %v11360_v39  ;;  %7841 = vmatprep.subr.bf16.mxu0 %v11367_v15  ;;  %v4462_v39 = vld [vmem:[#allocation6 + $0x6f0] sm:$0xff]  ;;  %v4459_v15 = vld [vmem:[#allocation6 + $0x6d8] sm:$0xff] }
 0x407   :  { %8053 = vmatprep.subr.bf16.mxu1 %v11369_v44  ;;  %v4463_v44 = vld [vmem:[#allocation6 + $0x6f8] sm:$0xff]  ;;  %v11415_v35 = vcombine.high %v4458_v21, %v4462_v39  ;;  %v11414_v6 = vcombine.low %v4458_v21, %v4462_v39 }
 0x408   :  { %v11417_v32 = vcombine.high %v4459_v15, %v4463_v44  ;;  %v11416_v37 = vcombine.low %v4459_v15, %v4463_v44 }
 0x409   :  { %7842 = vmatpush1.bf16.msra.mxu0 %v11366_v48  ;;  %v4466_v48 = vld [vmem:[#allocation6 + $0x710] sm:$0xff] }
 0x40a   :  { %8054 = vmatpush1.bf16.msra.mxu1 %v11368_v51  ;;  %7843 = vmatprep.subr.bf16.mxu0 %v11375_v47  ;;  %v4470_v51 = vld [vmem:[#allocation6 + $0x730] sm:$0xff]  ;;  %v4467_v47 = vld [vmem:[#allocation6 + $0x718] sm:$0xff] }
 0x40b   :  { %8055 = vmatprep.subr.bf16.mxu1 %v11377_v3  ;;  %v4471_v3 = vld [vmem:[#allocation6 + $0x738] sm:$0xff]  ;;  %v11423_v10 = vcombine.high %v4466_v48, %v4470_v51  ;;  %v11422_v16 = vcombine.low %v4466_v48, %v4470_v51 }
 0x40c   :  { %v11425_v13 = vcombine.high %v4467_v47, %v4471_v3  ;;  %v11424_v17 = vcombine.low %v4467_v47, %v4471_v3 }
 0x40d   :  { %7844 = vmatpush1.bf16.msra.mxu0 %v11374_v1  ;;  %v4474_v1 = vld [vmem:[#allocation6 + $0x750] sm:$0xff] }
 0x40e   :  { %8056 = vmatpush1.bf16.msra.mxu1 %v11376_v55  ;;  %7845 = vmatprep.subr.bf16.mxu0 %v11383_v57  ;;  %v4478_v55 = vld [vmem:[#allocation6 + $0x770] sm:$0xff]  ;;  %v4475_v57 = vld [vmem:[#allocation6 + $0x758] sm:$0xff] }
 0x40f   :  { %8057 = vmatprep.subr.bf16.mxu1 %v11385_v33  ;;  %v4479_v33 = vld [vmem:[#allocation6 + $0x778] sm:$0xff]  ;;  %v11431_v63 = vcombine.high %v4474_v1, %v4478_v55  ;;  %v11430_v34 = vcombine.low %v4474_v1, %v4478_v55 }
 0x410   :  { %v11433_v36 = vcombine.high %v4475_v57, %v4479_v33  ;;  %v11432_v19 = vcombine.low %v4475_v57, %v4479_v33 }
 0x411   :  { %7846 = vmatpush1.bf16.msra.mxu0 %v11382_v42  ;;  %v4482_v42 = vld [vmem:[#allocation6 + $0x790] sm:$0xff] }
 0x412   :  { %8058 = vmatpush1.bf16.msra.mxu1 %v11384_v0  ;;  %7847 = vmatprep.subr.bf16.mxu0 %v11391_v18  ;;  %v4486_v0 = vld [vmem:[#allocation6 + $0x7b0] sm:$0xff]  ;;  %v4483_v18 = vld [vmem:[#allocation6 + $0x798] sm:$0xff] }
 0x413   :  { %8059 = vmatprep.subr.bf16.mxu1 %v11393_v5  ;;  %v4487_v5 = vld [vmem:[#allocation6 + $0x7b8] sm:$0xff]  ;;  %v11439_v20 = vcombine.high %v4482_v42, %v4486_v0  ;;  %v11438_v27 = vcombine.low %v4482_v42, %v4486_v0 }
 0x414   :  { %v11441_v49 = vcombine.high %v4483_v18, %v4487_v5  ;;  %v11440_v14 = vcombine.low %v4483_v18, %v4487_v5  ;;  %v4530_v18 = vld [vmem:[#allocation6 + $0x910] sm:$0xff] }
 0x415   :  { %7848 = vmatpush1.bf16.msra.mxu0 %v11390_v59  ;;  %v4490_v59 = vld [vmem:[#allocation6 + $0x7d0] sm:$0xff] }
 0x416   :  { %8060 = vmatpush1.bf16.msra.mxu1 %v11392_v25  ;;  %7849 = vmatprep.subr.bf16.mxu0 %v11399_v22  ;;  %v4494_v25 = vld [vmem:[#allocation6 + $0x7f0] sm:$0xff]  ;;  %v4491_v22 = vld [vmem:[#allocation6 + $0x7d8] sm:$0xff] }
 0x417   :  { %8061 = vmatprep.subr.bf16.mxu1 %v11401_v23  ;;  %v4495_v23 = vld [vmem:[#allocation6 + $0x7f8] sm:$0xff]  ;;  %v11447_v29 = vcombine.high %v4490_v59, %v4494_v25  ;;  %v11446_v21 = vcombine.low %v4490_v59, %v4494_v25  ;;  %v4534_v5 = vld [vmem:[#allocation6 + $0x930] sm:$0xff] }
 0x418   :  { %v11449_v45 = vcombine.high %v4491_v22, %v4495_v23  ;;  %v11448_v39 = vcombine.low %v4491_v22, %v4495_v23  ;;  %v11487_v59 = vcombine.high %v4530_v18, %v4534_v5  ;;  %v4538_v22 = vld [vmem:[#allocation6 + $0x950] sm:$0xff] }
 0x419   :  { %7850 = vmatpush1.bf16.msra.mxu0 %v11398_v30  ;;  %v4498_v30 = vld [vmem:[#allocation6 + $0x810] sm:$0xff] }
 0x41a   :  { %8062 = vmatpush1.bf16.msra.mxu1 %v11400_v41  ;;  %7851 = vmatprep.subr.bf16.mxu0 %v11407_v4  ;;  %v4502_v41 = vld [vmem:[#allocation6 + $0x830] sm:$0xff]  ;;  %v4499_v4 = vld [vmem:[#allocation6 + $0x818] sm:$0xff] }
 0x41b   :  { %8063 = vmatprep.subr.bf16.mxu1 %v11409_v38  ;;  %v4503_v38 = vld [vmem:[#allocation6 + $0x838] sm:$0xff]  ;;  %v11455_v15 = vcombine.high %v4498_v30, %v4502_v41  ;;  %v11454_v48 = vcombine.low %v4498_v30, %v4502_v41  ;;  %v4542_v23 = vld [vmem:[#allocation6 + $0x970] sm:$0xff] }
 0x41c   :  { %v11457_v44 = vcombine.high %v4499_v4, %v4503_v38  ;;  %v11456_v51 = vcombine.low %v4499_v4, %v4503_v38  ;;  %v4550_v41 = vld [vmem:[#allocation6 + $0x9b0] sm:$0xff]  ;;  %v4547_v4 = vld [vmem:[#allocation6 + $0x998] sm:$0xff] }
 0x41d   :  { %7852 = vmatpush1.bf16.msra.mxu0 %v11406_v11  ;;  %v4506_v11 = vld [vmem:[#allocation6 + $0x850] sm:$0xff]  ;;  %v4551_v38 = vld [vmem:[#allocation6 + $0x9b8] sm:$0xff] }
 0x41e   :  { %8064 = vmatpush1.bf16.msra.mxu1 %v11408_v12  ;;  %7853 = vmatprep.subr.bf16.mxu0 %v11415_v35  ;;  %v4510_v12 = vld [vmem:[#allocation6 + $0x870] sm:$0xff]  ;;  %v4507_v35 = vld [vmem:[#allocation6 + $0x858] sm:$0xff] }
 0x41f   :  { %8065 = vmatprep.subr.bf16.mxu1 %v11417_v32  ;;  %v4511_v32 = vld [vmem:[#allocation6 + $0x878] sm:$0xff]  ;;  %v11463_v47 = vcombine.high %v4506_v11, %v4510_v12  ;;  %v11462_v1 = vcombine.low %v4506_v11, %v4510_v12  ;;  %v4554_v11 = vld [vmem:[#allocation6 + $0x9d0] sm:$0xff] }
 0x420   :  { %v11465_v3 = vcombine.high %v4507_v35, %v4511_v32  ;;  %v11464_v55 = vcombine.low %v4507_v35, %v4511_v32  ;;  %v4558_v12 = vld [vmem:[#allocation6 + $0x9f0] sm:$0xff]  ;;  %v4555_v35 = vld [vmem:[#allocation6 + $0x9d8] sm:$0xff] }
 0x421   :  { %7854 = vmatpush1.bf16.msra.mxu0 %v11414_v6  ;;  %v4514_v6 = vld [vmem:[#allocation6 + $0x890] sm:$0xff]  ;;  %v4559_v32 = vld [vmem:[#allocation6 + $0x9f8] sm:$0xff] }
 0x422   :  { %8066 = vmatpush1.bf16.msra.mxu1 %v11416_v37  ;;  %7855 = vmatprep.subr.bf16.mxu0 %v11423_v10  ;;  %v4518_v37 = vld [vmem:[#allocation6 + $0x8b0] sm:$0xff]  ;;  %v4515_v10 = vld [vmem:[#allocation6 + $0x898] sm:$0xff] }
 0x423   :  { %8067 = vmatprep.subr.bf16.mxu1 %v11425_v13  ;;  %v4519_v13 = vld [vmem:[#allocation6 + $0x8b8] sm:$0xff]  ;;  %v11471_v57 = vcombine.high %v4514_v6, %v4518_v37 }
 0x424   :  { %v11473_v33 = vcombine.high %v4515_v10, %v4519_v13  ;;  %v11472_v42 = vcombine.low %v4515_v10, %v4519_v13  ;;  %v4563_v10 = vld [vmem:[#allocation6 + $0xa18] sm:$0xff] }
 0x425   :  { %7856 = vmatpush1.bf16.msra.mxu0 %v11422_v16  ;;  %v4522_v16 = vld [vmem:[#allocation6 + $0x8d0] sm:$0xff]  ;;  %v4567_v13 = vld [vmem:[#allocation6 + $0xa38] sm:$0xff] }
 0x426   :  { %8068 = vmatpush1.bf16.msra.mxu1 %v11424_v17  ;;  %7857 = vmatprep.subr.bf16.mxu0 %v11431_v63  ;;  %v4526_v17 = vld [vmem:[#allocation6 + $0x8f0] sm:$0xff]  ;;  %v4523_v63 = vld [vmem:[#allocation6 + $0x8d8] sm:$0xff] }
 0x427   :  { %8069 = vmatprep.subr.bf16.mxu1 %v11433_v36  ;;  %v4527_v36 = vld [vmem:[#allocation6 + $0x8f8] sm:$0xff]  ;;  %v11479_v0 = vcombine.high %v4522_v16, %v4526_v17 }
 0x429   :  { %7858 = vmatpush1.bf16.msra.mxu0 %v11430_v34  ;;  %v4531_v34 = vld [vmem:[#allocation6 + $0x918] sm:$0xff] }
 0x42a   :  { %8070 = vmatpush1.bf16.msra.mxu1 %v11432_v19  ;;  %7859 = vmatprep.subr.bf16.mxu0 %v11439_v20  ;;  %v4535_v19 = vld [vmem:[#allocation6 + $0x938] sm:$0xff]  ;;  %v11478_v20 = vcombine.low %v4522_v16, %v4526_v17  ;;  %v4570_v16 = vld [vmem:[#allocation6 + $0xa50] sm:$0xff] }
 0x42b   :  { %8071 = vmatprep.subr.bf16.mxu1 %v11441_v49  ;;  %v11480_v49 = vcombine.low %v4523_v63, %v4527_v36  ;;  %v11489_v25 = vcombine.high %v4531_v34, %v4535_v19  ;;  %v4574_v17 = vld [vmem:[#allocation6 + $0xa70] sm:$0xff] }
 0x42d   :  { %7860 = vmatpush1.bf16.msra.mxu0 %v11438_v27  ;;  %v4539_v27 = vld [vmem:[#allocation6 + $0x958] sm:$0xff] }
 0x42e   :  { %8072 = vmatpush1.bf16.msra.mxu1 %v11440_v14  ;;  %7861 = vmatprep.subr.bf16.mxu0 %v11447_v29  ;;  %v4543_v14 = vld [vmem:[#allocation6 + $0x978] sm:$0xff]  ;;  %v11488_v29 = vcombine.low %v4531_v34, %v4535_v19 }
 0x42f   :  { %8073 = vmatprep.subr.bf16.mxu1 %v11449_v45  ;;  %v11495_v45 = vcombine.high %v4538_v22, %v4542_v23  ;;  %v11497_v30 = vcombine.high %v4539_v27, %v4543_v14  ;;  %v4579_v34 = vld [vmem:[#allocation6 + $0xa98] sm:$0xff] }
 0x430   :  { %v4583_v19 = vld [vmem:[#allocation6 + $0xab8] sm:$0xff] }
 0x431   :  { %7862 = vmatpush1.bf16.msra.mxu0 %v11446_v21  ;;  %v11494_v21 = vcombine.low %v4538_v22, %v4542_v23  ;;  %v4586_v22 = vld [vmem:[#allocation6 + $0xad0] sm:$0xff] }
 0x432   :  { %8074 = vmatpush1.bf16.msra.mxu1 %v11448_v39  ;;  %7884 = vmatprep.subr.bf16.mxu0 %v11455_v15  ;;  %v11496_v39 = vcombine.low %v4539_v27, %v4543_v14  ;;  %v4590_v23 = vld [vmem:[#allocation6 + $0xaf0] sm:$0xff]  ;;  %v4587_v27 = vld [vmem:[#allocation6 + $0xad8] sm:$0xff] }
 0x433   :  { %8096 = vmatprep.subr.bf16.mxu1 %v11457_v44  ;;  %v11505_v44 = vcombine.high %v4547_v4, %v4551_v38  ;;  %v4591_v14 = vld [vmem:[#allocation6 + $0xaf8] sm:$0xff] }
 0x434   :  { %7864 = vmatmul.mubr.bf16.vlgmr.msra.gmra.mrb[24].mxu0 %v13403_v53 }
 0x435   :  { %8076 = vmatmul.mubr.bf16.vlgmr.msra.gmra.mrb[24].mxu1 %v13403_v53  ;;  %7873 = vmatprep.mubr.bf16.mxu0 %v13425_v28  ;;  %v11470_v53 = vcombine.low %v4514_v6, %v4518_v37  ;;  %v4562_v6 = vld [vmem:[#allocation6 + $0xa10] sm:$0xff] }
 0x436   :  { %7885 = vmatpush1.bf16.msra.mxu0 %v11454_v48  ;;  %8085 = vmatprep.mubr.bf16.mxu1 %v13425_v28  ;;  %v11481_v28 = vcombine.high %v4523_v63, %v4527_v36  ;;  %v4566_v37 = vld [vmem:[#allocation6 + $0xa30] sm:$0xff]  ;;  %v4571_v63 = vld [vmem:[#allocation6 + $0xa58] sm:$0xff] }
 0x437   :  { %8097 = vmatpush1.bf16.msra.mxu1 %v11456_v51  ;;  %7886 = vmatprep.subr.bf16.mxu0 %v11463_v47  ;;  %v11504_v51 = vcombine.low %v4547_v4, %v4551_v38  ;;  %v11511_v47 = vcombine.high %v4554_v11, %v4558_v12  ;;  %v4575_v36 = vld [vmem:[#allocation6 + $0xa78] sm:$0xff] }
 0x438   :  { %8098 = vmatprep.subr.bf16.mxu1 %v11465_v3  ;;  %v11513_v3 = vcombine.high %v4555_v35, %v4559_v32  ;;  %v4595_v4 = vld [vmem:[#allocation6 + $0xb18] sm:$0xff] }
 0x439   :  { %v4599_v38 = vld [vmem:[#allocation6 + $0xb38] sm:$0xff] }
 0x43a   :  { %7887 = vmatpush1.bf16.msra.mxu0 %v11462_v1  ;;  %v11510_v1 = vcombine.low %v4554_v11, %v4558_v12  ;;  %v4602_v11 = vld [vmem:[#allocation6 + $0xb50] sm:$0xff] }
 0x43b   :  { %8099 = vmatpush1.bf16.msra.mxu1 %v11464_v55  ;;  %7888 = vmatprep.subr.bf16.mxu0 %v11471_v57  ;;  %v11512_v55 = vcombine.low %v4555_v35, %v4559_v32  ;;  %v11519_v57 = vcombine.high %v4562_v6, %v4566_v37  ;;  %v4606_v12 = vld [vmem:[#allocation6 + $0xb70] sm:$0xff]  ;;  %v4603_v35 = vld [vmem:[#allocation6 + $0xb58] sm:$0xff] }
 0x43c   :  { %7874 = vmatmul.mubr.bf16.gmra.mrb[28].mxu0 %v13421_v24  ;;  %8100 = vmatprep.subr.bf16.mxu1 %v11473_v33  ;;  %v11521_v33 = vcombine.high %v4563_v10, %v4567_v13  ;;  %v4607_v32 = vld [vmem:[#allocation6 + $0xb78] sm:$0xff] }
 0x43d   :  { %8086 = vmatmul.mubr.bf16.gmra.mrb[28].mxu1 %v13421_v24  ;;  %7916 = vmatprep.mubr.bf16.mxu0 %v13485_v56  ;;  %v11486_v24 = vcombine.low %v4530_v18, %v4534_v5  ;;  %v4578_v18 = vld [vmem:[#allocation6 + $0xa90] sm:$0xff] }
 0x43e   :  { %7889 = vmatpush1.bf16.msra.mxu0 %v11470_v53  ;;  %8128 = vmatprep.mubr.bf16.mxu1 %v13485_v56  ;;  %v4546_v56 = vld [vmem:[#allocation6 + $0x990] sm:$0xff]  ;;  %v11518_v53 = vcombine.low %v4562_v6, %v4566_v37 }
 0x43f   :  { %8101 = vmatpush1.bf16.msra.mxu1 %v11472_v42  ;;  %7890 = vmatprep.subr.bf16.mxu0 %v11479_v0  ;;  %v11503_v15 = vcombine.high %v4546_v56, %v4550_v41  ;;  %v11502_v48 = vcombine.low %v4546_v56, %v4550_v41  ;;  %v11520_v42 = vcombine.low %v4563_v10, %v4567_v13  ;;  %v4582_v5 = vld [vmem:[#allocation6 + $0xab0] sm:$0xff]  ;;  %v4611_v10 = vld [vmem:[#allocation6 + $0xb98] sm:$0xff] }
 0x440   :  { %8102 = vmatprep.subr.bf16.mxu1 %v11481_v28  ;;  %v11527_v0 = vcombine.high %v4570_v16, %v4574_v17  ;;  %v11529_v28 = vcombine.high %v4571_v63, %v4575_v36  ;;  %v4594_v56 = vld [vmem:[#allocation6 + $0xb10] sm:$0xff]  ;;  %v4615_v13 = vld [vmem:[#allocation6 + $0xbb8] sm:$0xff] }
 0x441   :  { %v4598_v41 = vld [vmem:[#allocation6 + $0xb30] sm:$0xff] }
 0x442   :  { %7891 = vmatpush1.bf16.msra.mxu0 %v11478_v20  ;;  %v11526_v20 = vcombine.low %v4570_v16, %v4574_v17  ;;  %v4610_v6 = vld [vmem:[#allocation6 + $0xb90] sm:$0xff] }
 0x443   :  { %8103 = vmatpush1.bf16.msra.mxu1 %v11480_v49  ;;  %7892 = vmatprep.subr.bf16.mxu0 %v11487_v59  ;;  %v11528_v49 = vcombine.low %v4571_v63, %v4575_v36  ;;  %v11535_v59 = vcombine.high %v4578_v18, %v4582_v5  ;;  %v4614_v37 = vld [vmem:[#allocation6 + $0xbb0] sm:$0xff]  ;;  %v4619_v63 = vld [vmem:[#allocation6 + $0xbd8] sm:$0xff] }
 0x444   :  { %8104 = vmatprep.subr.bf16.mxu1 %v11489_v25  ;;  %v11537_v25 = vcombine.high %v4579_v34, %v4583_v19  ;;  %v4618_v16 = vld [vmem:[#allocation6 + $0xbd0] sm:$0xff]  ;;  %v4623_v36 = vld [vmem:[#allocation6 + $0xbf8] sm:$0xff] }
 0x445   :  { %v4622_v17 = vld [vmem:[#allocation6 + $0xbf0] sm:$0xff] }
 0x446   :  { %7893 = vmatpush1.bf16.msra.mxu0 %v11486_v24  ;;  %v11534_v24 = vcombine.low %v4578_v18, %v4582_v5  ;;  %v4626_v18 = vld [vmem:[#allocation6 + $0xc10] sm:$0xff] }
 0x447   :  { %8105 = vmatpush1.bf16.msra.mxu1 %v11488_v29  ;;  %7894 = vmatprep.subr.bf16.mxu0 %v11495_v45  ;;  %v11536_v29 = vcombine.low %v4579_v34, %v4583_v19  ;;  %v11543_v45 = vcombine.high %v4586_v22, %v4590_v23  ;;  %v4630_v5 = vld [vmem:[#allocation6 + $0xc30] sm:$0xff]  ;;  %v4627_v34 = vld [vmem:[#allocation6 + $0xc18] sm:$0xff] }
 0x448   :  { %8106 = vmatprep.subr.bf16.mxu1 %v11497_v30  ;;  %v11545_v30 = vcombine.high %v4587_v27, %v4591_v14  ;;  %v4631_v19 = vld [vmem:[#allocation6 + $0xc38] sm:$0xff] }
 0x44a   :  { %7895 = vmatpush1.bf16.msra.mxu0 %v11494_v21  ;;  %v11542_v21 = vcombine.low %v4586_v22, %v4590_v23  ;;  %v4634_v22 = vld [vmem:[#allocation6 + $0xc50] sm:$0xff] }
 0x44b   :  { %8107 = vmatpush1.bf16.msra.mxu1 %v11496_v39  ;;  %7896 = vmatprep.subr.bf16.mxu0 %v11503_v15  ;;  %v11544_v39 = vcombine.low %v4587_v27, %v4591_v14  ;;  %v11551_v15 = vcombine.high %v4594_v56, %v4598_v41  ;;  %v4638_v23 = vld [vmem:[#allocation6 + $0xc70] sm:$0xff]  ;;  %v4635_v27 = vld [vmem:[#allocation6 + $0xc58] sm:$0xff] }
 0x44c   :  { %8108 = vmatprep.subr.bf16.mxu1 %v11505_v44  ;;  %v11553_v44 = vcombine.high %v4595_v4, %v4599_v38  ;;  %v4639_v14 = vld [vmem:[#allocation6 + $0xc78] sm:$0xff] }
 0x44e   :  { %7897 = vmatpush1.bf16.msra.mxu0 %v11502_v48  ;;  %v11550_v48 = vcombine.low %v4594_v56, %v4598_v41  ;;  %v4642_v56 = vld [vmem:[#allocation6 + $0xc90] sm:$0xff] }
 0x44f   :  { %8109 = vmatpush1.bf16.msra.mxu1 %v11504_v51  ;;  %7898 = vmatprep.subr.bf16.mxu0 %v11511_v47  ;;  %v11552_v51 = vcombine.low %v4595_v4, %v4599_v38  ;;  %v11559_v47 = vcombine.high %v4602_v11, %v4606_v12  ;;  %v4646_v41 = vld [vmem:[#allocation6 + $0xcb0] sm:$0xff]  ;;  %v4643_v4 = vld [vmem:[#allocation6 + $0xc98] sm:$0xff] }
 0x450   :  { %8110 = vmatprep.subr.bf16.mxu1 %v11513_v3  ;;  %v11561_v3 = vcombine.high %v4603_v35, %v4607_v32  ;;  %v4647_v38 = vld [vmem:[#allocation6 + $0xcb8] sm:$0xff] }
 0x452   :  { %7899 = vmatpush1.bf16.msra.mxu0 %v11510_v1  ;;  %v11558_v1 = vcombine.low %v4602_v11, %v4606_v12  ;;  %v4650_v11 = vld [vmem:[#allocation6 + $0xcd0] sm:$0xff] }
 0x453   :  { %8111 = vmatpush1.bf16.msra.mxu1 %v11512_v55  ;;  %7900 = vmatprep.subr.bf16.mxu0 %v11519_v57  ;;  %v11560_v55 = vcombine.low %v4603_v35, %v4607_v32  ;;  %v11567_v57 = vcombine.high %v4610_v6, %v4614_v37  ;;  %v4654_v12 = vld [vmem:[#allocation6 + $0xcf0] sm:$0xff]  ;;  %v4651_v35 = vld [vmem:[#allocation6 + $0xcd8] sm:$0xff] }
 0x454   :  { %8112 = vmatprep.subr.bf16.mxu1 %v11521_v33  ;;  %v11569_v33 = vcombine.high %v4611_v10, %v4615_v13  ;;  %v4655_v32 = vld [vmem:[#allocation6 + $0xcf8] sm:$0xff] }
 0x456   :  { %7901 = vmatpush1.bf16.msra.mxu0 %v11518_v53  ;;  %v11566_v53 = vcombine.low %v4610_v6, %v4614_v37  ;;  %v4659_v6 = vld [vmem:[#allocation6 + $0xd18] sm:$0xff] }
 0x457   :  { %8113 = vmatpush1.bf16.msra.mxu1 %v11520_v42  ;;  %7902 = vmatprep.subr.bf16.mxu0 %v11527_v0  ;;  %v11568_v42 = vcombine.low %v4611_v10, %v4615_v13  ;;  %v11575_v0 = vcombine.high %v4618_v16, %v4622_v17  ;;  %v4663_v37 = vld [vmem:[#allocation6 + $0xd38] sm:$0xff]  ;;  %v11606_v10 = vcombine.low %v4650_v11, %v4654_v12 }
 0x458   :  { %8114 = vmatprep.subr.bf16.mxu1 %v11529_v28  ;;  %v11577_v28 = vcombine.high %v4619_v63, %v4623_v36  ;;  %v11608_v13 = vcombine.low %v4651_v35, %v4655_v32 }
 0x45a   :  { %7903 = vmatpush1.bf16.msra.mxu0 %v11526_v20  ;;  %v11574_v20 = vcombine.low %v4618_v16, %v4622_v17  ;;  %v4670_v16 = vld [vmem:[#allocation6 + $0xd70] sm:$0xff]  ;;  %v4667_v17 = vld [vmem:[#allocation6 + $0xd58] sm:$0xff] }
 0x45b   :  { %8115 = vmatpush1.bf16.msra.mxu1 %v11528_v49  ;;  %7904 = vmatprep.subr.bf16.mxu0 %v11535_v59  ;;  %v11576_v49 = vcombine.low %v4619_v63, %v4623_v36  ;;  %v11583_v59 = vcombine.high %v4626_v18, %v4630_v5  ;;  %v4671_v63 = vld [vmem:[#allocation6 + $0xd78] sm:$0xff]  ;;  %v11616_v36 = vcombine.low %v4659_v6, %v4663_v37 }
 0x45c   :  { %8116 = vmatprep.subr.bf16.mxu1 %v11537_v25  ;;  %v11585_v25 = vcombine.high %v4627_v34, %v4631_v19 }
 0x45e   :  { %7905 = vmatpush1.bf16.msra.mxu0 %v11534_v24  ;;  %v11582_v24 = vcombine.low %v4626_v18, %v4630_v5  ;;  %v11625_v18 = vcombine.high %v4667_v17, %v4671_v63  ;;  %v4674_v5 = vld [vmem:[#allocation6 + $0xd90] sm:$0xff] }
 0x45f   :  { %8117 = vmatpush1.bf16.msra.mxu1 %v11536_v29  ;;  %7906 = vmatprep.subr.bf16.mxu0 %v11543_v45  ;;  %v11584_v29 = vcombine.low %v4627_v34, %v4631_v19  ;;  %v11591_v45 = vcombine.high %v4634_v22, %v4638_v23  ;;  %v4678_v34 = vld [vmem:[#allocation6 + $0xdb0] sm:$0xff] }
 0x460   :  { %8118 = vmatprep.subr.bf16.mxu1 %v11545_v30  ;;  %v11593_v30 = vcombine.high %v4635_v27, %v4639_v14 }
 0x462   :  { %7907 = vmatpush1.bf16.msra.mxu0 %v11542_v21  ;;  %v11590_v21 = vcombine.low %v4634_v22, %v4638_v23 }
 0x463   :  { %8119 = vmatpush1.bf16.msra.mxu1 %v11544_v39  ;;  %7908 = vmatprep.subr.bf16.mxu0 %v11551_v15  ;;  %v11592_v39 = vcombine.low %v4635_v27, %v4639_v14  ;;  %v11599_v15 = vcombine.high %v4642_v56, %v4646_v41 }
 0x464   :  { %8120 = vmatprep.subr.bf16.mxu1 %v11553_v44  ;;  %v11601_v44 = vcombine.high %v4643_v4, %v4647_v38 }
 0x466   :  { %7909 = vmatpush1.bf16.msra.mxu0 %v11550_v48  ;;  %v11600_v48 = vcombine.low %v4643_v4, %v4647_v38  ;;  %v11631_v38 = vcombine.high %v4674_v5, %v4678_v34 }
 0x467   :  { %8121 = vmatpush1.bf16.msra.mxu1 %v11552_v51  ;;  %7910 = vmatprep.subr.bf16.mxu0 %v11559_v47  ;;  %v11607_v51 = vcombine.high %v4650_v11, %v4654_v12  ;;  %v4658_v47 = vld [vmem:[#allocation6 + $0xd10] sm:$0xff]  ;;  %v11630_v11 = vcombine.low %v4674_v5, %v4678_v34  ;;  %v4691_v5 = vld [vmem:[#allocation6 + $0xe18] sm:$0xff] }
 0x468   :  { %8122 = vmatprep.subr.bf16.mxu1 %v11561_v3  ;;  %v4662_v3 = vld [vmem:[#allocation6 + $0xd30] sm:$0xff]  ;;  %v4695_v34 = vld [vmem:[#allocation6 + $0xe38] sm:$0xff] }
 0x46a   :  { %7911 = vmatpush1.bf16.msra.mxu0 %v11558_v1  ;;  %v11615_v1 = vcombine.high %v4658_v47, %v4662_v3 }
 0x46b   :  { %8123 = vmatpush1.bf16.msra.mxu1 %v11560_v55  ;;  %7912 = vmatprep.subr.bf16.mxu0 %v11567_v57  ;;  %v4752_v55 = vld [vmem:[#allocation7] sm:$0xff]  ;;  %v11617_v57 = vcombine.high %v4659_v6, %v4663_v37 }
 0x46c   :  { %8124 = vmatprep.subr.bf16.mxu1 %v11569_v33  ;;  %v4666_v33 = vld [vmem:[#allocation6 + $0xd50] sm:$0xff] }
 0x46d   :  { %v11622_v14 = vcombine.low %v4666_v33, %v4670_v16 }
 0x46e   :  { %7913 = vmatpush1.bf16.msra.mxu0 %v11566_v53  ;;  %v13550_v53 = vrot.slane %v4752_v55, %v13351_v31 }
 0x46f   :  { %8125 = vmatpush1.bf16.msra.mxu1 %v11568_v42  ;;  %7914 = vmatprep.subr.bf16.mxu0 %v11575_v0  ;;  %v13556_v42 = vrot.slane %v4752_v55, %v13358_v40  ;;  %v13559_v0 = vrot.slane %v4752_v55, %v13361_v43 }
 0x470   :  { %8126 = vmatprep.subr.bf16.mxu1 %v11577_v28  ;;  %v11623_v28 = vcombine.high %v4666_v33, %v4670_v16 }
 0x472   :  { %7915 = vmatpush1.bf16.msra.mxu0 %v11574_v20 }
 0x473   :  { %8127 = vmatpush1.bf16.msra.mxu1 %v11576_v49  ;;  %7937 = vmatprep.subr.bf16.mxu0 %v11583_v59  ;;  %v13561_v49 = vld [vmem:[#allocation6 + $0xd98] sm:$0xff] }
 0x474   :  { %8149 = vmatprep.subr.bf16.mxu1 %v11585_v25  ;;  %v4679_v59 = vld [vmem:[#allocation6 + $0xdb8] sm:$0xff] }
 0x475   :  { %7917 = vmatmul.mubr.bf16.vlgmr.msra.gmra.mrb[24].mxu0 %v13481_v54  ;;  %v11633_v12 = vcombine.high %v13561_v49, %v4679_v59 }
 0x476   :  { %8129 = vmatmul.mubr.bf16.vlgmr.msra.gmra.mrb[24].mxu1 %v13481_v54  ;;  %7926 = vmatprep.mubr.bf16.mxu0 %v13507_v61  ;;  %v11598_v54 = vcombine.low %v4642_v56, %v4646_v41 }
 0x477   :  { %7938 = vmatpush1.bf16.msra.mxu0 %v11582_v24  ;;  %8138 = vmatprep.mubr.bf16.mxu1 %v13507_v61  ;;  %v11609_v61 = vcombine.high %v4651_v35, %v4655_v32  ;;  %v11624_v24 = vcombine.low %v4667_v17, %v4671_v63  ;;  %v4690_v17 = vld [vmem:[#allocation6 + $0xe10] sm:$0xff] }
 0x478   :  { %8150 = vmatpush1.bf16.msra.mxu1 %v11584_v29  ;;  %7939 = vmatprep.subr.bf16.mxu0 %v11591_v45  ;;  %v13565_v29 = vld [vmem:[#allocation6 + $0xdd0] sm:$0xff] }
 0x479   :  { %8151 = vmatprep.subr.bf16.mxu1 %v11593_v30  ;;  %v13567_v45 = vld [vmem:[#allocation6 + $0xdf0] sm:$0xff] }
 0x47a   :  { %v4694_v63 = vld [vmem:[#allocation6 + $0xe30] sm:$0xff] }
 0x47b   :  { %7940 = vmatpush1.bf16.msra.mxu0 %v11590_v21 }
 0x47c   :  { %8152 = vmatpush1.bf16.msra.mxu1 %v11592_v39  ;;  %7941 = vmatprep.subr.bf16.mxu0 %v11599_v15 }
 0x47d   :  { %7927 = vmatmul.mubr.bf16.gmra.mrb[28].mxu0 %v13503_v46  ;;  %8153 = vmatprep.subr.bf16.mxu1 %v11601_v44 }
 0x47e   :  { %8139 = vmatmul.mubr.bf16.gmra.mrb[28].mxu1 %v13503_v46  ;;  %7969 = vmatprep.mubr.bf16.mxu0 %v13491_v2  ;;  %v11614_v46 = vcombine.low %v4658_v47, %v4662_v3 }
 0x47f   :  { %7942 = vmatpush1.bf16.msra.mxu0 %v11598_v54  ;;  %8181 = vmatprep.mubr.bf16.mxu1 %v13491_v2  ;;  %v13553_v2 = vrot.slane %v4752_v55, %v13355_v58  ;;  %v11632_v54 = vcombine.low %v13561_v49, %v4679_v59 }
 0x480   :  { %8154 = vmatpush1.bf16.msra.mxu1 %v11600_v48  ;;  %7943 = vmatprep.subr.bf16.mxu0 %v11607_v51  ;;  %v11639_v48 = vcombine.high %v13565_v29, %v13567_v45  ;;  %v4683_v51 = vld [vmem:[#allocation6 + $0xdd8] sm:$0xff] }
 0x481   :  { %8155 = vmatprep.subr.bf16.mxu1 %v11609_v61  ;;  %v4687_v61 = vld [vmem:[#allocation6 + $0xdf8] sm:$0xff] }
 0x482   :  { %v11641_v16 = vcombine.high %v4683_v51, %v4687_v61 }
 0x483   :  { %7944 = vmatpush1.bf16.msra.mxu0 %v11606_v10 }
 0x484   :  { %8156 = vmatpush1.bf16.msra.mxu1 %v11608_v13  ;;  %7945 = vmatprep.subr.bf16.mxu0 %v11615_v1 }
 0x485   :  { %8157 = vmatprep.subr.bf16.mxu1 %v11617_v57 }
 0x486   :  { %v7547_v19 = vpop.f32.mrb[16].mxu0  ;;  %v7759_v20 = vpop.f32.mrb[16].mxu1 }
 0x487   :  { %7946 = vmatpush1.bf16.msra.mxu0 %v11614_v46  ;;  %v12083_v25 = vadd.f32 %v7547_v19, %v13550_v53  ;;  %v12091_v22 = vadd.f32 %v7759_v20, %v13553_v2  ;;  %v7549_v23 = vpop.f32.mrb[17].mxu0  ;;  %v7761_v27 = vpop.f32.mrb[17].mxu1 }
 0x488   :  { %8158 = vmatpush1.bf16.msra.mxu1 %v11616_v36  ;;  %v12084_v30 = vadd.f32 %v7549_v23, %v13556_v42  ;;  %v12092_v56 = vadd.f32 %v7761_v27, %v13559_v0  ;;  %7947 = vmatprep.subr.bf16.mxu0 %v11623_v28  ;;  %v7551_v41 = vpop.f32.mrb[18].mxu0  ;;  %v7763_v4 = vpop.f32.mrb[18].mxu1  ;;  %v4698_v23 = vld [vmem:[#allocation6 + $0xe50] sm:$0xff] }
 0x489   :  { %8159 = vmatprep.subr.bf16.mxu1 %v11625_v18  ;;  %v12085_v21 = vadd.f32 %v7551_v41, %v13550_v53  ;;  %v12093_v39 = vadd.f32 %v7763_v4, %v13553_v2  ;;  %v7553_v15 = vpop.f32.mrb[19].mxu0  ;;  %v7765_v44 = vpop.f32.mrb[19].mxu1  ;;  %v8202_v47 = vmax.f32 %v12083_v25, 0.0  ;;  %v8204_v3 = vmax.f32 %v12091_v22, 0.0  ;;  %v4702_v27 = vld [vmem:[#allocation6 + $0xe70] sm:$0xff] }
 0x48a   :  { %v12086_v35 = vadd.f32 %v7553_v15, %v13556_v42  ;;  %v12094_v32 = vadd.f32 %v7765_v44, %v13559_v0  ;;  %v8203_v10 = vmax.f32 %v12084_v30, 0.0  ;;  %v8205_v13 = vmax.f32 %v12092_v56, 0.0 }
 0x48b   :  { %v8210_v6 = vmax.f32 %v12085_v21, 0.0  ;;  %v8212_v37 = vmax.f32 %v12093_v39, 0.0  ;;  %7948 = vmatpush1.bf16.msra.mxu0 %v11622_v14  ;;  %v11638_v25 = vcombine.low %v13565_v29, %v13567_v45  ;;  %v11640_v22 = vcombine.low %v4683_v51, %v4687_v61 }
 0x48c   :  { %8160 = vmatpush1.bf16.msra.mxu1 %v11624_v24  ;;  %v8211_v1 = vmax.f32 %v12086_v35, 0.0  ;;  %v8213_v55 = vmax.f32 %v12094_v32, 0.0  ;;  %7949 = vmatprep.subr.bf16.mxu0 %v11631_v38  ;;  %v11647_v41 = vcombine.high %v4690_v17, %v4694_v63  ;;  %v11646_v29 = vcombine.low %v4690_v17, %v4694_v63  ;;  %v4699_v35 = vld [vmem:[#allocation6 + $0xe58] sm:$0xff] }
 0x48d   :  { %v13579_v57 = vpack.c.bf16 %v8210_v6, %v8202_v47  ;;  %v13581_v33 = vpack.c.bf16 %v8212_v37, %v8204_v3  ;;  %8161 = vmatprep.subr.bf16.mxu1 %v11633_v12  ;;  %v11649_v45 = vcombine.high %v4691_v5, %v4695_v34  ;;  %v11655_v12 = vcombine.high %v4698_v23, %v4702_v27  ;;  %v4703_v32 = vld [vmem:[#allocation6 + $0xe78] sm:$0xff]  ;;  %v4706_v37 = vld [vmem:[#allocation6 + $0xe90] sm:$0xff] }
 0x48e   :  { %v13583_v46 = vpack.c.bf16 %v8211_v1, %v8203_v10  ;;  %v13585_v36 = vpack.c.bf16 %v8213_v55, %v8205_v13  ;;  %v7557_v28 = vpop.f32.mrb[20].mxu0  ;;  %v7769_v18 = vpop.f32.mrb[20].mxu1  ;;  %v4710_v10 = vld [vmem:[#allocation6 + $0xeb0] sm:$0xff]  ;;  %v4707_v55 = vld [vmem:[#allocation6 + $0xe98] sm:$0xff]  ;;  %v11654_v17 = vcombine.low %v4698_v23, %v4702_v27  ;;  %v11656_v63 = vcombine.low %v4699_v35, %v4703_v32 }
 0x48f   :  { %7950 = vmatpush1.bf16.msra.mxu0 %v11630_v11  ;;  %v12087_v19 = vadd.f32 %v7557_v28, %v13550_v53  ;;  %v12095_v20 = vadd.f32 %v7769_v18, %v13553_v2  ;;  %v7559_v49 = vpop.f32.mrb[21].mxu0  ;;  %v7771_v59 = vpop.f32.mrb[21].mxu1  ;;  %v11648_v11 = vcombine.low %v4691_v5, %v4695_v34  ;;  %v11663_v28 = vcombine.high %v4706_v37, %v4710_v10  ;;  %v4714_v5 = vld [vmem:[#allocation6 + $0xed0] sm:$0xff]  ;;  %v4723_v27 = vld [vmem:[#allocation6 + $0xf18] sm:$0xff] }
 0x490   :  { %8162 = vmatpush1.bf16.msra.mxu1 %v11632_v54  ;;  %v12088_v14 = vadd.f32 %v7559_v49, %v13556_v42  ;;  %v12096_v24 = vadd.f32 %v7771_v59, %v13559_v0  ;;  %7951 = vmatprep.subr.bf16.mxu0 %v11639_v48  ;;  %v7561_v30 = vpop.f32.mrb[22].mxu0  ;;  %v7773_v56 = vpop.f32.mrb[22].mxu1  ;;  %v4718_v34 = vld [vmem:[#allocation6 + $0xef0] sm:$0xff]  ;;  %v11662_v49 = vcombine.low %v4706_v37, %v4710_v10 }
 0x491   :  { %8163 = vmatprep.subr.bf16.mxu1 %v11641_v16  ;;  %v12089_v4 = vadd.f32 %v7561_v30, %v13550_v53  ;;  %v12097_v38 = vadd.f32 %v7773_v56, %v13553_v2  ;;  %v7563_v21 = vpop.f32.mrb[23].mxu0  ;;  %v7775_v39 = vpop.f32.mrb[23].mxu1  ;;  %v8218_v54 = vmax.f32 %v12087_v19, 0.0  ;;  %v8220_v48 = vmax.f32 %v12095_v20, 0.0  ;;  %v4711_v16 = vld [vmem:[#allocation6 + $0xeb8] sm:$0xff]  ;;  %v4726_v23 = vld [vmem:[#allocation6 + $0xf30] sm:$0xff] }
 0x492   :  { %v12090_v15 = vadd.f32 %v7563_v21, %v13556_v42  ;;  %v12098_v44 = vadd.f32 %v7775_v39, %v13559_v0  ;;  %v8219_v53 = vmax.f32 %v12088_v14, 0.0  ;;  %v8221_v47 = vmax.f32 %v12096_v24, 0.0  ;;  %v4715_v19 = vld [vmem:[#allocation6 + $0xed8] sm:$0xff]  ;;  %v4722_v14 = vld [vmem:[#allocation6 + $0xf10] sm:$0xff] }
 0x493   :  { %v8226_v51 = vmax.f32 %v12089_v4, 0.0  ;;  %v8228_v61 = vmax.f32 %v12097_v38, 0.0  ;;  %7952 = vmatpush1.bf16.msra.mxu0 %v11638_v25  ;;  %v11657_v0 = vcombine.high %v4699_v35, %v4703_v32  ;;  %v11665_v18 = vcombine.high %v4707_v55, %v4711_v16  ;;  %v4719_v20 = vld [vmem:[#allocation6 + $0xef8] sm:$0xff]  ;;  %v4730_v38 = vld [vmem:[#allocation6 + $0xf50] sm:$0xff] }
 0x494   :  { %8164 = vmatpush1.bf16.msra.mxu1 %v11640_v22  ;;  %v8227_v2 = vmax.f32 %v12090_v15, 0.0  ;;  %v8229_v3 = vmax.f32 %v12098_v44, 0.0  ;;  %7953 = vmatprep.subr.bf16.mxu0 %v11647_v41  ;;  %v11664_v59 = vcombine.low %v4707_v55, %v4711_v16  ;;  %v11671_v25 = vcombine.high %v4714_v5, %v4718_v34  ;;  %v4727_v24 = vld [vmem:[#allocation6 + $0xf38] sm:$0xff]  ;;  %v4734_v21 = vld [vmem:[#allocation6 + $0xf70] sm:$0xff] }
 0x495   :  { %v13597_v6 = vpack.c.bf16 %v8226_v51, %v8218_v54  ;;  %v13599_v42 = vpack.c.bf16 %v8228_v61, %v8220_v48  ;;  %8165 = vmatprep.subr.bf16.mxu1 %v11649_v45  ;;  %v11673_v22 = vcombine.high %v4715_v19, %v4719_v20  ;;  %v11670_v30 = vcombine.low %v4714_v5, %v4718_v34  ;;  %v4731_v39 = vld [vmem:[#allocation6 + $0xf58] sm:$0xff]  ;;  %v4742_v35 = vld [vmem:[#allocation6 + $0xfb0] sm:$0xff] }
 0x496   :  { %v13601_v13 = vpack.c.bf16 %v8227_v2, %v8219_v53  ;;  %v13603_v1 = vpack.c.bf16 %v8229_v3, %v8221_v47  ;;  %v11672_v56 = vcombine.low %v4715_v19, %v4719_v20  ;;  %v11679_v41 = vcombine.high %v4722_v14, %v4726_v23  ;;  %v4739_v32 = vld [vmem:[#allocation6 + $0xf98] sm:$0xff]  ;;  %v4746_v47 = vld [vmem:[#allocation6 + $0xfd0] sm:$0xff] }
 0x497   :  { %7954 = vmatpush1.bf16.msra.mxu0 %v11646_v29  ;;  %v11681_v4 = vcombine.high %v4723_v27, %v4727_v24  ;;  %v4735_v29 = vld [vmem:[#allocation6 + $0xf78] sm:$0xff]  ;;  %v11678_v45 = vcombine.low %v4722_v14, %v4726_v23  ;;  %v11680_v15 = vcombine.low %v4723_v27, %v4727_v24  ;;  %v11687_v44 = vcombine.high %v4730_v38, %v4734_v21  ;;  %v4750_v2 = vld [vmem:[#allocation6 + $0xff0] sm:$0xff] }
 0x498   :  { %8166 = vmatpush1.bf16.msra.mxu1 %v11648_v11  ;;  %7955 = vmatprep.subr.bf16.mxu0 %v11655_v12  ;;  %v11689_v11 = vcombine.high %v4731_v39, %v4735_v29  ;;  %v4738_v12 = vld [vmem:[#allocation6 + $0xf90] sm:$0xff]  ;;  %v4743_v54 = vld [vmem:[#allocation6 + $0xfb8] sm:$0xff]  ;;  %v11686_v48 = vcombine.low %v4730_v38, %v4734_v21  ;;  %v11688_v51 = vcombine.low %v4731_v39, %v4735_v29 }
 0x499   :  { %8167 = vmatprep.subr.bf16.mxu1 %v11657_v0  ;;  %v11695_v61 = vcombine.high %v4738_v12, %v4742_v35  ;;  %v11697_v53 = vcombine.high %v4739_v32, %v4743_v54  ;;  %v4747_v3 = vld [vmem:[#allocation6 + $0xfd8] sm:$0xff]  ;;  %v11694_v37 = vcombine.low %v4738_v12, %v4742_v35  ;;  %v11696_v10 = vcombine.low %v4739_v32, %v4743_v54  ;;  %v12388_v34 = vld [vmem:[#allocation9 + $0x8] ss:$16 sps:$4 sm:$0xff]   ;;  %v12396_v20 = vld [vmem:[#allocation9 + $0x2c] ss:$16 sps:$4 sm:$0xff]  }
 0x49a   :  { %v4751_v0 = vld [vmem:[#allocation6 + $0xff8] sm:$0xff]  ;;  %v11703_v55 = vcombine.high %v4746_v47, %v4750_v2  ;;  %v12400_v23 = vld [vmem:[#allocation9 + $0x48] ss:$16 sps:$4 sm:$0xff]   ;;  %v12426_v29 = vld [vmem:[#allocation9 + $0xcc] ss:$16 sps:$4 sm:$0xff]  }
 0x49b   :  { %7956 = vmatpush1.bf16.msra.mxu0 %v11654_v17  ;;  %v11705_v16 = vcombine.high %v4747_v3, %v4751_v0  ;;  %v11702_v17 = vcombine.low %v4746_v47, %v4750_v2  ;;  %v12385_v5 = vld [vmem:[#allocation9] ss:$16 sps:$4 sm:$0xff]   ;;  %v12393_v19 = vld [vmem:[#allocation9 + $0x24] ss:$16 sps:$4 sm:$0xff]   ;;  %v12406_v24 = vld [vmem:[#allocation9 + $0x68] ss:$16 sps:$4 sm:$0xff]  }
 0x49c   :  { %8168 = vmatpush1.bf16.msra.mxu1 %v11656_v63  ;;  %7957 = vmatprep.subr.bf16.mxu0 %v11663_v28  ;;  %v11704_v63 = vcombine.low %v4747_v3, %v4751_v0  ;;  %v12387_v28 = vld [vmem:[#allocation9 + $0x4] ss:$16 sps:$4 sm:$0xff]   ;;  %v12397_v14 = vld [vmem:[#allocation9 + $0x40] ss:$16 sps:$4 sm:$0xff]   ;;  %v12430_v35 = vld [vmem:[#allocation9 + $0xe8] ss:$16 sps:$4 sm:$0xff]  }
 0x49d   :  { %8169 = vmatprep.subr.bf16.mxu1 %v11665_v18  ;;  %v12390_v18 = vld [vmem:[#allocation9 + $0xc] ss:$16 sps:$4 sm:$0xff]   ;;  %v12405_v27 = vld [vmem:[#allocation9 + $0x64] ss:$16 sps:$4 sm:$0xff]   ;;  %v12415_v21 = vld [vmem:[#allocation9 + $0xa0] ss:$16 sps:$4 sm:$0xff]  }
 0x49e   :  { %v12417_v38 = vld [vmem:[#allocation9 + $0xa4] ss:$16 sps:$4 sm:$0xff]   ;;  %v12427_v12 = vld [vmem:[#allocation9 + $0xe0] ss:$16 sps:$4 sm:$0xff]   ;;  %v12438_v54 = vld [vmem:[#allocation9 + $0x10c] ss:$16 sps:$4 sm:$0xff]  }
 0x49f   :  { %7958 = vmatpush1.bf16.msra.mxu0 %v11662_v49  ;;  %v12391_v49 = vld [vmem:[#allocation9 + $0x20] ss:$16 sps:$4 sm:$0xff]   ;;  %v12423_v39 = vld [vmem:[#allocation9 + $0xc4] ss:$16 sps:$4 sm:$0xff]   ;;  %v12442_v2 = vld [vmem:[#allocation9 + $0x128] ss:$16 sps:$4 sm:$0xff]  }
 0x4a0   :  { %8170 = vmatpush1.bf16.msra.mxu1 %v11664_v59  ;;  %7959 = vmatprep.subr.bf16.mxu0 %v11671_v25  ;;  %v12394_v59 = vld [vmem:[#allocation9 + $0x28] ss:$16 sps:$4 sm:$0xff]   ;;  %v12399_v25 = vld [vmem:[#allocation9 + $0x44] ss:$16 sps:$4 sm:$0xff]   ;;  %v12439_v47 = vld [vmem:[#allocation9 + $0x120] ss:$16 sps:$4 sm:$0xff]  }
 0x4a1   :  { %8171 = vmatprep.subr.bf16.mxu1 %v11673_v22  ;;  %v12402_v22 = vld [vmem:[#allocation9 + $0x4c] ss:$16 sps:$4 sm:$0xff]   ;;  %v12435_v32 = vld [vmem:[#allocation9 + $0x104] ss:$16 sps:$4 sm:$0xff]  }
 0x4a2   :  { %v12447_v3 = vld [vmem:[#allocation9 + $0x144] ss:$16 sps:$4 sm:$0xff]   ;;  %v12450_v0 = vld [vmem:[#allocation9 + $0x14c] ss:$16 sps:$4 sm:$0xff]  }
 0x4a3   :  { %7960 = vmatpush1.bf16.msra.mxu0 %v11670_v30  ;;  %v12411_v30 = vld [vmem:[#allocation9 + $0x84] ss:$16 sps:$4 sm:$0xff]  }
 0x4a4   :  { %8172 = vmatpush1.bf16.msra.mxu1 %v11672_v56  ;;  %7961 = vmatprep.subr.bf16.mxu0 %v11679_v41  ;;  %v12414_v56 = vld [vmem:[#allocation9 + $0x8c] ss:$16 sps:$4 sm:$0xff]   ;;  %v12409_v41 = vld [vmem:[#allocation9 + $0x80] ss:$16 sps:$4 sm:$0xff]  }
 0x4a5   :  { %8173 = vmatprep.subr.bf16.mxu1 %v11681_v4  ;;  %v12412_v4 = vld [vmem:[#allocation9 + $0x88] ss:$16 sps:$4 sm:$0xff]  }
 0x4a7   :  { %7962 = vmatpush1.bf16.msra.mxu0 %v11678_v45  ;;  %v12421_v45 = vld [vmem:[#allocation9 + $0xc0] ss:$16 sps:$4 sm:$0xff]  }
 0x4a8   :  { %8174 = vmatpush1.bf16.msra.mxu1 %v11680_v15  ;;  %7963 = vmatprep.subr.bf16.mxu0 %v11687_v44  ;;  %v12424_v15 = vld [vmem:[#allocation9 + $0xc8] ss:$16 sps:$4 sm:$0xff]   ;;  %v12429_v44 = vld [vmem:[#allocation9 + $0xe4] ss:$16 sps:$4 sm:$0xff]  }
 0x4a9   :  { %8175 = vmatprep.subr.bf16.mxu1 %v11689_v11  ;;  %v12432_v11 = vld [vmem:[#allocation9 + $0xec] ss:$16 sps:$4 sm:$0xff]  }
 0x4ab   :  { %7964 = vmatpush1.bf16.msra.mxu0 %v11686_v48  ;;  %v12433_v48 = vld [vmem:[#allocation9 + $0x100] ss:$16 sps:$4 sm:$0xff]  }
 0x4ac   :  { %8176 = vmatpush1.bf16.msra.mxu1 %v11688_v51  ;;  %7965 = vmatprep.subr.bf16.mxu0 %v11695_v61  ;;  %v12436_v51 = vld [vmem:[#allocation9 + $0x108] ss:$16 sps:$4 sm:$0xff]   ;;  %v12441_v61 = vld [vmem:[#allocation9 + $0x124] ss:$16 sps:$4 sm:$0xff]  }
 0x4ad   :  { %8177 = vmatprep.subr.bf16.mxu1 %v11697_v53  ;;  %v12444_v53 = vld [vmem:[#allocation9 + $0x12c] ss:$16 sps:$4 sm:$0xff]  }
 0x4af   :  { %7966 = vmatpush1.bf16.msra.mxu0 %v11694_v37  ;;  %v12445_v37 = vld [vmem:[#allocation9 + $0x140] ss:$16 sps:$4 sm:$0xff]  }
 0x4b0   :  { %8178 = vmatpush1.bf16.msra.mxu1 %v11696_v10  ;;  %7967 = vmatprep.subr.bf16.mxu0 %v11703_v55  ;;  %v12448_v10 = vld [vmem:[#allocation9 + $0x148] ss:$16 sps:$4 sm:$0xff]   ;;  %v12453_v55 = vld [vmem:[#allocation9 + $0x164] ss:$16 sps:$4 sm:$0xff]  }
 0x4b1   :  { %8179 = vmatprep.subr.bf16.mxu1 %v11705_v16  ;;  %v12456_v16 = vld [vmem:[#allocation9 + $0x16c] ss:$16 sps:$4 sm:$0xff]  }
 0x4b3   :  { %7968 = vmatpush1.bf16.msra.mxu0 %v11702_v17  ;;  %v12451_v17 = vld [vmem:[#allocation9 + $0x160] ss:$16 sps:$4 sm:$0xff]  }
 0x4b4   :  { %8180 = vmatpush1.bf16.msra.mxu1 %v11704_v63  ;;  %9808 = vmatprep.subr.bf16.mxu0 %v12387_v28  ;;  %v12454_v63 = vld [vmem:[#allocation9 + $0x168] ss:$16 sps:$4 sm:$0xff]   ;;  %v12459_v28 = vld [vmem:[#allocation9 + $0x184] ss:$16 sps:$4 sm:$0xff]  }
 0x4b5   :  { %10020 = vmatprep.subr.bf16.mxu1 %v12390_v18  ;;  %v12462_v18 = vld [vmem:[#allocation9 + $0x18c] ss:$16 sps:$4 sm:$0xff]  }
 0x4b6   :  { %7970 = vmatmul.mubr.bf16.vlgmr.msra.gmra.mrb[24].mxu0 %v13483_v52 }
 0x4b7   :  { %8182 = vmatmul.mubr.bf16.vlgmr.msra.gmra.mrb[24].mxu1 %v13483_v52  ;;  %7979 = vmatprep.mubr.bf16.mxu0 %v13509_v62  ;;  %v12408_v52 = vld [vmem:[#allocation9 + $0x6c] ss:$16 sps:$4 sm:$0xff]  }
 0x4b8   :  { %8191 = vmatprep.mubr.bf16.mxu1 %v13509_v62  ;;  %9809 = vmatpush1.bf16.msra.mxu0 %v12385_v5  ;;  %v12403_v62 = vld [vmem:[#allocation9 + $0x60] ss:$16 sps:$4 sm:$0xff]  }
 0x4b9   :  { %10021 = vmatpush1.bf16.msra.mxu1 %v12388_v34  ;;  %9810 = vmatprep.subr.bf16.mxu0 %v12393_v19  ;;  %v12457_v5 = vld [vmem:[#allocation9 + $0x180] ss:$16 sps:$4 sm:$0xff]   ;;  %v12460_v34 = vld [vmem:[#allocation9 + $0x188] ss:$16 sps:$4 sm:$0xff]   ;;  %v12465_v19 = vld [vmem:[#allocation9 + $0x1a4] ss:$16 sps:$4 sm:$0xff]  }
 0x4ba   :  { %10022 = vmatprep.subr.bf16.mxu1 %v12396_v20  ;;  %v12468_v20 = vld [vmem:[#allocation9 + $0x1ac] ss:$16 sps:$4 sm:$0xff]  }
 0x4bc   :  { %9811 = vmatpush1.bf16.msra.mxu0 %v12391_v49  ;;  %v12463_v49 = vld [vmem:[#allocation9 + $0x1a0] ss:$16 sps:$4 sm:$0xff]  }
 0x4bd   :  { %10023 = vmatpush1.bf16.msra.mxu1 %v12394_v59  ;;  %9812 = vmatprep.subr.bf16.mxu0 %v12399_v25  ;;  %v12466_v59 = vld [vmem:[#allocation9 + $0x1a8] ss:$16 sps:$4 sm:$0xff]   ;;  %v12471_v25 = vld [vmem:[#allocation9 + $0x1c4] ss:$16 sps:$4 sm:$0xff]  }
 0x4be   :  { %7980 = vmatmul.mubr.bf16.gmra.mrb[28].mxu0 %v13505_v60  ;;  %10024 = vmatprep.subr.bf16.mxu1 %v12402_v22  ;;  %v12474_v22 = vld [vmem:[#allocation9 + $0x1cc] ss:$16 sps:$4 sm:$0xff]  }
 0x4bf   :  { %8192 = vmatmul.mubr.bf16.gmra.mrb[28].mxu1 %v13505_v60  ;;  %9840 = vmatprep.mubr.bf16.mxu0 %v13583_v46  ;;  %v12420_v60 = vld [vmem:[#allocation9 + $0xac] ss:$16 sps:$4 sm:$0xff]  }
 0x4c0   :  { %9813 = vmatpush1.bf16.msra.mxu0 %v12397_v14  ;;  %10052 = vmatprep.mubr.bf16.mxu1 %v13583_v46  ;;  %v12418_v46 = vld [vmem:[#allocation9 + $0xa8] ss:$16 sps:$4 sm:$0xff]   ;;  %v12469_v14 = vld [vmem:[#allocation9 + $0x1c0] ss:$16 sps:$4 sm:$0xff]  }
 0x4c1   :  { %10025 = vmatpush1.bf16.msra.mxu1 %v12400_v23  ;;  %9814 = vmatprep.subr.bf16.mxu0 %v12405_v27  ;;  %v12472_v23 = vld [vmem:[#allocation9 + $0x1c8] ss:$16 sps:$4 sm:$0xff]   ;;  %v12477_v27 = vld [vmem:[#allocation9 + $0x1e4] ss:$16 sps:$4 sm:$0xff]  }
 0x4c2   :  { %10026 = vmatprep.subr.bf16.mxu1 %v12408_v52  ;;  %v12480_v52 = vld [vmem:[#allocation9 + $0x1ec] ss:$16 sps:$4 sm:$0xff]  }
 0x4c4   :  { %9815 = vmatpush1.bf16.msra.mxu0 %v12403_v62  ;;  %v12475_v62 = vld [vmem:[#allocation9 + $0x1e0] ss:$16 sps:$4 sm:$0xff]  }
 0x4c5   :  { %10027 = vmatpush1.bf16.msra.mxu1 %v12406_v24  ;;  %9816 = vmatprep.subr.bf16.mxu0 %v12411_v30  ;;  %v12478_v24 = vld [vmem:[#allocation9 + $0x1e8] ss:$16 sps:$4 sm:$0xff]   ;;  %v12483_v30 = vld [vmem:[#allocation9 + $0x204] ss:$16 sps:$4 sm:$0xff]  }
 0x4c6   :  { %10028 = vmatprep.subr.bf16.mxu1 %v12414_v56  ;;  %v12486_v56 = vld [vmem:[#allocation9 + $0x20c] ss:$16 sps:$4 sm:$0xff]  }
 0x4c8   :  { %9817 = vmatpush1.bf16.msra.mxu0 %v12409_v41  ;;  %v12481_v41 = vld [vmem:[#allocation9 + $0x200] ss:$16 sps:$4 sm:$0xff]  }
 0x4c9   :  { %10029 = vmatpush1.bf16.msra.mxu1 %v12412_v4  ;;  %9818 = vmatprep.subr.bf16.mxu0 %v12417_v38  ;;  %v12484_v4 = vld [vmem:[#allocation9 + $0x208] ss:$16 sps:$4 sm:$0xff]   ;;  %v12489_v38 = vld [vmem:[#allocation9 + $0x224] ss:$16 sps:$4 sm:$0xff]  }
 0x4ca   :  { %10030 = vmatprep.subr.bf16.mxu1 %v12420_v60  ;;  %v12492_v60 = vld [vmem:[#allocation9 + $0x22c] ss:$16 sps:$4 sm:$0xff]  }
 0x4cc   :  { %9819 = vmatpush1.bf16.msra.mxu0 %v12415_v21  ;;  %v12487_v21 = vld [vmem:[#allocation9 + $0x220] ss:$16 sps:$4 sm:$0xff]  }
 0x4cd   :  { %10031 = vmatpush1.bf16.msra.mxu1 %v12418_v46  ;;  %9820 = vmatprep.subr.bf16.mxu0 %v12423_v39  ;;  %v12490_v46 = vld [vmem:[#allocation9 + $0x228] ss:$16 sps:$4 sm:$0xff]   ;;  %v12495_v39 = vld [vmem:[#allocation9 + $0x244] ss:$16 sps:$4 sm:$0xff]  }
 0x4ce   :  { %10032 = vmatprep.subr.bf16.mxu1 %v12426_v29  ;;  %v12498_v29 = vld [vmem:[#allocation9 + $0x24c] ss:$16 sps:$4 sm:$0xff]  }
 0x4d0   :  { %9821 = vmatpush1.bf16.msra.mxu0 %v12421_v45  ;;  %v12493_v45 = vld [vmem:[#allocation9 + $0x240] ss:$16 sps:$4 sm:$0xff]  }
 0x4d1   :  { %10033 = vmatpush1.bf16.msra.mxu1 %v12424_v15  ;;  %9822 = vmatprep.subr.bf16.mxu0 %v12429_v44  ;;  %v12496_v15 = vld [vmem:[#allocation9 + $0x248] ss:$16 sps:$4 sm:$0xff]   ;;  %v12501_v44 = vld [vmem:[#allocation9 + $0x264] ss:$16 sps:$4 sm:$0xff]  }
 0x4d2   :  { %10034 = vmatprep.subr.bf16.mxu1 %v12432_v11  ;;  %v12502_v11 = vld [vmem:[#allocation9 + $0x268] ss:$16 sps:$4 sm:$0xff]  }
 0x4d4   :  { %9823 = vmatpush1.bf16.msra.mxu0 %v12427_v12  ;;  %v12507_v12 = vld [vmem:[#allocation9 + $0x284] ss:$16 sps:$4 sm:$0xff]  }
 0x4d5   :  { %10035 = vmatpush1.bf16.msra.mxu1 %v12430_v35  ;;  %9824 = vmatprep.subr.bf16.mxu0 %v12435_v32  ;;  %v12510_v35 = vld [vmem:[#allocation9 + $0x28c] ss:$16 sps:$4 sm:$0xff]   ;;  %v12505_v32 = vld [vmem:[#allocation9 + $0x280] ss:$16 sps:$4 sm:$0xff]  }
 0x4d6   :  { %10036 = vmatprep.subr.bf16.mxu1 %v12438_v54  ;;  %v12508_v54 = vld [vmem:[#allocation9 + $0x288] ss:$16 sps:$4 sm:$0xff]  }
 0x4d8   :  { %9825 = vmatpush1.bf16.msra.mxu0 %v12433_v48  ;;  %v12513_v48 = vld [vmem:[#allocation9 + $0x2a4] ss:$16 sps:$4 sm:$0xff]  }
 0x4d9   :  { %10037 = vmatpush1.bf16.msra.mxu1 %v12436_v51  ;;  %9826 = vmatprep.subr.bf16.mxu0 %v12441_v61  ;;  %v12511_v51 = vld [vmem:[#allocation9 + $0x2a0] ss:$16 sps:$4 sm:$0xff]   ;;  %v12519_v61 = vld [vmem:[#allocation9 + $0x2c4] ss:$16 sps:$4 sm:$0xff]  }
 0x4da   :  { %10038 = vmatprep.subr.bf16.mxu1 %v12444_v53  ;;  %v12522_v53 = vld [vmem:[#allocation9 + $0x2cc] ss:$16 sps:$4 sm:$0xff]  }
 0x4dc   :  { %9827 = vmatpush1.bf16.msra.mxu0 %v12439_v47  ;;  %v12517_v47 = vld [vmem:[#allocation9 + $0x2c0] ss:$16 sps:$4 sm:$0xff]  }
 0x4dd   :  { %10039 = vmatpush1.bf16.msra.mxu1 %v12442_v2  ;;  %9828 = vmatprep.subr.bf16.mxu0 %v12447_v3  ;;  %v12520_v2 = vld [vmem:[#allocation9 + $0x2c8] ss:$16 sps:$4 sm:$0xff]   ;;  %v12525_v3 = vld [vmem:[#allocation9 + $0x2e4] ss:$16 sps:$4 sm:$0xff]  }
 0x4de   :  { %10040 = vmatprep.subr.bf16.mxu1 %v12450_v0  ;;  %v12528_v0 = vld [vmem:[#allocation9 + $0x2ec] ss:$16 sps:$4 sm:$0xff]  }
 0x4e0   :  { %9829 = vmatpush1.bf16.msra.mxu0 %v12445_v37  ;;  %v12523_v37 = vld [vmem:[#allocation9 + $0x2e0] ss:$16 sps:$4 sm:$0xff]  }
 0x4e1   :  { %10041 = vmatpush1.bf16.msra.mxu1 %v12448_v10  ;;  %9830 = vmatprep.subr.bf16.mxu0 %v12453_v55  ;;  %v12526_v10 = vld [vmem:[#allocation9 + $0x2e8] ss:$16 sps:$4 sm:$0xff]   ;;  %v12531_v55 = vld [vmem:[#allocation9 + $0x304] ss:$16 sps:$4 sm:$0xff]  }
 0x4e2   :  { %10042 = vmatprep.subr.bf16.mxu1 %v12456_v16  ;;  %v12534_v16 = vld [vmem:[#allocation9 + $0x30c] ss:$16 sps:$4 sm:$0xff]  }
 0x4e4   :  { %9831 = vmatpush1.bf16.msra.mxu0 %v12451_v17  ;;  %v12529_v17 = vld [vmem:[#allocation9 + $0x300] ss:$16 sps:$4 sm:$0xff]  }
 0x4e5   :  { %10043 = vmatpush1.bf16.msra.mxu1 %v12454_v63  ;;  %9832 = vmatprep.subr.bf16.mxu0 %v12459_v28  ;;  %v12532_v63 = vld [vmem:[#allocation9 + $0x308] ss:$16 sps:$4 sm:$0xff]   ;;  %v12537_v28 = vld [vmem:[#allocation9 + $0x324] ss:$16 sps:$4 sm:$0xff]  }
 0x4e6   :  { %10044 = vmatprep.subr.bf16.mxu1 %v12462_v18  ;;  %v12540_v18 = vld [vmem:[#allocation9 + $0x32c] ss:$16 sps:$4 sm:$0xff]  }
 0x4e8   :  { %9833 = vmatpush1.bf16.msra.mxu0 %v12457_v5  ;;  %v12535_v5 = vld [vmem:[#allocation9 + $0x320] ss:$16 sps:$4 sm:$0xff]  }
 0x4e9   :  { %10045 = vmatpush1.bf16.msra.mxu1 %v12460_v34  ;;  %9834 = vmatprep.subr.bf16.mxu0 %v12465_v19  ;;  %v12538_v34 = vld [vmem:[#allocation9 + $0x328] ss:$16 sps:$4 sm:$0xff]   ;;  %v12543_v19 = vld [vmem:[#allocation9 + $0x344] ss:$16 sps:$4 sm:$0xff]  }
 0x4ea   :  { %10046 = vmatprep.subr.bf16.mxu1 %v12468_v20  ;;  %v12546_v20 = vld [vmem:[#allocation9 + $0x34c] ss:$16 sps:$4 sm:$0xff]  }
 0x4ec   :  { %9835 = vmatpush1.bf16.msra.mxu0 %v12463_v49  ;;  %v12541_v49 = vld [vmem:[#allocation9 + $0x340] ss:$16 sps:$4 sm:$0xff]  }
 0x4ed   :  { %10047 = vmatpush1.bf16.msra.mxu1 %v12466_v59  ;;  %9836 = vmatprep.subr.bf16.mxu0 %v12471_v25  ;;  %v12544_v59 = vld [vmem:[#allocation9 + $0x348] ss:$16 sps:$4 sm:$0xff]   ;;  %v12549_v25 = vld [vmem:[#allocation9 + $0x364] ss:$16 sps:$4 sm:$0xff]  }
 0x4ee   :  { %10048 = vmatprep.subr.bf16.mxu1 %v12474_v22  ;;  %v12552_v22 = vld [vmem:[#allocation9 + $0x36c] ss:$16 sps:$4 sm:$0xff]  }
 0x4f0   :  { %9837 = vmatpush1.bf16.msra.mxu0 %v12469_v14  ;;  %v12547_v14 = vld [vmem:[#allocation9 + $0x360] ss:$16 sps:$4 sm:$0xff]  }
 0x4f1   :  { %10049 = vmatpush1.bf16.msra.mxu1 %v12472_v23  ;;  %9838 = vmatprep.subr.bf16.mxu0 %v12477_v27  ;;  %v12550_v23 = vld [vmem:[#allocation9 + $0x368] ss:$16 sps:$4 sm:$0xff]   ;;  %v12555_v27 = vld [vmem:[#allocation9 + $0x384] ss:$16 sps:$4 sm:$0xff]  }
 0x4f2   :  { %10050 = vmatprep.subr.bf16.mxu1 %v12480_v52  ;;  %v12558_v52 = vld [vmem:[#allocation9 + $0x38c] ss:$16 sps:$4 sm:$0xff]  }
 0x4f4   :  { %9839 = vmatpush1.bf16.msra.mxu0 %v12475_v62  ;;  %v12553_v62 = vld [vmem:[#allocation9 + $0x380] ss:$16 sps:$4 sm:$0xff]  }
 0x4f5   :  { %10051 = vmatpush1.bf16.msra.mxu1 %v12478_v24  ;;  %9861 = vmatprep.subr.bf16.mxu0 %v12483_v30  ;;  %v12556_v24 = vld [vmem:[#allocation9 + $0x388] ss:$16 sps:$4 sm:$0xff]   ;;  %v12561_v30 = vld [vmem:[#allocation9 + $0x3a4] ss:$16 sps:$4 sm:$0xff]  }
 0x4f6   :  { %10073 = vmatprep.subr.bf16.mxu1 %v12486_v56  ;;  %v12564_v56 = vld [vmem:[#allocation9 + $0x3ac] ss:$16 sps:$4 sm:$0xff]  }
 0x4f7   :  { %9841 = vmatmul.mubr.bf16.vlgmr.msra.gmra.mrb[32].mxu0 %v13579_v57 }
 0x4f8   :  { %10053 = vmatmul.mubr.bf16.vlgmr.msra.gmra.mrb[32].mxu1 %v13579_v57  ;;  %9850 = vmatprep.mubr.bf16.mxu0 %v13601_v13  ;;  %v12504_v57 = vld [vmem:[#allocation9 + $0x26c] ss:$16 sps:$4 sm:$0xff]  }
 0x4f9   :  { %9862 = vmatpush1.bf16.msra.mxu0 %v12481_v41  ;;  %10062 = vmatprep.mubr.bf16.mxu1 %v13601_v13  ;;  %v12499_v13 = vld [vmem:[#allocation9 + $0x260] ss:$16 sps:$4 sm:$0xff]  }
 0x4fa   :  { %10074 = vmatpush1.bf16.msra.mxu1 %v12484_v4  ;;  %9863 = vmatprep.subr.bf16.mxu0 %v12489_v38  ;;  %v12559_v41 = vld [vmem:[#allocation9 + $0x3a0] ss:$16 sps:$4 sm:$0xff]   ;;  %v12562_v4 = vld [vmem:[#allocation9 + $0x3a8] ss:$16 sps:$4 sm:$0xff]   ;;  %v12567_v38 = vld [vmem:[#allocation9 + $0x3c4] ss:$16 sps:$4 sm:$0xff]  }
 0x4fb   :  { %10075 = vmatprep.subr.bf16.mxu1 %v12492_v60  ;;  %v12570_v60 = vld [vmem:[#allocation9 + $0x3cc] ss:$16 sps:$4 sm:$0xff]  }
 0x4fd   :  { %9864 = vmatpush1.bf16.msra.mxu0 %v12487_v21  ;;  %v12565_v21 = vld [vmem:[#allocation9 + $0x3c0] ss:$16 sps:$4 sm:$0xff]  }
 0x4fe   :  { %10076 = vmatpush1.bf16.msra.mxu1 %v12490_v46  ;;  %9865 = vmatprep.subr.bf16.mxu0 %v12495_v39  ;;  %v12568_v46 = vld [vmem:[#allocation9 + $0x3c8] ss:$16 sps:$4 sm:$0xff]   ;;  %v12573_v39 = vld [vmem:[#allocation9 + $0x3e4] ss:$16 sps:$4 sm:$0xff]  }
 0x4ff   :  { %9851 = vmatmul.mubr.bf16.gmra.mrb[36].mxu0 %v13597_v6  ;;  %10077 = vmatprep.subr.bf16.mxu1 %v12498_v29  ;;  %v12576_v29 = vld [vmem:[#allocation9 + $0x3ec] ss:$16 sps:$4 sm:$0xff]  }
 0x500   :  { %10063 = vmatmul.mubr.bf16.gmra.mrb[36].mxu1 %v13597_v6  ;;  %9893 = vmatprep.mubr.bf16.mxu0 %v13585_v36  ;;  %v12516_v6 = vld [vmem:[#allocation9 + $0x2ac] ss:$16 sps:$4 sm:$0xff]  }
 0x501   :  { %9866 = vmatpush1.bf16.msra.mxu0 %v12493_v45  ;;  %10105 = vmatprep.mubr.bf16.mxu1 %v13585_v36  ;;  %v12514_v36 = vld [vmem:[#allocation9 + $0x2a8] ss:$16 sps:$4 sm:$0xff]   ;;  %v12571_v45 = vld [vmem:[#allocation9 + $0x3e0] ss:$16 sps:$4 sm:$0xff]  }
 0x502   :  { %10078 = vmatpush1.bf16.msra.mxu1 %v12496_v15  ;;  %9867 = vmatprep.subr.bf16.mxu0 %v12501_v44  ;;  %v12574_v15 = vld [vmem:[#allocation9 + $0x3e8] ss:$16 sps:$4 sm:$0xff]   ;;  %v12579_v44 = vld [vmem:[#allocation9 + $0x404] ss:$16 sps:$4 sm:$0xff]  }
 0x503   :  { %10079 = vmatprep.subr.bf16.mxu1 %v12504_v57  ;;  %v12582_v57 = vld [vmem:[#allocation9 + $0x40c] ss:$16 sps:$4 sm:$0xff]  }
 0x505   :  { %9868 = vmatpush1.bf16.msra.mxu0 %v12499_v13  ;;  %v12577_v13 = vld [vmem:[#allocation9 + $0x400] ss:$16 sps:$4 sm:$0xff]  }
 0x506   :  { %10080 = vmatpush1.bf16.msra.mxu1 %v12502_v11  ;;  %9869 = vmatprep.subr.bf16.mxu0 %v12507_v12  ;;  %v12580_v11 = vld [vmem:[#allocation9 + $0x408] ss:$16 sps:$4 sm:$0xff]   ;;  %v12585_v12 = vld [vmem:[#allocation9 + $0x424] ss:$16 sps:$4 sm:$0xff]  }
 0x507   :  { %10081 = vmatprep.subr.bf16.mxu1 %v12510_v35  ;;  %v12588_v35 = vld [vmem:[#allocation9 + $0x42c] ss:$16 sps:$4 sm:$0xff]  }
 0x509   :  { %9870 = vmatpush1.bf16.msra.mxu0 %v12505_v32  ;;  %v12583_v32 = vld [vmem:[#allocation9 + $0x420] ss:$16 sps:$4 sm:$0xff]  }
 0x50a   :  { %10082 = vmatpush1.bf16.msra.mxu1 %v12508_v54  ;;  %9871 = vmatprep.subr.bf16.mxu0 %v12513_v48  ;;  %v12586_v54 = vld [vmem:[#allocation9 + $0x428] ss:$16 sps:$4 sm:$0xff]   ;;  %v12591_v48 = vld [vmem:[#allocation9 + $0x444] ss:$16 sps:$4 sm:$0xff]  }
 0x50b   :  { %10083 = vmatprep.subr.bf16.mxu1 %v12516_v6  ;;  %v12594_v6 = vld [vmem:[#allocation9 + $0x44c] ss:$16 sps:$4 sm:$0xff]  }
 0x50d   :  { %9872 = vmatpush1.bf16.msra.mxu0 %v12511_v51  ;;  %v12589_v51 = vld [vmem:[#allocation9 + $0x440] ss:$16 sps:$4 sm:$0xff]  }
 0x50e   :  { %10084 = vmatpush1.bf16.msra.mxu1 %v12514_v36  ;;  %9873 = vmatprep.subr.bf16.mxu0 %v12519_v61  ;;  %v12592_v36 = vld [vmem:[#allocation9 + $0x448] ss:$16 sps:$4 sm:$0xff]   ;;  %v12597_v61 = vld [vmem:[#allocation9 + $0x464] ss:$16 sps:$4 sm:$0xff]  }
 0x50f   :  { %10085 = vmatprep.subr.bf16.mxu1 %v12522_v53  ;;  %v12598_v53 = vld [vmem:[#allocation9 + $0x468] ss:$16 sps:$4 sm:$0xff]  }
 0x511   :  { %9874 = vmatpush1.bf16.msra.mxu0 %v12517_v47  ;;  %v12603_v47 = vld [vmem:[#allocation9 + $0x484] ss:$16 sps:$4 sm:$0xff]  }
 0x512   :  { %10086 = vmatpush1.bf16.msra.mxu1 %v12520_v2  ;;  %9875 = vmatprep.subr.bf16.mxu0 %v12525_v3  ;;  %v12606_v2 = vld [vmem:[#allocation9 + $0x48c] ss:$16 sps:$4 sm:$0xff]   ;;  %v12601_v3 = vld [vmem:[#allocation9 + $0x480] ss:$16 sps:$4 sm:$0xff]  }
 0x513   :  { %10087 = vmatprep.subr.bf16.mxu1 %v12528_v0  ;;  %v12604_v0 = vld [vmem:[#allocation9 + $0x488] ss:$16 sps:$4 sm:$0xff]  }
 0x515   :  { %9876 = vmatpush1.bf16.msra.mxu0 %v12523_v37  ;;  %v12609_v37 = vld [vmem:[#allocation9 + $0x4a4] ss:$16 sps:$4 sm:$0xff]  }
 0x516   :  { %10088 = vmatpush1.bf16.msra.mxu1 %v12526_v10  ;;  %9877 = vmatprep.subr.bf16.mxu0 %v12531_v55  ;;  %v12612_v10 = vld [vmem:[#allocation9 + $0x4ac] ss:$16 sps:$4 sm:$0xff]   ;;  %v12607_v55 = vld [vmem:[#allocation9 + $0x4a0] ss:$16 sps:$4 sm:$0xff]  }
 0x517   :  { %10089 = vmatprep.subr.bf16.mxu1 %v12534_v16  ;;  %v12615_v16 = vld [vmem:[#allocation9 + $0x4c4] ss:$16 sps:$4 sm:$0xff]  }
 0x519   :  { %9878 = vmatpush1.bf16.msra.mxu0 %v12529_v17  ;;  %v12618_v17 = vld [vmem:[#allocation9 + $0x4cc] ss:$16 sps:$4 sm:$0xff]  }
 0x51a   :  { %10090 = vmatpush1.bf16.msra.mxu1 %v12532_v63  ;;  %9879 = vmatprep.subr.bf16.mxu0 %v12537_v28  ;;  %v12613_v63 = vld [vmem:[#allocation9 + $0x4c0] ss:$16 sps:$4 sm:$0xff]   ;;  %v12616_v28 = vld [vmem:[#allocation9 + $0x4c8] ss:$16 sps:$4 sm:$0xff]  }
 0x51b   :  { %10091 = vmatprep.subr.bf16.mxu1 %v12540_v18  ;;  %v12621_v18 = vld [vmem:[#allocation9 + $0x4e4] ss:$16 sps:$4 sm:$0xff]  }
 0x51d   :  { %9880 = vmatpush1.bf16.msra.mxu0 %v12535_v5  ;;  %v12624_v5 = vld [vmem:[#allocation9 + $0x4ec] ss:$16 sps:$4 sm:$0xff]  }
 0x51e   :  { %10092 = vmatpush1.bf16.msra.mxu1 %v12538_v34  ;;  %9881 = vmatprep.subr.bf16.mxu0 %v12543_v19  ;;  %v12619_v34 = vld [vmem:[#allocation9 + $0x4e0] ss:$16 sps:$4 sm:$0xff]   ;;  %v12622_v19 = vld [vmem:[#allocation9 + $0x4e8] ss:$16 sps:$4 sm:$0xff]  }
 0x51f   :  { %10093 = vmatprep.subr.bf16.mxu1 %v12546_v20  ;;  %v12627_v20 = vld [vmem:[#allocation9 + $0x504] ss:$16 sps:$4 sm:$0xff]  }
 0x521   :  { %9882 = vmatpush1.bf16.msra.mxu0 %v12541_v49  ;;  %v12630_v49 = vld [vmem:[#allocation9 + $0x50c] ss:$16 sps:$4 sm:$0xff]  }
 0x522   :  { %10094 = vmatpush1.bf16.msra.mxu1 %v12544_v59  ;;  %9883 = vmatprep.subr.bf16.mxu0 %v12549_v25  ;;  %v12625_v59 = vld [vmem:[#allocation9 + $0x500] ss:$16 sps:$4 sm:$0xff]   ;;  %v12628_v25 = vld [vmem:[#allocation9 + $0x508] ss:$16 sps:$4 sm:$0xff]  }
 0x523   :  { %10095 = vmatprep.subr.bf16.mxu1 %v12552_v22  ;;  %v12633_v22 = vld [vmem:[#allocation9 + $0x524] ss:$16 sps:$4 sm:$0xff]  }
 0x525   :  { %9884 = vmatpush1.bf16.msra.mxu0 %v12547_v14  ;;  %v12636_v14 = vld [vmem:[#allocation9 + $0x52c] ss:$16 sps:$4 sm:$0xff]  }
 0x526   :  { %10096 = vmatpush1.bf16.msra.mxu1 %v12550_v23  ;;  %9885 = vmatprep.subr.bf16.mxu0 %v12555_v27  ;;  %v12631_v23 = vld [vmem:[#allocation9 + $0x520] ss:$16 sps:$4 sm:$0xff]   ;;  %v12634_v27 = vld [vmem:[#allocation9 + $0x528] ss:$16 sps:$4 sm:$0xff]  }
 0x527   :  { %10097 = vmatprep.subr.bf16.mxu1 %v12558_v52  ;;  %v12639_v52 = vld [vmem:[#allocation9 + $0x544] ss:$16 sps:$4 sm:$0xff]  }
 0x529   :  { %9886 = vmatpush1.bf16.msra.mxu0 %v12553_v62  ;;  %v12642_v62 = vld [vmem:[#allocation9 + $0x54c] ss:$16 sps:$4 sm:$0xff]  }
 0x52a   :  { %10098 = vmatpush1.bf16.msra.mxu1 %v12556_v24  ;;  %9887 = vmatprep.subr.bf16.mxu0 %v12561_v30  ;;  %v12637_v24 = vld [vmem:[#allocation9 + $0x540] ss:$16 sps:$4 sm:$0xff]   ;;  %v12640_v30 = vld [vmem:[#allocation9 + $0x548] ss:$16 sps:$4 sm:$0xff]  }
 0x52b   :  { %10099 = vmatprep.subr.bf16.mxu1 %v12564_v56  ;;  %v12645_v56 = vld [vmem:[#allocation9 + $0x564] ss:$16 sps:$4 sm:$0xff]  }
 0x52d   :  { %9888 = vmatpush1.bf16.msra.mxu0 %v12559_v41  ;;  %v12648_v41 = vld [vmem:[#allocation9 + $0x56c] ss:$16 sps:$4 sm:$0xff]  }
 0x52e   :  { %10100 = vmatpush1.bf16.msra.mxu1 %v12562_v4  ;;  %9889 = vmatprep.subr.bf16.mxu0 %v12567_v38  ;;  %v12643_v4 = vld [vmem:[#allocation9 + $0x560] ss:$16 sps:$4 sm:$0xff]   ;;  %v12646_v38 = vld [vmem:[#allocation9 + $0x568] ss:$16 sps:$4 sm:$0xff]  }
 0x52f   :  { %10101 = vmatprep.subr.bf16.mxu1 %v12570_v60  ;;  %v12651_v60 = vld [vmem:[#allocation9 + $0x584] ss:$16 sps:$4 sm:$0xff]  }
 0x531   :  { %9890 = vmatpush1.bf16.msra.mxu0 %v12565_v21  ;;  %v12654_v21 = vld [vmem:[#allocation9 + $0x58c] ss:$16 sps:$4 sm:$0xff]  }
 0x532   :  { %10102 = vmatpush1.bf16.msra.mxu1 %v12568_v46  ;;  %9891 = vmatprep.subr.bf16.mxu0 %v12573_v39  ;;  %v12649_v46 = vld [vmem:[#allocation9 + $0x580] ss:$16 sps:$4 sm:$0xff]   ;;  %v12652_v39 = vld [vmem:[#allocation9 + $0x588] ss:$16 sps:$4 sm:$0xff]  }
 0x533   :  { %10103 = vmatprep.subr.bf16.mxu1 %v12576_v29  ;;  %v12657_v29 = vld [vmem:[#allocation9 + $0x5a4] ss:$16 sps:$4 sm:$0xff]  }
 0x535   :  { %9892 = vmatpush1.bf16.msra.mxu0 %v12571_v45  ;;  %v12660_v45 = vld [vmem:[#allocation9 + $0x5ac] ss:$16 sps:$4 sm:$0xff]  }
 0x536   :  { %10104 = vmatpush1.bf16.msra.mxu1 %v12574_v15  ;;  %9914 = vmatprep.subr.bf16.mxu0 %v12579_v44  ;;  %v12655_v15 = vld [vmem:[#allocation9 + $0x5a0] ss:$16 sps:$4 sm:$0xff]   ;;  %v12658_v44 = vld [vmem:[#allocation9 + $0x5a8] ss:$16 sps:$4 sm:$0xff]  }
 0x537   :  { %10126 = vmatprep.subr.bf16.mxu1 %v12582_v57  ;;  %v12663_v57 = vld [vmem:[#allocation9 + $0x5c4] ss:$16 sps:$4 sm:$0xff]  }
 0x538   :  { %9894 = vmatmul.mubr.bf16.vlgmr.msra.gmra.mrb[32].mxu0 %v13581_v33 }
 0x539   :  { %10106 = vmatmul.mubr.bf16.vlgmr.msra.gmra.mrb[32].mxu1 %v13581_v33  ;;  %9903 = vmatprep.mubr.bf16.mxu0 %v13603_v1  ;;  %v12600_v33 = vld [vmem:[#allocation9 + $0x46c] ss:$16 sps:$4 sm:$0xff]  }
 0x53a   :  { %10115 = vmatprep.mubr.bf16.mxu1 %v13603_v1  ;;  %9915 = vmatpush1.bf16.msra.mxu0 %v12577_v13  ;;  %v12595_v1 = vld [vmem:[#allocation9 + $0x460] ss:$16 sps:$4 sm:$0xff]   ;;  %v12666_v13 = vld [vmem:[#allocation9 + $0x5cc] ss:$16 sps:$4 sm:$0xff]  }
 0x53b   :  { %10127 = vmatpush1.bf16.msra.mxu1 %v12580_v11  ;;  %9916 = vmatprep.subr.bf16.mxu0 %v12585_v12  ;;  %v12661_v11 = vld [vmem:[#allocation9 + $0x5c0] ss:$16 sps:$4 sm:$0xff]   ;;  %v12664_v12 = vld [vmem:[#allocation9 + $0x5c8] ss:$16 sps:$4 sm:$0xff]  }
 0x53c   :  { %10128 = vmatprep.subr.bf16.mxu1 %v12588_v35  ;;  %v12669_v35 = vld [vmem:[#allocation9 + $0x5e4] ss:$16 sps:$4 sm:$0xff]  }
 0x53e   :  { %9917 = vmatpush1.bf16.msra.mxu0 %v12583_v32  ;;  %v12672_v32 = vld [vmem:[#allocation9 + $0x5ec] ss:$16 sps:$4 sm:$0xff]  }
 0x53f   :  { %10129 = vmatpush1.bf16.msra.mxu1 %v12586_v54  ;;  %9918 = vmatprep.subr.bf16.mxu0 %v12591_v48  ;;  %v12667_v54 = vld [vmem:[#allocation9 + $0x5e0] ss:$16 sps:$4 sm:$0xff]   ;;  %v12670_v48 = vld [vmem:[#allocation9 + $0x5e8] ss:$16 sps:$4 sm:$0xff]  }
 0x540   :  { %9904 = vmatmul.mubr.bf16.gmra.mrb[36].mxu0 %v13599_v42  ;;  %10130 = vmatprep.subr.bf16.mxu1 %v12594_v6  ;;  %v12675_v6 = vld [vmem:[#allocation9 + $0x604] ss:$16 sps:$4 sm:$0xff]  }
 0x541   :  { %10116 = vmatmul.mubr.bf16.gmra.mrb[36].mxu1 %v13599_v42  ;;  %v12610_v42 = vld [vmem:[#allocation9 + $0x4a8] ss:$16 sps:$4 sm:$0xff]  }
 0x542   :  { %9919 = vmatpush1.bf16.msra.mxu0 %v12589_v51  ;;  %v12678_v51 = vld [vmem:[#allocation9 + $0x60c] ss:$16 sps:$4 sm:$0xff]  }
 0x543   :  { %10131 = vmatpush1.bf16.msra.mxu1 %v12592_v36  ;;  %9920 = vmatprep.subr.bf16.mxu0 %v12597_v61  ;;  %v12818_v36 = vld [vmem:[#allocation7] sm:$0xff] }
 0x544   :  { %10132 = vmatprep.subr.bf16.mxu1 %v12600_v33  ;;  %v4773_v61 = vrot.slane %v12818_v36, %v682_v7  ;;  %v4781_v33 = vrot.slane %v12818_v36, %v690_v50 }
 0x546   :  { %9921 = vmatpush1.bf16.msra.mxu0 %v12595_v1  ;;  %v4777_v1 = vrot.slane %v12818_v36, %v686_v8 }
 0x547   :  { %10133 = vmatpush1.bf16.msra.mxu1 %v12598_v53  ;;  %9922 = vmatprep.subr.bf16.mxu0 %v12603_v47  ;;  %v4785_v53 = vrot.slane %v12818_v36, %v694_v9 }
 0x548   :  { %10134 = vmatprep.subr.bf16.mxu1 %v12606_v2 }
 0x54a   :  { %9923 = vmatpush1.bf16.msra.mxu0 %v12601_v3 }
 0x54b   :  { %10135 = vmatpush1.bf16.msra.mxu1 %v12604_v0  ;;  %9924 = vmatprep.subr.bf16.mxu0 %v12609_v37 }
 0x54c   :  { %10136 = vmatprep.subr.bf16.mxu1 %v12612_v10 }
 0x54e   :  { %9925 = vmatpush1.bf16.msra.mxu0 %v12607_v55 }
 0x54f   :  { %10137 = vmatpush1.bf16.msra.mxu1 %v12610_v42  ;;  %9926 = vmatprep.subr.bf16.mxu0 %v12615_v16 }
 0x550   :  { %10138 = vmatprep.subr.bf16.mxu1 %v12618_v17 }
 0x552   :  { %9927 = vmatpush1.bf16.msra.mxu0 %v12613_v63 }
 0x553   :  { %10139 = vmatpush1.bf16.msra.mxu1 %v12616_v28  ;;  %9928 = vmatprep.subr.bf16.mxu0 %v12621_v18 }
 0x554   :  { %10140 = vmatprep.subr.bf16.mxu1 %v12624_v5 }
 0x556   :  { %9929 = vmatpush1.bf16.msra.mxu0 %v12619_v34 }
 0x557   :  { %10141 = vmatpush1.bf16.msra.mxu1 %v12622_v19  ;;  %9930 = vmatprep.subr.bf16.mxu0 %v12627_v20 }
 0x558   :  { %10142 = vmatprep.subr.bf16.mxu1 %v12630_v49 }
 0x55a   :  { %9931 = vmatpush1.bf16.msra.mxu0 %v12625_v59 }
 0x55b   :  { %10143 = vmatpush1.bf16.msra.mxu1 %v12628_v25  ;;  %9932 = vmatprep.subr.bf16.mxu0 %v12633_v22 }
 0x55c   :  { %10144 = vmatprep.subr.bf16.mxu1 %v12636_v14 }
 0x55e   :  { %9933 = vmatpush1.bf16.msra.mxu0 %v12631_v23 }
 0x55f   :  { %10145 = vmatpush1.bf16.msra.mxu1 %v12634_v27  ;;  %9934 = vmatprep.subr.bf16.mxu0 %v12639_v52  ;;  %v12673_v27 = vld [vmem:[#allocation9 + $0x600] ss:$16 sps:$4 sm:$0xff]   ;;  %v12676_v52 = vld [vmem:[#allocation9 + $0x608] ss:$16 sps:$4 sm:$0xff]  }
 0x560   :  { %10146 = vmatprep.subr.bf16.mxu1 %v12642_v62 }
 0x562   :  { %9935 = vmatpush1.bf16.msra.mxu0 %v12637_v24 }
 0x563   :  { %10147 = vmatpush1.bf16.msra.mxu1 %v12640_v30  ;;  %9936 = vmatprep.subr.bf16.mxu0 %v12645_v56 }
 0x564   :  { %10148 = vmatprep.subr.bf16.mxu1 %v12648_v41  ;;  %v12681_v41 = vld [vmem:[#allocation9 + $0x624] ss:$16 sps:$4 sm:$0xff]  }
 0x566   :  { %9937 = vmatpush1.bf16.msra.mxu0 %v12643_v4  ;;  %v12684_v4 = vld [vmem:[#allocation9 + $0x62c] ss:$16 sps:$4 sm:$0xff]  }
 0x567   :  { %10149 = vmatpush1.bf16.msra.mxu1 %v12646_v38  ;;  %9938 = vmatprep.subr.bf16.mxu0 %v12651_v60 }
 0x568   :  { %10150 = vmatprep.subr.bf16.mxu1 %v12654_v21 }
 0x56a   :  { %9939 = vmatpush1.bf16.msra.mxu0 %v12649_v46 }
 0x56b   :  { %10151 = vmatpush1.bf16.msra.mxu1 %v12652_v39  ;;  %9940 = vmatprep.subr.bf16.mxu0 %v12657_v29 }
 0x56c   :  { %10152 = vmatprep.subr.bf16.mxu1 %v12660_v45 }
 0x56e   :  { %9941 = vmatpush1.bf16.msra.mxu0 %v12655_v15 }
 0x56f   :  { %10153 = vmatpush1.bf16.msra.mxu1 %v12658_v44  ;;  %9942 = vmatprep.subr.bf16.mxu0 %v12663_v57 }
 0x570   :  { %10154 = vmatprep.subr.bf16.mxu1 %v12666_v13 }
 0x572   :  { %9943 = vmatpush1.bf16.msra.mxu0 %v12661_v11  ;;  %v12679_v11 = vld [vmem:[#allocation9 + $0x620] ss:$16 sps:$4 sm:$0xff]  }
 0x573   :  { %10155 = vmatpush1.bf16.msra.mxu1 %v12664_v12  ;;  %9944 = vmatprep.subr.bf16.mxu0 %v12669_v35  ;;  %v12682_v12 = vld [vmem:[#allocation9 + $0x628] ss:$16 sps:$4 sm:$0xff]  }
 0x574   :  { %10156 = vmatprep.subr.bf16.mxu1 %v12672_v32 }
 0x576   :  { %9945 = vmatpush1.bf16.msra.mxu0 %v12667_v54 }
 0x577   :  { %10157 = vmatpush1.bf16.msra.mxu1 %v12670_v48  ;;  %9967 = vmatprep.subr.bf16.mxu0 %v12675_v6  ;;  %v12687_v48 = vld [vmem:[#allocation9 + $0x644] ss:$16 sps:$4 sm:$0xff]   ;;  %v12690_v6 = vld [vmem:[#allocation9 + $0x64c] ss:$16 sps:$4 sm:$0xff]  }
 0x578   :  { %10179 = vmatprep.subr.bf16.mxu1 %v12678_v51 }
 0x589   :  { %v7971_v47 = vpop.f32.mrb[24].mxu0 }
 0x58a   :  { %v12099_v2 = vadd.f32 %v7971_v47, %v4773_v61  ;;  %v8183_v3 = vpop.f32.mrb[24].mxu1  ;;  %v7973_v0 = vpop.f32.mrb[25].mxu0 }
 0x58b   :  { %v12107_v37 = vadd.f32 %v8183_v3, %v4781_v33  ;;  %v12100_v10 = vadd.f32 %v7973_v0, %v4777_v1  ;;  %v8185_v55 = vpop.f32.mrb[25].mxu1  ;;  %v7975_v42 = vpop.f32.mrb[26].mxu0 }
 0x58c   :  { %v12108_v16 = vadd.f32 %v8185_v55, %v4785_v53  ;;  %v12101_v17 = vadd.f32 %v7975_v42, %v4773_v61  ;;  %v8187_v7 = vpop.f32.mrb[26].mxu1  ;;  %v7977_v63 = vpop.f32.mrb[27].mxu0  ;;  %v8206_v5 = vmax.f32 %v12099_v2, 0.0  ;;  %v12696_v42 = vld [vmem:[#allocation9 + $0x66c] ss:$16 sps:$4 sm:$0xff]  }
 0x58d   :  { %v12109_v28 = vadd.f32 %v8187_v7, %v4781_v33  ;;  %v12102_v50 = vadd.f32 %v7977_v63, %v4777_v1  ;;  %v8189_v18 = vpop.f32.mrb[27].mxu1  ;;  %v8208_v26 = vmax.f32 %v12107_v37, 0.0  ;;  %v8207_v9 = vmax.f32 %v12100_v10, 0.0  ;;  %v12685_v37 = vld [vmem:[#allocation9 + $0x640] ss:$16 sps:$4 sm:$0xff]  }
 0x58e   :  { %v8214_v8 = vmax.f32 %v12101_v17, 0.0  ;;  %v12110_v34 = vadd.f32 %v8189_v18, %v4785_v53  ;;  %v8209_v49 = vmax.f32 %v12108_v16, 0.0  ;;  %v12688_v10 = vld [vmem:[#allocation9 + $0x648] ss:$16 sps:$4 sm:$0xff]   ;;  %v12691_v16 = vld [vmem:[#allocation9 + $0x660] ss:$16 sps:$4 sm:$0xff]  }
 0x58f   :  { %v8216_v19 = vmax.f32 %v12109_v28, 0.0  ;;  %v8215_v20 = vmax.f32 %v12102_v50, 0.0  ;;  %v12694_v17 = vld [vmem:[#allocation9 + $0x668] ss:$16 sps:$4 sm:$0xff]   ;;  %v12699_v7 = vld [vmem:[#allocation9 + $0x684] ss:$16 sps:$4 sm:$0xff]  }
 0x590   :  { %v8238_v59 = vpack.c.bf16 %v8214_v8, %v8206_v5  ;;  %v8217_v25 = vmax.f32 %v12110_v34, 0.0  ;;  %v12702_v63 = vld [vmem:[#allocation9 + $0x68c] ss:$16 sps:$4 sm:$0xff]   ;;  %v12697_v28 = vld [vmem:[#allocation9 + $0x680] ss:$16 sps:$4 sm:$0xff]  }
 0x591   :  { %v13635_v22 = vpack.c.bf16 %v8216_v19, %v8208_v26  ;;  %v8239_v14 = vpack.c.bf16 %v8215_v20, %v8207_v9  ;;  %v7981_v23 = vpop.f32.mrb[28].mxu0  ;;  %v12700_v50 = vld [vmem:[#allocation9 + $0x688] ss:$16 sps:$4 sm:$0xff]   ;;  %v12705_v18 = vld [vmem:[#allocation9 + $0x6a4] ss:$16 sps:$4 sm:$0xff]  }
 0x592   :  { %v8241_v62 = vpack.c.bf16 %v8217_v25, %v8209_v49  ;;  %v12103_v24 = vadd.f32 %v7981_v23, %v4773_v61  ;;  %v8193_v30 = vpop.f32.mrb[28].mxu1  ;;  %v7983_v56 = vpop.f32.mrb[29].mxu0  ;;  %v12708_v5 = vld [vmem:[#allocation9 + $0x6ac] ss:$16 sps:$4 sm:$0xff]   ;;  %v12703_v8 = vld [vmem:[#allocation9 + $0x6a0] ss:$16 sps:$4 sm:$0xff]  }
 0x593   :  { %v12111_v38 = vadd.f32 %v8193_v30, %v4781_v33  ;;  %v12104_v60 = vadd.f32 %v7983_v56, %v4777_v1  ;;  %v8195_v21 = vpop.f32.mrb[29].mxu1  ;;  %v7985_v46 = vpop.f32.mrb[30].mxu0  ;;  %9946 = vmatprep.mubr.bf16.mxu0 %v8239_v14  ;;  %10158 = vmatprep.mubr.bf16.mxu1 %v8239_v14  ;;  %v12706_v34 = vld [vmem:[#allocation9 + $0x6a8] ss:$16 sps:$4 sm:$0xff]   ;;  %v12711_v26 = vld [vmem:[#allocation9 + $0x6c4] ss:$16 sps:$4 sm:$0xff]  }
 0x594   :  { %v12112_v39 = vadd.f32 %v8195_v21, %v4785_v53  ;;  %v12105_v29 = vadd.f32 %v7985_v46, %v4773_v61  ;;  %v8197_v45 = vpop.f32.mrb[30].mxu1  ;;  %v7987_v15 = vpop.f32.mrb[31].mxu0  ;;  %9947 = vmatmul.mubr.bf16.vlgmr.msra.gmra.mrb[32].mxu0 %v8238_v59  ;;  %10159 = vmatmul.mubr.bf16.vlgmr.msra.gmra.mrb[32].mxu1 %v8238_v59  ;;  %v8222_v35 = vmax.f32 %v12103_v24, 0.0  ;;  %v12714_v9 = vld [vmem:[#allocation9 + $0x6cc] ss:$16 sps:$4 sm:$0xff]  }
 0x595   :  { %v12113_v44 = vadd.f32 %v8197_v45, %v4781_v33  ;;  %v12106_v57 = vadd.f32 %v7987_v15, %v4777_v1  ;;  %v8199_v13 = vpop.f32.mrb[31].mxu1  ;;  %9968 = vmatpush1.bf16.msra.mxu0 %v12673_v27  ;;  %10180 = vmatpush1.bf16.msra.mxu1 %v12676_v52  ;;  %v8224_v51 = vmax.f32 %v12111_v38, 0.0  ;;  %v8223_v36 = vmax.f32 %v12104_v60, 0.0  ;;  %v12709_v19 = vld [vmem:[#allocation9 + $0x6c0] ss:$16 sps:$4 sm:$0xff]  }
 0x596   :  { %v8230_v32 = vmax.f32 %v12105_v29, 0.0  ;;  %v12114_v54 = vadd.f32 %v8199_v13, %v4785_v53  ;;  %9969 = vmatprep.subr.bf16.mxu0 %v12681_v41  ;;  %10181 = vmatprep.subr.bf16.mxu1 %v12684_v4  ;;  %v8225_v2 = vmax.f32 %v12112_v39, 0.0  ;;  %v12693_v53 = vld [vmem:[#allocation9 + $0x664] ss:$16 sps:$4 sm:$0xff]   ;;  %v12712_v20 = vld [vmem:[#allocation9 + $0x6c8] ss:$16 sps:$4 sm:$0xff]  }
 0x597   :  { %v8232_v61 = vmax.f32 %v12113_v44, 0.0  ;;  %v8231_v47 = vmax.f32 %v12106_v57, 0.0  ;;  %v12717_v49 = vld [vmem:[#allocation9 + $0x6e4] ss:$16 sps:$4 sm:$0xff]   ;;  %v12720_v59 = vld [vmem:[#allocation9 + $0x6ec] ss:$16 sps:$4 sm:$0xff]  }
 0x598   :  { %v8246_v3 = vpack.c.bf16 %v8230_v32, %v8222_v35  ;;  %v8233_v33 = vmax.f32 %v12114_v54, 0.0  ;;  %v12715_v25 = vld [vmem:[#allocation9 + $0x6e0] ss:$16 sps:$4 sm:$0xff]   ;;  %v12718_v14 = vld [vmem:[#allocation9 + $0x6e8] ss:$16 sps:$4 sm:$0xff]  }
 0x599   :  { %v13637_v1 = vpack.c.bf16 %v8232_v61, %v8224_v51  ;;  %v8247_v0 = vpack.c.bf16 %v8231_v47, %v8223_v36  ;;  %9970 = vmatpush1.bf16.msra.mxu0 %v12679_v11  ;;  %10182 = vmatpush1.bf16.msra.mxu1 %v12682_v12  ;;  %v12723_v23 = vld [vmem:[#allocation9 + $0x704] ss:$16 sps:$4 sm:$0xff]   ;;  %v12726_v27 = vld [vmem:[#allocation9 + $0x70c] ss:$16 sps:$4 sm:$0xff]   ;;  %v12721_v52 = vld [vmem:[#allocation9 + $0x700] ss:$16 sps:$4 sm:$0xff]  }
 0x59a   :  { %v13639_v55 = vpack.c.bf16 %v8233_v33, %v8225_v2  ;;  %9971 = vmatprep.subr.bf16.mxu0 %v12687_v48  ;;  %10183 = vmatprep.subr.bf16.mxu1 %v12690_v6  ;;  %v12729_v24 = vld [vmem:[#allocation9 + $0x724] ss:$16 sps:$4 sm:$0xff]   ;;  %v12732_v30 = vld [vmem:[#allocation9 + $0x72c] ss:$16 sps:$4 sm:$0xff]   ;;  %v12727_v56 = vld [vmem:[#allocation9 + $0x720] ss:$16 sps:$4 sm:$0xff]  }
 0x59b   :  { %9956 = vmatprep.mubr.bf16.mxu0 %v8247_v0  ;;  %10168 = vmatprep.mubr.bf16.mxu1 %v8247_v0  ;;  %v12730_v41 = vld [vmem:[#allocation9 + $0x728] ss:$16 sps:$4 sm:$0xff]   ;;  %v12735_v4 = vld [vmem:[#allocation9 + $0x744] ss:$16 sps:$4 sm:$0xff]   ;;  %v12738_v38 = vld [vmem:[#allocation9 + $0x74c] ss:$16 sps:$4 sm:$0xff]  }
 0x59c   :  { %9957 = vmatmul.mubr.bf16.gmra.mrb[36].mxu0 %v8246_v3  ;;  %10169 = vmatmul.mubr.bf16.gmra.mrb[36].mxu1 %v8246_v3  ;;  %v12733_v60 = vld [vmem:[#allocation9 + $0x740] ss:$16 sps:$4 sm:$0xff]   ;;  %v12736_v21 = vld [vmem:[#allocation9 + $0x748] ss:$16 sps:$4 sm:$0xff]   ;;  %v12741_v46 = vld [vmem:[#allocation9 + $0x764] ss:$16 sps:$4 sm:$0xff]  }
 0x59d   :  { %9972 = vmatpush1.bf16.msra.mxu0 %v12685_v37  ;;  %10184 = vmatpush1.bf16.msra.mxu1 %v12688_v10  ;;  %v12744_v39 = vld [vmem:[#allocation9 + $0x76c] ss:$16 sps:$4 sm:$0xff]   ;;  %v12739_v29 = vld [vmem:[#allocation9 + $0x760] ss:$16 sps:$4 sm:$0xff]   ;;  %v12742_v45 = vld [vmem:[#allocation9 + $0x768] ss:$16 sps:$4 sm:$0xff]  }
 0x59e   :  { %9999 = vmatprep.mubr.bf16.mxu0 %v8241_v62  ;;  %10211 = vmatprep.mubr.bf16.mxu1 %v8241_v62  ;;  %v12724_v62 = vld [vmem:[#allocation9 + $0x708] ss:$16 sps:$4 sm:$0xff]   ;;  %v12747_v15 = vld [vmem:[#allocation9 + $0x784] ss:$16 sps:$4 sm:$0xff]   ;;  %v12750_v44 = vld [vmem:[#allocation9 + $0x78c] ss:$16 sps:$4 sm:$0xff]  }
 0x59f   :  { %9973 = vmatprep.subr.bf16.mxu0 %v12693_v53  ;;  %10185 = vmatprep.subr.bf16.mxu1 %v12696_v42  ;;  %v12745_v57 = vld [vmem:[#allocation9 + $0x780] ss:$16 sps:$4 sm:$0xff]   ;;  %v12748_v13 = vld [vmem:[#allocation9 + $0x788] ss:$16 sps:$4 sm:$0xff]   ;;  %v12753_v11 = vld [vmem:[#allocation9 + $0x7a4] ss:$16 sps:$4 sm:$0xff]  }
 0x5a0   :  { %v12756_v12 = vld [vmem:[#allocation9 + $0x7ac] ss:$16 sps:$4 sm:$0xff]   ;;  %v12751_v35 = vld [vmem:[#allocation9 + $0x7a0] ss:$16 sps:$4 sm:$0xff]   ;;  %v12754_v32 = vld [vmem:[#allocation9 + $0x7a8] ss:$16 sps:$4 sm:$0xff]  }
 0x5a1   :  { %9974 = vmatpush1.bf16.msra.mxu0 %v12691_v16  ;;  %10186 = vmatpush1.bf16.msra.mxu1 %v12694_v17  ;;  %v12759_v54 = vld [vmem:[#allocation9 + $0x7c4] ss:$16 sps:$4 sm:$0xff]   ;;  %v12762_v48 = vld [vmem:[#allocation9 + $0x7cc] ss:$16 sps:$4 sm:$0xff]   ;;  %v12757_v6 = vld [vmem:[#allocation9 + $0x7c0] ss:$16 sps:$4 sm:$0xff]  }
 0x5a2   :  { %9975 = vmatprep.subr.bf16.mxu0 %v12699_v7  ;;  %10187 = vmatprep.subr.bf16.mxu1 %v12702_v63  ;;  %v12760_v51 = vld [vmem:[#allocation9 + $0x7c8] ss:$16 sps:$4 sm:$0xff]   ;;  %v12765_v36 = vld [vmem:[#allocation9 + $0x7e4] ss:$16 sps:$4 sm:$0xff]   ;;  %v12768_v61 = vld [vmem:[#allocation9 + $0x7ec] ss:$16 sps:$4 sm:$0xff]  }
 0x5a3   :  { %v12763_v47 = vld [vmem:[#allocation9 + $0x7e0] ss:$16 sps:$4 sm:$0xff]   ;;  %v12766_v2 = vld [vmem:[#allocation9 + $0x7e8] ss:$16 sps:$4 sm:$0xff]  }
 0x5a4   :  { %v12769_v3 = vld [vmem:[#allocation12 + $0x40] sm:$0xff]   ;;  %v12773_v10 = vld [vmem:[#allocation12 + $0x48] sm:$0xff]   ;;  %v12777_v17 = vld [vmem:[#allocation12 + $0x50] sm:$0xff]  }
 0x5a5   :  { %9976 = vmatpush1.bf16.msra.mxu0 %v12697_v28  ;;  %10188 = vmatpush1.bf16.msra.mxu1 %v12700_v50  ;;  %v12770_v33 = vld [vmem:[#allocation12 + $0xc0] sm:$0xff]   ;;  %v12774_v53 = vld [vmem:[#allocation12 + $0xc8] sm:$0xff]   ;;  %v12778_v7 = vld [vmem:[#allocation12 + $0xd0] sm:$0xff]  }
 0x5a6   :  { %9977 = vmatprep.subr.bf16.mxu0 %v12705_v18  ;;  %10189 = vmatprep.subr.bf16.mxu1 %v12708_v5  ;;  %v12771_v0 = vld [vmem:[#allocation12] sm:$0xff]   ;;  %v12775_v42 = vld [vmem:[#allocation12 + $0x8] sm:$0xff]   ;;  %v12779_v63 = vld [vmem:[#allocation12 + $0x10] sm:$0xff]  }
 0x5a7   :  { %v12772_v37 = vld [vmem:[#allocation12 + $0x80] sm:$0xff]   ;;  %v12776_v16 = vld [vmem:[#allocation12 + $0x88] sm:$0xff]   ;;  %v12780_v28 = vld [vmem:[#allocation12 + $0x90] sm:$0xff]  }
 0x5a8   :  { %v12781_v50 = vld [vmem:[#allocation12 + $0x58] sm:$0xff]   ;;  %v12785_v5 = vld [vmem:[#allocation12 + $0x60] sm:$0xff]  }
 0x5a9   :  { %9978 = vmatpush1.bf16.msra.mxu0 %v12703_v8  ;;  %10190 = vmatpush1.bf16.msra.mxu1 %v12706_v34  ;;  %v12784_v18 = vld [vmem:[#allocation12 + $0x98] sm:$0xff]   ;;  %v12786_v8 = vld [vmem:[#allocation12 + $0xe0] sm:$0xff]  }
 0x5aa   :  { %9979 = vmatprep.subr.bf16.mxu0 %v12711_v26  ;;  %10191 = vmatprep.subr.bf16.mxu1 %v12714_v9  ;;  %v12787_v34 = vld [vmem:[#allocation12 + $0x20] sm:$0xff]   ;;  %v12789_v9 = vld [vmem:[#allocation12 + $0x68] sm:$0xff]  }
 0x5ab   :  { %v12788_v26 = vld [vmem:[#allocation12 + $0xa0] sm:$0xff]  }
 0x5ad   :  { %9980 = vmatpush1.bf16.msra.mxu0 %v12709_v19  ;;  %10192 = vmatpush1.bf16.msra.mxu1 %v12712_v20  ;;  %v12790_v19 = vld [vmem:[#allocation12 + $0xe8] sm:$0xff]  }
 0x5ae   :  { %9981 = vmatprep.subr.bf16.mxu0 %v12717_v49  ;;  %10193 = vmatprep.subr.bf16.mxu1 %v12720_v59  ;;  %v12792_v20 = vld [vmem:[#allocation12 + $0xa8] sm:$0xff]   ;;  %v12793_v49 = vld [vmem:[#allocation12 + $0x70] sm:$0xff]  }
 0x5af   :  { %v12794_v59 = vld [vmem:[#allocation12 + $0xf0] sm:$0xff]  }
 0x5b1   :  { %9982 = vmatpush1.bf16.msra.mxu0 %v12715_v25  ;;  %10194 = vmatpush1.bf16.msra.mxu1 %v12718_v14  ;;  %v12795_v25 = vld [vmem:[#allocation12 + $0x30] sm:$0xff]  }
 0x5b2   :  { %9983 = vmatprep.subr.bf16.mxu0 %v12723_v23  ;;  %10195 = vmatprep.subr.bf16.mxu1 %v12726_v27  ;;  %v12796_v14 = vld [vmem:[#allocation12 + $0xb0] sm:$0xff]   ;;  %v12797_v23 = vld [vmem:[#allocation12 + $0x78] sm:$0xff]  }
 0x5b3   :  { %v12798_v27 = vld [vmem:[#allocation12 + $0xf8] sm:$0xff]  }
 0x5b5   :  { %9984 = vmatpush1.bf16.msra.mxu0 %v12721_v52  ;;  %10196 = vmatpush1.bf16.msra.mxu1 %v12724_v62  ;;  %v12799_v52 = vld [vmem:[#allocation12 + $0x38] sm:$0xff]  }
 0x5b6   :  { %9985 = vmatprep.subr.bf16.mxu0 %v12729_v24  ;;  %10197 = vmatprep.subr.bf16.mxu1 %v12732_v30  ;;  %v12800_v62 = vld [vmem:[#allocation12 + $0xb8] sm:$0xff]  }
 0x5b7   :  { %v8506_v24 = vld [vmem:[#allocation10] sm:$0xf] }
 0x5b8   :  { %v8511_v30 = vrot.slane %v8506_v24, %v13351_v31 }
 0x5b9   :  { %9986 = vmatpush1.bf16.msra.mxu0 %v12727_v56  ;;  %10198 = vmatpush1.bf16.msra.mxu1 %v12730_v41  ;;  %v8519_v56 = vrot.slane %v8506_v24, %v13355_v58  ;;  %v8515_v41 = vrot.slane %v8506_v24, %v13358_v40 }
 0x5ba   :  { %9987 = vmatprep.subr.bf16.mxu0 %v12735_v4  ;;  %10199 = vmatprep.subr.bf16.mxu1 %v12738_v38  ;;  %v8523_v4 = vrot.slane %v8506_v24, %v13361_v43 }
 0x5bd   :  { %9988 = vmatpush1.bf16.msra.mxu0 %v12733_v60  ;;  %10200 = vmatpush1.bf16.msra.mxu1 %v12736_v21 }
 0x5be   :  { %9989 = vmatprep.subr.bf16.mxu0 %v12741_v46  ;;  %10201 = vmatprep.subr.bf16.mxu1 %v12744_v39 }
 0x5c1   :  { %9990 = vmatpush1.bf16.msra.mxu0 %v12739_v29  ;;  %10202 = vmatpush1.bf16.msra.mxu1 %v12742_v45 }
 0x5c2   :  { %9991 = vmatprep.subr.bf16.mxu0 %v12747_v15  ;;  %10203 = vmatprep.subr.bf16.mxu1 %v12750_v44 }
 0x5c5   :  { %9992 = vmatpush1.bf16.msra.mxu0 %v12745_v57  ;;  %10204 = vmatpush1.bf16.msra.mxu1 %v12748_v13 }
 0x5c6   :  { %9993 = vmatprep.subr.bf16.mxu0 %v12753_v11  ;;  %10205 = vmatprep.subr.bf16.mxu1 %v12756_v12 }
 0x5c9   :  { %9994 = vmatpush1.bf16.msra.mxu0 %v12751_v35  ;;  %10206 = vmatpush1.bf16.msra.mxu1 %v12754_v32 }
 0x5ca   :  { %9995 = vmatprep.subr.bf16.mxu0 %v12759_v54  ;;  %10207 = vmatprep.subr.bf16.mxu1 %v12762_v48 }
 0x5cd   :  { %9996 = vmatpush1.bf16.msra.mxu0 %v12757_v6  ;;  %10208 = vmatpush1.bf16.msra.mxu1 %v12760_v51 }
 0x5ce   :  { %9997 = vmatprep.subr.bf16.mxu0 %v12765_v36  ;;  %10209 = vmatprep.subr.bf16.mxu1 %v12768_v61 }
 0x5d1   :  { %9998 = vmatpush1.bf16.msra.mxu0 %v12763_v47  ;;  %10210 = vmatpush1.bf16.msra.mxu1 %v12766_v2 }
 0x5d2   :  { %11995 = vmatprep.subr.bf16.mxu0 %v12769_v3  ;;  %12023 = vmatprep.subr.bf16.mxu1 %v12770_v33 }
 0x5d4   :  { %10000 = vmatmul.mubr.bf16.vlgmr.msra.gmra.mrb[32].mxu0 %v13635_v22  ;;  %10212 = vmatmul.mubr.bf16.vlgmr.msra.gmra.mrb[32].mxu1 %v13635_v22  ;;  %v12782_v22 = vld [vmem:[#allocation12 + $0xd8] sm:$0xff]  }
 0x5d5   :  { %10009 = vmatprep.mubr.bf16.mxu0 %v13639_v55  ;;  %10221 = vmatprep.mubr.bf16.mxu1 %v13639_v55  ;;  %v12783_v55 = vld [vmem:[#allocation12 + $0x18] sm:$0xff]  }
 0x5d6   :  { %11996 = vmatpush3.bf16.msra.mxu0 %v12771_v0  ;;  %12024 = vmatpush3.bf16.msra.mxu1 %v12772_v37 }
 0x5d7   :  { %11997 = vmatprep.subr.bf16.mxu0 %v12773_v10  ;;  %12025 = vmatprep.subr.bf16.mxu1 %v12774_v53 }
 0x5da   :  { %11998 = vmatpush3.bf16.msra.mxu0 %v12775_v42  ;;  %12026 = vmatpush3.bf16.msra.mxu1 %v12776_v16 }
 0x5db   :  { %11999 = vmatprep.subr.bf16.mxu0 %v12777_v17  ;;  %12027 = vmatprep.subr.bf16.mxu1 %v12778_v7 }
 0x5dc   :  { %10010 = vmatmul.mubr.bf16.gmra.mrb[36].mxu0 %v13637_v1  ;;  %10222 = vmatmul.mubr.bf16.gmra.mrb[36].mxu1 %v13637_v1  ;;  %v12791_v1 = vld [vmem:[#allocation12 + $0x28] sm:$0xff]  }
 0x5de   :  { %12000 = vmatpush3.bf16.msra.mxu0 %v12779_v63  ;;  %12028 = vmatpush3.bf16.msra.mxu1 %v12780_v28 }
 0x5df   :  { %12001 = vmatprep.subr.bf16.mxu0 %v12781_v50  ;;  %12029 = vmatprep.subr.bf16.mxu1 %v12782_v22 }
 0x5e2   :  { %12002 = vmatpush3.bf16.msra.mxu0 %v12783_v55  ;;  %12030 = vmatpush3.bf16.msra.mxu1 %v12784_v18 }
 0x5e3   :  { %12003 = vmatprep.subr.bf16.mxu0 %v12785_v5  ;;  %12031 = vmatprep.subr.bf16.mxu1 %v12786_v8 }
 0x5e6   :  { %12004 = vmatpush3.bf16.msra.mxu0 %v12787_v34  ;;  %12032 = vmatpush3.bf16.msra.mxu1 %v12788_v26 }
 0x5e7   :  { %12005 = vmatprep.subr.bf16.mxu0 %v12789_v9  ;;  %12033 = vmatprep.subr.bf16.mxu1 %v12790_v19 }
 0x5ea   :  { %12006 = vmatpush3.bf16.msra.mxu0 %v12791_v1  ;;  %12034 = vmatpush3.bf16.msra.mxu1 %v12792_v20 }
 0x5eb   :  { %12007 = vmatprep.subr.bf16.mxu0 %v12793_v49  ;;  %12035 = vmatprep.subr.bf16.mxu1 %v12794_v59 }
 0x5ee   :  { %12008 = vmatpush3.bf16.msra.mxu0 %v12795_v25  ;;  %12036 = vmatpush3.bf16.msra.mxu1 %v12796_v14 }
 0x5ef   :  { %12009 = vmatprep.subr.bf16.mxu0 %v12797_v23  ;;  %12037 = vmatprep.subr.bf16.mxu1 %v12798_v27 }
 0x5f2   :  { %12010 = vmatpush3.bf16.msra.mxu0 %v12799_v52  ;;  %12038 = vmatpush3.bf16.msra.mxu1 %v12800_v62  ;;  %v11962_v62 = vld [vmem:[#allocation13] ss:$0 sm:$0xff] }
 0x6a7   :  { %v10001_v38 = vpop.f32.mrb[32].mxu0  ;;  %v10213_v60 = vpop.f32.mrb[32].mxu1 }
 0x6a8   :  { %v12115_v21 = vadd.f32 %v10001_v38, %v8511_v30  ;;  %v12123_v46 = vadd.f32 %v10213_v60, %v8519_v56  ;;  %v10003_v39 = vpop.f32.mrb[33].mxu0  ;;  %v10215_v29 = vpop.f32.mrb[33].mxu1 }
 0x6a9   :  { %v12116_v45 = vadd.f32 %v10003_v39, %v8515_v41  ;;  %v12124_v15 = vadd.f32 %v10215_v29, %v8523_v4  ;;  %v10005_v44 = vpop.f32.mrb[34].mxu0  ;;  %v10217_v57 = vpop.f32.mrb[34].mxu1 }
 0x6aa   :  { %v12117_v13 = vadd.f32 %v10005_v44, %v8511_v30  ;;  %v12125_v11 = vadd.f32 %v10217_v57, %v8519_v56  ;;  %v10007_v12 = vpop.f32.mrb[35].mxu0  ;;  %v10219_v31 = vpop.f32.mrb[35].mxu1  ;;  %v10232_v32 = vmax.f32 %v12115_v21, 0.0  ;;  %v10234_v40 = vmax.f32 %v12123_v46, 0.0 }
 0x6ab   :  { %v12118_v35 = vadd.f32 %v10007_v12, %v8515_v41  ;;  %v12126_v58 = vadd.f32 %v10219_v31, %v8523_v4  ;;  %v10233_v48 = vmax.f32 %v12116_v45, 0.0  ;;  %v10235_v6 = vmax.f32 %v12124_v15, 0.0 }
 0x6ac   :  { %v10236_v54 = vmax.f32 %v12117_v13, 0.0  ;;  %v10238_v43 = vmax.f32 %v12125_v11, 0.0 }
 0x6ad   :  { %v10237_v51 = vmax.f32 %v12118_v35, 0.0  ;;  %v10239_v36 = vmax.f32 %v12126_v58, 0.0 }
 0x6ae   :  { %v10248_v61 = vpack.c.bf16 %v10236_v54, %v10232_v32  ;;  %v10250_v47 = vpack.c.bf16 %v10238_v43, %v10234_v40 }
 0x6af   :  { %v10249_v2 = vpack.c.bf16 %v10237_v51, %v10233_v48  ;;  %v10251_v3 = vpack.c.bf16 %v10239_v36, %v10235_v6  ;;  %v10011_v33 = vpop.f32.mrb[36].mxu0  ;;  %v10223_v0 = vpop.f32.mrb[36].mxu1 }
 0x6b0   :  { %v12119_v37 = vadd.f32 %v10011_v33, %v8511_v30  ;;  %v12127_v10 = vadd.f32 %v10223_v0, %v8519_v56  ;;  %v10013_v53 = vpop.f32.mrb[37].mxu0  ;;  %v10225_v42 = vpop.f32.mrb[37].mxu1 }
 0x6b1   :  { %v12120_v16 = vadd.f32 %v10013_v53, %v8515_v41  ;;  %v12128_v17 = vadd.f32 %v10225_v42, %v8523_v4  ;;  %v10015_v7 = vpop.f32.mrb[38].mxu0  ;;  %v10227_v63 = vpop.f32.mrb[38].mxu1  ;;  %10551 = vmatprep.mubr.bf16.mxu0 %v10249_v2  ;;  %10600 = vmatprep.mubr.bf16.mxu1 %v10251_v3 }
 0x6b2   :  { %v12121_v28 = vadd.f32 %v10015_v7, %v8511_v30  ;;  %v12129_v50 = vadd.f32 %v10227_v63, %v8519_v56  ;;  %v10017_v22 = vpop.f32.mrb[39].mxu0  ;;  %v10229_v55 = vpop.f32.mrb[39].mxu1  ;;  %10552 = vmatmul.mubr.bf16.vlgmr.msra.gmra.mrb[40].mxu0 %v10248_v61  ;;  %10601 = vmatmul.mubr.bf16.vlgmr.msra.gmra.mrb[40].mxu1 %v10250_v47  ;;  %v10240_v8 = vmax.f32 %v12119_v37, 0.0  ;;  %v10242_v34 = vmax.f32 %v12127_v10, 0.0 }
 0x6b3   :  { %v12122_v18 = vadd.f32 %v10017_v22, %v8515_v41  ;;  %v12130_v5 = vadd.f32 %v10229_v55, %v8523_v4  ;;  %v10241_v19 = vmax.f32 %v12120_v16, 0.0  ;;  %v10243_v1 = vmax.f32 %v12128_v17, 0.0 }
 0x6b4   :  { %v10244_v26 = vmax.f32 %v12121_v28, 0.0  ;;  %v10246_v9 = vmax.f32 %v12129_v50, 0.0 }
 0x6b5   :  { %v10245_v20 = vmax.f32 %v12122_v18, 0.0  ;;  %v10247_v49 = vmax.f32 %v12130_v5, 0.0 }
 0x6b6   :  { %v10252_v59 = vpack.c.bf16 %v10244_v26, %v10240_v8  ;;  %v10254_v25 = vpack.c.bf16 %v10246_v9, %v10242_v34 }
 0x6b7   :  { %v10253_v14 = vpack.c.bf16 %v10245_v20, %v10241_v19  ;;  %v10255_v23 = vpack.c.bf16 %v10247_v49, %v10243_v1 }
 0x6b9   :  { %10559 = vmatprep.mubr.bf16.mxu0 %v10253_v14  ;;  %10608 = vmatprep.mubr.bf16.mxu1 %v10255_v23 }
 0x6ba   :  { %10560 = vmatmul.mubr.bf16.gmra.mrb[44].mxu0 %v10252_v59  ;;  %10609 = vmatmul.mubr.bf16.gmra.mrb[44].mxu1 %v10254_v25 }
 0x785   :  { %v12011_v27 = vpop.f32.mrb[40].mxu0  ;;  %v12039_v52 = vpop.f32.mrb[40].mxu1 }
 0x786   :  { %v12012_v24 = vpop.f32.mrb[41].mxu0  ;;  %v12040_v30 = vpop.f32.mrb[41].mxu1 }
 0x787   :  { %v12013_v56 = vadd.f32 %v12012_v24, %v12011_v27  ;;  %v12041_v41 = vadd.f32 %v12040_v30, %v12039_v52  ;;  %v12014_v4 = vpop.f32.mrb[42].mxu0  ;;  %v12042_v38 = vpop.f32.mrb[42].mxu1 }
 0x788   :  { %v12015_v60 = vpop.f32.mrb[43].mxu0  ;;  %v12043_v21 = vpop.f32.mrb[43].mxu1 }
 0x789   :  { %v10554_v46 = vadd.f32 %v12013_v56, %v11962_v62  ;;  %v12016_v39 = vadd.f32 %v12015_v60, %v12014_v4  ;;  %v12044_v29 = vadd.f32 %v12043_v21, %v12042_v38 }
 0x78b   :  { %v10557_v45 = vadd.f32 %v12016_v39, %v11962_v62  ;;  %v10603_v15 = vadd.f32 %v12041_v41, %v10554_v46 }
 0x78d   :  { %v12017_v44 = vpop.f32.mrb[44].mxu0  ;;  %v12045_v57 = vpop.f32.mrb[44].mxu1  ;;  %10617 = vmax.xlane.f32.xlu0 %v10603_v15  ;;  %v10606_v13 = vadd.f32 %v12044_v29, %v10557_v45 }
 0x78e   :  { %v12018_v11 = vpop.f32.mrb[45].mxu0  ;;  %v12046_v12 = vpop.f32.mrb[45].mxu1 }
 0x78f   :  { %v12019_v31 = vadd.f32 %v12018_v11, %v12017_v44  ;;  %v12047_v35 = vadd.f32 %v12046_v12, %v12045_v57  ;;  %v12020_v58 = vpop.f32.mrb[46].mxu0  ;;  %v12048_v32 = vpop.f32.mrb[46].mxu1 }
 0x790   :  { %v12021_v40 = vpop.f32.mrb[47].mxu0  ;;  %v12049_v54 = vpop.f32.mrb[47].mxu1 }
 0x791   :  { %v10562_v43 = vadd.f32 %v12019_v31, %v11962_v62  ;;  %v12022_v48 = vadd.f32 %v12021_v40, %v12020_v58  ;;  %v12050_v6 = vadd.f32 %v12049_v54, %v12048_v32  ;;  %10619 = vmax.xlane.f32.xlu0 %v10606_v13 }
 0x793   :  { %v10565_v51 = vadd.f32 %v12022_v48, %v11962_v62  ;;  %v10611_v36 = vadd.f32 %v12047_v35, %v10562_v43 }
 0x795   :  { %10621 = vmax.xlane.f32.xlu1 %v10611_v36  ;;  %v10614_v61 = vadd.f32 %v12050_v6, %v10565_v51 }
 0x799   :  { %10623 = vmax.xlane.f32.xlu1 %v10614_v61 }
 0x81a   :  { %v10618_v47 = vpop.xlane.xlu0 %10617 }
 0x81b   :  { %v10625_v2 = vsub.f32 %v10603_v15, %v10618_v47 }
 0x81d   :  { %v10629_v3 = vmul.f32 1.442695, %v10625_v2 }
 0x81e   :  { %v10620_v33 = vpop.xlane.xlu0 %10619 }
 0x81f   :  { %12801 = vpow2.f32 %v10629_v3  ;;  %v10626_v0 = vsub.f32 %v10606_v13, %v10620_v33 }
 0x821   :  { %v10631_v37 = vmul.f32 1.442695, %v10626_v0 }
 0x822   :  { %v10622_v10 = vpop.xlane.xlu1 %10621 }
 0x823   :  { %12803 = vpow2.f32 %v10631_v37  ;;  %v10627_v53 = vsub.f32 %v10611_v36, %v10622_v10 }
 0x825   :  { %v10633_v42 = vmul.f32 1.442695, %v10627_v53 }
 0x826   :  { %v10624_v16 = vpop.xlane.xlu1 %10623 }
 0x827   :  { %12805 = vpow2.f32 %v10633_v42  ;;  %v10628_v17 = vsub.f32 %v10614_v61, %v10624_v16 }
 0x829   :  { %v12802_v7 = vpop.eup %12801  ;;  %v10635_v63 = vmul.f32 1.442695, %v10628_v17 }
 0x82a   :  { %10637 = vadd.xlane.f32.xlu0 %v12802_v7 }
 0x82b   :  { %12807 = vpow2.f32 %v10635_v63 }
 0x82d   :  { %v12804_v28 = vpop.eup %12803 }
 0x82e   :  { %10639 = vadd.xlane.f32.xlu1 %v12804_v28 }
 0x831   :  { %v12806_v50 = vpop.eup %12805 }
 0x832   :  { %10641 = vadd.xlane.f32.xlu0 %v12806_v50 }
 0x835   :  { %v12808_v22 = vpop.eup %12807 }
 0x836   :  { %10643 = vadd.xlane.f32.xlu1 %v12808_v22 }
 0x8b7   :  { %v10638_v55 = vpop.xlane.xlu0 %10637 }
 0x8b8   :  { %12809 = vrcp.f32 %v10638_v55 }
 0x8bb   :  { %v10640_v18 = vpop.xlane.xlu1 %10639 }
 0x8bc   :  { %12811 = vrcp.f32 %v10640_v18 }
 0x8bf   :  { %v10642_v5 = vpop.xlane.xlu0 %10641 }
 0x8c0   :  { %12813 = vrcp.f32 %v10642_v5 }
 0x8c2   :  { %v12810_v8 = vpop.eup %12809 }
 0x8c3   :  { %v10649_v34 = vmul.f32 %v12810_v8, %v12802_v7  ;;  %v10644_v26 = vpop.xlane.xlu1 %10643 }
 0x8c4   :  { %12815 = vrcp.f32 %v10644_v26 }
 0x8c5   :  { %10653 = vst [vmem:[%s13672_s9] sm:$0xff] %v10649_v34 }
 0x8c6   :  { %v12812_v9 = vpop.eup %12811 }
 0x8c7   :  { %v10650_v19 = vmul.f32 %v12812_v9, %v12804_v28 }
 0x8c9   :  { %10654 = vst [vmem:[%s13672_s9 + $0x8] sm:$0xff] %v10650_v19 }
 0x8ca   :  { %v12814_v1 = vpop.eup %12813 }
 0x8cb   :  { %v10651_v20 = vmul.f32 %v12814_v1, %v12806_v50 }
 0x8cd   :  { %10655 = vst [vmem:[%s13672_s9 + $0x10] sm:$0xff] %v10651_v20 }
 0x8ce   :  { %v12816_v49 = vpop.eup %12815 }
 0x8cf   :  { %v10652_v59 = vmul.f32 %v12816_v49, %v12808_v22 }
 0x8d1   :  { %10656 = vst [vmem:[%s13672_s9 + $0x18] sm:$0xff] %v10652_v59 }
 0x8d2   :  { %10661 = vsyncpa [#allocation3], 1 }
 0x8d3   :  { %10662 = vsyncpa [#allocation5], 1 }
 0x8d4   :  { %10663 = vsyncpa [#allocation8], 1 }
 0x8d5   :  { %10664 = vsyncpa [#allocation11], 1 }
 0x8d6   :  { %10665 = vsyncpa [#allocation14], 1 }

</bundles_post_ra>
